<compile_context>
chip_gen: v6e
topology: v6e:2x2x1
jax: 0.10.0
libtpu: 0.0.40
codegen_flags: <defaults>
</compile_context>

<pallas_src>
import functools
import numpy as np

import jax
import jax.numpy as jnp
from jax.experimental import pallas as pl
from jax.experimental.pallas import tpu as pltpu


# -----------------------------------------------------------------------------
# Pallas kernels
# -----------------------------------------------------------------------------
def _ln(x, g, b):
    mu = jnp.mean(x, axis=-1, keepdims=True)
    xc = x - mu
    var = jnp.mean(xc * xc, axis=-1, keepdims=True)
    return (xc * jax.lax.rsqrt(var + 1e-5)) * g + b


def _linear_kernel(x_ref, w_ref, b_ref, o_ref):
    o_ref[...] = jnp.dot(x_ref[...], w_ref[...],
                         preferred_element_type=jnp.float32) + b_ref[...]


def _layernorm_kernel(x_ref, g_ref, b_ref, o_ref):
    o_ref[...] = _ln(x_ref[...], g_ref[...], b_ref[...])


def _ln_linear_kernel(x_ref, g_ref, beta_ref, w_ref, b_ref, o_ref):
    # Fused LayerNorm -> matmul (+bias).  LN runs on the VPU while the MXU
    # handles the matmul; saves one full activation HBM round-trip.
    y = _ln(x_ref[...], g_ref[...], beta_ref[...])
    o_ref[...] = jnp.dot(y, w_ref[...],
                         preferred_element_type=jnp.float32) + b_ref[...]


def _linear_ln_kernel(x_ref, w_ref, b_ref, g_ref, beta_ref, o_ref):
    # Fused matmul (+bias) -> LayerNorm (used by patch embedding).
    y = jnp.dot(x_ref[...], w_ref[...],
                preferred_element_type=jnp.float32) + b_ref[...]
    o_ref[...] = _ln(y, g_ref[...], beta_ref[...])


def _ln_mlp_kernel(x_ref, g_ref, beta_ref, w1_ref, b1_ref, w2_ref, b2_ref, o_ref):
    # Fused LayerNorm -> fc1 -> GELU -> fc2.
    y = _ln(x_ref[...], g_ref[...], beta_ref[...])
    h = jnp.dot(y, w1_ref[...], preferred_element_type=jnp.float32) + b1_ref[...]
    # TODO(synk): PyTorch nn.GELU uses the exact erf form; tanh approximation
    # is used here for a Mosaic-safe EUP lowering (small numerical delta).
    h = jax.nn.gelu(h, approximate=True)
    o_ref[...] = jnp.dot(h, w2_ref[...],
                         preferred_element_type=jnp.float32) + b2_ref[...]


def _window_attn_kernel(qkv_ref, bias_ref, o_ref, *, num_heads, head_dim, scale):
    """All windows + all heads in a single invocation.

    qkv_ref : (BW, N, 3C)  with 3C laid out as [q_h0..q_hH | k_h0.. | v_h0..]
    bias_ref: (nWb, nH, N, N) rel-pos bias (+ shift mask, already containing
              the -100 entries) -- added BEFORE the max-subtraction.
    o_ref   : (BW, N, C) attention output already merged over heads.
    """
    qkv = qkv_ref[...]
    bias = bias_ref[...]
    BW, N, C3 = qkv.shape
    C = C3 // 3
    nWb = bias.shape[0]
    Bb = BW // nWb

    for h in range(num_heads):                              # unrolled, nH <= 4
        lo = h * head_dim
        q = qkv[:, :, lo:lo + head_dim] * scale             # (BW, N, Dh)
        k = qkv[:, :, C + lo:C + lo + head_dim]
        v = qkv[:, :, 2 * C + lo:2 * C + lo + head_dim]

        attn = jnp.einsum('bnd,bmd->bnm', q, k,
                          preferred_element_type=jnp.float32)   # (BW, N, N)
        attn = (attn.reshape(Bb, nWb, N, N) + bias[:, h][None]).reshape(BW, N, N)
        attn = attn - jnp.max(attn, axis=-1, keepdims=True)
        p = jnp.exp(attn)
        p = p * pl.reciprocal(jnp.sum(p, axis=-1, keepdims=True), approx=True)

        o_ref[:, :, lo:lo + head_dim] = jnp.einsum(
            'bnm,bmd->bnd', p, v, preferred_element_type=jnp.float32)


# -----------------------------------------------------------------------------
# Row-tiled pallas_call wrappers (pipelined over the token dimension)
# -----------------------------------------------------------------------------
_TILE_ROWS = 256   # multiple of 8; small enough to stay well inside v7x VMEM


def _const_map(ndim):
    return lambda i: (0,) * ndim


def _row_tiled(kernel, x2, weights, out_cols, tile_rows=_TILE_ROWS):
    """Run `kernel` over row tiles of x2; weight operands stay resident."""
    rows, K = x2.shape
    tr = tile_rows if rows > tile_rows else rows
    prows = -(-rows // tr) * tr
    xp = jnp.pad(x2, ((0, prows - rows), (0, 0))) if prows != rows else x2
    out = pl.pallas_call(
        kernel,
        out_shape=jax.ShapeDtypeStruct((prows, out_cols), jnp.float32),
        grid=(prows // tr,),
        in_specs=[pl.BlockSpec((tr, K), lambda i: (i, 0))]
                 + [pl.BlockSpec(w.shape, _const_map(w.ndim)) for w in weights],
        out_specs=pl.BlockSpec((tr, out_cols), lambda i: (i, 0)),
        compiler_params=pltpu.CompilerParams(
            dimension_semantics=("parallel",)),
    )(xp, *weights)
    return out[:rows] if prows != rows else out


def linear(x, w, b):
    lead, K, N = x.shape[:-1], x.shape[-1], w.shape[-1]
    out = _row_tiled(_linear_kernel, x.reshape(-1, K), [w, b.reshape(1, N)], N)
    return out.reshape(*lead, N)


def layernorm(x, g, b):
    lead, C = x.shape[:-1], x.shape[-1]
    out = _row_tiled(_layernorm_kernel, x.reshape(-1, C),
                     [g.reshape(1, C), b.reshape(1, C)], C)
    return out.reshape(*lead, C)


def ln_linear(x, g, beta, w, b):
    lead, K, N = x.shape[:-1], x.shape[-1], w.shape[-1]
    out = _row_tiled(_ln_linear_kernel, x.reshape(-1, K),
                     [g.reshape(1, K), beta.reshape(1, K), w, b.reshape(1, N)], N)
    return out.reshape(*lead, N)


def linear_ln(x, w, b, g, beta):
    lead, K, N = x.shape[:-1], x.shape[-1], w.shape[-1]
    out = _row_tiled(_linear_ln_kernel, x.reshape(-1, K),
                     [w, b.reshape(1, N), g.reshape(1, N), beta.reshape(1, N)], N)
    return out.reshape(*lead, N)


def ln_mlp(x, g, beta, w1, b1, w2, b2):
    lead, C, hidden = x.shape[:-1], x.shape[-1], w1.shape[-1]
    out = _row_tiled(_ln_mlp_kernel, x.reshape(-1, C),
                     [g.reshape(1, C), beta.reshape(1, C),
                      w1, b1.reshape(1, hidden), w2, b2.reshape(1, C)], C)
    return out.reshape(*lead, C)


def window_attention(qkv, bias, num_heads, head_dim, scale):
    """qkv: (BW, N, 3C), bias: (nWb, nH, N, N) -> (BW, N, C).

    Everything (all windows, all heads) fits easily in VMEM at these window
    sizes, so one un-gridded invocation amortizes launch/DMA overhead over the
    whole batch of window-heads.
    """
    BW, N, C3 = qkv.shape
    C = C3 // 3
    return pl.pallas_call(
        functools.partial(_window_attn_kernel, num_heads=num_heads,
                          head_dim=head_dim, scale=scale),
        out_shape=jax.ShapeDtypeStruct((BW, N, C), jnp.float32),
    )(qkv, bias)


# -----------------------------------------------------------------------------
# Swin building blocks (glue in plain JAX, compute in the kernels above)
# -----------------------------------------------------------------------------
def window_partition(x, ws):
    B, H, W, C = x.shape
    x = x.reshape(B, H // ws, ws, W // ws, ws, C)
    return x.transpose(0, 1, 3, 2, 4, 5).reshape(-1, ws * ws, C)


def window_reverse(windows, ws, H, W, B):
    C = windows.shape[-1]
    x = windows.reshape(B, H // ws, W // ws, ws, ws, C)
    return x.transpose(0, 1, 3, 2, 4, 5).reshape(B, H, W, C)


def relative_position_index(ws):
    coords = np.stack(np.meshgrid(np.arange(ws), np.arange(ws), indexing='ij'))
    coords_flat = coords.reshape(2, -1)
    rel = coords_flat[:, :, None] - coords_flat[:, None, :]
    rel = rel.transpose(1, 2, 0).astype(np.int64)
    rel[..., 0] += ws - 1
    rel[..., 1] += ws - 1
    rel[..., 0] *= 2 * ws - 1
    return rel.sum(-1)  # (N, N)


def compute_attn_mask(H, W, ws, shift):
    if shift == 0:
        return None
    img_mask = np.zeros((1, H, W, 1), np.float32)
    cnt = 0
    for h in (slice(0, -ws), slice(-ws, -shift), slice(-shift, None)):
        for w in (slice(0, -ws), slice(-ws, -shift), slice(-shift, None)):
            img_mask[:, h, w, :] = cnt
            cnt += 1
    mw = img_mask.reshape(1, H // ws, ws, W // ws, ws, 1)
    mw = mw.transpose(0, 1, 3, 2, 4, 5).reshape(-1, ws * ws)
    am = mw[:, None, :] - mw[:, :, None]
    am = np.where(am != 0, -100.0, 0.0).astype(np.float32)
    return jnp.asarray(am)  # (nW, N, N)


def swin_block(x, H, W, p, num_heads, ws, shift, attn_mask):
    B, L, C = x.shape
    head_dim = C // num_heads
    scale = head_dim ** -0.5
    shortcut = x

    # Cyclic shift + window partition on the UN-normalized tokens (pure token
    # permutation, so LayerNorm commutes) -> LN is fused into the QKV matmul.
    xi = x.reshape(B, H, W, C)
    if shift > 0:
        xi = jnp.roll(xi, shift=(-shift, -shift), axis=(1, 2))
    windows = window_partition(xi, ws)                       # (BW, N, C)
    BW, N, _ = windows.shape

    qkv = ln_linear(windows, p['norm1_g'], p['norm1_b'],
                    p['qkv_w'], p['qkv_b'])                  # (BW, N, 3C)

    # Tiny (nW, nH, N, N) bias; never broadcast to the BW dimension.
    rel_bias = p['rel_bias_table'][p['rel_index'].reshape(-1)]
    rel_bias = rel_bias.reshape(N, N, num_heads).transpose(2, 0, 1)   # (nH, N, N)
    if attn_mask is not None:
        bias = rel_bias[None] + attn_mask[:, None]           # (nW, nH, N, N)
    else:
        bias = rel_bias[None]                                # (1, nH, N, N)

    attn_out = window_attention(qkv, bias, num_heads, head_dim, scale)  # (BW, N, C)
    attn_out = linear(attn_out, p['proj_w'], p['proj_b'])    # (BW, N, C)

    xo = window_reverse(attn_out, ws, H, W, B)
    if shift > 0:
        xo = jnp.roll(xo, shift=(shift, shift), axis=(1, 2))
    x = shortcut + xo.reshape(B, L, C)

    # Fused LayerNorm(norm2) + MLP.
    y = ln_mlp(x, p['norm2_g'], p['norm2_b'],
               p['fc1_w'], p['fc1_b'], p['fc2_w'], p['fc2_b'])
    return x + y


def patch_merging(x, H, W, p):
    B, L, C = x.shape
    x = x.reshape(B, H, W, C)
    x0 = x[:, 0::2, 0::2, :]
    x1 = x[:, 1::2, 0::2, :]
    x2 = x[:, 0::2, 1::2, :]
    x3 = x[:, 1::2, 1::2, :]
    x = jnp.concatenate([x0, x1, x2, x3], axis=-1).reshape(B, (H // 2) * (W // 2), 4 * C)
    # Fused LayerNorm + reduction linear (bias=False in the reference).
    x = ln_linear(x, p['norm_g'], p['norm_b'], p['reduce_w'],
                  jnp.zeros((2 * C,), jnp.float32))
    return x, H // 2, W // 2


def patch_embed(x, p, patch_size):
    B, C, H, W = x.shape
    Ph, Pw = H // patch_size, W // patch_size
    # conv(4x4, stride 4) == per-patch linear on (C, kh, kw)-ordered features
    x = x.reshape(B, C, Ph, patch_size, Pw, patch_size)
    x = x.transpose(0, 2, 4, 1, 3, 5).reshape(B, Ph * Pw, C * patch_size * patch_size)
    # Fused projection + LayerNorm.
    x = linear_ln(x, p['proj_w'], p['proj_b'], p['norm_g'], p['norm_b'])
    return x, Ph, Pw


def swin_encoder(x, params, cfg):
    outs = []
    x, H, W = patch_embed(x, params['patch_embed'], cfg['patch_size'])
    B = x.shape[0]
    num_stages = len(cfg['depths'])
    for i, (depth, nh) in enumerate(zip(cfg['depths'], cfg['num_heads'])):
        stage_p = params['stages'][i]
        C = x.shape[-1]
        ws = cfg['window_size']
        shift_allowed = True
        if min(H, W) <= ws:
            ws = min(H, W)
            shift_allowed = False
        for d in range(depth):
            shift = (ws // 2) if (shift_allowed and d % 2 == 1) else 0
            mask = compute_attn_mask(H, W, ws, shift)
            x = swin_block(x, H, W, stage_p['blocks'][d], nh, ws, shift, mask)
        onp = params['out_norms'][i]
        out = layernorm(x, onp['g'], onp['b']).reshape(B, H, W, C).transpose(0, 3, 1, 2)
        outs.append(out)                                    # NCHW, like PyTorch
        if i < num_stages - 1:
            x, H, W = patch_merging(x, H, W, stage_p['downsample'])
    return tuple(outs)


# -----------------------------------------------------------------------------
# Deterministic parameter init
# -----------------------------------------------------------------------------
class ParamGen:
    def __init__(self, key):
        self._key = key

    def _next(self):
        self._key, k = jax.random.split(self._key)
        return k

    def normal(self, shape, std=0.02):
        return std * jax.random.normal(self._next(), shape, dtype=jnp.float32)

    @staticmethod
    def ones(shape):
        return jnp.ones(shape, jnp.float32)

    @staticmethod
    def zeros(shape):
        return jnp.zeros(shape, jnp.float32)


def init_swin_params(key, cfg):
    pg = ParamGen(key)
    ed, p, cin = cfg['embed_dim'], cfg['patch_size'], cfg['in_chans']
    params = {
        'patch_embed': dict(
            proj_w=pg.normal((cin * p * p, ed)), proj_b=pg.zeros((ed,)),
            norm_g=pg.ones((ed,)), norm_b=pg.zeros((ed,)),
        )
    }
    H = W = cfg['img_size'] // p
    stages, out_norms = [], []
    num_stages = len(cfg['depths'])
    for i, (depth, nh) in enumerate(zip(cfg['depths'], cfg['num_heads'])):
        C = ed * (2 ** i)
        ws = min(cfg['window_size'], H, W)
        hidden = 4 * C
        blocks = []
        for _ in range(depth):
            blocks.append(dict(
                norm1_g=pg.ones((C,)), norm1_b=pg.zeros((C,)),
                qkv_w=pg.normal((C, 3 * C)), qkv_b=pg.zeros((3 * C,)),
                rel_bias_table=pg.normal(((2 * ws - 1) ** 2, nh)),
                rel_index=jnp.asarray(relative_position_index(ws), jnp.int32),
                proj_w=pg.normal((C, C)), proj_b=pg.zeros((C,)),
                norm2_g=pg.ones((C,)), norm2_b=pg.zeros((C,)),
                fc1_w=pg.normal((C, hidden)), fc1_b=pg.zeros((hidden,)),
                fc2_w=pg.normal((hidden, C)), fc2_b=pg.zeros((C,)),
            ))
        stage = dict(blocks=blocks)
        if i < num_stages - 1:
            stage['downsample'] = dict(
                norm_g=pg.ones((4 * C,)), norm_b=pg.zeros((4 * C,)),
                reduce_w=pg.normal((4 * C, 2 * C)),
            )
        stages.append(stage)
        out_norms.append(dict(g=pg.ones((C,)), b=pg.zeros((C,))))
        H //= 2
        W //= 2
    params['stages'] = stages
    params['out_norms'] = out_norms
    return params


# -----------------------------------------------------------------------------
# Encoder_RGBT_Swin equivalent
# -----------------------------------------------------------------------------
if __name__ == "__main__":
    # Scaled-down "tiny"-style config (independent RGB / T encoders).
    cfg = dict(img_size=32, patch_size=4, in_chans=3, embed_dim=32,
               depths=(2, 2), num_heads=(2, 4), window_size=4)

    key = jax.random.PRNGKey(0)
    k_rgb, k_t, k_x = jax.random.split(key, 3)
    params_rgb = init_swin_params(k_rgb, cfg)   # enc_rgb weights
    params_t = init_swin_params(k_t, cfg)       # enc_t weights

    rgb = jax.random.normal(k_x, (2, 3, 32, 32), jnp.float32)  # NCHW, like PyTorch

    @jax.jit
    def encoder_rgbt_swin(rgb, t=None):
        if t is None:          # mirrors `if t == None: t = rgb`
            t = rgb
        rgb_feats = swin_encoder(rgb, params_rgb, cfg)
        t_feats = swin_encoder(t, params_t, cfg)
        return rgb_feats, t_feats

    rgb_feats, t_feats = encoder_rgbt_swin(rgb)
    jax.block_until_ready((rgb_feats, t_feats))

    expected = [(2, 32, 8, 8), (2, 64, 4, 4)]
    assert [f.shape for f in rgb_feats] == expected
    assert [f.shape for f in t_feats] == expected
    assert all(bool(jnp.all(jnp.isfinite(f))) for f in rgb_feats + t_feats)
    print("KERNEL_OK")
</pallas_src>

<mosaic_0001>
module attributes {stable_mosaic.version = 11 : i64} {
  func.func @_linear_ln_kernel(%arg0: i32, %arg1: memref<128x48xf32, #tpu.memory_space<vmem>>, %arg2: memref<48x32xf32, #tpu.memory_space<vmem>>, %arg3: memref<1x32xf32, #tpu.memory_space<vmem>>, %arg4: memref<1x32xf32, #tpu.memory_space<vmem>>, %arg5: memref<1x32xf32, #tpu.memory_space<vmem>>, %arg6: memref<128x32xf32, #tpu.memory_space<vmem>>) attributes {dimension_semantics = [#tpu.dimension_semantics<parallel>], iteration_bounds = array<i64: 1>, scalar_prefetch = 0 : i64, scratch_operands = 0 : i64, tpu.core_type = #tpu.core_type<tc>, window_params = [{transform_indices = @transform_0, window_bounds = array<i64: 128, 48>}, {pipeline_mode = #tpu.pipeline_mode<synchronous>, transform_indices = @transform_1, window_bounds = array<i64: 48, 32>}, {pipeline_mode = #tpu.pipeline_mode<synchronous>, transform_indices = @transform_2, window_bounds = array<i64: 1, 32>}, {pipeline_mode = #tpu.pipeline_mode<synchronous>, transform_indices = @transform_3, window_bounds = array<i64: 1, 32>}, {pipeline_mode = #tpu.pipeline_mode<synchronous>, transform_indices = @transform_4, window_bounds = array<i64: 1, 32>}, {transform_indices = @transform_5, window_bounds = array<i64: 128, 32>}]} {
    %c0 = arith.constant 0 : index
    %c0_0 = arith.constant 0 : index
    %0 = vector.load %arg1[%c0, %c0_0] : memref<128x48xf32, #tpu.memory_space<vmem>>, vector<128x48xf32>
    %c0_1 = arith.constant 0 : index
    %c0_2 = arith.constant 0 : index
    %1 = vector.load %arg2[%c0_1, %c0_2] : memref<48x32xf32, #tpu.memory_space<vmem>>, vector<48x32xf32>
    %cst = arith.constant dense<0.000000e+00> : vector<128x32xf32>
    %2 = tpu.matmul %0, %1, %cst {dimension_numbers = #tpu.dot_dimension_numbers<[1], [0], [0], [1], [0, 0, 1, 1], [], []>} : vector<128x48xf32>, vector<48x32xf32>, vector<128x32xf32> -> vector<128x32xf32>
    %c0_3 = arith.constant 0 : index
    %c0_4 = arith.constant 0 : index
    %3 = vector.load %arg3[%c0_3, %c0_4] : memref<1x32xf32, #tpu.memory_space<vmem>>, vector<1x32xf32>
    %4 = vector.broadcast %3 : vector<1x32xf32> to vector<128x32xf32>
    %5 = arith.addf %2, %4 : vector<128x32xf32>
    %c0_5 = arith.constant 0 : index
    %c0_6 = arith.constant 0 : index
    %6 = vector.load %arg4[%c0_5, %c0_6] : memref<1x32xf32, #tpu.memory_space<vmem>>, vector<1x32xf32>
    %c0_7 = arith.constant 0 : index
    %c0_8 = arith.constant 0 : index
    %7 = vector.load %arg5[%c0_7, %c0_8] : memref<1x32xf32, #tpu.memory_space<vmem>>, vector<1x32xf32>
    %cst_9 = arith.constant dense<0.000000e+00> : vector<128xf32>
    %8 = vector.multi_reduction <add>, %5, %cst_9 [1] : vector<128x32xf32> to vector<128xf32>
    %9 = vector.shape_cast %8 : vector<128xf32> to vector<128x1xf32>
    %cst_10 = arith.constant 3.200000e+01 : f32
    %10 = vector.broadcast %cst_10 : f32 to vector<128x1xf32>
    %11 = arith.divf %9, %10 : vector<128x1xf32>
    %12 = vector.broadcast %11 : vector<128x1xf32> to vector<128x32xf32>
    %13 = arith.subf %5, %12 : vector<128x32xf32>
    %14 = arith.mulf %13, %13 : vector<128x32xf32>
    %cst_11 = arith.constant dense<0.000000e+00> : vector<128xf32>
    %15 = vector.multi_reduction <add>, %14, %cst_11 [1] : vector<128x32xf32> to vector<128xf32>
    %16 = vector.shape_cast %15 : vector<128xf32> to vector<128x1xf32>
    %cst_12 = arith.constant 3.200000e+01 : f32
    %17 = vector.broadcast %cst_12 : f32 to vector<128x1xf32>
    %18 = arith.divf %16, %17 : vector<128x1xf32>
    %cst_13 = arith.constant 9.99999974E-6 : f32
    %19 = vector.broadcast %cst_13 : f32 to vector<128x1xf32>
    %20 = arith.addf %18, %19 : vector<128x1xf32>
    %21 = math.rsqrt %20 : vector<128x1xf32>
    %22 = vector.broadcast %21 : vector<128x1xf32> to vector<128x32xf32>
    %23 = arith.mulf %13, %22 : vector<128x32xf32>
    %24 = vector.broadcast %6 : vector<1x32xf32> to vector<128x32xf32>
    %25 = arith.mulf %23, %24 : vector<128x32xf32>
    %26 = vector.broadcast %7 : vector<1x32xf32> to vector<128x32xf32>
    %27 = arith.addf %25, %26 : vector<128x32xf32>
    %c0_14 = arith.constant 0 : index
    %c0_15 = arith.constant 0 : index
    %28 = vector.load %arg6[%c0_14, %c0_15] : memref<128x32xf32, #tpu.memory_space<vmem>>, vector<128x32xf32>
    tpu.vector_store %arg6[%c0_14, %c0_15], %27 {strides = array<i32>} : memref<128x32xf32, #tpu.memory_space<vmem>>, vector<128x32xf32>,
    return
  }
  func.func @transform_0(%arg0: i32) -> (i32, i32) {
    %c0_i32 = arith.constant 0 : i32
    %c0_i32_0 = arith.constant 0 : i32
    return %arg0, %c0_i32 : i32, i32
  }
  func.func @transform_1(%arg0: i32) -> (i32, i32) {
    %c0_i32 = arith.constant 0 : i32
    %c0_i32_0 = arith.constant 0 : i32
    %c0_i32_1 = arith.constant 0 : i32
    return %c0_i32, %c0_i32_0 : i32, i32
  }
  func.func @transform_2(%arg0: i32) -> (i32, i32) {
    %c0_i32 = arith.constant 0 : i32
    %c0_i32_0 = arith.constant 0 : i32
    %c0_i32_1 = arith.constant 0 : i32
    return %c0_i32, %c0_i32_0 : i32, i32
  }
  func.func @transform_3(%arg0: i32) -> (i32, i32) {
    %c0_i32 = arith.constant 0 : i32
    %c0_i32_0 = arith.constant 0 : i32
    %c0_i32_1 = arith.constant 0 : i32
    return %c0_i32, %c0_i32_0 : i32, i32
  }
  func.func @transform_4(%arg0: i32) -> (i32, i32) {
    %c0_i32 = arith.constant 0 : i32
    %c0_i32_0 = arith.constant 0 : i32
    %c0_i32_1 = arith.constant 0 : i32
    return %c0_i32, %c0_i32_0 : i32, i32
  }
  func.func @transform_5(%arg0: i32) -> (i32, i32) {
    %c0_i32 = arith.constant 0 : i32
    %c0_i32_0 = arith.constant 0 : i32
    return %arg0, %c0_i32 : i32, i32
  }
}

module attributes {stable_mosaic.version = 11 : i64} {
  func.func @_window_attn_kernel(%arg0: memref<8x16x96xf32, #tpu.memory_space<vmem>>, %arg1: memref<1x2x16x16xf32, #tpu.memory_space<vmem>>, %arg2: memref<8x16x32xf32, #tpu.memory_space<vmem>>) attributes {dimension_semantics = [], scalar_prefetch = 0 : i64, scratch_operands = 0 : i64, tpu.core_type = #tpu.core_type<tc>} {
    %c0 = arith.constant 0 : index
    %c0_0 = arith.constant 0 : index
    %c0_1 = arith.constant 0 : index
    %0 = vector.load %arg0[%c0, %c0_0, %c0_1] : memref<8x16x96xf32, #tpu.memory_space<vmem>>, vector<8x16x96xf32>
    %c0_2 = arith.constant 0 : index
    %c0_3 = arith.constant 0 : index
    %c0_4 = arith.constant 0 : index
    %c0_5 = arith.constant 0 : index
    %1 = vector.load %arg1[%c0_2, %c0_3, %c0_4, %c0_5] : memref<1x2x16x16xf32, #tpu.memory_space<vmem>>, vector<1x2x16x16xf32>
    %2 = vector.extract_strided_slice %0 {offsets = [0, 0, 0], sizes = [8, 16, 16], strides = [1, 1, 1]} : vector<8x16x96xf32> to vector<8x16x16xf32>
    %cst = arith.constant 2.500000e-01 : f32
    %3 = vector.broadcast %cst : f32 to vector<8x16x16xf32>
    %4 = arith.mulf %2, %3 : vector<8x16x16xf32>
    %5 = vector.extract_strided_slice %0 {offsets = [0, 0, 32], sizes = [8, 16, 16], strides = [1, 1, 1]} : vector<8x16x96xf32> to vector<8x16x16xf32>
    %6 = vector.extract_strided_slice %0 {offsets = [0, 0, 64], sizes = [8, 16, 16], strides = [1, 1, 1]} : vector<8x16x96xf32> to vector<8x16x16xf32>
    "tpu.trace_start"() <{level = 10 : i32, message = "bnd,bmd->bnm"}> : () -> ()
    %cst_6 = arith.constant dense<0.000000e+00> : vector<8x16x16xf32>
    %7 = tpu.matmul %4, %5, %cst_6 {dimension_numbers = #tpu.dot_dimension_numbers<[2], [2], [1], [1], [0, 0, 0, 1, 1, 1], [0], [0]>} : vector<8x16x16xf32>, vector<8x16x16xf32>, vector<8x16x16xf32> -> vector<8x16x16xf32>
    "tpu.trace_stop"() : () -> ()
    %8 = vector.shape_cast %7 : vector<8x16x16xf32> to vector<8x1x16x16xf32>
    %9 = vector.extract_strided_slice %1 {offsets = [0, 0, 0, 0], sizes = [1, 1, 16, 16], strides = [1, 1, 1, 1]} : vector<1x2x16x16xf32> to vector<1x1x16x16xf32>
    %10 = vector.shape_cast %9 : vector<1x1x16x16xf32> to vector<1x16x16xf32>
    %11 = vector.shape_cast %10 : vector<1x16x16xf32> to vector<1x1x16x16xf32>
    %12 = vector.broadcast %11 : vector<1x1x16x16xf32> to vector<8x1x16x16xf32>
    %13 = arith.addf %8, %12 : vector<8x1x16x16xf32>
    %14 = vector.shape_cast %13 : vector<8x1x16x16xf32> to vector<8x16x16xf32>
    %cst_7 = arith.constant dense<0xFF800000> : vector<8x16xf32>
    %15 = vector.multi_reduction <maximumf>, %14, %cst_7 [2] : vector<8x16x16xf32> to vector<8x16xf32>
    %16 = vector.shape_cast %15 : vector<8x16xf32> to vector<8x16x1xf32>
    %17 = vector.broadcast %16 : vector<8x16x1xf32> to vector<8x16x16xf32>
    %18 = arith.subf %14, %17 : vector<8x16x16xf32>
    %19 = math.exp %18 : vector<8x16x16xf32>
    %cst_8 = arith.constant dense<0.000000e+00> : vector<8x16xf32>
    %20 = vector.multi_reduction <add>, %19, %cst_8 [2] : vector<8x16x16xf32> to vector<8x16xf32>
    %21 = vector.shape_cast %20 : vector<8x16xf32> to vector<8x16x1xf32>
    %22 = tpu.reciprocal %21 {approx = true} : vector<8x16x1xf32> -> vector<8x16x1xf32>
    %23 = vector.broadcast %22 : vector<8x16x1xf32> to vector<8x16x16xf32>
    %24 = arith.mulf %19, %23 : vector<8x16x16xf32>
    "tpu.trace_start"() <{level = 10 : i32, message = "bnm,bmd->bnd"}> : () -> ()
    %cst_9 = arith.constant dense<0.000000e+00> : vector<8x16x16xf32>
    %25 = tpu.matmul %24, %6, %cst_9 {dimension_numbers = #tpu.dot_dimension_numbers<[2], [1], [1], [2], [0, 0, 0, 1, 1, 2], [0], [0]>} : vector<8x16x16xf32>, vector<8x16x16xf32>, vector<8x16x16xf32> -> vector<8x16x16xf32>
    "tpu.trace_stop"() : () -> ()
    %c0_10 = arith.constant 0 : index
    %c0_11 = arith.constant 0 : index
    %c0_12 = arith.constant 0 : index
    %26 = vector.load %arg2[%c0_10, %c0_11, %c0_12] : memref<8x16x32xf32, #tpu.memory_space<vmem>>, vector<8x16x16xf32>
    tpu.vector_store %arg2[%c0_10, %c0_11, %c0_12], %25 {strides = array<i32>} : memref<8x16x32xf32, #tpu.memory_space<vmem>>, vector<8x16x16xf32>,
    %27 = vector.extract_strided_slice %0 {offsets = [0, 0, 16], sizes = [8, 16, 16], strides = [1, 1, 1]} : vector<8x16x96xf32> to vector<8x16x16xf32>
    %cst_13 = arith.constant 2.500000e-01 : f32
    %28 = vector.broadcast %cst_13 : f32 to vector<8x16x16xf32>
    %29 = arith.mulf %27, %28 : vector<8x16x16xf32>
    %30 = vector.extract_strided_slice %0 {offsets = [0, 0, 48], sizes = [8, 16, 16], strides = [1, 1, 1]} : vector<8x16x96xf32> to vector<8x16x16xf32>
    %31 = vector.extract_strided_slice %0 {offsets = [0, 0, 80], sizes = [8, 16, 16], strides = [1, 1, 1]} : vector<8x16x96xf32> to vector<8x16x16xf32>
    "tpu.trace_start"() <{level = 10 : i32, message = "bnd,bmd->bnm"}> : () -> ()
    %cst_14 = arith.constant dense<0.000000e+00> : vector<8x16x16xf32>
    %32 = tpu.matmul %29, %30, %cst_14 {dimension_numbers = #tpu.dot_dimension_numbers<[2], [2], [1], [1], [0, 0, 0, 1, 1, 1], [0], [0]>} : vector<8x16x16xf32>, vector<8x16x16xf32>, vector<8x16x16xf32> -> vector<8x16x16xf32>
    "tpu.trace_stop"() : () -> ()
    %33 = vector.shape_cast %32 : vector<8x16x16xf32> to vector<8x1x16x16xf32>
    %34 = vector.extract_strided_slice %1 {offsets = [0, 1, 0, 0], sizes = [1, 1, 16, 16], strides = [1, 1, 1, 1]} : vector<1x2x16x16xf32> to vector<1x1x16x16xf32>
    %35 = vector.shape_cast %34 : vector<1x1x16x16xf32> to vector<1x16x16xf32>
    %36 = vector.shape_cast %35 : vector<1x16x16xf32> to vector<1x1x16x16xf32>
    %37 = vector.broadcast %36 : vector<1x1x16x16xf32> to vector<8x1x16x16xf32>
    %38 = arith.addf %33, %37 : vector<8x1x16x16xf32>
    %39 = vector.shape_cast %38 : vector<8x1x16x16xf32> to vector<8x16x16xf32>
    %cst_15 = arith.constant dense<0xFF800000> : vector<8x16xf32>
    %40 = vector.multi_reduction <maximumf>, %39, %cst_15 [2] : vector<8x16x16xf32> to vector<8x16xf32>
    %41 = vector.shape_cast %40 : vector<8x16xf32> to vector<8x16x1xf32>
    %42 = vector.broadcast %41 : vector<8x16x1xf32> to vector<8x16x16xf32>
    %43 = arith.subf %39, %42 : vector<8x16x16xf32>
    %44 = math.exp %43 : vector<8x16x16xf32>
    %cst_16 = arith.constant dense<0.000000e+00> : vector<8x16xf32>
    %45 = vector.multi_reduction <add>, %44, %cst_16 [2] : vector<8x16x16xf32> to vector<8x16xf32>
    %46 = vector.shape_cast %45 : vector<8x16xf32> to vector<8x16x1xf32>
    %47 = tpu.reciprocal %46 {approx = true} : vector<8x16x1xf32> -> vector<8x16x1xf32>
    %48 = vector.broadcast %47 : vector<8x16x1xf32> to vector<8x16x16xf32>
    %49 = arith.mulf %44, %48 : vector<8x16x16xf32>
    "tpu.trace_start"() <{level = 10 : i32, message = "bnm,bmd->bnd"}> : () -> ()
    %cst_17 = arith.constant dense<0.000000e+00> : vector<8x16x16xf32>
    %50 = tpu.matmul %49, %31, %cst_17 {dimension_numbers = #tpu.dot_dimension_numbers<[2], [1], [1], [2], [0, 0, 0, 1, 1, 2], [0], [0]>} : vector<8x16x16xf32>, vector<8x16x16xf32>, vector<8x16x16xf32> -> vector<8x16x16xf32>
    "tpu.trace_stop"() : () -> ()
    %c0_18 = arith.constant 0 : index
    %c0_19 = arith.constant 0 : index
    %c16 = arith.constant 16 : index
    %51 = vector.load %arg2[%c0_18, %c0_19, %c16] : memref<8x16x32xf32, #tpu.memory_space<vmem>>, vector<8x16x16xf32>
    tpu.vector_store %arg2[%c0_18, %c0_19, %c16], %50 {strides = array<i32>} : memref<8x16x32xf32, #tpu.memory_space<vmem>>, vector<8x16x16xf32>,
    return
  }
}

module attributes {stable_mosaic.version = 11 : i64} {
  func.func @_ln_linear_kernel(%arg0: i32, %arg1: memref<128x32xf32, #tpu.memory_space<vmem>>, %arg2: memref<1x32xf32, #tpu.memory_space<vmem>>, %arg3: memref<1x32xf32, #tpu.memory_space<vmem>>, %arg4: memref<32x96xf32, #tpu.memory_space<vmem>>, %arg5: memref<1x96xf32, #tpu.memory_space<vmem>>, %arg6: memref<128x96xf32, #tpu.memory_space<vmem>>) attributes {dimension_semantics = [#tpu.dimension_semantics<parallel>], iteration_bounds = array<i64: 1>, scalar_prefetch = 0 : i64, scratch_operands = 0 : i64, tpu.core_type = #tpu.core_type<tc>, window_params = [{transform_indices = @transform_0, window_bounds = array<i64: 128, 32>}, {pipeline_mode = #tpu.pipeline_mode<synchronous>, transform_indices = @transform_1, window_bounds = array<i64: 1, 32>}, {pipeline_mode = #tpu.pipeline_mode<synchronous>, transform_indices = @transform_2, window_bounds = array<i64: 1, 32>}, {pipeline_mode = #tpu.pipeline_mode<synchronous>, transform_indices = @transform_3, window_bounds = array<i64: 32, 96>}, {pipeline_mode = #tpu.pipeline_mode<synchronous>, transform_indices = @transform_4, window_bounds = array<i64: 1, 96>}, {transform_indices = @transform_5, window_bounds = array<i64: 128, 96>}]} {
    %c0 = arith.constant 0 : index
    %c0_0 = arith.constant 0 : index
    %0 = vector.load %arg1[%c0, %c0_0] : memref<128x32xf32, #tpu.memory_space<vmem>>, vector<128x32xf32>
    %c0_1 = arith.constant 0 : index
    %c0_2 = arith.constant 0 : index
    %1 = vector.load %arg2[%c0_1, %c0_2] : memref<1x32xf32, #tpu.memory_space<vmem>>, vector<1x32xf32>
    %c0_3 = arith.constant 0 : index
    %c0_4 = arith.constant 0 : index
    %2 = vector.load %arg3[%c0_3, %c0_4] : memref<1x32xf32, #tpu.memory_space<vmem>>, vector<1x32xf32>
    %cst = arith.constant dense<0.000000e+00> : vector<128xf32>
    %3 = vector.multi_reduction <add>, %0, %cst [1] : vector<128x32xf32> to vector<128xf32>
    %4 = vector.shape_cast %3 : vector<128xf32> to vector<128x1xf32>
    %cst_5 = arith.constant 3.200000e+01 : f32
    %5 = vector.broadcast %cst_5 : f32 to vector<128x1xf32>
    %6 = arith.divf %4, %5 : vector<128x1xf32>
    %7 = vector.broadcast %6 : vector<128x1xf32> to vector<128x32xf32>
    %8 = arith.subf %0, %7 : vector<128x32xf32>
    %9 = arith.mulf %8, %8 : vector<128x32xf32>
    %cst_6 = arith.constant dense<0.000000e+00> : vector<128xf32>
    %10 = vector.multi_reduction <add>, %9, %cst_6 [1] : vector<128x32xf32> to vector<128xf32>
    %11 = vector.shape_cast %10 : vector<128xf32> to vector<128x1xf32>
    %cst_7 = arith.constant 3.200000e+01 : f32
    %12 = vector.broadcast %cst_7 : f32 to vector<128x1xf32>
    %13 = arith.divf %11, %12 : vector<128x1xf32>
    %cst_8 = arith.constant 9.99999974E-6 : f32
    %14 = vector.broadcast %cst_8 : f32 to vector<128x1xf32>
    %15 = arith.addf %13, %14 : vector<128x1xf32>
    %16 = math.rsqrt %15 : vector<128x1xf32>
    %17 = vector.broadcast %16 : vector<128x1xf32> to vector<128x32xf32>
    %18 = arith.mulf %8, %17 : vector<128x32xf32>
    %19 = vector.broadcast %1 : vector<1x32xf32> to vector<128x32xf32>
    %20 = arith.mulf %18, %19 : vector<128x32xf32>
    %21 = vector.broadcast %2 : vector<1x32xf32> to vector<128x32xf32>
    %22 = arith.addf %20, %21 : vector<128x32xf32>
    %c0_9 = arith.constant 0 : index
    %c0_10 = arith.constant 0 : index
    %23 = vector.load %arg4[%c0_9, %c0_10] : memref<32x96xf32, #tpu.memory_space<vmem>>, vector<32x96xf32>
    %cst_11 = arith.constant dense<0.000000e+00> : vector<128x96xf32>
    %24 = tpu.matmul %22, %23, %cst_11 {dimension_numbers = #tpu.dot_dimension_numbers<[1], [0], [0], [1], [0, 0, 1, 1], [], []>} : vector<128x32xf32>, vector<32x96xf32>, vector<128x96xf32> -> vector<128x96xf32>
    %c0_12 = arith.constant 0 : index
    %c0_13 = arith.constant 0 : index
    %25 = vector.load %arg5[%c0_12, %c0_13] : memref<1x96xf32, #tpu.memory_space<vmem>>, vector<1x96xf32>
    %26 = vector.broadcast %25 : vector<1x96xf32> to vector<128x96xf32>
    %27 = arith.addf %24, %26 : vector<128x96xf32>
    %c0_14 = arith.constant 0 : index
    %c0_15 = arith.constant 0 : index
    %28 = vector.load %arg6[%c0_14, %c0_15] : memref<128x96xf32, #tpu.memory_space<vmem>>, vector<128x96xf32>
    tpu.vector_store %arg6[%c0_14, %c0_15], %27 {strides = array<i32>} : memref<128x96xf32, #tpu.memory_space<vmem>>, vector<128x96xf32>,
    return
  }
  func.func @transform_0(%arg0: i32) -> (i32, i32) {
    %c0_i32 = arith.constant 0 : i32
    %c0_i32_0 = arith.constant 0 : i32
    return %arg0, %c0_i32 : i32, i32
  }
  func.func @transform_1(%arg0: i32) -> (i32, i32) {
    %c0_i32 = arith.constant 0 : i32
    %c0_i32_0 = arith.constant 0 : i32
    %c0_i32_1 = arith.constant 0 : i32
    return %c0_i32, %c0_i32_0 : i32, i32
  }
  func.func @transform_2(%arg0: i32) -> (i32, i32) {
    %c0_i32 = arith.constant 0 : i32
    %c0_i32_0 = arith.constant 0 : i32
    %c0_i32_1 = arith.constant 0 : i32
    return %c0_i32, %c0_i32_0 : i32, i32
  }
  func.func @transform_3(%arg0: i32) -> (i32, i32) {
    %c0_i32 = arith.constant 0 : i32
    %c0_i32_0 = arith.constant 0 : i32
    %c0_i32_1 = arith.constant 0 : i32
    return %c0_i32, %c0_i32_0 : i32, i32
  }
  func.func @transform_4(%arg0: i32) -> (i32, i32) {
    %c0_i32 = arith.constant 0 : i32
    %c0_i32_0 = arith.constant 0 : i32
    %c0_i32_1 = arith.constant 0 : i32
    return %c0_i32, %c0_i32_0 : i32, i32
  }
  func.func @transform_5(%arg0: i32) -> (i32, i32) {
    %c0_i32 = arith.constant 0 : i32
    %c0_i32_0 = arith.constant 0 : i32
    return %arg0, %c0_i32 : i32, i32
  }
}

module attributes {stable_mosaic.version = 11 : i64} {
  func.func @_linear_kernel(%arg0: i32, %arg1: memref<128x32xf32, #tpu.memory_space<vmem>>, %arg2: memref<32x32xf32, #tpu.memory_space<vmem>>, %arg3: memref<1x32xf32, #tpu.memory_space<vmem>>, %arg4: memref<128x32xf32, #tpu.memory_space<vmem>>) attributes {dimension_semantics = [#tpu.dimension_semantics<parallel>], iteration_bounds = array<i64: 1>, scalar_prefetch = 0 : i64, scratch_operands = 0 : i64, tpu.core_type = #tpu.core_type<tc>, window_params = [{transform_indices = @transform_0, window_bounds = array<i64: 128, 32>}, {pipeline_mode = #tpu.pipeline_mode<synchronous>, transform_indices = @transform_1, window_bounds = array<i64: 32, 32>}, {pipeline_mode = #tpu.pipeline_mode<synchronous>, transform_indices = @transform_2, window_bounds = array<i64: 1, 32>}, {transform_indices = @transform_3, window_bounds = array<i64: 128, 32>}]} {
    %c0 = arith.constant 0 : index
    %c0_0 = arith.constant 0 : index
    %0 = vector.load %arg1[%c0, %c0_0] : memref<128x32xf32, #tpu.memory_space<vmem>>, vector<128x32xf32>
    %c0_1 = arith.constant 0 : index
    %c0_2 = arith.constant 0 : index
    %1 = vector.load %arg2[%c0_1, %c0_2] : memref<32x32xf32, #tpu.memory_space<vmem>>, vector<32x32xf32>
    %cst = arith.constant dense<0.000000e+00> : vector<128x32xf32>
    %2 = tpu.matmul %0, %1, %cst {dimension_numbers = #tpu.dot_dimension_numbers<[1], [0], [0], [1], [0, 0, 1, 1], [], []>} : vector<128x32xf32>, vector<32x32xf32>, vector<128x32xf32> -> vector<128x32xf32>
    %c0_3 = arith.constant 0 : index
    %c0_4 = arith.constant 0 : index
    %3 = vector.load %arg3[%c0_3, %c0_4] : memref<1x32xf32, #tpu.memory_space<vmem>>, vector<1x32xf32>
    %4 = vector.broadcast %3 : vector<1x32xf32> to vector<128x32xf32>
    %5 = arith.addf %2, %4 : vector<128x32xf32>
    %c0_5 = arith.constant 0 : index
    %c0_6 = arith.constant 0 : index
    %6 = vector.load %arg4[%c0_5, %c0_6] : memref<128x32xf32, #tpu.memory_space<vmem>>, vector<128x32xf32>
    tpu.vector_store %arg4[%c0_5, %c0_6], %5 {strides = array<i32>} : memref<128x32xf32, #tpu.memory_space<vmem>>, vector<128x32xf32>,
    return
  }
  func.func @transform_0(%arg0: i32) -> (i32, i32) {
    %c0_i32 = arith.constant 0 : i32
    %c0_i32_0 = arith.constant 0 : i32
    return %arg0, %c0_i32 : i32, i32
  }
  func.func @transform_1(%arg0: i32) -> (i32, i32) {
    %c0_i32 = arith.constant 0 : i32
    %c0_i32_0 = arith.constant 0 : i32
    %c0_i32_1 = arith.constant 0 : i32
    return %c0_i32, %c0_i32_0 : i32, i32
  }
  func.func @transform_2(%arg0: i32) -> (i32, i32) {
    %c0_i32 = arith.constant 0 : i32
    %c0_i32_0 = arith.constant 0 : i32
    %c0_i32_1 = arith.constant 0 : i32
    return %c0_i32, %c0_i32_0 : i32, i32
  }
  func.func @transform_3(%arg0: i32) -> (i32, i32) {
    %c0_i32 = arith.constant 0 : i32
    %c0_i32_0 = arith.constant 0 : i32
    return %arg0, %c0_i32 : i32, i32
  }
}

module attributes {stable_mosaic.version = 11 : i64} {
  func.func @_ln_mlp_kernel(%arg0: i32, %arg1: memref<128x32xf32, #tpu.memory_space<vmem>>, %arg2: memref<1x32xf32, #tpu.memory_space<vmem>>, %arg3: memref<1x32xf32, #tpu.memory_space<vmem>>, %arg4: memref<32x128xf32, #tpu.memory_space<vmem>>, %arg5: memref<1x128xf32, #tpu.memory_space<vmem>>, %arg6: memref<128x32xf32, #tpu.memory_space<vmem>>, %arg7: memref<1x32xf32, #tpu.memory_space<vmem>>, %arg8: memref<128x32xf32, #tpu.memory_space<vmem>>) attributes {dimension_semantics = [#tpu.dimension_semantics<parallel>], iteration_bounds = array<i64: 1>, scalar_prefetch = 0 : i64, scratch_operands = 0 : i64, tpu.core_type = #tpu.core_type<tc>, window_params = [{transform_indices = @transform_0, window_bounds = array<i64: 128, 32>}, {pipeline_mode = #tpu.pipeline_mode<synchronous>, transform_indices = @transform_1, window_bounds = array<i64: 1, 32>}, {pipeline_mode = #tpu.pipeline_mode<synchronous>, transform_indices = @transform_2, window_bounds = array<i64: 1, 32>}, {pipeline_mode = #tpu.pipeline_mode<synchronous>, transform_indices = @transform_3, window_bounds = array<i64: 32, 128>}, {pipeline_mode = #tpu.pipeline_mode<synchronous>, transform_indices = @transform_4, window_bounds = array<i64: 1, 128>}, {pipeline_mode = #tpu.pipeline_mode<synchronous>, transform_indices = @transform_5, window_bounds = array<i64: 128, 32>}, {pipeline_mode = #tpu.pipeline_mode<synchronous>, transform_indices = @transform_6, window_bounds = array<i64: 1, 32>}, {transform_indices = @transform_7, window_bounds = array<i64: 128, 32>}]} {
    %c0 = arith.constant 0 : index
    %c0_0 = arith.constant 0 : index
    %0 = vector.load %arg1[%c0, %c0_0] : memref<128x32xf32, #tpu.memory_space<vmem>>, vector<128x32xf32>
    %c0_1 = arith.constant 0 : index
    %c0_2 = arith.constant 0 : index
    %1 = vector.load %arg2[%c0_1, %c0_2] : memref<1x32xf32, #tpu.memory_space<vmem>>, vector<1x32xf32>
    %c0_3 = arith.constant 0 : index
    %c0_4 = arith.constant 0 : index
    %2 = vector.load %arg3[%c0_3, %c0_4] : memref<1x32xf32, #tpu.memory_space<vmem>>, vector<1x32xf32>
    %cst = arith.constant dense<0.000000e+00> : vector<128xf32>
    %3 = vector.multi_reduction <add>, %0, %cst [1] : vector<128x32xf32> to vector<128xf32>
    %4 = vector.shape_cast %3 : vector<128xf32> to vector<128x1xf32>
    %cst_5 = arith.constant 3.200000e+01 : f32
    %5 = vector.broadcast %cst_5 : f32 to vector<128x1xf32>
    %6 = arith.divf %4, %5 : vector<128x1xf32>
    %7 = vector.broadcast %6 : vector<128x1xf32> to vector<128x32xf32>
    %8 = arith.subf %0, %7 : vector<128x32xf32>
    %9 = arith.mulf %8, %8 : vector<128x32xf32>
    %cst_6 = arith.constant dense<0.000000e+00> : vector<128xf32>
    %10 = vector.multi_reduction <add>, %9, %cst_6 [1] : vector<128x32xf32> to vector<128xf32>
    %11 = vector.shape_cast %10 : vector<128xf32> to vector<128x1xf32>
    %cst_7 = arith.constant 3.200000e+01 : f32
    %12 = vector.broadcast %cst_7 : f32 to vector<128x1xf32>
    %13 = arith.divf %11, %12 : vector<128x1xf32>
    %cst_8 = arith.constant 9.99999974E-6 : f32
    %14 = vector.broadcast %cst_8 : f32 to vector<128x1xf32>
    %15 = arith.addf %13, %14 : vector<128x1xf32>
    %16 = math.rsqrt %15 : vector<128x1xf32>
    %17 = vector.broadcast %16 : vector<128x1xf32> to vector<128x32xf32>
    %18 = arith.mulf %8, %17 : vector<128x32xf32>
    %19 = vector.broadcast %1 : vector<1x32xf32> to vector<128x32xf32>
    %20 = arith.mulf %18, %19 : vector<128x32xf32>
    %21 = vector.broadcast %2 : vector<1x32xf32> to vector<128x32xf32>
    %22 = arith.addf %20, %21 : vector<128x32xf32>
    %c0_9 = arith.constant 0 : index
    %c0_10 = arith.constant 0 : index
    %23 = vector.load %arg4[%c0_9, %c0_10] : memref<32x128xf32, #tpu.memory_space<vmem>>, vector<32x128xf32>
    %cst_11 = arith.constant dense<0.000000e+00> : vector<128x128xf32>
    %24 = tpu.matmul %22, %23, %cst_11 {dimension_numbers = #tpu.dot_dimension_numbers<[1], [0], [0], [1], [0, 0, 1, 1], [], []>} : vector<128x32xf32>, vector<32x128xf32>, vector<128x128xf32> -> vector<128x128xf32>
    %c0_12 = arith.constant 0 : index
    %c0_13 = arith.constant 0 : index
    %25 = vector.load %arg5[%c0_12, %c0_13] : memref<1x128xf32, #tpu.memory_space<vmem>>, vector<1x128xf32>
    %26 = vector.broadcast %25 : vector<1x128xf32> to vector<128x128xf32>
    %27 = arith.addf %24, %26 : vector<128x128xf32>
    %28 = arith.mulf %27, %27 : vector<128x128xf32>
    %29 = arith.mulf %27, %28 : vector<128x128xf32>
    %cst_14 = arith.constant 4.471500e-02 : f32
    %30 = vector.broadcast %cst_14 : f32 to vector<128x128xf32>
    %31 = arith.mulf %30, %29 : vector<128x128xf32>
    %32 = arith.addf %27, %31 : vector<128x128xf32>
    %cst_15 = arith.constant 0.797884583 : f32
    %33 = vector.broadcast %cst_15 : f32 to vector<128x128xf32>
    %34 = arith.mulf %33, %32 : vector<128x128xf32>
    %35 = math.tanh %34 : vector<128x128xf32>
    %cst_16 = arith.constant 1.000000e+00 : f32
    %36 = vector.broadcast %cst_16 : f32 to vector<128x128xf32>
    %37 = arith.addf %36, %35 : vector<128x128xf32>
    %cst_17 = arith.constant 5.000000e-01 : f32
    %38 = vector.broadcast %cst_17 : f32 to vector<128x128xf32>
    %39 = arith.mulf %38, %37 : vector<128x128xf32>
    %40 = arith.mulf %27, %39 : vector<128x128xf32>
    %c0_18 = arith.constant 0 : index
    %c0_19 = arith.constant 0 : index
    %41 = vector.load %arg6[%c0_18, %c0_19] : memref<128x32xf32, #tpu.memory_space<vmem>>, vector<128x32xf32>
    %cst_20 = arith.constant dense<0.000000e+00> : vector<128x32xf32>
    %42 = tpu.matmul %40, %41, %cst_20 {dimension_numbers = #tpu.dot_dimension_numbers<[1], [0], [0], [1], [0, 0, 1, 1], [], []>} : vector<128x128xf32>, vector<128x32xf32>, vector<128x32xf32> -> vector<128x32xf32>
    %c0_21 = arith.constant 0 : index
    %c0_22 = arith.constant 0 : index
    %43 = vector.load %arg7[%c0_21, %c0_22] : memref<1x32xf32, #tpu.memory_space<vmem>>, vector<1x32xf32>
    %44 = vector.broadcast %43 : vector<1x32xf32> to vector<128x32xf32>
    %45 = arith.addf %42, %44 : vector<128x32xf32>
    %c0_23 = arith.constant 0 : index
    %c0_24 = arith.constant 0 : index
    %46 = vector.load %arg8[%c0_23, %c0_24] : memref<128x32xf32, #tpu.memory_space<vmem>>, vector<128x32xf32>
    tpu.vector_store %arg8[%c0_23, %c0_24], %45 {strides = array<i32>} : memref<128x32xf32, #tpu.memory_space<vmem>>, vector<128x32xf32>,
    return
  }
  func.func @transform_0(%arg0: i32) -> (i32, i32) {
    %c0_i32 = arith.constant 0 : i32
    %c0_i32_0 = arith.constant 0 : i32
    return %arg0, %c0_i32 : i32, i32
  }
  func.func @transform_1(%arg0: i32) -> (i32, i32) {
    %c0_i32 = arith.constant 0 : i32
    %c0_i32_0 = arith.constant 0 : i32
    %c0_i32_1 = arith.constant 0 : i32
    return %c0_i32, %c0_i32_0 : i32, i32
  }
  func.func @transform_2(%arg0: i32) -> (i32, i32) {
    %c0_i32 = arith.constant 0 : i32
    %c0_i32_0 = arith.constant 0 : i32
    %c0_i32_1 = arith.constant 0 : i32
    return %c0_i32, %c0_i32_0 : i32, i32
  }
  func.func @transform_3(%arg0: i32) -> (i32, i32) {
    %c0_i32 = arith.constant 0 : i32
    %c0_i32_0 = arith.constant 0 : i32
    %c0_i32_1 = arith.constant 0 : i32
    return %c0_i32, %c0_i32_0 : i32, i32
  }
  func.func @transform_4(%arg0: i32) -> (i32, i32) {
    %c0_i32 = arith.constant 0 : i32
    %c0_i32_0 = arith.constant 0 : i32
    %c0_i32_1 = arith.constant 0 : i32
    return %c0_i32, %c0_i32_0 : i32, i32
  }
  func.func @transform_5(%arg0: i32) -> (i32, i32) {
    %c0_i32 = arith.constant 0 : i32
    %c0_i32_0 = arith.constant 0 : i32
    %c0_i32_1 = arith.constant 0 : i32
    return %c0_i32, %c0_i32_0 : i32, i32
  }
  func.func @transform_6(%arg0: i32) -> (i32, i32) {
    %c0_i32 = arith.constant 0 : i32
    %c0_i32_0 = arith.constant 0 : i32
    %c0_i32_1 = arith.constant 0 : i32
    return %c0_i32, %c0_i32_0 : i32, i32
  }
  func.func @transform_7(%arg0: i32) -> (i32, i32) {
    %c0_i32 = arith.constant 0 : i32
    %c0_i32_0 = arith.constant 0 : i32
    return %arg0, %c0_i32 : i32, i32
  }
}

module attributes {stable_mosaic.version = 11 : i64} {
  func.func @_window_attn_kernel(%arg0: memref<8x16x96xf32, #tpu.memory_space<vmem>>, %arg1: memref<4x2x16x16xf32, #tpu.memory_space<vmem>>, %arg2: memref<8x16x32xf32, #tpu.memory_space<vmem>>) attributes {dimension_semantics = [], scalar_prefetch = 0 : i64, scratch_operands = 0 : i64, tpu.core_type = #tpu.core_type<tc>} {
    %c0 = arith.constant 0 : index
    %c0_0 = arith.constant 0 : index
    %c0_1 = arith.constant 0 : index
    %0 = vector.load %arg0[%c0, %c0_0, %c0_1] : memref<8x16x96xf32, #tpu.memory_space<vmem>>, vector<8x16x96xf32>
    %c0_2 = arith.constant 0 : index
    %c0_3 = arith.constant 0 : index
    %c0_4 = arith.constant 0 : index
    %c0_5 = arith.constant 0 : index
    %1 = vector.load %arg1[%c0_2, %c0_3, %c0_4, %c0_5] : memref<4x2x16x16xf32, #tpu.memory_space<vmem>>, vector<4x2x16x16xf32>
    %2 = vector.extract_strided_slice %0 {offsets = [0, 0, 0], sizes = [8, 16, 16], strides = [1, 1, 1]} : vector<8x16x96xf32> to vector<8x16x16xf32>
    %cst = arith.constant 2.500000e-01 : f32
    %3 = vector.broadcast %cst : f32 to vector<8x16x16xf32>
    %4 = arith.mulf %2, %3 : vector<8x16x16xf32>
    %5 = vector.extract_strided_slice %0 {offsets = [0, 0, 32], sizes = [8, 16, 16], strides = [1, 1, 1]} : vector<8x16x96xf32> to vector<8x16x16xf32>
    %6 = vector.extract_strided_slice %0 {offsets = [0, 0, 64], sizes = [8, 16, 16], strides = [1, 1, 1]} : vector<8x16x96xf32> to vector<8x16x16xf32>
    "tpu.trace_start"() <{level = 10 : i32, message = "bnd,bmd->bnm"}> : () -> ()
    %cst_6 = arith.constant dense<0.000000e+00> : vector<8x16x16xf32>
    %7 = tpu.matmul %4, %5, %cst_6 {dimension_numbers = #tpu.dot_dimension_numbers<[2], [2], [1], [1], [0, 0, 0, 1, 1, 1], [0], [0]>} : vector<8x16x16xf32>, vector<8x16x16xf32>, vector<8x16x16xf32> -> vector<8x16x16xf32>
    "tpu.trace_stop"() : () -> ()
    %8 = vector.shape_cast %7 : vector<8x16x16xf32> to vector<2x4x16x16xf32>
    %9 = vector.extract_strided_slice %1 {offsets = [0, 0, 0, 0], sizes = [4, 1, 16, 16], strides = [1, 1, 1, 1]} : vector<4x2x16x16xf32> to vector<4x1x16x16xf32>
    %10 = vector.shape_cast %9 : vector<4x1x16x16xf32> to vector<4x16x16xf32>
    %11 = vector.shape_cast %10 : vector<4x16x16xf32> to vector<1x4x16x16xf32>
    %12 = vector.broadcast %11 : vector<1x4x16x16xf32> to vector<2x4x16x16xf32>
    %13 = arith.addf %8, %12 : vector<2x4x16x16xf32>
    %14 = vector.shape_cast %13 : vector<2x4x16x16xf32> to vector<8x16x16xf32>
    %cst_7 = arith.constant dense<0xFF800000> : vector<8x16xf32>
    %15 = vector.multi_reduction <maximumf>, %14, %cst_7 [2] : vector<8x16x16xf32> to vector<8x16xf32>
    %16 = vector.shape_cast %15 : vector<8x16xf32> to vector<8x16x1xf32>
    %17 = vector.broadcast %16 : vector<8x16x1xf32> to vector<8x16x16xf32>
    %18 = arith.subf %14, %17 : vector<8x16x16xf32>
    %19 = math.exp %18 : vector<8x16x16xf32>
    %cst_8 = arith.constant dense<0.000000e+00> : vector<8x16xf32>
    %20 = vector.multi_reduction <add>, %19, %cst_8 [2] : vector<8x16x16xf32> to vector<8x16xf32>
    %21 = vector.shape_cast %20 : vector<8x16xf32> to vector<8x16x1xf32>
    %22 = tpu.reciprocal %21 {approx = true} : vector<8x16x1xf32> -> vector<8x16x1xf32>
    %23 = vector.broadcast %22 : vector<8x16x1xf32> to vector<8x16x16xf32>
    %24 = arith.mulf %19, %23 : vector<8x16x16xf32>
    "tpu.trace_start"() <{level = 10 : i32, message = "bnm,bmd->bnd"}> : () -> ()
    %cst_9 = arith.constant dense<0.000000e+00> : vector<8x16x16xf32>
    %25 = tpu.matmul %24, %6, %cst_9 {dimension_numbers = #tpu.dot_dimension_numbers<[2], [1], [1], [2], [0, 0, 0, 1, 1, 2], [0], [0]>} : vector<8x16x16xf32>, vector<8x16x16xf32>, vector<8x16x16xf32> -> vector<8x16x16xf32>
    "tpu.trace_stop"() : () -> ()
    %c0_10 = arith.constant 0 : index
    %c0_11 = arith.constant 0 : index
    %c0_12 = arith.constant 0 : index
    %26 = vector.load %arg2[%c0_10, %c0_11, %c0_12] : memref<8x16x32xf32, #tpu.memory_space<vmem>>, vector<8x16x16xf32>
    tpu.vector_store %arg2[%c0_10, %c0_11, %c0_12], %25 {strides = array<i32>} : memref<8x16x32xf32, #tpu.memory_space<vmem>>, vector<8x16x16xf32>,
    %27 = vector.extract_strided_slice %0 {offsets = [0, 0, 16], sizes = [8, 16, 16], strides = [1, 1, 1]} : vector<8x16x96xf32> to vector<8x16x16xf32>
    %cst_13 = arith.constant 2.500000e-01 : f32
    %28 = vector.broadcast %cst_13 : f32 to vector<8x16x16xf32>
    %29 = arith.mulf %27, %28 : vector<8x16x16xf32>
    %30 = vector.extract_strided_slice %0 {offsets = [0, 0, 48], sizes = [8, 16, 16], strides = [1, 1, 1]} : vector<8x16x96xf32> to vector<8x16x16xf32>
    %31 = vector.extract_strided_slice %0 {offsets = [0, 0, 80], sizes = [8, 16, 16], strides = [1, 1, 1]} : vector<8x16x96xf32> to vector<8x16x16xf32>
    "tpu.trace_start"() <{level = 10 : i32, message = "bnd,bmd->bnm"}> : () -> ()
    %cst_14 = arith.constant dense<0.000000e+00> : vector<8x16x16xf32>
    %32 = tpu.matmul %29, %30, %cst_14 {dimension_numbers = #tpu.dot_dimension_numbers<[2], [2], [1], [1], [0, 0, 0, 1, 1, 1], [0], [0]>} : vector<8x16x16xf32>, vector<8x16x16xf32>, vector<8x16x16xf32> -> vector<8x16x16xf32>
    "tpu.trace_stop"() : () -> ()
    %33 = vector.shape_cast %32 : vector<8x16x16xf32> to vector<2x4x16x16xf32>
    %34 = vector.extract_strided_slice %1 {offsets = [0, 1, 0, 0], sizes = [4, 1, 16, 16], strides = [1, 1, 1, 1]} : vector<4x2x16x16xf32> to vector<4x1x16x16xf32>
    %35 = vector.shape_cast %34 : vector<4x1x16x16xf32> to vector<4x16x16xf32>
    %36 = vector.shape_cast %35 : vector<4x16x16xf32> to vector<1x4x16x16xf32>
    %37 = vector.broadcast %36 : vector<1x4x16x16xf32> to vector<2x4x16x16xf32>
    %38 = arith.addf %33, %37 : vector<2x4x16x16xf32>
    %39 = vector.shape_cast %38 : vector<2x4x16x16xf32> to vector<8x16x16xf32>
    %cst_15 = arith.constant dense<0xFF800000> : vector<8x16xf32>
    %40 = vector.multi_reduction <maximumf>, %39, %cst_15 [2] : vector<8x16x16xf32> to vector<8x16xf32>
    %41 = vector.shape_cast %40 : vector<8x16xf32> to vector<8x16x1xf32>
    %42 = vector.broadcast %41 : vector<8x16x1xf32> to vector<8x16x16xf32>
    %43 = arith.subf %39, %42 : vector<8x16x16xf32>
    %44 = math.exp %43 : vector<8x16x16xf32>
    %cst_16 = arith.constant dense<0.000000e+00> : vector<8x16xf32>
    %45 = vector.multi_reduction <add>, %44, %cst_16 [2] : vector<8x16x16xf32> to vector<8x16xf32>
    %46 = vector.shape_cast %45 : vector<8x16xf32> to vector<8x16x1xf32>
    %47 = tpu.reciprocal %46 {approx = true} : vector<8x16x1xf32> -> vector<8x16x1xf32>
    %48 = vector.broadcast %47 : vector<8x16x1xf32> to vector<8x16x16xf32>
    %49 = arith.mulf %44, %48 : vector<8x16x16xf32>
    "tpu.trace_start"() <{level = 10 : i32, message = "bnm,bmd->bnd"}> : () -> ()
    %cst_17 = arith.constant dense<0.000000e+00> : vector<8x16x16xf32>
    %50 = tpu.matmul %49, %31, %cst_17 {dimension_numbers = #tpu.dot_dimension_numbers<[2], [1], [1], [2], [0, 0, 0, 1, 1, 2], [0], [0]>} : vector<8x16x16xf32>, vector<8x16x16xf32>, vector<8x16x16xf32> -> vector<8x16x16xf32>
    "tpu.trace_stop"() : () -> ()
    %c0_18 = arith.constant 0 : index
    %c0_19 = arith.constant 0 : index
    %c16 = arith.constant 16 : index
    %51 = vector.load %arg2[%c0_18, %c0_19, %c16] : memref<8x16x32xf32, #tpu.memory_space<vmem>>, vector<8x16x16xf32>
    tpu.vector_store %arg2[%c0_18, %c0_19, %c16], %50 {strides = array<i32>} : memref<8x16x32xf32, #tpu.memory_space<vmem>>, vector<8x16x16xf32>,
    return
  }
}

module attributes {stable_mosaic.version = 11 : i64} {
  func.func @_ln_linear_kernel(%arg0: i32, %arg1: memref<32x128xf32, #tpu.memory_space<vmem>>, %arg2: memref<1x128xf32, #tpu.memory_space<vmem>>, %arg3: memref<1x128xf32, #tpu.memory_space<vmem>>, %arg4: memref<128x64xf32, #tpu.memory_space<vmem>>, %arg5: memref<1x64xf32, #tpu.memory_space<vmem>>, %arg6: memref<32x64xf32, #tpu.memory_space<vmem>>) attributes {dimension_semantics = [#tpu.dimension_semantics<parallel>], iteration_bounds = array<i64: 1>, scalar_prefetch = 0 : i64, scratch_operands = 0 : i64, tpu.core_type = #tpu.core_type<tc>, window_params = [{transform_indices = @transform_0, window_bounds = array<i64: 32, 128>}, {pipeline_mode = #tpu.pipeline_mode<synchronous>, transform_indices = @transform_1, window_bounds = array<i64: 1, 128>}, {pipeline_mode = #tpu.pipeline_mode<synchronous>, transform_indices = @transform_2, window_bounds = array<i64: 1, 128>}, {pipeline_mode = #tpu.pipeline_mode<synchronous>, transform_indices = @transform_3, window_bounds = array<i64: 128, 64>}, {pipeline_mode = #tpu.pipeline_mode<synchronous>, transform_indices = @transform_4, window_bounds = array<i64: 1, 64>}, {transform_indices = @transform_5, window_bounds = array<i64: 32, 64>}]} {
    %c0 = arith.constant 0 : index
    %c0_0 = arith.constant 0 : index
    %0 = vector.load %arg1[%c0, %c0_0] : memref<32x128xf32, #tpu.memory_space<vmem>>, vector<32x128xf32>
    %c0_1 = arith.constant 0 : index
    %c0_2 = arith.constant 0 : index
    %1 = vector.load %arg2[%c0_1, %c0_2] : memref<1x128xf32, #tpu.memory_space<vmem>>, vector<1x128xf32>
    %c0_3 = arith.constant 0 : index
    %c0_4 = arith.constant 0 : index
    %2 = vector.load %arg3[%c0_3, %c0_4] : memref<1x128xf32, #tpu.memory_space<vmem>>, vector<1x128xf32>
    %cst = arith.constant dense<0.000000e+00> : vector<32xf32>
    %3 = vector.multi_reduction <add>, %0, %cst [1] : vector<32x128xf32> to vector<32xf32>
    %4 = vector.shape_cast %3 : vector<32xf32> to vector<32x1xf32>
    %cst_5 = arith.constant 1.280000e+02 : f32
    %5 = vector.broadcast %cst_5 : f32 to vector<32x1xf32>
    %6 = arith.divf %4, %5 : vector<32x1xf32>
    %7 = vector.broadcast %6 : vector<32x1xf32> to vector<32x128xf32>
    %8 = arith.subf %0, %7 : vector<32x128xf32>
    %9 = arith.mulf %8, %8 : vector<32x128xf32>
    %cst_6 = arith.constant dense<0.000000e+00> : vector<32xf32>
    %10 = vector.multi_reduction <add>, %9, %cst_6 [1] : vector<32x128xf32> to vector<32xf32>
    %11 = vector.shape_cast %10 : vector<32xf32> to vector<32x1xf32>
    %cst_7 = arith.constant 1.280000e+02 : f32
    %12 = vector.broadcast %cst_7 : f32 to vector<32x1xf32>
    %13 = arith.divf %11, %12 : vector<32x1xf32>
    %cst_8 = arith.constant 9.99999974E-6 : f32
    %14 = vector.broadcast %cst_8 : f32 to vector<32x1xf32>
    %15 = arith.addf %13, %14 : vector<32x1xf32>
    %16 = math.rsqrt %15 : vector<32x1xf32>
    %17 = vector.broadcast %16 : vector<32x1xf32> to vector<32x128xf32>
    %18 = arith.mulf %8, %17 : vector<32x128xf32>
    %19 = vector.broadcast %1 : vector<1x128xf32> to vector<32x128xf32>
    %20 = arith.mulf %18, %19 : vector<32x128xf32>
    %21 = vector.broadcast %2 : vector<1x128xf32> to vector<32x128xf32>
    %22 = arith.addf %20, %21 : vector<32x128xf32>
    %c0_9 = arith.constant 0 : index
    %c0_10 = arith.constant 0 : index
    %23 = vector.load %arg4[%c0_9, %c0_10] : memref<128x64xf32, #tpu.memory_space<vmem>>, vector<128x64xf32>
    %cst_11 = arith.constant dense<0.000000e+00> : vector<32x64xf32>
    %24 = tpu.matmul %22, %23, %cst_11 {dimension_numbers = #tpu.dot_dimension_numbers<[1], [0], [0], [1], [0, 0, 1, 1], [], []>} : vector<32x128xf32>, vector<128x64xf32>, vector<32x64xf32> -> vector<32x64xf32>
    %c0_12 = arith.constant 0 : index
    %c0_13 = arith.constant 0 : index
    %25 = vector.load %arg5[%c0_12, %c0_13] : memref<1x64xf32, #tpu.memory_space<vmem>>, vector<1x64xf32>
    %26 = vector.broadcast %25 : vector<1x64xf32> to vector<32x64xf32>
    %27 = arith.addf %24, %26 : vector<32x64xf32>
    %c0_14 = arith.constant 0 : index
    %c0_15 = arith.constant 0 : index
    %28 = vector.load %arg6[%c0_14, %c0_15] : memref<32x64xf32, #tpu.memory_space<vmem>>, vector<32x64xf32>
    tpu.vector_store %arg6[%c0_14, %c0_15], %27 {strides = array<i32>} : memref<32x64xf32, #tpu.memory_space<vmem>>, vector<32x64xf32>,
    return
  }
  func.func @transform_0(%arg0: i32) -> (i32, i32) {
    %c0_i32 = arith.constant 0 : i32
    %c0_i32_0 = arith.constant 0 : i32
    return %arg0, %c0_i32 : i32, i32
  }
  func.func @transform_1(%arg0: i32) -> (i32, i32) {
    %c0_i32 = arith.constant 0 : i32
    %c0_i32_0 = arith.constant 0 : i32
    %c0_i32_1 = arith.constant 0 : i32
    return %c0_i32, %c0_i32_0 : i32, i32
  }
  func.func @transform_2(%arg0: i32) -> (i32, i32) {
    %c0_i32 = arith.constant 0 : i32
    %c0_i32_0 = arith.constant 0 : i32
    %c0_i32_1 = arith.constant 0 : i32
    return %c0_i32, %c0_i32_0 : i32, i32
  }
  func.func @transform_3(%arg0: i32) -> (i32, i32) {
    %c0_i32 = arith.constant 0 : i32
    %c0_i32_0 = arith.constant 0 : i32
    %c0_i32_1 = arith.constant 0 : i32
    return %c0_i32, %c0_i32_0 : i32, i32
  }
  func.func @transform_4(%arg0: i32) -> (i32, i32) {
    %c0_i32 = arith.constant 0 : i32
    %c0_i32_0 = arith.constant 0 : i32
    %c0_i32_1 = arith.constant 0 : i32
    return %c0_i32, %c0_i32_0 : i32, i32
  }
  func.func @transform_5(%arg0: i32) -> (i32, i32) {
    %c0_i32 = arith.constant 0 : i32
    %c0_i32_0 = arith.constant 0 : i32
    return %arg0, %c0_i32 : i32, i32
  }
}

module attributes {stable_mosaic.version = 11 : i64} {
  func.func @_layernorm_kernel(%arg0: i32, %arg1: memref<128x32xf32, #tpu.memory_space<vmem>>, %arg2: memref<1x32xf32, #tpu.memory_space<vmem>>, %arg3: memref<1x32xf32, #tpu.memory_space<vmem>>, %arg4: memref<128x32xf32, #tpu.memory_space<vmem>>) attributes {dimension_semantics = [#tpu.dimension_semantics<parallel>], iteration_bounds = array<i64: 1>, scalar_prefetch = 0 : i64, scratch_operands = 0 : i64, tpu.core_type = #tpu.core_type<tc>, window_params = [{transform_indices = @transform_0, window_bounds = array<i64: 128, 32>}, {pipeline_mode = #tpu.pipeline_mode<synchronous>, transform_indices = @transform_1, window_bounds = array<i64: 1, 32>}, {pipeline_mode = #tpu.pipeline_mode<synchronous>, transform_indices = @transform_2, window_bounds = array<i64: 1, 32>}, {transform_indices = @transform_3, window_bounds = array<i64: 128, 32>}]} {
    %c0 = arith.constant 0 : index
    %c0_0 = arith.constant 0 : index
    %0 = vector.load %arg1[%c0, %c0_0] : memref<128x32xf32, #tpu.memory_space<vmem>>, vector<128x32xf32>
    %c0_1 = arith.constant 0 : index
    %c0_2 = arith.constant 0 : index
    %1 = vector.load %arg2[%c0_1, %c0_2] : memref<1x32xf32, #tpu.memory_space<vmem>>, vector<1x32xf32>
    %c0_3 = arith.constant 0 : index
    %c0_4 = arith.constant 0 : index
    %2 = vector.load %arg3[%c0_3, %c0_4] : memref<1x32xf32, #tpu.memory_space<vmem>>, vector<1x32xf32>
    %cst = arith.constant dense<0.000000e+00> : vector<128xf32>
    %3 = vector.multi_reduction <add>, %0, %cst [1] : vector<128x32xf32> to vector<128xf32>
    %4 = vector.shape_cast %3 : vector<128xf32> to vector<128x1xf32>
    %cst_5 = arith.constant 3.200000e+01 : f32
    %5 = vector.broadcast %cst_5 : f32 to vector<128x1xf32>
    %6 = arith.divf %4, %5 : vector<128x1xf32>
    %7 = vector.broadcast %6 : vector<128x1xf32> to vector<128x32xf32>
    %8 = arith.subf %0, %7 : vector<128x32xf32>
    %9 = arith.mulf %8, %8 : vector<128x32xf32>
    %cst_6 = arith.constant dense<0.000000e+00> : vector<128xf32>
    %10 = vector.multi_reduction <add>, %9, %cst_6 [1] : vector<128x32xf32> to vector<128xf32>
    %11 = vector.shape_cast %10 : vector<128xf32> to vector<128x1xf32>
    %cst_7 = arith.constant 3.200000e+01 : f32
    %12 = vector.broadcast %cst_7 : f32 to vector<128x1xf32>
    %13 = arith.divf %11, %12 : vector<128x1xf32>
    %cst_8 = arith.constant 9.99999974E-6 : f32
    %14 = vector.broadcast %cst_8 : f32 to vector<128x1xf32>
    %15 = arith.addf %13, %14 : vector<128x1xf32>
    %16 = math.rsqrt %15 : vector<128x1xf32>
    %17 = vector.broadcast %16 : vector<128x1xf32> to vector<128x32xf32>
    %18 = arith.mulf %8, %17 : vector<128x32xf32>
    %19 = vector.broadcast %1 : vector<1x32xf32> to vector<128x32xf32>
    %20 = arith.mulf %18, %19 : vector<128x32xf32>
    %21 = vector.broadcast %2 : vector<1x32xf32> to vector<128x32xf32>
    %22 = arith.addf %20, %21 : vector<128x32xf32>
    %c0_9 = arith.constant 0 : index
    %c0_10 = arith.constant 0 : index
    %23 = vector.load %arg4[%c0_9, %c0_10] : memref<128x32xf32, #tpu.memory_space<vmem>>, vector<128x32xf32>
    tpu.vector_store %arg4[%c0_9, %c0_10], %22 {strides = array<i32>} : memref<128x32xf32, #tpu.memory_space<vmem>>, vector<128x32xf32>,
    return
  }
  func.func @transform_0(%arg0: i32) -> (i32, i32) {
    %c0_i32 = arith.constant 0 : i32
    %c0_i32_0 = arith.constant 0 : i32
    return %arg0, %c0_i32 : i32, i32
  }
  func.func @transform_1(%arg0: i32) -> (i32, i32) {
    %c0_i32 = arith.constant 0 : i32
    %c0_i32_0 = arith.constant 0 : i32
    %c0_i32_1 = arith.constant 0 : i32
    return %c0_i32, %c0_i32_0 : i32, i32
  }
  func.func @transform_2(%arg0: i32) -> (i32, i32) {
    %c0_i32 = arith.constant 0 : i32
    %c0_i32_0 = arith.constant 0 : i32
    %c0_i32_1 = arith.constant 0 : i32
    return %c0_i32, %c0_i32_0 : i32, i32
  }
  func.func @transform_3(%arg0: i32) -> (i32, i32) {
    %c0_i32 = arith.constant 0 : i32
    %c0_i32_0 = arith.constant 0 : i32
    return %arg0, %c0_i32 : i32, i32
  }
}

module attributes {stable_mosaic.version = 11 : i64} {
  func.func @_ln_linear_kernel(%arg0: i32, %arg1: memref<32x64xf32, #tpu.memory_space<vmem>>, %arg2: memref<1x64xf32, #tpu.memory_space<vmem>>, %arg3: memref<1x64xf32, #tpu.memory_space<vmem>>, %arg4: memref<64x192xf32, #tpu.memory_space<vmem>>, %arg5: memref<1x192xf32, #tpu.memory_space<vmem>>, %arg6: memref<32x192xf32, #tpu.memory_space<vmem>>) attributes {dimension_semantics = [#tpu.dimension_semantics<parallel>], iteration_bounds = array<i64: 1>, scalar_prefetch = 0 : i64, scratch_operands = 0 : i64, tpu.core_type = #tpu.core_type<tc>, window_params = [{transform_indices = @transform_0, window_bounds = array<i64: 32, 64>}, {pipeline_mode = #tpu.pipeline_mode<synchronous>, transform_indices = @transform_1, window_bounds = array<i64: 1, 64>}, {pipeline_mode = #tpu.pipeline_mode<synchronous>, transform_indices = @transform_2, window_bounds = array<i64: 1, 64>}, {pipeline_mode = #tpu.pipeline_mode<synchronous>, transform_indices = @transform_3, window_bounds = array<i64: 64, 192>}, {pipeline_mode = #tpu.pipeline_mode<synchronous>, transform_indices = @transform_4, window_bounds = array<i64: 1, 192>}, {transform_indices = @transform_5, window_bounds = array<i64: 32, 192>}]} {
    %c0 = arith.constant 0 : index
    %c0_0 = arith.constant 0 : index
    %0 = vector.load %arg1[%c0, %c0_0] : memref<32x64xf32, #tpu.memory_space<vmem>>, vector<32x64xf32>
    %c0_1 = arith.constant 0 : index
    %c0_2 = arith.constant 0 : index
    %1 = vector.load %arg2[%c0_1, %c0_2] : memref<1x64xf32, #tpu.memory_space<vmem>>, vector<1x64xf32>
    %c0_3 = arith.constant 0 : index
    %c0_4 = arith.constant 0 : index
    %2 = vector.load %arg3[%c0_3, %c0_4] : memref<1x64xf32, #tpu.memory_space<vmem>>, vector<1x64xf32>
    %cst = arith.constant dense<0.000000e+00> : vector<32xf32>
    %3 = vector.multi_reduction <add>, %0, %cst [1] : vector<32x64xf32> to vector<32xf32>
    %4 = vector.shape_cast %3 : vector<32xf32> to vector<32x1xf32>
    %cst_5 = arith.constant 6.400000e+01 : f32
    %5 = vector.broadcast %cst_5 : f32 to vector<32x1xf32>
    %6 = arith.divf %4, %5 : vector<32x1xf32>
    %7 = vector.broadcast %6 : vector<32x1xf32> to vector<32x64xf32>
    %8 = arith.subf %0, %7 : vector<32x64xf32>
    %9 = arith.mulf %8, %8 : vector<32x64xf32>
    %cst_6 = arith.constant dense<0.000000e+00> : vector<32xf32>
    %10 = vector.multi_reduction <add>, %9, %cst_6 [1] : vector<32x64xf32> to vector<32xf32>
    %11 = vector.shape_cast %10 : vector<32xf32> to vector<32x1xf32>
    %cst_7 = arith.constant 6.400000e+01 : f32
    %12 = vector.broadcast %cst_7 : f32 to vector<32x1xf32>
    %13 = arith.divf %11, %12 : vector<32x1xf32>
    %cst_8 = arith.constant 9.99999974E-6 : f32
    %14 = vector.broadcast %cst_8 : f32 to vector<32x1xf32>
    %15 = arith.addf %13, %14 : vector<32x1xf32>
    %16 = math.rsqrt %15 : vector<32x1xf32>
    %17 = vector.broadcast %16 : vector<32x1xf32> to vector<32x64xf32>
    %18 = arith.mulf %8, %17 : vector<32x64xf32>
    %19 = vector.broadcast %1 : vector<1x64xf32> to vector<32x64xf32>
    %20 = arith.mulf %18, %19 : vector<32x64xf32>
    %21 = vector.broadcast %2 : vector<1x64xf32> to vector<32x64xf32>
    %22 = arith.addf %20, %21 : vector<32x64xf32>
    %c0_9 = arith.constant 0 : index
    %c0_10 = arith.constant 0 : index
    %23 = vector.load %arg4[%c0_9, %c0_10] : memref<64x192xf32, #tpu.memory_space<vmem>>, vector<64x192xf32>
    %cst_11 = arith.constant dense<0.000000e+00> : vector<32x192xf32>
    %24 = tpu.matmul %22, %23, %cst_11 {dimension_numbers = #tpu.dot_dimension_numbers<[1], [0], [0], [1], [0, 0, 1, 1], [], []>} : vector<32x64xf32>, vector<64x192xf32>, vector<32x192xf32> -> vector<32x192xf32>
    %c0_12 = arith.constant 0 : index
    %c0_13 = arith.constant 0 : index
    %25 = vector.load %arg5[%c0_12, %c0_13] : memref<1x192xf32, #tpu.memory_space<vmem>>, vector<1x192xf32>
    %26 = vector.broadcast %25 : vector<1x192xf32> to vector<32x192xf32>
    %27 = arith.addf %24, %26 : vector<32x192xf32>
    %c0_14 = arith.constant 0 : index
    %c0_15 = arith.constant 0 : index
    %28 = vector.load %arg6[%c0_14, %c0_15] : memref<32x192xf32, #tpu.memory_space<vmem>>, vector<32x192xf32>
    tpu.vector_store %arg6[%c0_14, %c0_15], %27 {strides = array<i32>} : memref<32x192xf32, #tpu.memory_space<vmem>>, vector<32x192xf32>,
    return
  }
  func.func @transform_0(%arg0: i32) -> (i32, i32) {
    %c0_i32 = arith.constant 0 : i32
    %c0_i32_0 = arith.constant 0 : i32
    return %arg0, %c0_i32 : i32, i32
  }
  func.func @transform_1(%arg0: i32) -> (i32, i32) {
    %c0_i32 = arith.constant 0 : i32
    %c0_i32_0 = arith.constant 0 : i32
    %c0_i32_1 = arith.constant 0 : i32
    return %c0_i32, %c0_i32_0 : i32, i32
  }
  func.func @transform_2(%arg0: i32) -> (i32, i32) {
    %c0_i32 = arith.constant 0 : i32
    %c0_i32_0 = arith.constant 0 : i32
    %c0_i32_1 = arith.constant 0 : i32
    return %c0_i32, %c0_i32_0 : i32, i32
  }
  func.func @transform_3(%arg0: i32) -> (i32, i32) {
    %c0_i32 = arith.constant 0 : i32
    %c0_i32_0 = arith.constant 0 : i32
    %c0_i32_1 = arith.constant 0 : i32
    return %c0_i32, %c0_i32_0 : i32, i32
  }
  func.func @transform_4(%arg0: i32) -> (i32, i32) {
    %c0_i32 = arith.constant 0 : i32
    %c0_i32_0 = arith.constant 0 : i32
    %c0_i32_1 = arith.constant 0 : i32
    return %c0_i32, %c0_i32_0 : i32, i32
  }
  func.func @transform_5(%arg0: i32) -> (i32, i32) {
    %c0_i32 = arith.constant 0 : i32
    %c0_i32_0 = arith.constant 0 : i32
    return %arg0, %c0_i32 : i32, i32
  }
}

module attributes {stable_mosaic.version = 11 : i64} {
  func.func @_window_attn_kernel(%arg0: memref<2x16x192xf32, #tpu.memory_space<vmem>>, %arg1: memref<1x4x16x16xf32, #tpu.memory_space<vmem>>, %arg2: memref<2x16x64xf32, #tpu.memory_space<vmem>>) attributes {dimension_semantics = [], scalar_prefetch = 0 : i64, scratch_operands = 0 : i64, tpu.core_type = #tpu.core_type<tc>} {
    %c0 = arith.constant 0 : index
    %c0_0 = arith.constant 0 : index
    %c0_1 = arith.constant 0 : index
    %0 = vector.load %arg0[%c0, %c0_0, %c0_1] : memref<2x16x192xf32, #tpu.memory_space<vmem>>, vector<2x16x192xf32>
    %c0_2 = arith.constant 0 : index
    %c0_3 = arith.constant 0 : index
    %c0_4 = arith.constant 0 : index
    %c0_5 = arith.constant 0 : index
    %1 = vector.load %arg1[%c0_2, %c0_3, %c0_4, %c0_5] : memref<1x4x16x16xf32, #tpu.memory_space<vmem>>, vector<1x4x16x16xf32>
    %2 = vector.extract_strided_slice %0 {offsets = [0, 0, 0], sizes = [2, 16, 16], strides = [1, 1, 1]} : vector<2x16x192xf32> to vector<2x16x16xf32>
    %cst = arith.constant 2.500000e-01 : f32
    %3 = vector.broadcast %cst : f32 to vector<2x16x16xf32>
    %4 = arith.mulf %2, %3 : vector<2x16x16xf32>
    %5 = vector.extract_strided_slice %0 {offsets = [0, 0, 64], sizes = [2, 16, 16], strides = [1, 1, 1]} : vector<2x16x192xf32> to vector<2x16x16xf32>
    %6 = vector.extract_strided_slice %0 {offsets = [0, 0, 128], sizes = [2, 16, 16], strides = [1, 1, 1]} : vector<2x16x192xf32> to vector<2x16x16xf32>
    "tpu.trace_start"() <{level = 10 : i32, message = "bnd,bmd->bnm"}> : () -> ()
    %cst_6 = arith.constant dense<0.000000e+00> : vector<2x16x16xf32>
    %7 = tpu.matmul %4, %5, %cst_6 {dimension_numbers = #tpu.dot_dimension_numbers<[2], [2], [1], [1], [0, 0, 0, 1, 1, 1], [0], [0]>} : vector<2x16x16xf32>, vector<2x16x16xf32>, vector<2x16x16xf32> -> vector<2x16x16xf32>
    "tpu.trace_stop"() : () -> ()
    %8 = vector.shape_cast %7 : vector<2x16x16xf32> to vector<2x1x16x16xf32>
    %9 = vector.extract_strided_slice %1 {offsets = [0, 0, 0, 0], sizes = [1, 1, 16, 16], strides = [1, 1, 1, 1]} : vector<1x4x16x16xf32> to vector<1x1x16x16xf32>
    %10 = vector.shape_cast %9 : vector<1x1x16x16xf32> to vector<1x16x16xf32>
    %11 = vector.shape_cast %10 : vector<1x16x16xf32> to vector<1x1x16x16xf32>
    %12 = vector.broadcast %11 : vector<1x1x16x16xf32> to vector<2x1x16x16xf32>
    %13 = arith.addf %8, %12 : vector<2x1x16x16xf32>
    %14 = vector.shape_cast %13 : vector<2x1x16x16xf32> to vector<2x16x16xf32>
    %cst_7 = arith.constant dense<0xFF800000> : vector<2x16xf32>
    %15 = vector.multi_reduction <maximumf>, %14, %cst_7 [2] : vector<2x16x16xf32> to vector<2x16xf32>
    %16 = vector.shape_cast %15 : vector<2x16xf32> to vector<2x16x1xf32>
    %17 = vector.broadcast %16 : vector<2x16x1xf32> to vector<2x16x16xf32>
    %18 = arith.subf %14, %17 : vector<2x16x16xf32>
    %19 = math.exp %18 : vector<2x16x16xf32>
    %cst_8 = arith.constant dense<0.000000e+00> : vector<2x16xf32>
    %20 = vector.multi_reduction <add>, %19, %cst_8 [2] : vector<2x16x16xf32> to vector<2x16xf32>
    %21 = vector.shape_cast %20 : vector<2x16xf32> to vector<2x16x1xf32>
    %22 = tpu.reciprocal %21 {approx = true} : vector<2x16x1xf32> -> vector<2x16x1xf32>
    %23 = vector.broadcast %22 : vector<2x16x1xf32> to vector<2x16x16xf32>
    %24 = arith.mulf %19, %23 : vector<2x16x16xf32>
    "tpu.trace_start"() <{level = 10 : i32, message = "bnm,bmd->bnd"}> : () -> ()
    %cst_9 = arith.constant dense<0.000000e+00> : vector<2x16x16xf32>
    %25 = tpu.matmul %24, %6, %cst_9 {dimension_numbers = #tpu.dot_dimension_numbers<[2], [1], [1], [2], [0, 0, 0, 1, 1, 2], [0], [0]>} : vector<2x16x16xf32>, vector<2x16x16xf32>, vector<2x16x16xf32> -> vector<2x16x16xf32>
    "tpu.trace_stop"() : () -> ()
    %c0_10 = arith.constant 0 : index
    %c0_11 = arith.constant 0 : index
    %c0_12 = arith.constant 0 : index
    %26 = vector.load %arg2[%c0_10, %c0_11, %c0_12] : memref<2x16x64xf32, #tpu.memory_space<vmem>>, vector<2x16x16xf32>
    tpu.vector_store %arg2[%c0_10, %c0_11, %c0_12], %25 {strides = array<i32>} : memref<2x16x64xf32, #tpu.memory_space<vmem>>, vector<2x16x16xf32>,
    %27 = vector.extract_strided_slice %0 {offsets = [0, 0, 16], sizes = [2, 16, 16], strides = [1, 1, 1]} : vector<2x16x192xf32> to vector<2x16x16xf32>
    %cst_13 = arith.constant 2.500000e-01 : f32
    %28 = vector.broadcast %cst_13 : f32 to vector<2x16x16xf32>
    %29 = arith.mulf %27, %28 : vector<2x16x16xf32>
    %30 = vector.extract_strided_slice %0 {offsets = [0, 0, 80], sizes = [2, 16, 16], strides = [1, 1, 1]} : vector<2x16x192xf32> to vector<2x16x16xf32>
    %31 = vector.extract_strided_slice %0 {offsets = [0, 0, 144], sizes = [2, 16, 16], strides = [1, 1, 1]} : vector<2x16x192xf32> to vector<2x16x16xf32>
    "tpu.trace_start"() <{level = 10 : i32, message = "bnd,bmd->bnm"}> : () -> ()
    %cst_14 = arith.constant dense<0.000000e+00> : vector<2x16x16xf32>
    %32 = tpu.matmul %29, %30, %cst_14 {dimension_numbers = #tpu.dot_dimension_numbers<[2], [2], [1], [1], [0, 0, 0, 1, 1, 1], [0], [0]>} : vector<2x16x16xf32>, vector<2x16x16xf32>, vector<2x16x16xf32> -> vector<2x16x16xf32>
    "tpu.trace_stop"() : () -> ()
    %33 = vector.shape_cast %32 : vector<2x16x16xf32> to vector<2x1x16x16xf32>
    %34 = vector.extract_strided_slice %1 {offsets = [0, 1, 0, 0], sizes = [1, 1, 16, 16], strides = [1, 1, 1, 1]} : vector<1x4x16x16xf32> to vector<1x1x16x16xf32>
    %35 = vector.shape_cast %34 : vector<1x1x16x16xf32> to vector<1x16x16xf32>
    %36 = vector.shape_cast %35 : vector<1x16x16xf32> to vector<1x1x16x16xf32>
    %37 = vector.broadcast %36 : vector<1x1x16x16xf32> to vector<2x1x16x16xf32>
    %38 = arith.addf %33, %37 : vector<2x1x16x16xf32>
    %39 = vector.shape_cast %38 : vector<2x1x16x16xf32> to vector<2x16x16xf32>
    %cst_15 = arith.constant dense<0xFF800000> : vector<2x16xf32>
    %40 = vector.multi_reduction <maximumf>, %39, %cst_15 [2] : vector<2x16x16xf32> to vector<2x16xf32>
    %41 = vector.shape_cast %40 : vector<2x16xf32> to vector<2x16x1xf32>
    %42 = vector.broadcast %41 : vector<2x16x1xf32> to vector<2x16x16xf32>
    %43 = arith.subf %39, %42 : vector<2x16x16xf32>
    %44 = math.exp %43 : vector<2x16x16xf32>
    %cst_16 = arith.constant dense<0.000000e+00> : vector<2x16xf32>
    %45 = vector.multi_reduction <add>, %44, %cst_16 [2] : vector<2x16x16xf32> to vector<2x16xf32>
    %46 = vector.shape_cast %45 : vector<2x16xf32> to vector<2x16x1xf32>
    %47 = tpu.reciprocal %46 {approx = true} : vector<2x16x1xf32> -> vector<2x16x1xf32>
    %48 = vector.broadcast %47 : vector<2x16x1xf32> to vector<2x16x16xf32>
    %49 = arith.mulf %44, %48 : vector<2x16x16xf32>
    "tpu.trace_start"() <{level = 10 : i32, message = "bnm,bmd->bnd"}> : () -> ()
    %cst_17 = arith.constant dense<0.000000e+00> : vector<2x16x16xf32>
    %50 = tpu.matmul %49, %31, %cst_17 {dimension_numbers = #tpu.dot_dimension_numbers<[2], [1], [1], [2], [0, 0, 0, 1, 1, 2], [0], [0]>} : vector<2x16x16xf32>, vector<2x16x16xf32>, vector<2x16x16xf32> -> vector<2x16x16xf32>
    "tpu.trace_stop"() : () -> ()
    %c0_18 = arith.constant 0 : index
    %c0_19 = arith.constant 0 : index
    %c16 = arith.constant 16 : index
    %51 = vector.load %arg2[%c0_18, %c0_19, %c16] : memref<2x16x64xf32, #tpu.memory_space<vmem>>, vector<2x16x16xf32>
    tpu.vector_store %arg2[%c0_18, %c0_19, %c16], %50 {strides = array<i32>} : memref<2x16x64xf32, #tpu.memory_space<vmem>>, vector<2x16x16xf32>,
    %52 = vector.extract_strided_slice %0 {offsets = [0, 0, 32], sizes = [2, 16, 16], strides = [1, 1, 1]} : vector<2x16x192xf32> to vector<2x16x16xf32>
    %cst_20 = arith.constant 2.500000e-01 : f32
    %53 = vector.broadcast %cst_20 : f32 to vector<2x16x16xf32>
    %54 = arith.mulf %52, %53 : vector<2x16x16xf32>
    %55 = vector.extract_strided_slice %0 {offsets = [0, 0, 96], sizes = [2, 16, 16], strides = [1, 1, 1]} : vector<2x16x192xf32> to vector<2x16x16xf32>
    %56 = vector.extract_strided_slice %0 {offsets = [0, 0, 160], sizes = [2, 16, 16], strides = [1, 1, 1]} : vector<2x16x192xf32> to vector<2x16x16xf32>
    "tpu.trace_start"() <{level = 10 : i32, message = "bnd,bmd->bnm"}> : () -> ()
    %cst_21 = arith.constant dense<0.000000e+00> : vector<2x16x16xf32>
    %57 = tpu.matmul %54, %55, %cst_21 {dimension_numbers = #tpu.dot_dimension_numbers<[2], [2], [1], [1], [0, 0, 0, 1, 1, 1], [0], [0]>} : vector<2x16x16xf32>, vector<2x16x16xf32>, vector<2x16x16xf32> -> vector<2x16x16xf32>
    "tpu.trace_stop"() : () -> ()
    %58 = vector.shape_cast %57 : vector<2x16x16xf32> to vector<2x1x16x16xf32>
    %59 = vector.extract_strided_slice %1 {offsets = [0, 2, 0, 0], sizes = [1, 1, 16, 16], strides = [1, 1, 1, 1]} : vector<1x4x16x16xf32> to vector<1x1x16x16xf32>
    %60 = vector.shape_cast %59 : vector<1x1x16x16xf32> to vector<1x16x16xf32>
    %61 = vector.shape_cast %60 : vector<1x16x16xf32> to vector<1x1x16x16xf32>
    %62 = vector.broadcast %61 : vector<1x1x16x16xf32> to vector<2x1x16x16xf32>
    %63 = arith.addf %58, %62 : vector<2x1x16x16xf32>
    %64 = vector.shape_cast %63 : vector<2x1x16x16xf32> to vector<2x16x16xf32>
    %cst_22 = arith.constant dense<0xFF800000> : vector<2x16xf32>
    %65 = vector.multi_reduction <maximumf>, %64, %cst_22 [2] : vector<2x16x16xf32> to vector<2x16xf32>
    %66 = vector.shape_cast %65 : vector<2x16xf32> to vector<2x16x1xf32>
    %67 = vector.broadcast %66 : vector<2x16x1xf32> to vector<2x16x16xf32>
    %68 = arith.subf %64, %67 : vector<2x16x16xf32>
    %69 = math.exp %68 : vector<2x16x16xf32>
    %cst_23 = arith.constant dense<0.000000e+00> : vector<2x16xf32>
    %70 = vector.multi_reduction <add>, %69, %cst_23 [2] : vector<2x16x16xf32> to vector<2x16xf32>
    %71 = vector.shape_cast %70 : vector<2x16xf32> to vector<2x16x1xf32>
    %72 = tpu.reciprocal %71 {approx = true} : vector<2x16x1xf32> -> vector<2x16x1xf32>
    %73 = vector.broadcast %72 : vector<2x16x1xf32> to vector<2x16x16xf32>
    %74 = arith.mulf %69, %73 : vector<2x16x16xf32>
    "tpu.trace_start"() <{level = 10 : i32, message = "bnm,bmd->bnd"}> : () -> ()
    %cst_24 = arith.constant dense<0.000000e+00> : vector<2x16x16xf32>
    %75 = tpu.matmul %74, %56, %cst_24 {dimension_numbers = #tpu.dot_dimension_numbers<[2], [1], [1], [2], [0, 0, 0, 1, 1, 2], [0], [0]>} : vector<2x16x16xf32>, vector<2x16x16xf32>, vector<2x16x16xf32> -> vector<2x16x16xf32>
    "tpu.trace_stop"() : () -> ()
    %c0_25 = arith.constant 0 : index
    %c0_26 = arith.constant 0 : index
    %c32 = arith.constant 32 : index
    %76 = vector.load %arg2[%c0_25, %c0_26, %c32] : memref<2x16x64xf32, #tpu.memory_space<vmem>>, vector<2x16x16xf32>
    tpu.vector_store %arg2[%c0_25, %c0_26, %c32], %75 {strides = array<i32>} : memref<2x16x64xf32, #tpu.memory_space<vmem>>, vector<2x16x16xf32>,
    %77 = vector.extract_strided_slice %0 {offsets = [0, 0, 48], sizes = [2, 16, 16], strides = [1, 1, 1]} : vector<2x16x192xf32> to vector<2x16x16xf32>
    %cst_27 = arith.constant 2.500000e-01 : f32
    %78 = vector.broadcast %cst_27 : f32 to vector<2x16x16xf32>
    %79 = arith.mulf %77, %78 : vector<2x16x16xf32>
    %80 = vector.extract_strided_slice %0 {offsets = [0, 0, 112], sizes = [2, 16, 16], strides = [1, 1, 1]} : vector<2x16x192xf32> to vector<2x16x16xf32>
    %81 = vector.extract_strided_slice %0 {offsets = [0, 0, 176], sizes = [2, 16, 16], strides = [1, 1, 1]} : vector<2x16x192xf32> to vector<2x16x16xf32>
    "tpu.trace_start"() <{level = 10 : i32, message = "bnd,bmd->bnm"}> : () -> ()
    %cst_28 = arith.constant dense<0.000000e+00> : vector<2x16x16xf32>
    %82 = tpu.matmul %79, %80, %cst_28 {dimension_numbers = #tpu.dot_dimension_numbers<[2], [2], [1], [1], [0, 0, 0, 1, 1, 1], [0], [0]>} : vector<2x16x16xf32>, vector<2x16x16xf32>, vector<2x16x16xf32> -> vector<2x16x16xf32>
    "tpu.trace_stop"() : () -> ()
    %83 = vector.shape_cast %82 : vector<2x16x16xf32> to vector<2x1x16x16xf32>
    %84 = vector.extract_strided_slice %1 {offsets = [0, 3, 0, 0], sizes = [1, 1, 16, 16], strides = [1, 1, 1, 1]} : vector<1x4x16x16xf32> to vector<1x1x16x16xf32>
    %85 = vector.shape_cast %84 : vector<1x1x16x16xf32> to vector<1x16x16xf32>
    %86 = vector.shape_cast %85 : vector<1x16x16xf32> to vector<1x1x16x16xf32>
    %87 = vector.broadcast %86 : vector<1x1x16x16xf32> to vector<2x1x16x16xf32>
    %88 = arith.addf %83, %87 : vector<2x1x16x16xf32>
    %89 = vector.shape_cast %88 : vector<2x1x16x16xf32> to vector<2x16x16xf32>
    %cst_29 = arith.constant dense<0xFF800000> : vector<2x16xf32>
    %90 = vector.multi_reduction <maximumf>, %89, %cst_29 [2] : vector<2x16x16xf32> to vector<2x16xf32>
    %91 = vector.shape_cast %90 : vector<2x16xf32> to vector<2x16x1xf32>
    %92 = vector.broadcast %91 : vector<2x16x1xf32> to vector<2x16x16xf32>
    %93 = arith.subf %89, %92 : vector<2x16x16xf32>
    %94 = math.exp %93 : vector<2x16x16xf32>
    %cst_30 = arith.constant dense<0.000000e+00> : vector<2x16xf32>
    %95 = vector.multi_reduction <add>, %94, %cst_30 [2] : vector<2x16x16xf32> to vector<2x16xf32>
    %96 = vector.shape_cast %95 : vector<2x16xf32> to vector<2x16x1xf32>
    %97 = tpu.reciprocal %96 {approx = true} : vector<2x16x1xf32> -> vector<2x16x1xf32>
    %98 = vector.broadcast %97 : vector<2x16x1xf32> to vector<2x16x16xf32>
    %99 = arith.mulf %94, %98 : vector<2x16x16xf32>
    "tpu.trace_start"() <{level = 10 : i32, message = "bnm,bmd->bnd"}> : () -> ()
    %cst_31 = arith.constant dense<0.000000e+00> : vector<2x16x16xf32>
    %100 = tpu.matmul %99, %81, %cst_31 {dimension_numbers = #tpu.dot_dimension_numbers<[2], [1], [1], [2], [0, 0, 0, 1, 1, 2], [0], [0]>} : vector<2x16x16xf32>, vector<2x16x16xf32>, vector<2x16x16xf32> -> vector<2x16x16xf32>
    "tpu.trace_stop"() : () -> ()
    %c0_32 = arith.constant 0 : index
    %c0_33 = arith.constant 0 : index
    %c48 = arith.constant 48 : index
    %101 = vector.load %arg2[%c0_32, %c0_33, %c48] : memref<2x16x64xf32, #tpu.memory_space<vmem>>, vector<2x16x16xf32>
    tpu.vector_store %arg2[%c0_32, %c0_33, %c48], %100 {strides = array<i32>} : memref<2x16x64xf32, #tpu.memory_space<vmem>>, vector<2x16x16xf32>,
    return
  }
}

module attributes {stable_mosaic.version = 11 : i64} {
  func.func @_linear_kernel(%arg0: i32, %arg1: memref<32x64xf32, #tpu.memory_space<vmem>>, %arg2: memref<64x64xf32, #tpu.memory_space<vmem>>, %arg3: memref<1x64xf32, #tpu.memory_space<vmem>>, %arg4: memref<32x64xf32, #tpu.memory_space<vmem>>) attributes {dimension_semantics = [#tpu.dimension_semantics<parallel>], iteration_bounds = array<i64: 1>, scalar_prefetch = 0 : i64, scratch_operands = 0 : i64, tpu.core_type = #tpu.core_type<tc>, window_params = [{transform_indices = @transform_0, window_bounds = array<i64: 32, 64>}, {pipeline_mode = #tpu.pipeline_mode<synchronous>, transform_indices = @transform_1, window_bounds = array<i64: 64, 64>}, {pipeline_mode = #tpu.pipeline_mode<synchronous>, transform_indices = @transform_2, window_bounds = array<i64: 1, 64>}, {transform_indices = @transform_3, window_bounds = array<i64: 32, 64>}]} {
    %c0 = arith.constant 0 : index
    %c0_0 = arith.constant 0 : index
    %0 = vector.load %arg1[%c0, %c0_0] : memref<32x64xf32, #tpu.memory_space<vmem>>, vector<32x64xf32>
    %c0_1 = arith.constant 0 : index
    %c0_2 = arith.constant 0 : index
    %1 = vector.load %arg2[%c0_1, %c0_2] : memref<64x64xf32, #tpu.memory_space<vmem>>, vector<64x64xf32>
    %cst = arith.constant dense<0.000000e+00> : vector<32x64xf32>
    %2 = tpu.matmul %0, %1, %cst {dimension_numbers = #tpu.dot_dimension_numbers<[1], [0], [0], [1], [0, 0, 1, 1], [], []>} : vector<32x64xf32>, vector<64x64xf32>, vector<32x64xf32> -> vector<32x64xf32>
    %c0_3 = arith.constant 0 : index
    %c0_4 = arith.constant 0 : index
    %3 = vector.load %arg3[%c0_3, %c0_4] : memref<1x64xf32, #tpu.memory_space<vmem>>, vector<1x64xf32>
    %4 = vector.broadcast %3 : vector<1x64xf32> to vector<32x64xf32>
    %5 = arith.addf %2, %4 : vector<32x64xf32>
    %c0_5 = arith.constant 0 : index
    %c0_6 = arith.constant 0 : index
    %6 = vector.load %arg4[%c0_5, %c0_6] : memref<32x64xf32, #tpu.memory_space<vmem>>, vector<32x64xf32>
    tpu.vector_store %arg4[%c0_5, %c0_6], %5 {strides = array<i32>} : memref<32x64xf32, #tpu.memory_space<vmem>>, vector<32x64xf32>,
    return
  }
  func.func @transform_0(%arg0: i32) -> (i32, i32) {
    %c0_i32 = arith.constant 0 : i32
    %c0_i32_0 = arith.constant 0 : i32
    return %arg0, %c0_i32 : i32, i32
  }
  func.func @transform_1(%arg0: i32) -> (i32, i32) {
    %c0_i32 = arith.constant 0 : i32
    %c0_i32_0 = arith.constant 0 : i32
    %c0_i32_1 = arith.constant 0 : i32
    return %c0_i32, %c0_i32_0 : i32, i32
  }
  func.func @transform_2(%arg0: i32) -> (i32, i32) {
    %c0_i32 = arith.constant 0 : i32
    %c0_i32_0 = arith.constant 0 : i32
    %c0_i32_1 = arith.constant 0 : i32
    return %c0_i32, %c0_i32_0 : i32, i32
  }
  func.func @transform_3(%arg0: i32) -> (i32, i32) {
    %c0_i32 = arith.constant 0 : i32
    %c0_i32_0 = arith.constant 0 : i32
    return %arg0, %c0_i32 : i32, i32
  }
}

module attributes {stable_mosaic.version = 11 : i64} {
  func.func @_layernorm_kernel(%arg0: i32, %arg1: memref<32x64xf32, #tpu.memory_space<vmem>>, %arg2: memref<1x64xf32, #tpu.memory_space<vmem>>, %arg3: memref<1x64xf32, #tpu.memory_space<vmem>>, %arg4: memref<32x64xf32, #tpu.memory_space<vmem>>) attributes {dimension_semantics = [#tpu.dimension_semantics<parallel>], iteration_bounds = array<i64: 1>, scalar_prefetch = 0 : i64, scratch_operands = 0 : i64, tpu.core_type = #tpu.core_type<tc>, window_params = [{transform_indices = @transform_0, window_bounds = array<i64: 32, 64>}, {pipeline_mode = #tpu.pipeline_mode<synchronous>, transform_indices = @transform_1, window_bounds = array<i64: 1, 64>}, {pipeline_mode = #tpu.pipeline_mode<synchronous>, transform_indices = @transform_2, window_bounds = array<i64: 1, 64>}, {transform_indices = @transform_3, window_bounds = array<i64: 32, 64>}]} {
    %c0 = arith.constant 0 : index
    %c0_0 = arith.constant 0 : index
    %0 = vector.load %arg1[%c0, %c0_0] : memref<32x64xf32, #tpu.memory_space<vmem>>, vector<32x64xf32>
    %c0_1 = arith.constant 0 : index
    %c0_2 = arith.constant 0 : index
    %1 = vector.load %arg2[%c0_1, %c0_2] : memref<1x64xf32, #tpu.memory_space<vmem>>, vector<1x64xf32>
    %c0_3 = arith.constant 0 : index
    %c0_4 = arith.constant 0 : index
    %2 = vector.load %arg3[%c0_3, %c0_4] : memref<1x64xf32, #tpu.memory_space<vmem>>, vector<1x64xf32>
    %cst = arith.constant dense<0.000000e+00> : vector<32xf32>
    %3 = vector.multi_reduction <add>, %0, %cst [1] : vector<32x64xf32> to vector<32xf32>
    %4 = vector.shape_cast %3 : vector<32xf32> to vector<32x1xf32>
    %cst_5 = arith.constant 6.400000e+01 : f32
    %5 = vector.broadcast %cst_5 : f32 to vector<32x1xf32>
    %6 = arith.divf %4, %5 : vector<32x1xf32>
    %7 = vector.broadcast %6 : vector<32x1xf32> to vector<32x64xf32>
    %8 = arith.subf %0, %7 : vector<32x64xf32>
    %9 = arith.mulf %8, %8 : vector<32x64xf32>
    %cst_6 = arith.constant dense<0.000000e+00> : vector<32xf32>
    %10 = vector.multi_reduction <add>, %9, %cst_6 [1] : vector<32x64xf32> to vector<32xf32>
    %11 = vector.shape_cast %10 : vector<32xf32> to vector<32x1xf32>
    %cst_7 = arith.constant 6.400000e+01 : f32
    %12 = vector.broadcast %cst_7 : f32 to vector<32x1xf32>
    %13 = arith.divf %11, %12 : vector<32x1xf32>
    %cst_8 = arith.constant 9.99999974E-6 : f32
    %14 = vector.broadcast %cst_8 : f32 to vector<32x1xf32>
    %15 = arith.addf %13, %14 : vector<32x1xf32>
    %16 = math.rsqrt %15 : vector<32x1xf32>
    %17 = vector.broadcast %16 : vector<32x1xf32> to vector<32x64xf32>
    %18 = arith.mulf %8, %17 : vector<32x64xf32>
    %19 = vector.broadcast %1 : vector<1x64xf32> to vector<32x64xf32>
    %20 = arith.mulf %18, %19 : vector<32x64xf32>
    %21 = vector.broadcast %2 : vector<1x64xf32> to vector<32x64xf32>
    %22 = arith.addf %20, %21 : vector<32x64xf32>
    %c0_9 = arith.constant 0 : index
    %c0_10 = arith.constant 0 : index
    %23 = vector.load %arg4[%c0_9, %c0_10] : memref<32x64xf32, #tpu.memory_space<vmem>>, vector<32x64xf32>
    tpu.vector_store %arg4[%c0_9, %c0_10], %22 {strides = array<i32>} : memref<32x64xf32, #tpu.memory_space<vmem>>, vector<32x64xf32>,
    return
  }
  func.func @transform_0(%arg0: i32) -> (i32, i32) {
    %c0_i32 = arith.constant 0 : i32
    %c0_i32_0 = arith.constant 0 : i32
    return %arg0, %c0_i32 : i32, i32
  }
  func.func @transform_1(%arg0: i32) -> (i32, i32) {
    %c0_i32 = arith.constant 0 : i32
    %c0_i32_0 = arith.constant 0 : i32
    %c0_i32_1 = arith.constant 0 : i32
    return %c0_i32, %c0_i32_0 : i32, i32
  }
  func.func @transform_2(%arg0: i32) -> (i32, i32) {
    %c0_i32 = arith.constant 0 : i32
    %c0_i32_0 = arith.constant 0 : i32
    %c0_i32_1 = arith.constant 0 : i32
    return %c0_i32, %c0_i32_0 : i32, i32
  }
  func.func @transform_3(%arg0: i32) -> (i32, i32) {
    %c0_i32 = arith.constant 0 : i32
    %c0_i32_0 = arith.constant 0 : i32
    return %arg0, %c0_i32 : i32, i32
  }
}

module attributes {stable_mosaic.version = 11 : i64} {
  func.func @_ln_mlp_kernel(%arg0: i32, %arg1: memref<32x64xf32, #tpu.memory_space<vmem>>, %arg2: memref<1x64xf32, #tpu.memory_space<vmem>>, %arg3: memref<1x64xf32, #tpu.memory_space<vmem>>, %arg4: memref<64x256xf32, #tpu.memory_space<vmem>>, %arg5: memref<1x256xf32, #tpu.memory_space<vmem>>, %arg6: memref<256x64xf32, #tpu.memory_space<vmem>>, %arg7: memref<1x64xf32, #tpu.memory_space<vmem>>, %arg8: memref<32x64xf32, #tpu.memory_space<vmem>>) attributes {dimension_semantics = [#tpu.dimension_semantics<parallel>], iteration_bounds = array<i64: 1>, scalar_prefetch = 0 : i64, scratch_operands = 0 : i64, tpu.core_type = #tpu.core_type<tc>, window_params = [{transform_indices = @transform_0, window_bounds = array<i64: 32, 64>}, {pipeline_mode = #tpu.pipeline_mode<synchronous>, transform_indices = @transform_1, window_bounds = array<i64: 1, 64>}, {pipeline_mode = #tpu.pipeline_mode<synchronous>, transform_indices = @transform_2, window_bounds = array<i64: 1, 64>}, {pipeline_mode = #tpu.pipeline_mode<synchronous>, transform_indices = @transform_3, window_bounds = array<i64: 64, 256>}, {pipeline_mode = #tpu.pipeline_mode<synchronous>, transform_indices = @transform_4, window_bounds = array<i64: 1, 256>}, {pipeline_mode = #tpu.pipeline_mode<synchronous>, transform_indices = @transform_5, window_bounds = array<i64: 256, 64>}, {pipeline_mode = #tpu.pipeline_mode<synchronous>, transform_indices = @transform_6, window_bounds = array<i64: 1, 64>}, {transform_indices = @transform_7, window_bounds = array<i64: 32, 64>}]} {
    %c0 = arith.constant 0 : index
    %c0_0 = arith.constant 0 : index
    %0 = vector.load %arg1[%c0, %c0_0] : memref<32x64xf32, #tpu.memory_space<vmem>>, vector<32x64xf32>
    %c0_1 = arith.constant 0 : index
    %c0_2 = arith.constant 0 : index
    %1 = vector.load %arg2[%c0_1, %c0_2] : memref<1x64xf32, #tpu.memory_space<vmem>>, vector<1x64xf32>
    %c0_3 = arith.constant 0 : index
    %c0_4 = arith.constant 0 : index
    %2 = vector.load %arg3[%c0_3, %c0_4] : memref<1x64xf32, #tpu.memory_space<vmem>>, vector<1x64xf32>
    %cst = arith.constant dense<0.000000e+00> : vector<32xf32>
    %3 = vector.multi_reduction <add>, %0, %cst [1] : vector<32x64xf32> to vector<32xf32>
    %4 = vector.shape_cast %3 : vector<32xf32> to vector<32x1xf32>
    %cst_5 = arith.constant 6.400000e+01 : f32
    %5 = vector.broadcast %cst_5 : f32 to vector<32x1xf32>
    %6 = arith.divf %4, %5 : vector<32x1xf32>
    %7 = vector.broadcast %6 : vector<32x1xf32> to vector<32x64xf32>
    %8 = arith.subf %0, %7 : vector<32x64xf32>
    %9 = arith.mulf %8, %8 : vector<32x64xf32>
    %cst_6 = arith.constant dense<0.000000e+00> : vector<32xf32>
    %10 = vector.multi_reduction <add>, %9, %cst_6 [1] : vector<32x64xf32> to vector<32xf32>
    %11 = vector.shape_cast %10 : vector<32xf32> to vector<32x1xf32>
    %cst_7 = arith.constant 6.400000e+01 : f32
    %12 = vector.broadcast %cst_7 : f32 to vector<32x1xf32>
    %13 = arith.divf %11, %12 : vector<32x1xf32>
    %cst_8 = arith.constant 9.99999974E-6 : f32
    %14 = vector.broadcast %cst_8 : f32 to vector<32x1xf32>
    %15 = arith.addf %13, %14 : vector<32x1xf32>
    %16 = math.rsqrt %15 : vector<32x1xf32>
    %17 = vector.broadcast %16 : vector<32x1xf32> to vector<32x64xf32>
    %18 = arith.mulf %8, %17 : vector<32x64xf32>
    %19 = vector.broadcast %1 : vector<1x64xf32> to vector<32x64xf32>
    %20 = arith.mulf %18, %19 : vector<32x64xf32>
    %21 = vector.broadcast %2 : vector<1x64xf32> to vector<32x64xf32>
    %22 = arith.addf %20, %21 : vector<32x64xf32>
    %c0_9 = arith.constant 0 : index
    %c0_10 = arith.constant 0 : index
    %23 = vector.load %arg4[%c0_9, %c0_10] : memref<64x256xf32, #tpu.memory_space<vmem>>, vector<64x256xf32>
    %cst_11 = arith.constant dense<0.000000e+00> : vector<32x256xf32>
    %24 = tpu.matmul %22, %23, %cst_11 {dimension_numbers = #tpu.dot_dimension_numbers<[1], [0], [0], [1], [0, 0, 1, 1], [], []>} : vector<32x64xf32>, vector<64x256xf32>, vector<32x256xf32> -> vector<32x256xf32>
    %c0_12 = arith.constant 0 : index
    %c0_13 = arith.constant 0 : index
    %25 = vector.load %arg5[%c0_12, %c0_13] : memref<1x256xf32, #tpu.memory_space<vmem>>, vector<1x256xf32>
    %26 = vector.broadcast %25 : vector<1x256xf32> to vector<32x256xf32>
    %27 = arith.addf %24, %26 : vector<32x256xf32>
    %28 = arith.mulf %27, %27 : vector<32x256xf32>
    %29 = arith.mulf %27, %28 : vector<32x256xf32>
    %cst_14 = arith.constant 4.471500e-02 : f32
    %30 = vector.broadcast %cst_14 : f32 to vector<32x256xf32>
    %31 = arith.mulf %30, %29 : vector<32x256xf32>
    %32 = arith.addf %27, %31 : vector<32x256xf32>
    %cst_15 = arith.constant 0.797884583 : f32
    %33 = vector.broadcast %cst_15 : f32 to vector<32x256xf32>
    %34 = arith.mulf %33, %32 : vector<32x256xf32>
    %35 = math.tanh %34 : vector<32x256xf32>
    %cst_16 = arith.constant 1.000000e+00 : f32
    %36 = vector.broadcast %cst_16 : f32 to vector<32x256xf32>
    %37 = arith.addf %36, %35 : vector<32x256xf32>
    %cst_17 = arith.constant 5.000000e-01 : f32
    %38 = vector.broadcast %cst_17 : f32 to vector<32x256xf32>
    %39 = arith.mulf %38, %37 : vector<32x256xf32>
    %40 = arith.mulf %27, %39 : vector<32x256xf32>
    %c0_18 = arith.constant 0 : index
    %c0_19 = arith.constant 0 : index
    %41 = vector.load %arg6[%c0_18, %c0_19] : memref<256x64xf32, #tpu.memory_space<vmem>>, vector<256x64xf32>
    %cst_20 = arith.constant dense<0.000000e+00> : vector<32x64xf32>
    %42 = tpu.matmul %40, %41, %cst_20 {dimension_numbers = #tpu.dot_dimension_numbers<[1], [0], [0], [1], [0, 0, 1, 1], [], []>} : vector<32x256xf32>, vector<256x64xf32>, vector<32x64xf32> -> vector<32x64xf32>
    %c0_21 = arith.constant 0 : index
    %c0_22 = arith.constant 0 : index
    %43 = vector.load %arg7[%c0_21, %c0_22] : memref<1x64xf32, #tpu.memory_space<vmem>>, vector<1x64xf32>
    %44 = vector.broadcast %43 : vector<1x64xf32> to vector<32x64xf32>
    %45 = arith.addf %42, %44 : vector<32x64xf32>
    %c0_23 = arith.constant 0 : index
    %c0_24 = arith.constant 0 : index
    %46 = vector.load %arg8[%c0_23, %c0_24] : memref<32x64xf32, #tpu.memory_space<vmem>>, vector<32x64xf32>
    tpu.vector_store %arg8[%c0_23, %c0_24], %45 {strides = array<i32>} : memref<32x64xf32, #tpu.memory_space<vmem>>, vector<32x64xf32>,
    return
  }
  func.func @transform_0(%arg0: i32) -> (i32, i32) {
    %c0_i32 = arith.constant 0 : i32
    %c0_i32_0 = arith.constant 0 : i32
    return %arg0, %c0_i32 : i32, i32
  }
  func.func @transform_1(%arg0: i32) -> (i32, i32) {
    %c0_i32 = arith.constant 0 : i32
    %c0_i32_0 = arith.constant 0 : i32
    %c0_i32_1 = arith.constant 0 : i32
    return %c0_i32, %c0_i32_0 : i32, i32
  }
  func.func @transform_2(%arg0: i32) -> (i32, i32) {
    %c0_i32 = arith.constant 0 : i32
    %c0_i32_0 = arith.constant 0 : i32
    %c0_i32_1 = arith.constant 0 : i32
    return %c0_i32, %c0_i32_0 : i32, i32
  }
  func.func @transform_3(%arg0: i32) -> (i32, i32) {
    %c0_i32 = arith.constant 0 : i32
    %c0_i32_0 = arith.constant 0 : i32
    %c0_i32_1 = arith.constant 0 : i32
    return %c0_i32, %c0_i32_0 : i32, i32
  }
  func.func @transform_4(%arg0: i32) -> (i32, i32) {
    %c0_i32 = arith.constant 0 : i32
    %c0_i32_0 = arith.constant 0 : i32
    %c0_i32_1 = arith.constant 0 : i32
    return %c0_i32, %c0_i32_0 : i32, i32
  }
  func.func @transform_5(%arg0: i32) -> (i32, i32) {
    %c0_i32 = arith.constant 0 : i32
    %c0_i32_0 = arith.constant 0 : i32
    %c0_i32_1 = arith.constant 0 : i32
    return %c0_i32, %c0_i32_0 : i32, i32
  }
  func.func @transform_6(%arg0: i32) -> (i32, i32) {
    %c0_i32 = arith.constant 0 : i32
    %c0_i32_0 = arith.constant 0 : i32
    %c0_i32_1 = arith.constant 0 : i32
    return %c0_i32, %c0_i32_0 : i32, i32
  }
  func.func @transform_7(%arg0: i32) -> (i32, i32) {
    %c0_i32 = arith.constant 0 : i32
    %c0_i32_0 = arith.constant 0 : i32
    return %arg0, %c0_i32 : i32, i32
  }
}

</mosaic_0001>

<bundles_post_ra>
// kernel: encoder_rgbt_swin.41
= control target key start
LH: loop header
LB: loop body
LE: loop exit
PB: predicated region body
PF: predicated region fallthrough
CT: control target
= control target key end

     0   :  { %vm38_vm0 = vcmask 261120   ;;  %vm496_vm1 = vcmask 785408   ;;  %s995_s0 = inlined_call_operand.vmem [shape: f32[128,32], index: 0, kind: input, shape index: {}]   ;;  %s996_s3 = inlined_call_operand.vmem [shape: f32[32,96], index: 3, kind: input, shape index: {}]   ;;  %s997_s1 = inlined_call_operand.vmem [shape: f32[1,32], index: 1, kind: input, shape index: {}]   ;;  %s998_s2 = inlined_call_operand.vmem [shape: f32[1,32], index: 2, kind: input, shape index: {}]   ;;  %s999_s4 = inlined_call_operand.vmem [shape: f32[1,96], index: 4, kind: input, shape index: {}]   ;;  %s1000_s5 = inlined_call_operand.vmem [shape: f32[128,96], index: 5, kind: output, shape index: {}]  }
   0x1   :  { %v20_v0 = vld [vmem:[%s995_s0] sm:$0xff]  ;;  %v21_v1 = vld [vmem:[%s995_s0 + $0x8] sm:$0xff]  ;;  %v22_v8 = vld [vmem:[%s995_s0 + $0x10] sm:$0xff] }
   0x2   :  { %v28_v2 = vld [vmem:[%s995_s0 + $0x40] sm:$0xff]  ;;  %v39_v3 = vsel %vm38_vm0, %v20_v0, 0.0  ;;  %v42_v4 = vsel %vm38_vm0, %v21_v1, 0.0  ;;  %v29_v5 = vld [vmem:[%s995_s0 + $0x48] sm:$0xff]  ;;  %v30_v9 = vld [vmem:[%s995_s0 + $0x50] sm:$0xff]  ;;  %v45_v10 = vsel %vm38_vm0, %v22_v8, 0.0 }
   0x3   :  { %40 = vadd.xlane.f32.xlu0 %v39_v3  ;;  %43 = vadd.xlane.f32.xlu1 %v42_v4  ;;  %v63_v6 = vsel %vm38_vm0, %v28_v2, 0.0  ;;  %v66_v7 = vsel %vm38_vm0, %v29_v5, 0.0  ;;  %v69_v11 = vsel %vm38_vm0, %v30_v9, 0.0  ;;  %v685_v12 = vld [vmem:[%s995_s0 + $0x18] sm:$0xff]  ;;  %v699_v16 = vld [vmem:[%s995_s0 + $0x20] sm:$0xff]  ;;  %v713_v20 = vld [vmem:[%s995_s0 + $0x28] sm:$0xff] }
   0x4   :  { %v690_v13 = vld [vmem:[%s995_s0 + $0x58] sm:$0xff]  ;;  %v48_v14 = vsel %vm38_vm0, %v685_v12, 0.0  ;;  %v704_v17 = vld [vmem:[%s995_s0 + $0x60] sm:$0xff]  ;;  %v51_v18 = vsel %vm38_vm0, %v699_v16, 0.0  ;;  %v718_v21 = vld [vmem:[%s995_s0 + $0x68] sm:$0xff]  ;;  %v54_v22 = vsel %vm38_vm0, %v713_v20, 0.0 }
   0x5   :  { %v72_v15 = vsel %vm38_vm0, %v690_v13, 0.0  ;;  %v75_v19 = vsel %vm38_vm0, %v704_v17, 0.0  ;;  %v78_v23 = vsel %vm38_vm0, %v718_v21, 0.0  ;;  %v727_v24 = vld [vmem:[%s995_s0 + $0x30] sm:$0xff]  ;;  %v741_v28 = vld [vmem:[%s995_s0 + $0x38] sm:$0xff] }
   0x6   :  { %v732_v25 = vld [vmem:[%s995_s0 + $0x70] sm:$0xff]  ;;  %v57_v26 = vsel %vm38_vm0, %v727_v24, 0.0  ;;  %v746_v29 = vld [vmem:[%s995_s0 + $0x78] sm:$0xff]  ;;  %v60_v30 = vsel %vm38_vm0, %v741_v28, 0.0 }
   0x7   :  { %64 = vadd.xlane.f32.xlu0 %v63_v6  ;;  %67 = vadd.xlane.f32.xlu1 %v66_v7  ;;  %v81_v27 = vsel %vm38_vm0, %v732_v25, 0.0  ;;  %v84_v31 = vsel %vm38_vm0, %v746_v29, 0.0 }
   0xb   :  { %46 = vadd.xlane.f32.xlu0 %v45_v10  ;;  %70 = vadd.xlane.f32.xlu1 %v69_v11 }
   0xf   :  { %49 = vadd.xlane.f32.xlu0 %v48_v14  ;;  %73 = vadd.xlane.f32.xlu1 %v72_v15 }
  0x13   :  { %52 = vadd.xlane.f32.xlu0 %v51_v18  ;;  %76 = vadd.xlane.f32.xlu1 %v75_v19 }
  0x17   :  { %55 = vadd.xlane.f32.xlu0 %v54_v22  ;;  %79 = vadd.xlane.f32.xlu1 %v78_v23 }
  0x1b   :  { %58 = vadd.xlane.f32.xlu0 %v57_v26  ;;  %82 = vadd.xlane.f32.xlu1 %v81_v27 }
  0x1f   :  { %61 = vadd.xlane.f32.xlu0 %v60_v30  ;;  %85 = vadd.xlane.f32.xlu1 %v84_v31 }
  0x8c   :  { %v41_v32 = vpop.xlane.xlu0 %40  ;;  %v44_v33 = vpop.xlane.xlu1 %43 }
  0x8d   :  { %v88_v34 = vmul.f32 0.03125, %v41_v32  ;;  %v89_v35 = vmul.f32 0.03125, %v44_v33 }
  0x8f   :  { %v752_v36 = vsub.f32 %v20_v0, %v88_v34  ;;  %v754_v37 = vsub.f32 %v21_v1, %v89_v35 }
  0x90   :  { %v65_v38 = vpop.xlane.xlu0 %64  ;;  %v68_v39 = vpop.xlane.xlu1 %67 }
  0x91   :  { %v96_v40 = vmul.f32 0.03125, %v65_v38  ;;  %v97_v41 = vmul.f32 0.03125, %v68_v39  ;;  %v120_v42 = vmul.f32 %v752_v36, %v752_v36  ;;  %v121_v43 = vmul.f32 %v754_v37, %v754_v37 }
  0x93   :  { %v760_v44 = vsub.f32 %v28_v2, %v96_v40  ;;  %v762_v45 = vsub.f32 %v29_v5, %v97_v41  ;;  %v136_v46 = vsel %vm38_vm0, %v120_v42, 0.0  ;;  %v139_v49 = vsel %vm38_vm0, %v121_v43, 0.0 }
  0x94   :  { %137 = vadd.xlane.f32.xlu0 %v136_v46  ;;  %v47_v47 = vpop.xlane.xlu0 %46  ;;  %v71_v48 = vpop.xlane.xlu1 %70 }
  0x95   :  { %v90_v50 = vmul.f32 0.03125, %v47_v47  ;;  %v98_v51 = vmul.f32 0.03125, %v71_v48  ;;  %v128_v52 = vmul.f32 %v760_v44, %v760_v44  ;;  %v129_v53 = vmul.f32 %v762_v45, %v762_v45 }
  0x97   :  { %v770_v54 = vsub.f32 %v22_v8, %v90_v50  ;;  %v772_v55 = vsub.f32 %v30_v9, %v98_v51  ;;  %v160_v56 = vsel %vm38_vm0, %v128_v52, 0.0  ;;  %v163_v59 = vsel %vm38_vm0, %v129_v53, 0.0  ;;  %v294_v53 = vld [vmem:[%s996_s3 + $0x10] sm:$0xff] }
  0x98   :  { %140 = vadd.xlane.f32.xlu0 %v139_v49  ;;  %161 = vadd.xlane.f32.xlu1 %v160_v56  ;;  %v50_v57 = vpop.xlane.xlu0 %49  ;;  %v74_v58 = vpop.xlane.xlu1 %73  ;;  %v293_v56 = vld [vmem:[%s996_s3 + $0x8] sm:$0xff] }
  0x99   :  { %v91_v60 = vmul.f32 0.03125, %v50_v57  ;;  %v99_v61 = vmul.f32 0.03125, %v74_v58  ;;  %v122_v62 = vmul.f32 %v770_v54, %v770_v54  ;;  %v130_v63 = vmul.f32 %v772_v55, %v772_v55  ;;  %v292_v57 = vld [vmem:[%s996_s3] sm:$0xff] }
  0x9b   :  { %v781_v0 = vsub.f32 %v685_v12, %v91_v60  ;;  %v784_v1 = vsub.f32 %v690_v13, %v99_v61  ;;  %v142_v2 = vsel %vm38_vm0, %v122_v62, 0.0  ;;  %v166_v5 = vsel %vm38_vm0, %v130_v63, 0.0 }
  0x9c   :  { %164 = vadd.xlane.f32.xlu1 %v163_v59  ;;  %143 = vadd.xlane.f32.xlu0 %v142_v2  ;;  %v53_v3 = vpop.xlane.xlu0 %52  ;;  %v77_v4 = vpop.xlane.xlu1 %76 }
  0x9d   :  { %v92_v6 = vmul.f32 0.03125, %v53_v3  ;;  %v100_v7 = vmul.f32 0.03125, %v77_v4  ;;  %v123_v8 = vmul.f32 %v781_v0, %v781_v0  ;;  %v131_v9 = vmul.f32 %v784_v1, %v784_v1 }
  0x9f   :  { %v793_v10 = vsub.f32 %v699_v16, %v92_v6  ;;  %v796_v11 = vsub.f32 %v704_v17, %v100_v7  ;;  %v145_v12 = vsel %vm38_vm0, %v123_v8, 0.0  ;;  %v169_v15 = vsel %vm38_vm0, %v131_v9, 0.0 }
  0xa0   :  { %167 = vadd.xlane.f32.xlu1 %v166_v5  ;;  %146 = vadd.xlane.f32.xlu0 %v145_v12  ;;  %v56_v13 = vpop.xlane.xlu0 %55  ;;  %v80_v14 = vpop.xlane.xlu1 %79 }
  0xa1   :  { %v93_v18 = vmul.f32 0.03125, %v56_v13  ;;  %v101_v19 = vmul.f32 0.03125, %v80_v14  ;;  %v124_v22 = vmul.f32 %v793_v10, %v793_v10  ;;  %v132_v16 = vmul.f32 %v796_v11, %v796_v11 }
  0xa3   :  { %v805_v23 = vsub.f32 %v713_v20, %v93_v18  ;;  %v808_v17 = vsub.f32 %v718_v21, %v101_v19  ;;  %v148_v26 = vsel %vm38_vm0, %v124_v22, 0.0  ;;  %v172_v31 = vsel %vm38_vm0, %v132_v16, 0.0 }
  0xa4   :  { %170 = vadd.xlane.f32.xlu1 %v169_v15  ;;  %149 = vadd.xlane.f32.xlu0 %v148_v26  ;;  %v59_v27 = vpop.xlane.xlu0 %58  ;;  %v83_v30 = vpop.xlane.xlu1 %82 }
  0xa5   :  { %v94_v32 = vmul.f32 0.03125, %v59_v27  ;;  %v102_v33 = vmul.f32 0.03125, %v83_v30  ;;  %v125_v34 = vmul.f32 %v805_v23, %v805_v23  ;;  %v133_v20 = vmul.f32 %v808_v17, %v808_v17 }
  0xa7   :  { %v817_v35 = vsub.f32 %v727_v24, %v94_v32  ;;  %v820_v21 = vsub.f32 %v732_v25, %v102_v33  ;;  %v151_v38 = vsel %vm38_vm0, %v125_v34, 0.0  ;;  %v175_v41 = vsel %vm38_vm0, %v133_v20, 0.0  ;;  %v857_v32 = vld [vmem:[%s997_s1] ss:$0 sm:$0xff] }
  0xa8   :  { %173 = vadd.xlane.f32.xlu1 %v172_v31  ;;  %152 = vadd.xlane.f32.xlu0 %v151_v38  ;;  %v62_v39 = vpop.xlane.xlu0 %61  ;;  %v86_v40 = vpop.xlane.xlu1 %85 }
  0xa9   :  { %v95_v42 = vmul.f32 0.03125, %v62_v39  ;;  %v103_v43 = vmul.f32 0.03125, %v86_v40  ;;  %v126_v46 = vmul.f32 %v817_v35, %v817_v35  ;;  %v134_v24 = vmul.f32 %v820_v21, %v820_v21  ;;  %v863_v40 = vld [vmem:[%s998_s2] ss:$0 sm:$0xff] }
  0xab   :  { %v829_v47 = vsub.f32 %v741_v28, %v95_v42  ;;  %v832_v25 = vsub.f32 %v746_v29, %v103_v43  ;;  %v154_v48 = vsel %vm38_vm0, %v126_v46, 0.0  ;;  %v178_v49 = vsel %vm38_vm0, %v134_v24, 0.0  ;;  %v295_v29 = vld [vmem:[%s996_s3 + $0x18] sm:$0xff] }
  0xac   :  { %176 = vadd.xlane.f32.xlu1 %v175_v41  ;;  %155 = vadd.xlane.f32.xlu0 %v154_v48 }
  0xad   :  { %v127_v50 = vmul.f32 %v829_v47, %v829_v47  ;;  %v135_v51 = vmul.f32 %v832_v25, %v832_v25  ;;  %556 = vmatprep.subr.mxu0 %v295_v29  ;;  %588 = vmatprep.subr.mxu1 %v295_v29 }
  0xae   :  { %557 = vmatpush3.msra.mxu0 %v295_v29  ;;  %592 = vmatpush3.msra.mxu1 %v295_v29 }
  0xaf   :  { %v157_v52 = vsel %vm38_vm0, %v127_v50, 0.0  ;;  %v181_v28 = vsel %vm38_vm0, %v135_v51, 0.0  ;;  %558 = vmatprep.subr.mxu0 %v294_v53  ;;  %589 = vmatprep.subr.mxu1 %v294_v53 }
  0xb0   :  { %179 = vadd.xlane.f32.xlu1 %v178_v49  ;;  %158 = vadd.xlane.f32.xlu0 %v157_v52 }
  0xb1   :  { %559 = vmatpush3.msra.mxu0 %v294_v53  ;;  %593 = vmatpush3.msra.mxu1 %v294_v53 }
  0xb2   :  { %560 = vmatprep.subr.mxu0 %v293_v56  ;;  %590 = vmatprep.subr.mxu1 %v293_v56 }
  0xb3   :  { %561 = vmatpush3.msra.mxu0 %v293_v56  ;;  %594 = vmatpush3.msra.mxu1 %v293_v56 }
  0xb4   :  { %182 = vadd.xlane.f32.xlu1 %v181_v28  ;;  %562 = vmatprep.subr.mxu0 %v292_v57 }
  0xb5   :  { %563 = vmatpush3.msra.mxu0 %v292_v57  ;;  %591 = vmatprep.subr.mxu1 %v292_v57 }
  0xb6   :  { %595 = vmatpush3.msra.mxu1 %v292_v57 }
 0x11d   :  { %v138_v58 = vpop.xlane.xlu0 %137 }
 0x11e   :  { %v184_v59 = vmul.f32 0.03125, %v138_v58 }
 0x120   :  { %v200_v60 = vadd.f32 1e-05, %v184_v59 }
 0x121   :  { %v162_v61 = vpop.xlane.xlu1 %161  ;;  %v141_v62 = vpop.xlane.xlu0 %140 }
 0x122   :  { %596 = vrsqrt.f32 %v200_v60  ;;  %v192_v63 = vmul.f32 0.03125, %v162_v61  ;;  %v185_v2 = vmul.f32 0.03125, %v141_v62 }
 0x124   :  { %v208_v3 = vadd.f32 1e-05, %v192_v63  ;;  %v201_v4 = vadd.f32 1e-05, %v185_v2 }
 0x125   :  { %v165_v5 = vpop.xlane.xlu1 %164  ;;  %v144_v6 = vpop.xlane.xlu0 %143 }
 0x126   :  { %598 = vrsqrt.f32 %v208_v3  ;;  %v193_v7 = vmul.f32 0.03125, %v165_v5  ;;  %v186_v8 = vmul.f32 0.03125, %v144_v6 }
 0x127   :  { %600 = vrsqrt.f32 %v201_v4 }
 0x128   :  { %v209_v9 = vadd.f32 1e-05, %v193_v7  ;;  %v202_v12 = vadd.f32 1e-05, %v186_v8 }
 0x129   :  { %v168_v13 = vpop.xlane.xlu1 %167  ;;  %v147_v14 = vpop.xlane.xlu0 %146 }
 0x12a   :  { %602 = vrsqrt.f32 %v209_v9  ;;  %v194_v15 = vmul.f32 0.03125, %v168_v13  ;;  %v187_v18 = vmul.f32 0.03125, %v147_v14 }
 0x12b   :  { %604 = vrsqrt.f32 %v202_v12 }
 0x12c   :  { %v210_v19 = vadd.f32 1e-05, %v194_v15  ;;  %v203_v22 = vadd.f32 1e-05, %v187_v18 }
 0x12d   :  { %v171_v16 = vpop.xlane.xlu1 %170  ;;  %v150_v26 = vpop.xlane.xlu0 %149 }
 0x12e   :  { %606 = vrsqrt.f32 %v210_v19  ;;  %v195_v27 = vmul.f32 0.03125, %v171_v16  ;;  %v188_v30 = vmul.f32 0.03125, %v150_v26 }
 0x12f   :  { %v597_v31 = vpop.eup %596  ;;  %608 = vrsqrt.f32 %v203_v22 }
 0x130   :  { %v211_v33 = vadd.f32 1e-05, %v195_v27  ;;  %v204_v34 = vadd.f32 1e-05, %v188_v30  ;;  %v232_v20 = vmul.f32 %v597_v31, %v752_v36 }
 0x131   :  { %v174_v38 = vpop.xlane.xlu1 %173  ;;  %v153_v39 = vpop.xlane.xlu0 %152 }
 0x132   :  { %610 = vrsqrt.f32 %v211_v33  ;;  %v196_v41 = vmul.f32 0.03125, %v174_v38  ;;  %v189_v42 = vmul.f32 0.03125, %v153_v39  ;;  %v254_v43 = vmul.f32 %v857_v32, %v232_v20 }
 0x133   :  { %v599_v46 = vpop.eup %598  ;;  %612 = vrsqrt.f32 %v204_v34 }
 0x134   :  { %v601_v24 = vpop.eup %600  ;;  %v212_v48 = vadd.f32 1e-05, %v196_v41  ;;  %v205_v49 = vadd.f32 1e-05, %v189_v42  ;;  %v276_v50 = vadd.f32 %v863_v40, %v254_v43  ;;  %v240_v36 = vmul.f32 %v599_v46, %v760_v44 }
 0x135   :  { %v177_v51 = vpop.xlane.xlu1 %176  ;;  %v156_v52 = vpop.xlane.xlu0 %155  ;;  %v233_v28 = vmul.f32 %v601_v24, %v754_v37 }
 0x136   :  { %614 = vrsqrt.f32 %v212_v48  ;;  %v197_v29 = vmul.f32 0.03125, %v177_v51  ;;  %v190_v53 = vmul.f32 0.03125, %v156_v52  ;;  %564 = vmatprep.mubr.msk.f32.mxu0 %vm38_vm0, %v276_v50  ;;  %v262_v56 = vmul.f32 %v857_v32, %v240_v36 }
 0x137   :  { %v603_v57 = vpop.eup %602  ;;  %616 = vrsqrt.f32 %v205_v49  ;;  %v255_v58 = vmul.f32 %v857_v32, %v233_v28 }
 0x138   :  { %v605_v59 = vpop.eup %604  ;;  %v213_v60 = vadd.f32 1e-05, %v197_v29  ;;  %v206_v61 = vadd.f32 1e-05, %v190_v53  ;;  %v284_v44 = vadd.f32 %v863_v40, %v262_v56  ;;  %v241_v62 = vmul.f32 %v603_v57, %v762_v45 }
 0x139   :  { %v180_v63 = vpop.xlane.xlu1 %179  ;;  %v159_v37 = vpop.xlane.xlu0 %158  ;;  %v277_v2 = vadd.f32 %v863_v40, %v255_v58  ;;  %v234_v3 = vmul.f32 %v605_v59, %v770_v54 }
 0x13a   :  { %618 = vrsqrt.f32 %v213_v60  ;;  %v198_v4 = vmul.f32 0.03125, %v180_v63  ;;  %v191_v5 = vmul.f32 0.03125, %v159_v37  ;;  %576 = vmatprep.mubr.msk.f32.mxu1 %vm38_vm0, %v284_v44  ;;  %v263_v6 = vmul.f32 %v857_v32, %v241_v62  ;;  %v519_v44 = vld [vmem:[%s999_s4] ss:$0 sm:$0xff] }
 0x13b   :  { %v607_v7 = vpop.eup %606  ;;  %620 = vrsqrt.f32 %v206_v61  ;;  %565 = vmatmul.mubr.msk.f32.vlgmr.msra.gmra.mxu0 %vm38_vm0, %v277_v2  ;;  %v256_v8 = vmul.f32 %v857_v32, %v234_v3 }
 0x13c   :  { %v609_v45 = vpop.eup %608  ;;  %v214_v9 = vadd.f32 1e-05, %v198_v4  ;;  %v207_v12 = vadd.f32 1e-05, %v191_v5  ;;  %v285_v13 = vadd.f32 %v863_v40, %v263_v6  ;;  %v242_v54 = vmul.f32 %v607_v7, %v772_v55 }
 0x13d   :  { %v183_v14 = vpop.xlane.xlu1 %182  ;;  %v278_v15 = vadd.f32 %v863_v40, %v256_v8  ;;  %v235_v18 = vmul.f32 %v609_v45, %v781_v0 }
 0x13e   :  { %622 = vrsqrt.f32 %v214_v9  ;;  %v199_v19 = vmul.f32 0.03125, %v183_v14  ;;  %577 = vmatmul.mubr.msk.f32.vlgmr.msra.gmra.mxu1 %vm38_vm0, %v285_v13  ;;  %v264_v22 = vmul.f32 %v857_v32, %v242_v54 }
 0x13f   :  { %v611_v16 = vpop.eup %610  ;;  %624 = vrsqrt.f32 %v207_v12  ;;  %567 = vmatprep.mubr.msk.f32.mxu0 %vm38_vm0, %v278_v15  ;;  %v257_v26 = vmul.f32 %v857_v32, %v235_v18 }
 0x140   :  { %v613_v27 = vpop.eup %612  ;;  %v215_v30 = vadd.f32 1e-05, %v199_v19  ;;  %v286_v55 = vadd.f32 %v863_v40, %v264_v22  ;;  %v243_v31 = vmul.f32 %v611_v16, %v784_v1 }
 0x141   :  { %v279_v0 = vadd.f32 %v863_v40, %v257_v26  ;;  %v236_v33 = vmul.f32 %v613_v27, %v793_v10 }
 0x142   :  { %626 = vrsqrt.f32 %v215_v30  ;;  %579 = vmatprep.mubr.msk.f32.mxu1 %vm38_vm0, %v286_v55  ;;  %v265_v34 = vmul.f32 %v857_v32, %v243_v31 }
 0x143   :  { %v615_v20 = vpop.eup %614  ;;  %568 = vmatmul.mubr.msk.f32.gmra.mxu0 %vm38_vm0, %v279_v0  ;;  %v258_v38 = vmul.f32 %v857_v32, %v236_v33 }
 0x144   :  { %v617_v39 = vpop.eup %616  ;;  %v287_v41 = vadd.f32 %v863_v40, %v265_v34  ;;  %v244_v42 = vmul.f32 %v615_v20, %v796_v11 }
 0x145   :  { %v280_v1 = vadd.f32 %v863_v40, %v258_v38  ;;  %v237_v43 = vmul.f32 %v617_v39, %v805_v23 }
 0x146   :  { %580 = vmatmul.mubr.msk.f32.gmra.mxu1 %vm38_vm0, %v287_v41  ;;  %v266_v10 = vmul.f32 %v857_v32, %v244_v42 }
 0x147   :  { %v619_v46 = vpop.eup %618  ;;  %570 = vmatprep.mubr.msk.f32.mxu0 %vm38_vm0, %v280_v1  ;;  %v259_v24 = vmul.f32 %v857_v32, %v237_v43 }
 0x148   :  { %v621_v48 = vpop.eup %620  ;;  %v288_v49 = vadd.f32 %v863_v40, %v266_v10  ;;  %v245_v50 = vmul.f32 %v619_v46, %v808_v17 }
 0x149   :  { %v281_v11 = vadd.f32 %v863_v40, %v259_v24  ;;  %v238_v36 = vmul.f32 %v621_v48, %v817_v35 }
 0x14a   :  { %582 = vmatprep.mubr.msk.f32.mxu1 %vm38_vm0, %v288_v49  ;;  %v267_v23 = vmul.f32 %v857_v32, %v245_v50 }
 0x14b   :  { %v623_v51 = vpop.eup %622  ;;  %571 = vmatmul.mubr.msk.f32.gmra.mxu0 %vm38_vm0, %v281_v11  ;;  %v260_v52 = vmul.f32 %v857_v32, %v238_v36 }
 0x14c   :  { %v625_v28 = vpop.eup %624  ;;  %v289_v29 = vadd.f32 %v863_v40, %v267_v23  ;;  %v246_v53 = vmul.f32 %v623_v51, %v820_v21 }
 0x14d   :  { %v282_v17 = vadd.f32 %v863_v40, %v260_v52  ;;  %v239_v56 = vmul.f32 %v625_v28, %v829_v47 }
 0x14e   :  { %583 = vmatmul.mubr.msk.f32.gmra.mxu1 %vm38_vm0, %v289_v29  ;;  %v268_v35 = vmul.f32 %v857_v32, %v246_v53 }
 0x14f   :  { %v627_v57 = vpop.eup %626  ;;  %573 = vmatprep.mubr.msk.f32.mxu0 %vm38_vm0, %v282_v17  ;;  %v261_v58 = vmul.f32 %v857_v32, %v239_v56 }
 0x150   :  { %v290_v59 = vadd.f32 %v863_v40, %v268_v35  ;;  %v247_v60 = vmul.f32 %v627_v57, %v832_v25 }
 0x151   :  { %v283_v61 = vadd.f32 %v863_v40, %v261_v58 }
 0x152   :  { %585 = vmatprep.mubr.msk.f32.mxu1 %vm38_vm0, %v290_v59  ;;  %v269_v21 = vmul.f32 %v857_v32, %v247_v60 }
 0x153   :  { %574 = vmatmul.mubr.msk.f32.gmra.mxu0 %vm38_vm0, %v283_v61 }
 0x154   :  { %v291_v47 = vadd.f32 %v863_v40, %v269_v21 }
 0x156   :  { %586 = vmatmul.mubr.msk.f32.gmra.mxu1 %vm38_vm0, %v291_v47 }
 0x1fb   :  { %v566_v62 = vpop.f32.mrf.mxu0 }
 0x1fc   :  { %v423_v63 = vadd.f32 %v566_v62, %v519_v44 }
 0x1fd   :  { %v417_v25 = vpop.f32.mrf.mxu0 }
 0x1fe   :  { %498 = vst.msk [vmem:[%s1000_s5 + $0x8] sm:$0xff] %vm496_vm1, %v423_v63  ;;  %v418_v32 = vadd.f32 %v519_v44, %v417_v25  ;;  %v578_v37 = vpop.f32.mrf.mxu1 }
 0x1ff   :  { %v463_v2 = vadd.f32 %v578_v37, %v519_v44 }
 0x200   :  { %497 = vst.msk [vmem:[%s1000_s5] sm:$0xff] %vm496_vm1, %v418_v32  ;;  %v457_v40 = vpop.f32.mrf.mxu1 }
 0x201   :  { %506 = vst.msk [vmem:[%s1000_s5 + $0x48] sm:$0xff] %vm496_vm1, %v463_v2  ;;  %v458_v3 = vadd.f32 %v519_v44, %v457_v40 }
 0x203   :  { %505 = vst.msk [vmem:[%s1000_s5 + $0x40] sm:$0xff] %vm496_vm1, %v458_v3  ;;  %v569_v4 = vpop.f32.mrf.mxu0 }
 0x204   :  { %v433_v5 = vadd.f32 %v569_v4, %v519_v44 }
 0x205   :  { %v427_v6 = vpop.f32.mrf.mxu0 }
 0x206   :  { %500 = vst.msk [vmem:[%s1000_s5 + $0x18] sm:$0xff] %vm496_vm1, %v433_v5  ;;  %v428_v7 = vadd.f32 %v519_v44, %v427_v6  ;;  %v581_v8 = vpop.f32.mrf.mxu1 }
 0x207   :  { %v473_v45 = vadd.f32 %v581_v8, %v519_v44 }
 0x208   :  { %499 = vst.msk [vmem:[%s1000_s5 + $0x10] sm:$0xff] %vm496_vm1, %v428_v7  ;;  %v467_v9 = vpop.f32.mrf.mxu1 }
 0x209   :  { %508 = vst.msk [vmem:[%s1000_s5 + $0x58] sm:$0xff] %vm496_vm1, %v473_v45  ;;  %v468_v12 = vadd.f32 %v519_v44, %v467_v9 }
 0x20b   :  { %507 = vst.msk [vmem:[%s1000_s5 + $0x50] sm:$0xff] %vm496_vm1, %v468_v12  ;;  %v572_v13 = vpop.f32.mrf.mxu0 }
 0x20c   :  { %v443_v54 = vadd.f32 %v572_v13, %v519_v44 }
 0x20d   :  { %v437_v14 = vpop.f32.mrf.mxu0 }
 0x20e   :  { %502 = vst.msk [vmem:[%s1000_s5 + $0x28] sm:$0xff] %vm496_vm1, %v443_v54  ;;  %v438_v15 = vadd.f32 %v519_v44, %v437_v14  ;;  %v584_v18 = vpop.f32.mrf.mxu1 }
 0x20f   :  { %v483_v19 = vadd.f32 %v584_v18, %v519_v44 }
 0x210   :  { %501 = vst.msk [vmem:[%s1000_s5 + $0x20] sm:$0xff] %vm496_vm1, %v438_v15  ;;  %v477_v22 = vpop.f32.mrf.mxu1 }
 0x211   :  { %510 = vst.msk [vmem:[%s1000_s5 + $0x68] sm:$0xff] %vm496_vm1, %v483_v19  ;;  %v478_v16 = vadd.f32 %v519_v44, %v477_v22 }
 0x213   :  { %509 = vst.msk [vmem:[%s1000_s5 + $0x60] sm:$0xff] %vm496_vm1, %v478_v16  ;;  %v575_v26 = vpop.f32.mrf.mxu0 }
 0x214   :  { %v453_v27 = vadd.f32 %v575_v26, %v519_v44 }
 0x215   :  { %v447_v30 = vpop.f32.mrf.mxu0 }
 0x216   :  { %504 = vst.msk [vmem:[%s1000_s5 + $0x38] sm:$0xff] %vm496_vm1, %v453_v27  ;;  %v448_v55 = vadd.f32 %v519_v44, %v447_v30  ;;  %v587_v31 = vpop.f32.mrf.mxu1 }
 0x217   :  { %v493_v0 = vadd.f32 %v587_v31, %v519_v44 }
 0x218   :  { %503 = vst.msk [vmem:[%s1000_s5 + $0x30] sm:$0xff] %vm496_vm1, %v448_v55  ;;  %v487_v33 = vpop.f32.mrf.mxu1 }
 0x219   :  { %512 = vst.msk [vmem:[%s1000_s5 + $0x78] sm:$0xff] %vm496_vm1, %v493_v0  ;;  %v488_v34 = vadd.f32 %v519_v44, %v487_v33 }
 0x21b   :  { %511 = vst.msk [vmem:[%s1000_s5 + $0x70] sm:$0xff] %vm496_vm1, %v488_v34 }

// kernel: encoder_rgbt_swin.43
= control target key start
LH: loop header
LB: loop body
LE: loop exit
PB: predicated region body
PF: predicated region fallthrough
CT: control target
= control target key end

     0   :  { %vm41_vm0 = vcmask 261120   ;;  %s495_s1 = inlined_call_operand.vmem [shape: f32[32,32], index: 1, kind: input, shape index: {}]   ;;  %s496_s0 = inlined_call_operand.vmem [shape: f32[128,32], index: 0, kind: input, shape index: {}]   ;;  %s497_s2 = inlined_call_operand.vmem [shape: f32[1,32], index: 2, kind: input, shape index: {}]   ;;  %s498_s3 = inlined_call_operand.vmem [shape: f32[128,32], index: 3, kind: output, shape index: {}]  }
   0x1   :  { %v33_v0 = vld [vmem:[%s495_s1 + $0x18] sm:$0xff]  ;;  %v32_v1 = vld [vmem:[%s495_s1 + $0x10] sm:$0xff]  ;;  %v31_v2 = vld [vmem:[%s495_s1 + $0x8] sm:$0xff] }
   0x2   :  { %292 = vmatprep.subr.mxu0 %v33_v0  ;;  %324 = vmatprep.subr.mxu1 %v33_v0  ;;  %v30_v3 = vld [vmem:[%s495_s1] sm:$0xff]  ;;  %v15_v6 = vld [vmem:[%s496_s0 + $0x8] sm:$0xff]  ;;  %v16_v8 = vld [vmem:[%s496_s0 + $0x10] sm:$0xff] }
   0x3   :  { %293 = vmatpush3.msra.mxu0 %v33_v0  ;;  %328 = vmatpush3.msra.mxu1 %v33_v0  ;;  %v14_v4 = vld [vmem:[%s496_s0] sm:$0xff]  ;;  %v23_v7 = vld [vmem:[%s496_s0 + $0x48] sm:$0xff]  ;;  %v24_v9 = vld [vmem:[%s496_s0 + $0x50] sm:$0xff] }
   0x4   :  { %294 = vmatprep.subr.mxu0 %v32_v1  ;;  %325 = vmatprep.subr.mxu1 %v32_v1  ;;  %v22_v5 = vld [vmem:[%s496_s0 + $0x40] sm:$0xff]  ;;  %v17_v10 = vld [vmem:[%s496_s0 + $0x18] sm:$0xff]  ;;  %v19_v14 = vld [vmem:[%s496_s0 + $0x28] sm:$0xff] }
   0x5   :  { %295 = vmatpush3.msra.mxu0 %v32_v1  ;;  %329 = vmatpush3.msra.mxu1 %v32_v1  ;;  %v25_v11 = vld [vmem:[%s496_s0 + $0x58] sm:$0xff]  ;;  %v18_v12 = vld [vmem:[%s496_s0 + $0x20] sm:$0xff]  ;;  %v27_v15 = vld [vmem:[%s496_s0 + $0x68] sm:$0xff] }
   0x6   :  { %296 = vmatprep.subr.mxu0 %v31_v2  ;;  %326 = vmatprep.subr.mxu1 %v31_v2  ;;  %v26_v13 = vld [vmem:[%s496_s0 + $0x60] sm:$0xff]  ;;  %v20_v16 = vld [vmem:[%s496_s0 + $0x30] sm:$0xff]  ;;  %v21_v18 = vld [vmem:[%s496_s0 + $0x38] sm:$0xff] }
   0x7   :  { %297 = vmatpush3.msra.mxu0 %v31_v2  ;;  %330 = vmatpush3.msra.mxu1 %v31_v2  ;;  %v28_v17 = vld [vmem:[%s496_s0 + $0x70] sm:$0xff]  ;;  %v29_v19 = vld [vmem:[%s496_s0 + $0x78] sm:$0xff]  ;;  %v255_v20 = vld [vmem:[%s497_s2] ss:$0 sm:$0xff] }
   0x8   :  { %298 = vmatprep.subr.mxu0 %v30_v3  ;;  %327 = vmatprep.subr.mxu1 %v30_v3 }
   0x9   :  { %299 = vmatpush3.msra.mxu0 %v30_v3  ;;  %331 = vmatpush3.msra.mxu1 %v30_v3 }
   0xa   :  { %300 = vmatprep.mubr.msk.f32.mxu0 %vm41_vm0, %v14_v4  ;;  %312 = vmatprep.mubr.msk.f32.mxu1 %vm41_vm0, %v22_v5 }
   0xb   :  { %301 = vmatmul.mubr.msk.f32.vlgmr.msra.gmra.mxu0 %vm41_vm0, %v15_v6  ;;  %313 = vmatmul.mubr.msk.f32.vlgmr.msra.gmra.mxu1 %vm41_vm0, %v23_v7 }
   0xc   :  { %303 = vmatprep.mubr.msk.f32.mxu0 %vm41_vm0, %v16_v8  ;;  %315 = vmatprep.mubr.msk.f32.mxu1 %vm41_vm0, %v24_v9 }
   0xf   :  { %304 = vmatmul.mubr.msk.f32.gmra.mxu0 %vm41_vm0, %v17_v10  ;;  %316 = vmatmul.mubr.msk.f32.gmra.mxu1 %vm41_vm0, %v25_v11 }
  0x10   :  { %306 = vmatprep.mubr.msk.f32.mxu0 %vm41_vm0, %v18_v12  ;;  %318 = vmatprep.mubr.msk.f32.mxu1 %vm41_vm0, %v26_v13 }
  0x13   :  { %307 = vmatmul.mubr.msk.f32.gmra.mxu0 %vm41_vm0, %v19_v14  ;;  %319 = vmatmul.mubr.msk.f32.gmra.mxu1 %vm41_vm0, %v27_v15 }
  0x14   :  { %309 = vmatprep.mubr.msk.f32.mxu0 %vm41_vm0, %v20_v16  ;;  %321 = vmatprep.mubr.msk.f32.mxu1 %vm41_vm0, %v28_v17 }
  0x17   :  { %310 = vmatmul.mubr.msk.f32.gmra.mxu0 %vm41_vm0, %v21_v18  ;;  %322 = vmatmul.mubr.msk.f32.gmra.mxu1 %vm41_vm0, %v29_v19 }
  0xcb   :  { %v302_v21 = vpop.f32.mrf.mxu0  ;;  %v314_v22 = vpop.f32.mrf.mxu1 }
  0xcc   :  { %v162_v23 = vadd.f32 %v302_v21, %v255_v20  ;;  %v202_v24 = vadd.f32 %v314_v22, %v255_v20 }
  0xcd   :  { %v156_v25 = vpop.f32.mrf.mxu0  ;;  %v196_v26 = vpop.f32.mrf.mxu1 }
  0xce   :  { %236 = vst.msk [vmem:[%s498_s3 + $0x8] sm:$0xff] %vm41_vm0, %v162_v23  ;;  %244 = vst.msk [vmem:[%s498_s3 + $0x48] sm:$0xff] %vm41_vm0, %v202_v24  ;;  %v157_v27 = vadd.f32 %v255_v20, %v156_v25  ;;  %v197_v28 = vadd.f32 %v255_v20, %v196_v26 }
  0xcf   :  { %v305_v29 = vpop.f32.mrf.mxu0  ;;  %v317_v30 = vpop.f32.mrf.mxu1 }
  0xd0   :  { %235 = vst.msk [vmem:[%s498_s3] sm:$0xff] %vm41_vm0, %v157_v27  ;;  %243 = vst.msk [vmem:[%s498_s3 + $0x40] sm:$0xff] %vm41_vm0, %v197_v28  ;;  %v172_v31 = vadd.f32 %v305_v29, %v255_v20  ;;  %v212_v32 = vadd.f32 %v317_v30, %v255_v20 }
  0xd1   :  { %v166_v33 = vpop.f32.mrf.mxu0  ;;  %v206_v34 = vpop.f32.mrf.mxu1 }
  0xd2   :  { %238 = vst.msk [vmem:[%s498_s3 + $0x18] sm:$0xff] %vm41_vm0, %v172_v31  ;;  %246 = vst.msk [vmem:[%s498_s3 + $0x58] sm:$0xff] %vm41_vm0, %v212_v32  ;;  %v167_v35 = vadd.f32 %v255_v20, %v166_v33  ;;  %v207_v36 = vadd.f32 %v255_v20, %v206_v34 }
  0xd3   :  { %v308_v37 = vpop.f32.mrf.mxu0  ;;  %v320_v38 = vpop.f32.mrf.mxu1 }
  0xd4   :  { %237 = vst.msk [vmem:[%s498_s3 + $0x10] sm:$0xff] %vm41_vm0, %v167_v35  ;;  %245 = vst.msk [vmem:[%s498_s3 + $0x50] sm:$0xff] %vm41_vm0, %v207_v36  ;;  %v182_v39 = vadd.f32 %v308_v37, %v255_v20  ;;  %v222_v40 = vadd.f32 %v320_v38, %v255_v20 }
  0xd5   :  { %v176_v41 = vpop.f32.mrf.mxu0  ;;  %v216_v42 = vpop.f32.mrf.mxu1 }
  0xd6   :  { %240 = vst.msk [vmem:[%s498_s3 + $0x28] sm:$0xff] %vm41_vm0, %v182_v39  ;;  %248 = vst.msk [vmem:[%s498_s3 + $0x68] sm:$0xff] %vm41_vm0, %v222_v40  ;;  %v177_v43 = vadd.f32 %v255_v20, %v176_v41  ;;  %v217_v44 = vadd.f32 %v255_v20, %v216_v42 }
  0xd7   :  { %v311_v45 = vpop.f32.mrf.mxu0  ;;  %v323_v46 = vpop.f32.mrf.mxu1 }
  0xd8   :  { %239 = vst.msk [vmem:[%s498_s3 + $0x20] sm:$0xff] %vm41_vm0, %v177_v43  ;;  %247 = vst.msk [vmem:[%s498_s3 + $0x60] sm:$0xff] %vm41_vm0, %v217_v44  ;;  %v192_v47 = vadd.f32 %v311_v45, %v255_v20  ;;  %v232_v48 = vadd.f32 %v323_v46, %v255_v20 }
  0xd9   :  { %v186_v49 = vpop.f32.mrf.mxu0  ;;  %v226_v50 = vpop.f32.mrf.mxu1 }
  0xda   :  { %242 = vst.msk [vmem:[%s498_s3 + $0x38] sm:$0xff] %vm41_vm0, %v192_v47  ;;  %250 = vst.msk [vmem:[%s498_s3 + $0x78] sm:$0xff] %vm41_vm0, %v232_v48  ;;  %v187_v51 = vadd.f32 %v255_v20, %v186_v49  ;;  %v227_v52 = vadd.f32 %v255_v20, %v226_v50 }
  0xdc   :  { %241 = vst.msk [vmem:[%s498_s3 + $0x30] sm:$0xff] %vm41_vm0, %v187_v51  ;;  %249 = vst.msk [vmem:[%s498_s3 + $0x70] sm:$0xff] %vm41_vm0, %v227_v52 }

// kernel: encoder_rgbt_swin.40
= control target key start
LH: loop header
LB: loop body
LE: loop exit
PB: predicated region body
PF: predicated region fallthrough
CT: control target
= control target key end

     0   :  { %vm49_vm0 = vcmask 392192   ;;  %vm245_vm1 = vcmask 261120   ;;  %s1033_s1 = inlined_call_operand.vmem [shape: f32[48,32], index: 1, kind: input, shape index: {}]   ;;  %s1034_s0 = inlined_call_operand.vmem [shape: f32[128,48], index: 0, kind: input, shape index: {}]   ;;  %s1035_s2 = inlined_call_operand.vmem [shape: f32[1,32], index: 2, kind: input, shape index: {}, may-alias: {2,4}]   ;;  %s1036_s3 = inlined_call_operand.vmem [shape: f32[1,32], index: 3, kind: input, shape index: {}]   ;;  %s1037_s4 = inlined_call_operand.vmem [shape: f32[1,32], index: 4, kind: input, shape index: {}, may-alias: {2,4}]   ;;  %s1038_s5 = inlined_call_operand.vmem [shape: f32[128,32], index: 5, kind: output, shape index: {}]  }
   0x1   :  { %v41_v0 = vld [vmem:[%s1033_s1 + $0x28] sm:$0xff]  ;;  %v40_v1 = vld [vmem:[%s1033_s1 + $0x20] sm:$0xff]  ;;  %v39_v2 = vld [vmem:[%s1033_s1 + $0x18] sm:$0xff] }
   0x2   :  { %560 = vmatprep.subr.mxu0 %v41_v0  ;;  %596 = vmatprep.subr.mxu1 %v41_v0  ;;  %v38_v3 = vld [vmem:[%s1033_s1 + $0x10] sm:$0xff]  ;;  %v37_v4 = vld [vmem:[%s1033_s1 + $0x8] sm:$0xff]  ;;  %v36_v5 = vld [vmem:[%s1033_s1] sm:$0xff] }
   0x3   :  { %561 = vmatpush3.msra.mxu0 %v41_v0  ;;  %602 = vmatpush3.msra.mxu1 %v41_v0  ;;  %v20_v6 = vld [vmem:[%s1034_s0] sm:$0xff]  ;;  %v21_v8 = vld [vmem:[%s1034_s0 + $0x8] sm:$0xff]  ;;  %v22_v10 = vld [vmem:[%s1034_s0 + $0x10] sm:$0xff] }
   0x4   :  { %562 = vmatprep.subr.mxu0 %v40_v1  ;;  %597 = vmatprep.subr.mxu1 %v40_v1  ;;  %v28_v7 = vld [vmem:[%s1034_s0 + $0x40] sm:$0xff]  ;;  %v29_v9 = vld [vmem:[%s1034_s0 + $0x48] sm:$0xff]  ;;  %v30_v11 = vld [vmem:[%s1034_s0 + $0x50] sm:$0xff] }
   0x5   :  { %563 = vmatpush3.msra.mxu0 %v40_v1  ;;  %603 = vmatpush3.msra.mxu1 %v40_v1  ;;  %v23_v12 = vld [vmem:[%s1034_s0 + $0x18] sm:$0xff]  ;;  %v24_v14 = vld [vmem:[%s1034_s0 + $0x20] sm:$0xff]  ;;  %v25_v16 = vld [vmem:[%s1034_s0 + $0x28] sm:$0xff] }
   0x6   :  { %564 = vmatprep.subr.mxu0 %v39_v2  ;;  %598 = vmatprep.subr.mxu1 %v39_v2  ;;  %v31_v13 = vld [vmem:[%s1034_s0 + $0x58] sm:$0xff]  ;;  %v32_v15 = vld [vmem:[%s1034_s0 + $0x60] sm:$0xff]  ;;  %v33_v17 = vld [vmem:[%s1034_s0 + $0x68] sm:$0xff] }
   0x7   :  { %565 = vmatpush3.msra.mxu0 %v39_v2  ;;  %604 = vmatpush3.msra.mxu1 %v39_v2  ;;  %v26_v18 = vld [vmem:[%s1034_s0 + $0x30] sm:$0xff]  ;;  %v27_v20 = vld [vmem:[%s1034_s0 + $0x38] sm:$0xff]  ;;  %v519_v22 = vld [vmem:[%s1035_s2] ss:$0 sm:$0xff] }
   0x8   :  { %566 = vmatprep.subr.mxu0 %v38_v3  ;;  %599 = vmatprep.subr.mxu1 %v38_v3  ;;  %v34_v19 = vld [vmem:[%s1034_s0 + $0x70] sm:$0xff]  ;;  %v35_v21 = vld [vmem:[%s1034_s0 + $0x78] sm:$0xff] }
   0x9   :  { %567 = vmatpush3.msra.mxu0 %v38_v3  ;;  %605 = vmatpush3.msra.mxu1 %v38_v3 }
   0xa   :  { %568 = vmatprep.subr.mxu0 %v37_v4  ;;  %600 = vmatprep.subr.mxu1 %v37_v4 }
   0xb   :  { %569 = vmatpush3.msra.mxu0 %v37_v4  ;;  %606 = vmatpush3.msra.mxu1 %v37_v4 }
   0xc   :  { %570 = vmatprep.subr.mxu0 %v36_v5  ;;  %601 = vmatprep.subr.mxu1 %v36_v5 }
   0xd   :  { %571 = vmatpush3.msra.mxu0 %v36_v5  ;;  %607 = vmatpush3.msra.mxu1 %v36_v5 }
   0xe   :  { %572 = vmatprep.mubr.msk.f32.mxu0 %vm49_vm0, %v20_v6  ;;  %584 = vmatprep.mubr.msk.f32.mxu1 %vm49_vm0, %v28_v7 }
   0xf   :  { %573 = vmatmul.mubr.msk.f32.vlgmr.msra.gmra.mxu0 %vm49_vm0, %v21_v8  ;;  %585 = vmatmul.mubr.msk.f32.vlgmr.msra.gmra.mxu1 %vm49_vm0, %v29_v9 }
  0x10   :  { %575 = vmatprep.mubr.msk.f32.mxu0 %vm49_vm0, %v22_v10  ;;  %587 = vmatprep.mubr.msk.f32.mxu1 %vm49_vm0, %v30_v11 }
  0x13   :  { %576 = vmatmul.mubr.msk.f32.gmra.mxu0 %vm49_vm0, %v23_v12  ;;  %588 = vmatmul.mubr.msk.f32.gmra.mxu1 %vm49_vm0, %v31_v13 }
  0x14   :  { %578 = vmatprep.mubr.msk.f32.mxu0 %vm49_vm0, %v24_v14  ;;  %590 = vmatprep.mubr.msk.f32.mxu1 %vm49_vm0, %v32_v15 }
  0x17   :  { %579 = vmatmul.mubr.msk.f32.gmra.mxu0 %vm49_vm0, %v25_v16  ;;  %591 = vmatmul.mubr.msk.f32.gmra.mxu1 %vm49_vm0, %v33_v17 }
  0x18   :  { %581 = vmatprep.mubr.msk.f32.mxu0 %vm49_vm0, %v26_v18  ;;  %593 = vmatprep.mubr.msk.f32.mxu1 %vm49_vm0, %v34_v19 }
  0x1b   :  { %582 = vmatmul.mubr.msk.f32.gmra.mxu0 %vm49_vm0, %v27_v20  ;;  %594 = vmatmul.mubr.msk.f32.gmra.mxu1 %vm49_vm0, %v35_v21 }
  0xcf   :  { %v574_v23 = vpop.f32.mrf.mxu0  ;;  %v586_v24 = vpop.f32.mrf.mxu1 }
  0xd0   :  { %v755_v25 = vadd.f32 %v574_v23, %v519_v22  ;;  %v757_v26 = vadd.f32 %v586_v24, %v519_v22 }
  0xd1   :  { %v164_v27 = vpop.f32.mrf.mxu0  ;;  %v204_v28 = vpop.f32.mrf.mxu1 }
  0xd2   :  { %v759_v29 = vadd.f32 %v519_v22, %v164_v27  ;;  %v273_v30 = vsel %vm245_vm1, %v757_v26, 0.0  ;;  %v249_v31 = vsel %vm245_vm1, %v755_v25, 0.0  ;;  %v767_v37 = vadd.f32 %v519_v22, %v204_v28 }
  0xd3   :  { %274 = vadd.xlane.f32.xlu1 %v273_v30  ;;  %250 = vadd.xlane.f32.xlu0 %v249_v31  ;;  %v577_v32 = vpop.f32.mrf.mxu0  ;;  %v589_v33 = vpop.f32.mrf.mxu1 }
  0xd4   :  { %v180_v34 = vadd.f32 %v577_v32, %v519_v22  ;;  %v765_v35 = vadd.f32 %v589_v33, %v519_v22  ;;  %v246_v39 = vsel %vm245_vm1, %v759_v29, 0.0  ;;  %v270_v47 = vsel %vm245_vm1, %v767_v37, 0.0 }
  0xd5   :  { %v174_v36 = vpop.f32.mrf.mxu0  ;;  %v214_v40 = vpop.f32.mrf.mxu1 }
  0xd6   :  { %v255_v38 = vsel %vm245_vm1, %v180_v34, 0.0  ;;  %v279_v42 = vsel %vm245_vm1, %v765_v35, 0.0  ;;  %v774_v45 = vadd.f32 %v519_v22, %v174_v36  ;;  %v776_v46 = vadd.f32 %v519_v22, %v214_v40 }
  0xd7   :  { %256 = vadd.xlane.f32.xlu1 %v255_v38  ;;  %247 = vadd.xlane.f32.xlu0 %v246_v39  ;;  %v580_v41 = vpop.f32.mrf.mxu0  ;;  %v592_v44 = vpop.f32.mrf.mxu1 }
  0xd8   :  { %v780_v48 = vadd.f32 %v580_v41, %v519_v22  ;;  %v252_v52 = vsel %vm245_vm1, %v774_v45, 0.0  ;;  %v276_v53 = vsel %vm245_vm1, %v776_v46, 0.0  ;;  %v788_v54 = vadd.f32 %v592_v44, %v519_v22 }
  0xd9   :  { %v184_v43 = vpop.f32.mrf.mxu0  ;;  %v224_v50 = vpop.f32.mrf.mxu1 }
  0xda   :  { %v782_v49 = vadd.f32 %v519_v22, %v184_v43  ;;  %v790_v55 = vadd.f32 %v519_v22, %v224_v50  ;;  %v261_v56 = vsel %vm245_vm1, %v780_v48, 0.0  ;;  %v285_v62 = vsel %vm245_vm1, %v788_v54, 0.0 }
  0xdb   :  { %280 = vadd.xlane.f32.xlu1 %v279_v42  ;;  %271 = vadd.xlane.f32.xlu0 %v270_v47  ;;  %v583_v51 = vpop.f32.mrf.mxu0  ;;  %v595_v59 = vpop.f32.mrf.mxu1 }
  0xdc   :  { %v258_v57 = vsel %vm245_vm1, %v782_v49, 0.0  ;;  %v796_v60 = vadd.f32 %v583_v51, %v519_v22  ;;  %v282_v63 = vsel %vm245_vm1, %v790_v55, 0.0  ;;  %v804_v1 = vadd.f32 %v595_v59, %v519_v22 }
  0xdd   :  { %v194_v58 = vpop.f32.mrf.mxu0  ;;  %v234_v0 = vpop.f32.mrf.mxu1 }
  0xde   :  { %v798_v61 = vadd.f32 %v519_v22, %v194_v58  ;;  %v806_v2 = vadd.f32 %v519_v22, %v234_v0  ;;  %v267_v3 = vsel %vm245_vm1, %v796_v60, 0.0  ;;  %v291_v5 = vsel %vm245_vm1, %v804_v1, 0.0 }
  0xdf   :  { %253 = vadd.xlane.f32.xlu1 %v252_v52  ;;  %277 = vadd.xlane.f32.xlu0 %v276_v53 }
  0xe0   :  { %v264_v4 = vsel %vm245_vm1, %v798_v61, 0.0  ;;  %v288_v6 = vsel %vm245_vm1, %v806_v2, 0.0 }
  0xe3   :  { %262 = vadd.xlane.f32.xlu1 %v261_v56  ;;  %259 = vadd.xlane.f32.xlu0 %v258_v57 }
  0xe7   :  { %286 = vadd.xlane.f32.xlu1 %v285_v62  ;;  %283 = vadd.xlane.f32.xlu0 %v282_v63 }
  0xeb   :  { %268 = vadd.xlane.f32.xlu1 %v267_v3  ;;  %265 = vadd.xlane.f32.xlu0 %v264_v4 }
  0xef   :  { %292 = vadd.xlane.f32.xlu1 %v291_v5  ;;  %289 = vadd.xlane.f32.xlu0 %v288_v6 }
 0x15c   :  { %v275_v7 = vpop.xlane.xlu1 %274  ;;  %v251_v8 = vpop.xlane.xlu0 %250 }
 0x15d   :  { %v304_v9 = vmul.f32 0.03125, %v275_v7  ;;  %v296_v10 = vmul.f32 0.03125, %v251_v8 }
 0x15f   :  { %v817_v11 = vsub.f32 %v757_v26, %v304_v9  ;;  %v820_v12 = vsub.f32 %v755_v25, %v296_v10 }
 0x160   :  { %v257_v13 = vpop.xlane.xlu1 %256  ;;  %v248_v14 = vpop.xlane.xlu0 %247 }
 0x161   :  { %v298_v15 = vmul.f32 0.03125, %v257_v13  ;;  %v295_v16 = vmul.f32 0.03125, %v248_v14  ;;  %v328_v17 = vmul.f32 %v820_v12, %v820_v12  ;;  %v336_v21 = vmul.f32 %v817_v11, %v817_v11 }
 0x163   :  { %v824_v18 = vsub.f32 %v180_v34, %v298_v15  ;;  %v827_v19 = vsub.f32 %v759_v29, %v295_v16  ;;  %v346_v20 = vsel %vm245_vm1, %v328_v17, 0.0  ;;  %v370_v30 = vsel %vm245_vm1, %v336_v21, 0.0 }
 0x164   :  { %v281_v22 = vpop.xlane.xlu1 %280  ;;  %347 = vadd.xlane.f32.xlu1 %v346_v20  ;;  %v272_v23 = vpop.xlane.xlu0 %271 }
 0x165   :  { %v306_v24 = vmul.f32 0.03125, %v281_v22  ;;  %v303_v25 = vmul.f32 0.03125, %v272_v23  ;;  %v327_v26 = vmul.f32 %v827_v19, %v827_v19  ;;  %v330_v27 = vmul.f32 %v824_v18, %v824_v18 }
 0x167   :  { %v837_v28 = vsub.f32 %v765_v35, %v306_v24  ;;  %v840_v29 = vsub.f32 %v767_v37, %v303_v25  ;;  %v343_v31 = vsel %vm245_vm1, %v327_v26, 0.0  ;;  %v352_v39 = vsel %vm245_vm1, %v330_v27, 0.0 }
 0x168   :  { %371 = vadd.xlane.f32.xlu1 %v370_v30  ;;  %v254_v32 = vpop.xlane.xlu1 %253  ;;  %344 = vadd.xlane.f32.xlu0 %v343_v31  ;;  %v278_v33 = vpop.xlane.xlu0 %277 }
 0x169   :  { %v297_v34 = vmul.f32 0.03125, %v254_v32  ;;  %v305_v36 = vmul.f32 0.03125, %v278_v33  ;;  %v335_v38 = vmul.f32 %v840_v29, %v840_v29  ;;  %v338_v41 = vmul.f32 %v837_v28, %v837_v28 }
 0x16b   :  { %v848_v35 = vsub.f32 %v774_v45, %v297_v34  ;;  %v851_v37 = vsub.f32 %v776_v46, %v305_v36  ;;  %v367_v40 = vsel %vm245_vm1, %v335_v38, 0.0  ;;  %v376_v52 = vsel %vm245_vm1, %v338_v41, 0.0 }
 0x16c   :  { %353 = vadd.xlane.f32.xlu1 %v352_v39  ;;  %v263_v42 = vpop.xlane.xlu1 %262  ;;  %368 = vadd.xlane.f32.xlu0 %v367_v40  ;;  %v260_v43 = vpop.xlane.xlu0 %259 }
 0x16d   :  { %v300_v44 = vmul.f32 0.03125, %v263_v42  ;;  %v299_v47 = vmul.f32 0.03125, %v260_v43  ;;  %v329_v50 = vmul.f32 %v848_v35, %v848_v35  ;;  %v337_v45 = vmul.f32 %v851_v37, %v851_v37 }
 0x16f   :  { %v861_v46 = vsub.f32 %v780_v48, %v300_v44  ;;  %v864_v51 = vsub.f32 %v782_v49, %v299_v47  ;;  %v349_v53 = vsel %vm245_vm1, %v329_v50, 0.0  ;;  %v373_v63 = vsel %vm245_vm1, %v337_v45, 0.0 }
 0x170   :  { %377 = vadd.xlane.f32.xlu1 %v376_v52  ;;  %v287_v56 = vpop.xlane.xlu1 %286  ;;  %350 = vadd.xlane.f32.xlu0 %v349_v53  ;;  %v284_v57 = vpop.xlane.xlu0 %283 }
 0x171   :  { %v308_v58 = vmul.f32 0.03125, %v287_v56  ;;  %v307_v59 = vmul.f32 0.03125, %v284_v57  ;;  %v332_v62 = vmul.f32 %v861_v46, %v861_v46  ;;  %v331_v3 = vmul.f32 %v864_v51, %v864_v51 }
 0x173   :  { %v872_v48 = vsub.f32 %v788_v54, %v308_v58  ;;  %v875_v49 = vsub.f32 %v790_v55, %v307_v59  ;;  %v358_v0 = vsel %vm245_vm1, %v332_v62, 0.0  ;;  %v355_v13 = vsel %vm245_vm1, %v331_v3, 0.0  ;;  %v914_v3 = vld [vmem:[%s1036_s3] ss:$0 sm:$0xff] }
 0x174   :  { %359 = vadd.xlane.f32.xlu1 %v358_v0  ;;  %v269_v4 = vpop.xlane.xlu1 %268  ;;  %374 = vadd.xlane.f32.xlu0 %v373_v63  ;;  %v266_v5 = vpop.xlane.xlu0 %265 }
 0x175   :  { %v302_v6 = vmul.f32 0.03125, %v269_v4  ;;  %v301_v7 = vmul.f32 0.03125, %v266_v5  ;;  %v340_v8 = vmul.f32 %v872_v48, %v872_v48  ;;  %v339_v54 = vmul.f32 %v875_v49, %v875_v49 }
 0x177   :  { %v885_v55 = vsub.f32 %v796_v60, %v302_v6  ;;  %v888_v9 = vsub.f32 %v798_v61, %v301_v7  ;;  %v382_v10 = vsel %vm245_vm1, %v340_v8, 0.0  ;;  %v379_v21 = vsel %vm245_vm1, %v339_v54, 0.0  ;;  %v920_v7 = vld [vmem:[%s1037_s4] ss:$0 sm:$0xff] }
 0x178   :  { %383 = vadd.xlane.f32.xlu1 %v382_v10  ;;  %v293_v14 = vpop.xlane.xlu1 %292  ;;  %356 = vadd.xlane.f32.xlu0 %v355_v13  ;;  %v290_v15 = vpop.xlane.xlu0 %289 }
 0x179   :  { %v310_v16 = vmul.f32 0.03125, %v293_v14  ;;  %v309_v17 = vmul.f32 0.03125, %v290_v15  ;;  %v334_v20 = vmul.f32 %v885_v55, %v885_v55  ;;  %v333_v23 = vmul.f32 %v888_v9, %v888_v9 }
 0x17b   :  { %v896_v60 = vsub.f32 %v804_v1, %v310_v16  ;;  %v899_v61 = vsub.f32 %v806_v2, %v309_v17  ;;  %v364_v22 = vsel %vm245_vm1, %v334_v20, 0.0  ;;  %v361_v26 = vsel %vm245_vm1, %v333_v23, 0.0 }
 0x17c   :  { %365 = vadd.xlane.f32.xlu1 %v364_v22  ;;  %380 = vadd.xlane.f32.xlu0 %v379_v21 }
 0x17d   :  { %v342_v24 = vmul.f32 %v896_v60, %v896_v60  ;;  %v341_v1 = vmul.f32 %v899_v61, %v899_v61 }
 0x17f   :  { %v388_v25 = vsel %vm245_vm1, %v342_v24, 0.0  ;;  %v385_v2 = vsel %vm245_vm1, %v341_v1, 0.0 }
 0x180   :  { %389 = vadd.xlane.f32.xlu1 %v388_v25  ;;  %362 = vadd.xlane.f32.xlu0 %v361_v26 }
 0x184   :  { %386 = vadd.xlane.f32.xlu0 %v385_v2 }
 0x1ed   :  { %v348_v27 = vpop.xlane.xlu1 %347 }
 0x1ee   :  { %v392_v30 = vmul.f32 0.03125, %v348_v27 }
 0x1f0   :  { %v408_v31 = vadd.f32 1e-05, %v392_v30 }
 0x1f1   :  { %v372_v32 = vpop.xlane.xlu1 %371  ;;  %v345_v33 = vpop.xlane.xlu0 %344 }
 0x1f2   :  { %608 = vrsqrt.f32 %v408_v31  ;;  %v400_v34 = vmul.f32 0.03125, %v372_v32  ;;  %v391_v36 = vmul.f32 0.03125, %v345_v33 }
 0x1f4   :  { %v416_v38 = vadd.f32 1e-05, %v400_v34  ;;  %v407_v39 = vadd.f32 1e-05, %v391_v36 }
 0x1f5   :  { %v354_v40 = vpop.xlane.xlu1 %353  ;;  %v369_v41 = vpop.xlane.xlu0 %368 }
 0x1f6   :  { %610 = vrsqrt.f32 %v416_v38  ;;  %v394_v42 = vmul.f32 0.03125, %v354_v40  ;;  %v399_v43 = vmul.f32 0.03125, %v369_v41 }
 0x1f7   :  { %612 = vrsqrt.f32 %v407_v39 }
 0x1f8   :  { %v410_v44 = vadd.f32 1e-05, %v394_v42  ;;  %v415_v47 = vadd.f32 1e-05, %v399_v43 }
 0x1f9   :  { %v378_v50 = vpop.xlane.xlu1 %377  ;;  %v351_v45 = vpop.xlane.xlu0 %350 }
 0x1fa   :  { %614 = vrsqrt.f32 %v410_v44  ;;  %v402_v52 = vmul.f32 0.03125, %v378_v50  ;;  %v393_v53 = vmul.f32 0.03125, %v351_v45 }
 0x1fb   :  { %616 = vrsqrt.f32 %v415_v47 }
 0x1fc   :  { %v418_v56 = vadd.f32 1e-05, %v402_v52  ;;  %v409_v57 = vadd.f32 1e-05, %v393_v53 }
 0x1fd   :  { %v360_v58 = vpop.xlane.xlu1 %359  ;;  %v375_v59 = vpop.xlane.xlu0 %374 }
 0x1fe   :  { %618 = vrsqrt.f32 %v418_v56  ;;  %v396_v62 = vmul.f32 0.03125, %v360_v58  ;;  %v401_v63 = vmul.f32 0.03125, %v375_v59 }
 0x1ff   :  { %v609_v0 = vpop.eup %608  ;;  %620 = vrsqrt.f32 %v409_v57 }
 0x200   :  { %v440_v4 = vmul.f32 %v609_v0, %v820_v12  ;;  %v412_v5 = vadd.f32 1e-05, %v396_v62  ;;  %v417_v6 = vadd.f32 1e-05, %v401_v63 }
 0x201   :  { %v384_v8 = vpop.xlane.xlu1 %383  ;;  %v357_v54 = vpop.xlane.xlu0 %356 }
 0x202   :  { %v462_v10 = vmul.f32 %v914_v3, %v440_v4  ;;  %622 = vrsqrt.f32 %v412_v5  ;;  %v404_v13 = vmul.f32 0.03125, %v384_v8  ;;  %v395_v14 = vmul.f32 0.03125, %v357_v54 }
 0x203   :  { %v611_v15 = vpop.eup %610  ;;  %624 = vrsqrt.f32 %v417_v6 }
 0x204   :  { %v613_v16 = vpop.eup %612  ;;  %v484_v17 = vadd.f32 %v920_v7, %v462_v10  ;;  %v448_v12 = vmul.f32 %v611_v15, %v817_v11  ;;  %v420_v20 = vadd.f32 1e-05, %v404_v13  ;;  %v411_v21 = vadd.f32 1e-05, %v395_v14 }
 0x205   :  { %v439_v22 = vmul.f32 %v613_v16, %v827_v19  ;;  %v366_v23 = vpop.xlane.xlu1 %365  ;;  %v381_v24 = vpop.xlane.xlu0 %380 }
 0x206   :  { %500 = vst.msk [vmem:[%s1038_s5 + $0x8] sm:$0xff] %vm245_vm1, %v484_v17  ;;  %v470_v25 = vmul.f32 %v914_v3, %v448_v12  ;;  %626 = vrsqrt.f32 %v420_v20  ;;  %v398_v26 = vmul.f32 0.03125, %v366_v23  ;;  %v403_v1 = vmul.f32 0.03125, %v381_v24 }
 0x207   :  { %v615_v2 = vpop.eup %614  ;;  %v461_v27 = vmul.f32 %v914_v3, %v439_v22  ;;  %628 = vrsqrt.f32 %v411_v21 }
 0x208   :  { %v617_v11 = vpop.eup %616  ;;  %v492_v30 = vadd.f32 %v920_v7, %v470_v25  ;;  %v442_v19 = vmul.f32 %v615_v2, %v824_v18  ;;  %v414_v31 = vadd.f32 1e-05, %v398_v26  ;;  %v419_v32 = vadd.f32 1e-05, %v403_v1 }
 0x209   :  { %v483_v33 = vadd.f32 %v920_v7, %v461_v27  ;;  %v447_v34 = vmul.f32 %v617_v11, %v840_v29  ;;  %v390_v36 = vpop.xlane.xlu1 %389  ;;  %v363_v38 = vpop.xlane.xlu0 %362 }
 0x20a   :  { %508 = vst.msk [vmem:[%s1038_s5 + $0x48] sm:$0xff] %vm245_vm1, %v492_v30  ;;  %v464_v39 = vmul.f32 %v914_v3, %v442_v19  ;;  %630 = vrsqrt.f32 %v414_v31  ;;  %v406_v40 = vmul.f32 0.03125, %v390_v36  ;;  %v397_v41 = vmul.f32 0.03125, %v363_v38 }
 0x20b   :  { %v619_v42 = vpop.eup %618  ;;  %499 = vst.msk [vmem:[%s1038_s5] sm:$0xff] %vm245_vm1, %v483_v33  ;;  %v469_v18 = vmul.f32 %v914_v3, %v447_v34  ;;  %632 = vrsqrt.f32 %v419_v32 }
 0x20c   :  { %v621_v29 = vpop.eup %620  ;;  %v486_v43 = vadd.f32 %v920_v7, %v464_v39  ;;  %v450_v44 = vmul.f32 %v619_v42, %v837_v28  ;;  %v422_v47 = vadd.f32 1e-05, %v406_v40  ;;  %v413_v50 = vadd.f32 1e-05, %v397_v41 }
 0x20d   :  { %v491_v45 = vadd.f32 %v920_v7, %v469_v18  ;;  %v441_v52 = vmul.f32 %v621_v29, %v848_v35  ;;  %v387_v53 = vpop.xlane.xlu0 %386 }
 0x20e   :  { %502 = vst.msk [vmem:[%s1038_s5 + $0x18] sm:$0xff] %vm245_vm1, %v486_v43  ;;  %v472_v56 = vmul.f32 %v914_v3, %v450_v44  ;;  %634 = vrsqrt.f32 %v422_v47  ;;  %v405_v57 = vmul.f32 0.03125, %v387_v53 }
 0x20f   :  { %v623_v58 = vpop.eup %622  ;;  %507 = vst.msk [vmem:[%s1038_s5 + $0x40] sm:$0xff] %vm245_vm1, %v491_v45  ;;  %v463_v28 = vmul.f32 %v914_v3, %v441_v52  ;;  %636 = vrsqrt.f32 %v413_v50 }
 0x210   :  { %v625_v35 = vpop.eup %624  ;;  %v494_v59 = vadd.f32 %v920_v7, %v472_v56  ;;  %v444_v62 = vmul.f32 %v623_v58, %v861_v46  ;;  %v421_v63 = vadd.f32 1e-05, %v405_v57 }
 0x211   :  { %v485_v0 = vadd.f32 %v920_v7, %v463_v28  ;;  %v449_v4 = vmul.f32 %v625_v35, %v851_v37 }
 0x212   :  { %510 = vst.msk [vmem:[%s1038_s5 + $0x58] sm:$0xff] %vm245_vm1, %v494_v59  ;;  %v466_v5 = vmul.f32 %v914_v3, %v444_v62  ;;  %638 = vrsqrt.f32 %v421_v63 }
 0x213   :  { %v627_v6 = vpop.eup %626  ;;  %501 = vst.msk [vmem:[%s1038_s5 + $0x10] sm:$0xff] %vm245_vm1, %v485_v0  ;;  %v471_v46 = vmul.f32 %v914_v3, %v449_v4 }
 0x214   :  { %v629_v8 = vpop.eup %628  ;;  %v488_v54 = vadd.f32 %v920_v7, %v466_v5  ;;  %v452_v37 = vmul.f32 %v627_v6, %v872_v48 }
 0x215   :  { %v493_v10 = vadd.f32 %v920_v7, %v471_v46  ;;  %v443_v13 = vmul.f32 %v629_v8, %v864_v51 }
 0x216   :  { %504 = vst.msk [vmem:[%s1038_s5 + $0x28] sm:$0xff] %vm245_vm1, %v488_v54  ;;  %v474_v14 = vmul.f32 %v914_v3, %v452_v37 }
 0x217   :  { %v631_v15 = vpop.eup %630  ;;  %509 = vst.msk [vmem:[%s1038_s5 + $0x50] sm:$0xff] %vm245_vm1, %v493_v10  ;;  %v465_v16 = vmul.f32 %v914_v3, %v443_v13 }
 0x218   :  { %v633_v48 = vpop.eup %632  ;;  %v496_v17 = vadd.f32 %v920_v7, %v474_v14  ;;  %v446_v51 = vmul.f32 %v631_v15, %v885_v55 }
 0x219   :  { %v487_v12 = vadd.f32 %v920_v7, %v465_v16  ;;  %v451_v20 = vmul.f32 %v633_v48, %v875_v49 }
 0x21a   :  { %512 = vst.msk [vmem:[%s1038_s5 + $0x68] sm:$0xff] %vm245_vm1, %v496_v17  ;;  %v468_v21 = vmul.f32 %v914_v3, %v446_v51 }
 0x21b   :  { %v635_v22 = vpop.eup %634  ;;  %503 = vst.msk [vmem:[%s1038_s5 + $0x20] sm:$0xff] %vm245_vm1, %v487_v12  ;;  %v473_v23 = vmul.f32 %v914_v3, %v451_v20 }
 0x21c   :  { %v637_v55 = vpop.eup %636  ;;  %v490_v24 = vadd.f32 %v920_v7, %v468_v21  ;;  %v454_v49 = vmul.f32 %v635_v22, %v896_v60 }
 0x21d   :  { %v495_v25 = vadd.f32 %v920_v7, %v473_v23  ;;  %v445_v26 = vmul.f32 %v637_v55, %v888_v9 }
 0x21e   :  { %506 = vst.msk [vmem:[%s1038_s5 + $0x38] sm:$0xff] %vm245_vm1, %v490_v24  ;;  %v476_v1 = vmul.f32 %v914_v3, %v454_v49 }
 0x21f   :  { %v639_v2 = vpop.eup %638  ;;  %511 = vst.msk [vmem:[%s1038_s5 + $0x60] sm:$0xff] %vm245_vm1, %v495_v25  ;;  %v467_v27 = vmul.f32 %v914_v3, %v445_v26 }
 0x220   :  { %v498_v60 = vadd.f32 %v920_v7, %v476_v1  ;;  %v453_v11 = vmul.f32 %v639_v2, %v899_v61 }
 0x221   :  { %v489_v9 = vadd.f32 %v920_v7, %v467_v27 }
 0x222   :  { %514 = vst.msk [vmem:[%s1038_s5 + $0x78] sm:$0xff] %vm245_vm1, %v498_v60  ;;  %v475_v30 = vmul.f32 %v914_v3, %v453_v11 }
 0x223   :  { %505 = vst.msk [vmem:[%s1038_s5 + $0x30] sm:$0xff] %vm245_vm1, %v489_v9 }
 0x224   :  { %v497_v19 = vadd.f32 %v920_v7, %v475_v30 }
 0x226   :  { %513 = vst.msk [vmem:[%s1038_s5 + $0x70] sm:$0xff] %vm245_vm1, %v497_v19 }

// kernel: encoder_rgbt_swin.42
= control target key start
LH: loop header
LB: loop body
LE: loop exit
PB: predicated region body
PF: predicated region fallthrough
CT: control target
= control target key end

     0   :  { %s3969_s13 = smov 96   ;;  %vm53_vm0 = vcmask 130048   ;;  %s3970_s15 = smov 64   ;;  %vm3360_vm1 = vcmask 261248   ;;  %s5032_s0 = inlined_call_operand.vmem [shape: f32[8,16,96], index: 0, kind: input, shape index: {}]   ;;  %s5033_s1 = inlined_call_operand.vmem [shape: f32[1,2,16,16], index: 1, kind: input, shape index: {}]   ;;  %s5034_s2 = inlined_call_operand.vmem [shape: f32[8,16,32], index: 2, kind: output, shape index: {}]  }
   0x1   :  { %v3993_v0 = vld [vmem:[%s5032_s0 + $0x8] sm:$0xff]  ;;  %v3998_v1 = vld [vmem:[%s5032_s0] sm:$0xff]  ;;  %v4007_v2 = vld [vmem:[%s5032_s0 + $0x10] sm:$0xff]  ;;  %s3972_s16 = smov 112   ;;  %s3973_s21 = smov 48  }
   0x2   :  { %51 = vrot.lane.b32.xlu0 %v3993_v0, %s3969_s13  ;;  %49 = vrot.lane.b32.xlu1 %v3998_v1, %s3969_s13  ;;  %v31_v3 = vmul.f32 0.25, %v3998_v1  ;;  %v4013_v4 = vld [vmem:[%s5032_s0 + $0x18] sm:$0xff]  ;;  %v33_v5 = vmul.f32 0.25, %v4007_v2  ;;  %v4025_v6 = vld [vmem:[%s5032_s0 + $0x28] sm:$0xff]  ;;  %v4141_v22 = vmul.f32 0.25, %v3993_v0 }
   0x3   :  { %v4030_v7 = vld [vmem:[%s5032_s0 + $0x38] sm:$0xff]  ;;  %v4039_v8 = vld [vmem:[%s5032_s0 + $0x20] sm:$0xff]  ;;  %v4044_v9 = vld [vmem:[%s5032_s0 + $0x30] sm:$0xff]  ;;  %v4153_v26 = vmul.f32 0.25, %v4013_v4  ;;  %v4167_v30 = vmul.f32 0.25, %v4025_v6 }
   0x4   :  { %3609 = vmatprep.mubr.msk.f32.mxu0 %vm53_vm0, %v31_v3  ;;  %3616 = vmatprep.mubr.msk.f32.mxu1 %vm53_vm0, %v33_v5  ;;  %v4053_v10 = vld [vmem:[%s5032_s0 + $0x48] sm:$0xff]  ;;  %v4058_v11 = vld [vmem:[%s5032_s0 + $0x58] sm:$0xff]  ;;  %v4067_v12 = vld [vmem:[%s5032_s0 + $0x40] sm:$0xff]  ;;  %v4147_v23 = vmul.f32 0.25, %v4039_v8  ;;  %v4161_v27 = vmul.f32 0.25, %v4044_v9  ;;  %v4181_v34 = vmul.f32 0.25, %v4030_v7 }
   0x5   :  { %v4072_v13 = vld [vmem:[%s5032_s0 + $0x50] sm:$0xff]  ;;  %v4081_v14 = vld [vmem:[%s5032_s0 + $0x68] sm:$0xff]  ;;  %v4086_v15 = vld [vmem:[%s5032_s0 + $0x78] sm:$0xff]  ;;  %v4175_v31 = vmul.f32 0.25, %v4067_v12  ;;  %v4195_v38 = vmul.f32 0.25, %v4053_v10  ;;  %v4209_v42 = vmul.f32 0.25, %v4058_v11 }
   0x6   :  { %143 = vrot.lane.b32.xlu0 %v4013_v4, %s3969_s13  ;;  %141 = vrot.lane.b32.xlu1 %v4007_v2, %s3969_s13  ;;  %v4095_v16 = vld [vmem:[%s5032_s0 + $0x60] sm:$0xff]  ;;  %v4100_v17 = vld [vmem:[%s5032_s0 + $0x70] sm:$0xff]  ;;  %v4189_v35 = vmul.f32 0.25, %v4072_v13  ;;  %v4223_v46 = vmul.f32 0.25, %v4081_v14  ;;  %v4233_v47 = vmul.f32 0.25, %v4086_v15 }
   0x7   :  { %v4203_v39 = vmul.f32 0.25, %v4095_v16  ;;  %v4217_v43 = vmul.f32 0.25, %v4100_v17  ;;  %v28_v54 = vld [vmem:[%s5033_s1 + $0x8] sm:$0xff]  ;;  %v27_v58 = vld [vmem:[%s5033_s1] sm:$0xff] }
   0xa   :  { %234 = vrot.lane.b32.xlu0 %v4025_v6, %s3969_s13  ;;  %325 = vrot.lane.b32.xlu1 %v4030_v7, %s3969_s13 }
   0xe   :  { %232 = vrot.lane.b32.xlu0 %v4039_v8, %s3969_s13  ;;  %323 = vrot.lane.b32.xlu1 %v4044_v9, %s3969_s13 }
  0x12   :  { %416 = vrot.lane.b32.xlu0 %v4053_v10, %s3969_s13  ;;  %507 = vrot.lane.b32.xlu1 %v4058_v11, %s3969_s13 }
  0x16   :  { %414 = vrot.lane.b32.xlu0 %v4067_v12, %s3969_s13  ;;  %505 = vrot.lane.b32.xlu1 %v4072_v13, %s3969_s13 }
  0x1a   :  { %598 = vrot.lane.b32.xlu0 %v4081_v14, %s3969_s13  ;;  %689 = vrot.lane.b32.xlu1 %v4086_v15, %s3969_s13 }
  0x1e   :  { %596 = vrot.lane.b32.xlu0 %v4095_v16, %s3969_s13  ;;  %687 = vrot.lane.b32.xlu1 %v4100_v17, %s3969_s13  ;;  %s3971_s13 = smov 80  }
  0x22   :  { %970 = vrot.lane.b32.xlu1 %v3993_v0, %s3970_s15  ;;  %1057 = vrot.lane.b32.xlu0 %v4013_v4, %s3970_s15 }
  0x26   :  { %968 = vrot.lane.b32.xlu1 %v3998_v1, %s3970_s15  ;;  %1144 = vrot.lane.b32.xlu0 %v4025_v6, %s3970_s15 }
  0x2a   :  { %1055 = vrot.lane.b32.xlu1 %v4007_v2, %s3970_s15  ;;  %1142 = vrot.lane.b32.xlu0 %v4039_v8, %s3970_s15 }
  0x2e   :  { %1231 = vrot.lane.b32.xlu1 %v4030_v7, %s3970_s15  ;;  %1318 = vrot.lane.b32.xlu0 %v4053_v10, %s3970_s15 }
  0x32   :  { %1229 = vrot.lane.b32.xlu1 %v4044_v9, %s3970_s15  ;;  %1316 = vrot.lane.b32.xlu0 %v4067_v12, %s3970_s15 }
  0x36   :  { %1405 = vrot.lane.b32.xlu1 %v4058_v11, %s3970_s15  ;;  %1492 = vrot.lane.b32.xlu0 %v4081_v14, %s3970_s15 }
  0x3a   :  { %1403 = vrot.lane.b32.xlu1 %v4072_v13, %s3970_s15  ;;  %1490 = vrot.lane.b32.xlu0 %v4095_v16, %s3970_s15 }
  0x3e   :  { %1579 = vrot.lane.b32.xlu1 %v4086_v15, %s3970_s15  ;;  %1686 = vrot.lane.b32.xlu0 %v3993_v0, %s3971_s13 }
  0x42   :  { %1577 = vrot.lane.b32.xlu1 %v4100_v17, %s3970_s15  ;;  %1684 = vrot.lane.b32.xlu0 %v3998_v1, %s3971_s13 }
  0x46   :  { %1777 = vrot.lane.b32.xlu1 %v4013_v4, %s3971_s13  ;;  %1680 = vrot.lane.b32.xlu0 %v31_v3, %s3972_s16 }
  0x4a   :  { %1775 = vrot.lane.b32.xlu1 %v4007_v2, %s3971_s13  ;;  %1868 = vrot.lane.b32.xlu0 %v4025_v6, %s3971_s13 }
  0x4e   :  { %1771 = vrot.lane.b32.xlu1 %v33_v5, %s3972_s16 }
  0x52   :  { %1959 = vrot.lane.b32.xlu1 %v4030_v7, %s3971_s13 }
  0x74   :  { %v52_v18 = vpop.permute.xlu0 %51  ;;  %v50_v19 = vpop.permute.xlu1 %49 }
  0x75   :  { %3605 = vmatprep.subr.msk.mxu0 %vm53_vm0, %v52_v18 }
  0x76   :  { %3606 = vmatpush3.xpose.msk.msra.mxu0 %vm53_vm0, %v52_v18 }
  0x77   :  { %3607 = vmatprep.subr.msk.mxu0 %vm53_vm0, %v50_v19 }
  0x78   :  { %v144_v20 = vpop.permute.xlu0 %143  ;;  %v142_v21 = vpop.permute.xlu1 %141 }
  0x79   :  { %3612 = vmatprep.subr.msk.mxu1 %vm53_vm0, %v144_v20 }
  0x7a   :  { %3608 = vmatpush3.xpose.msk.msra.mxu0 %vm53_vm0, %v50_v19  ;;  %3613 = vmatpush3.xpose.msk.msra.mxu1 %vm53_vm0, %v144_v20 }
  0x7b   :  { %3614 = vmatprep.subr.msk.mxu1 %vm53_vm0, %v142_v21 }
  0x7c   :  { %v235_v24 = vpop.permute.xlu0 %234  ;;  %v326_v25 = vpop.permute.xlu1 %325 }
  0x7d   :  { %3610 = vmatmul.mubr.msk.f32.vlgmr.msra.gmra.mxu0 %vm53_vm0, %v4141_v22  ;;  %3619 = vmatprep.subr.msk.mxu0 %vm53_vm0, %v235_v24 }
  0x7e   :  { %3615 = vmatpush3.xpose.msk.msra.mxu1 %vm53_vm0, %v142_v21  ;;  %3620 = vmatpush3.xpose.msk.msra.mxu0 %vm53_vm0, %v235_v24 }
  0x7f   :  { %3626 = vmatprep.subr.msk.mxu1 %vm53_vm0, %v326_v25  ;;  %3623 = vmatprep.mubr.msk.f32.mxu0 %vm53_vm0, %v4147_v23 }
  0x80   :  { %v233_v28 = vpop.permute.xlu0 %232  ;;  %v324_v29 = vpop.permute.xlu1 %323 }
  0x81   :  { %3617 = vmatmul.mubr.msk.f32.vlgmr.msra.gmra.mxu1 %vm53_vm0, %v4153_v26  ;;  %3621 = vmatprep.subr.msk.mxu0 %vm53_vm0, %v233_v28 }
  0x82   :  { %3627 = vmatpush3.xpose.msk.msra.mxu1 %vm53_vm0, %v326_v25  ;;  %3622 = vmatpush3.xpose.msk.msra.mxu0 %vm53_vm0, %v233_v28 }
  0x83   :  { %3628 = vmatprep.subr.msk.mxu1 %vm53_vm0, %v324_v29  ;;  %3630 = vmatprep.mubr.msk.f32.mxu1 %vm53_vm0, %v4161_v27 }
  0x84   :  { %v417_v32 = vpop.permute.xlu0 %416  ;;  %v508_v33 = vpop.permute.xlu1 %507 }
  0x85   :  { %3624 = vmatmul.mubr.msk.f32.vlgmr.msra.gmra.mxu0 %vm53_vm0, %v4167_v30  ;;  %3633 = vmatprep.subr.msk.mxu0 %vm53_vm0, %v417_v32 }
  0x86   :  { %3629 = vmatpush3.xpose.msk.msra.mxu1 %vm53_vm0, %v324_v29  ;;  %3634 = vmatpush3.xpose.msk.msra.mxu0 %vm53_vm0, %v417_v32 }
  0x87   :  { %3640 = vmatprep.subr.msk.mxu1 %vm53_vm0, %v508_v33  ;;  %3637 = vmatprep.mubr.msk.f32.mxu0 %vm53_vm0, %v4175_v31 }
  0x88   :  { %v415_v36 = vpop.permute.xlu0 %414  ;;  %v506_v37 = vpop.permute.xlu1 %505 }
  0x89   :  { %3631 = vmatmul.mubr.msk.f32.vlgmr.msra.gmra.mxu1 %vm53_vm0, %v4181_v34  ;;  %3635 = vmatprep.subr.msk.mxu0 %vm53_vm0, %v415_v36 }
  0x8a   :  { %3641 = vmatpush3.xpose.msk.msra.mxu1 %vm53_vm0, %v508_v33  ;;  %3636 = vmatpush3.xpose.msk.msra.mxu0 %vm53_vm0, %v415_v36 }
  0x8b   :  { %3642 = vmatprep.subr.msk.mxu1 %vm53_vm0, %v506_v37  ;;  %3644 = vmatprep.mubr.msk.f32.mxu1 %vm53_vm0, %v4189_v35 }
  0x8c   :  { %v599_v40 = vpop.permute.xlu0 %598  ;;  %v690_v41 = vpop.permute.xlu1 %689 }
  0x8d   :  { %3638 = vmatmul.mubr.msk.f32.vlgmr.msra.gmra.mxu0 %vm53_vm0, %v4195_v38  ;;  %3647 = vmatprep.subr.msk.mxu0 %vm53_vm0, %v599_v40 }
  0x8e   :  { %3643 = vmatpush3.xpose.msk.msra.mxu1 %vm53_vm0, %v506_v37  ;;  %3648 = vmatpush3.xpose.msk.msra.mxu0 %vm53_vm0, %v599_v40 }
  0x8f   :  { %3654 = vmatprep.subr.msk.mxu1 %vm53_vm0, %v690_v41  ;;  %3651 = vmatprep.mubr.msk.f32.mxu0 %vm53_vm0, %v4203_v39 }
  0x90   :  { %v597_v44 = vpop.permute.xlu0 %596  ;;  %v688_v45 = vpop.permute.xlu1 %687 }
  0x91   :  { %3645 = vmatmul.mubr.msk.f32.vlgmr.msra.gmra.mxu1 %vm53_vm0, %v4209_v42  ;;  %3649 = vmatprep.subr.msk.mxu0 %vm53_vm0, %v597_v44 }
  0x92   :  { %3655 = vmatpush3.xpose.msk.msra.mxu1 %vm53_vm0, %v690_v41  ;;  %3650 = vmatpush3.xpose.msk.msra.mxu0 %vm53_vm0, %v597_v44 }
  0x93   :  { %3656 = vmatprep.subr.msk.mxu1 %vm53_vm0, %v688_v45  ;;  %3658 = vmatprep.mubr.msk.f32.mxu1 %vm53_vm0, %v4217_v43 }
  0x94   :  { %v971_v48 = vpop.permute.xlu1 %970  ;;  %v1058_v49 = vpop.permute.xlu0 %1057 }
  0x95   :  { %3652 = vmatmul.mubr.msk.f32.vlgmr.msra.gmra.mxu0 %vm53_vm0, %v4223_v46  ;;  %3661 = vmatprep.subr.mxu0 %v971_v48 }
  0x96   :  { %3657 = vmatpush3.xpose.msk.msra.mxu1 %vm53_vm0, %v688_v45  ;;  %3662 = vmatpush3.msra.mxu0 %v971_v48 }
  0x97   :  { %3668 = vmatprep.subr.mxu1 %v1058_v49 }
  0x98   :  { %v969_v50 = vpop.permute.xlu1 %968  ;;  %v4238_v51 = vpop.permute.xlu0 %1144 }
  0x99   :  { %3659 = vmatmul.mubr.msk.f32.vlgmr.msra.gmra.mxu1 %vm53_vm0, %v4233_v47  ;;  %3663 = vmatprep.subr.mxu0 %v969_v50 }
  0x9a   :  { %3669 = vmatpush3.msra.mxu1 %v1058_v49  ;;  %3664 = vmatpush3.msra.mxu0 %v969_v50 }
  0x9b   :  { %3675 = vmatprep.subr.mxu0 %v4238_v51 }
  0x9c   :  { %v1056_v52 = vpop.permute.xlu1 %1055 }
  0x9d   :  { %3670 = vmatprep.subr.mxu1 %v1056_v52 }
  0x9e   :  { %3671 = vmatpush3.msra.mxu1 %v1056_v52 }
  0xa0   :  { %v4241_v53 = vpop.permute.xlu1 %1231 }
  0xa1   :  { %3682 = vmatprep.subr.mxu1 %v4241_v53 }
 0x13d   :  { %v3611_v55 = vpop.f32.mrf.mxu0 }
 0x13e   :  { %v4247_v56 = vadd.f32 %v3611_v55, %v28_v54 }
 0x13f   :  { %v130_v59 = vpop.f32.mrf.mxu0 }
 0x140   :  { %v795_v57 = vsel %vm53_vm0, %v4247_v56, -inf  ;;  %v4256_v63 = vadd.f32 %v130_v59, %v27_v58 }
 0x141   :  { %v3618_v60 = vpop.f32.mrf.mxu1  ;;  %796 = vmax.xlane.f32.xlu0 %v795_v57 }
 0x142   :  { %v4254_v61 = vadd.f32 %v3618_v60, %v28_v54  ;;  %v792_v24 = vsel %vm53_vm0, %v4256_v63, -inf }
 0x143   :  { %v221_v62 = vpop.f32.mrf.mxu1 }
 0x144   :  { %v4258_v3 = vadd.f32 %v221_v62, %v27_v58  ;;  %v801_v5 = vsel %vm53_vm0, %v4254_v61, -inf }
 0x145   :  { %802 = vmax.xlane.f32.xlu0 %v801_v5  ;;  %v3625_v18 = vpop.f32.mrf.mxu0 }
 0x146   :  { %v798_v19 = vsel %vm53_vm0, %v4258_v3, -inf  ;;  %v4264_v20 = vadd.f32 %v3625_v18, %v28_v54 }
 0x147   :  { %799 = vmax.xlane.f32.xlu1 %v798_v19  ;;  %v312_v21 = vpop.f32.mrf.mxu0 }
 0x148   :  { %v807_v25 = vsel %vm53_vm0, %v4264_v20, -inf  ;;  %v4272_v32 = vadd.f32 %v312_v21, %v27_v58 }
 0x149   :  { %v3632_v28 = vpop.f32.mrf.mxu1  ;;  %793 = vmax.xlane.f32.xlu0 %v792_v24 }
 0x14a   :  { %v4270_v29 = vadd.f32 %v3632_v28, %v28_v54  ;;  %v804_v41 = vsel %vm53_vm0, %v4272_v32, -inf }
 0x14b   :  { %808 = vmax.xlane.f32.xlu1 %v807_v25  ;;  %v403_v33 = vpop.f32.mrf.mxu1 }
 0x14c   :  { %v4274_v36 = vadd.f32 %v403_v33, %v27_v58  ;;  %v813_v37 = vsel %vm53_vm0, %v4270_v29, -inf }
 0x14d   :  { %814 = vmax.xlane.f32.xlu0 %v813_v37  ;;  %v3639_v40 = vpop.f32.mrf.mxu0 }
 0x14e   :  { %v4280_v44 = vadd.f32 %v3639_v40, %v28_v54  ;;  %v810_v45 = vsel %vm53_vm0, %v4274_v36, -inf }
 0x14f   :  { %805 = vmax.xlane.f32.xlu1 %v804_v41  ;;  %v494_v48 = vpop.f32.mrf.mxu0 }
 0x150   :  { %v819_v49 = vsel %vm53_vm0, %v4280_v44, -inf  ;;  %v4288_v55 = vadd.f32 %v494_v48, %v27_v58 }
 0x151   :  { %v3646_v50 = vpop.f32.mrf.mxu1  ;;  %811 = vmax.xlane.f32.xlu0 %v810_v45 }
 0x152   :  { %v4286_v52 = vadd.f32 %v3646_v50, %v28_v54  ;;  %v816_v5 = vsel %vm53_vm0, %v4288_v55, -inf }
 0x153   :  { %820 = vmax.xlane.f32.xlu1 %v819_v49  ;;  %v585_v57 = vpop.f32.mrf.mxu1 }
 0x154   :  { %v4290_v59 = vadd.f32 %v585_v57, %v27_v58  ;;  %v825_v60 = vsel %vm53_vm0, %v4286_v52, -inf }
 0x155   :  { %826 = vmax.xlane.f32.xlu0 %v825_v60  ;;  %v3653_v62 = vpop.f32.mrf.mxu0 }
 0x156   :  { %v4296_v18 = vadd.f32 %v3653_v62, %v28_v54  ;;  %v822_v19 = vsel %vm53_vm0, %v4290_v59, -inf }
 0x157   :  { %817 = vmax.xlane.f32.xlu1 %v816_v5  ;;  %v676_v21 = vpop.f32.mrf.mxu0 }
 0x158   :  { %v831_v24 = vsel %vm53_vm0, %v4296_v18, -inf  ;;  %v4304_v33 = vadd.f32 %v676_v21, %v27_v58 }
 0x159   :  { %v3660_v25 = vpop.f32.mrf.mxu1  ;;  %823 = vmax.xlane.f32.xlu0 %v822_v19 }
 0x15a   :  { %v4302_v28 = vadd.f32 %v3660_v25, %v28_v54  ;;  %v828_v45 = vsel %vm53_vm0, %v4304_v33, -inf  ;;  %v4326_v54 = vpop.permute.xlu0 %1142 }
 0x15b   :  { %832 = vmax.xlane.f32.xlu1 %v831_v24  ;;  %v767_v37 = vpop.f32.mrf.mxu1 }
 0x15c   :  { %v4306_v40 = vadd.f32 %v767_v37, %v27_v58  ;;  %v837_v41 = vsel %vm53_vm0, %v4302_v28, -inf  ;;  %v4328_v58 = vpop.permute.xlu1 %1229 }
 0x15d   :  { %838 = vmax.xlane.f32.xlu0 %v837_v41 }
 0x15e   :  { %v834_v48 = vsel %vm53_vm0, %v4306_v40, -inf }
 0x15f   :  { %829 = vmax.xlane.f32.xlu1 %v828_v45 }
 0x160   :  { %v4332_v49 = vpop.permute.xlu1 %1405 }
 0x161   :  { %835 = vmax.xlane.f32.xlu0 %v834_v48 }
 0x170   :  { %1773 = vrot.lane.b32.xlu1 %v4153_v26, %s3972_s16  ;;  %v4330_v26 = vpop.permute.xlu0 %1318 }
 0x174   :  { %1957 = vrot.lane.b32.xlu1 %v4044_v9, %s3971_s13  ;;  %v4334_v50 = vpop.permute.xlu0 %1316 }
 0x177   :  { %1682 = vrot.lane.b32.xlu0 %v4141_v22, %s3972_s16  ;;  %v4336_v22 = vpop.permute.xlu1 %1403 }
 0x178   :  { %1953 = vrot.lane.b32.xlu1 %v4161_v27, %s3972_s16  ;;  %v4338_v57 = vpop.permute.xlu0 %1492 }
 0x179   :  { %5044 = vst [vmem:[#allocation2_spill] sm:$0xff] %v4338_v57 }
 0x17b   :  { %1866 = vrot.lane.b32.xlu0 %v4039_v8, %s3971_s13  ;;  %v4340_v27 = vpop.permute.xlu1 %1579 }
 0x17c   :  { %5045 = vst [vmem:[#allocation3_spill] sm:$0xff] %v4340_v27  ;;  %v4342_v60 = vpop.permute.xlu0 %1490 }
 0x17d   :  { %5046 = vst [vmem:[#allocation4_spill] sm:$0xff] %v4342_v60 }
 0x17f   :  { %1862 = vrot.lane.b32.xlu0 %v4147_v23, %s3972_s16  ;;  %v4344_v62 = vpop.permute.xlu1 %1577 }
 0x180   :  { %5047 = vst [vmem:[#allocation5_spill] sm:$0xff] %v4344_v62  ;;  %v4346_v23 = vpop.permute.xlu0 %1686 }
 0x181   :  { %5048 = vst [vmem:[#allocation6_spill] sm:$0xff] %v4346_v23 }
 0x183   :  { %v4348_v5 = vpop.permute.xlu1 %1777 }
 0x184   :  { %5049 = vst [vmem:[#allocation7_spill] sm:$0xff] %v4348_v5  ;;  %v4350_v19 = vpop.permute.xlu0 %1684 }
 0x185   :  { %5050 = vst [vmem:[#allocation8_spill] sm:$0xff] %v4350_v19 }
 0x187   :  { %v4352_v21 = vpop.permute.xlu1 %1775 }
 0x188   :  { %5051 = vst [vmem:[#allocation9_spill] sm:$0xff] %v4352_v21  ;;  %v4354_v24 = vpop.permute.xlu0 %1680 }
 0x189   :  { %5052 = vst [vmem:[#allocation10_spill] sm:$0xff] %v4354_v24 }
 0x18b   :  { %v4356_v25 = vpop.permute.xlu1 %1771 }
 0x18c   :  { %5053 = vst [vmem:[#allocation11_spill] sm:$0xff] %v4356_v25  ;;  %v4358_v37 = vpop.permute.xlu0 %1868 }
 0x18d   :  { %5054 = vst [vmem:[#allocation12_spill] sm:$0xff] %v4358_v37 }
 0x18f   :  { %v4361_v48 = vpop.permute.xlu1 %1959 }
 0x1ca   :  { %v797_v41 = vpop.xlane.xlu0 %796 }
 0x1cb   :  { %v841_v45 = vsub.f32 %v4247_v56, %v797_v41 }
 0x1cd   :  { %v858_v60 = vmul.f32 1.442695, %v841_v45 }
 0x1ce   :  { %v803_v62 = vpop.xlane.xlu0 %802 }
 0x1cf   :  { %3835 = vpow2.f32 %v858_v60  ;;  %v843_v23 = vsub.f32 %v4254_v61, %v803_v62 }
 0x1d0   :  { %v800_v5 = vpop.xlane.xlu1 %799 }
 0x1d1   :  { %v862_v19 = vmul.f32 1.442695, %v843_v23  ;;  %v842_v21 = vsub.f32 %v4258_v3, %v800_v5 }
 0x1d2   :  { %v794_v57 = vpop.xlane.xlu0 %793 }
 0x1d3   :  { %3837 = vpow2.f32 %v862_v19  ;;  %v860_v24 = vmul.f32 1.442695, %v842_v21  ;;  %v840_v25 = vsub.f32 %v4256_v63, %v794_v57 }
 0x1d4   :  { %v809_v37 = vpop.xlane.xlu1 %808 }
 0x1d5   :  { %3839 = vpow2.f32 %v860_v24  ;;  %v856_v27 = vmul.f32 1.442695, %v840_v25  ;;  %v845_v56 = vsub.f32 %v4264_v20, %v809_v37 }
 0x1d6   :  { %v815_v41 = vpop.xlane.xlu0 %814 }
 0x1d7   :  { %3841 = vpow2.f32 %v856_v27  ;;  %v866_v45 = vmul.f32 1.442695, %v845_v56  ;;  %v847_v60 = vsub.f32 %v4270_v29, %v815_v41 }
 0x1d8   :  { %v806_v61 = vpop.xlane.xlu1 %805 }
 0x1d9   :  { %3843 = vpow2.f32 %v866_v45  ;;  %v870_v62 = vmul.f32 1.442695, %v847_v60  ;;  %v844_v3 = vsub.f32 %v4272_v32, %v806_v61 }
 0x1da   :  { %v812_v23 = vpop.xlane.xlu0 %811 }
 0x1db   :  { %3845 = vpow2.f32 %v870_v62  ;;  %v864_v5 = vmul.f32 1.442695, %v844_v3  ;;  %v846_v63 = vsub.f32 %v4274_v36, %v812_v23 }
 0x1dc   :  { %v4370_v57 = vpop.eup %3835  ;;  %v821_v19 = vpop.xlane.xlu1 %820 }
 0x1dd   :  { %3847 = vpow2.f32 %v864_v5  ;;  %v868_v20 = vmul.f32 1.442695, %v846_v63  ;;  %v849_v27 = vsub.f32 %v4280_v44, %v821_v19  ;;  %v891_v29 = vsel %vm53_vm0, %v4370_v57, 0.0 }
 0x1de   :  { %v827_v21 = vpop.xlane.xlu0 %826  ;;  %892 = vadd.xlane.f32.xlu1 %v891_v29 }
 0x1df   :  { %3849 = vpow2.f32 %v868_v20  ;;  %v874_v24 = vmul.f32 1.442695, %v849_v27  ;;  %v851_v32 = vsub.f32 %v4286_v52, %v827_v21 }
 0x1e0   :  { %v4376_v25 = vpop.eup %3837  ;;  %v818_v37 = vpop.xlane.xlu1 %817 }
 0x1e1   :  { %3851 = vpow2.f32 %v874_v24  ;;  %v878_v36 = vmul.f32 1.442695, %v851_v32  ;;  %v848_v56 = vsub.f32 %v4288_v55, %v818_v37  ;;  %v897_v41 = vsel %vm53_vm0, %v4376_v25, 0.0 }
 0x1e2   :  { %v4381_v44 = vpop.eup %3839  ;;  %898 = vadd.xlane.f32.xlu0 %v897_v41  ;;  %v824_v45 = vpop.xlane.xlu0 %823 }
 0x1e3   :  { %3853 = vpow2.f32 %v878_v36  ;;  %v872_v60 = vmul.f32 1.442695, %v848_v56  ;;  %v850_v61 = vsub.f32 %v4290_v59, %v824_v45  ;;  %v894_v3 = vsel %vm53_vm0, %v4381_v44, 0.0 }
 0x1e4   :  { %v4384_v62 = vpop.eup %3841  ;;  %v833_v52 = vpop.xlane.xlu1 %832 }
 0x1e5   :  { %3855 = vpow2.f32 %v872_v60  ;;  %v876_v23 = vmul.f32 1.442695, %v850_v61  ;;  %v853_v55 = vsub.f32 %v4296_v18, %v833_v52  ;;  %v888_v5 = vsel %vm53_vm0, %v4384_v62, 0.0 }
 0x1e6   :  { %v4391_v63 = vpop.eup %3843  ;;  %895 = vadd.xlane.f32.xlu0 %v894_v3  ;;  %v839_v19 = vpop.xlane.xlu0 %838  ;;  %889 = vadd.xlane.f32.xlu1 %v888_v5 }
 0x1e7   :  { %3857 = vpow2.f32 %v876_v23  ;;  %v882_v59 = vmul.f32 1.442695, %v853_v55  ;;  %v855_v20 = vsub.f32 %v4302_v28, %v839_v19  ;;  %v903_v21 = vsel %vm53_vm0, %v4391_v63, 0.0 }
 0x1e8   :  { %v4394_v27 = vpop.eup %3845  ;;  %v830_v29 = vpop.xlane.xlu1 %829 }
 0x1e9   :  { %3859 = vpow2.f32 %v882_v59  ;;  %v886_v18 = vmul.f32 1.442695, %v855_v20  ;;  %v852_v24 = vsub.f32 %v4304_v33, %v830_v29  ;;  %v909_v32 = vsel %vm53_vm0, %v4394_v27, 0.0 }
 0x1ea   :  { %v4401_v37 = vpop.eup %3847  ;;  %910 = vadd.xlane.f32.xlu0 %v909_v32  ;;  %v836_v36 = vpop.xlane.xlu0 %835  ;;  %904 = vadd.xlane.f32.xlu1 %v903_v21 }
 0x1eb   :  { %3861 = vpow2.f32 %v886_v18  ;;  %v880_v28 = vmul.f32 1.442695, %v852_v24  ;;  %v854_v56 = vsub.f32 %v4306_v40, %v836_v36  ;;  %v900_v33 = vsel %vm53_vm0, %v4401_v37, 0.0 }
 0x1ec   :  { %v4404_v41 = vpop.eup %3849 }
 0x1ed   :  { %3863 = vpow2.f32 %v880_v28  ;;  %v884_v45 = vmul.f32 1.442695, %v854_v56  ;;  %v906_v60 = vsel %vm53_vm0, %v4404_v41, 0.0 }
 0x1ee   :  { %v4410_v61 = vpop.eup %3851  ;;  %907 = vadd.xlane.f32.xlu0 %v906_v60  ;;  %901 = vadd.xlane.f32.xlu1 %v900_v33 }
 0x1ef   :  { %3865 = vpow2.f32 %v884_v45  ;;  %v915_v3 = vsel %vm53_vm0, %v4410_v61, 0.0 }
 0x1f0   :  { %v4412_v52 = vpop.eup %3853 }
 0x1f1   :  { %v921_v40 = vsel %vm53_vm0, %v4412_v52, 0.0 }
 0x1f2   :  { %v4418_v23 = vpop.eup %3855  ;;  %922 = vadd.xlane.f32.xlu0 %v921_v40  ;;  %916 = vadd.xlane.f32.xlu1 %v915_v3  ;;  %v5055_v40 = vld [vmem:[#allocation3_spill] sm:$0xff]  ;;  %v5056_v3 = vld [vmem:[#allocation2_spill] sm:$0xff] }
 0x1f3   :  { %v912_v19 = vsel %vm53_vm0, %v4418_v23, 0.0 }
 0x1f4   :  { %v4420_v55 = vpop.eup %3857 }
 0x1f5   :  { %v918_v5 = vsel %vm53_vm0, %v4420_v55, 0.0 }
 0x1f6   :  { %v4426_v59 = vpop.eup %3859  ;;  %919 = vadd.xlane.f32.xlu0 %v918_v5  ;;  %913 = vadd.xlane.f32.xlu1 %v912_v19 }
 0x1f7   :  { %v927_v21 = vsel %vm53_vm0, %v4426_v59, 0.0 }
 0x1f8   :  { %v4428_v20 = vpop.eup %3861 }
 0x1f9   :  { %v933_v29 = vsel %vm53_vm0, %v4428_v20, 0.0 }
 0x1fa   :  { %v4434_v18 = vpop.eup %3863  ;;  %934 = vadd.xlane.f32.xlu0 %v933_v29  ;;  %928 = vadd.xlane.f32.xlu1 %v927_v21 }
 0x1fb   :  { %v924_v36 = vsel %vm53_vm0, %v4434_v18, 0.0 }
 0x1fc   :  { %v4436_v24 = vpop.eup %3865 }
 0x1fd   :  { %v930_v32 = vsel %vm53_vm0, %v4436_v24, 0.0 }
 0x1fe   :  { %931 = vadd.xlane.f32.xlu0 %v930_v32  ;;  %925 = vadd.xlane.f32.xlu1 %v924_v36  ;;  %v5058_v36 = vld [vmem:[#allocation4_spill] sm:$0xff] }
 0x20f   :  { %2141 = vrot.lane.b32.xlu1 %v4058_v11, %s3971_s13 }
 0x213   :  { %1955 = vrot.lane.b32.xlu1 %v4181_v34, %s3972_s16 }
 0x214   :  { %2050 = vrot.lane.b32.xlu0 %v4053_v10, %s3971_s13 }
 0x217   :  { %2139 = vrot.lane.b32.xlu1 %v4072_v13, %s3971_s13 }
 0x218   :  { %1864 = vrot.lane.b32.xlu0 %v4167_v30, %s3972_s16 }
 0x21b   :  { %2135 = vrot.lane.b32.xlu1 %v4189_v35, %s3972_s16 }
 0x21c   :  { %2048 = vrot.lane.b32.xlu0 %v4067_v12, %s3971_s13 }
 0x21f   :  { %2323 = vrot.lane.b32.xlu1 %v4086_v15, %s3971_s13 }
 0x220   :  { %2044 = vrot.lane.b32.xlu0 %v4175_v31, %s3972_s16 }
 0x223   :  { %2137 = vrot.lane.b32.xlu1 %v4209_v42, %s3972_s16 }
 0x224   :  { %2232 = vrot.lane.b32.xlu0 %v4081_v14, %s3971_s13 }
 0x227   :  { %2321 = vrot.lane.b32.xlu1 %v4100_v17, %s3971_s13 }
 0x228   :  { %2046 = vrot.lane.b32.xlu0 %v4195_v38, %s3972_s16 }
 0x22b   :  { %2317 = vrot.lane.b32.xlu1 %v4217_v43, %s3972_s16 }
 0x22c   :  { %2230 = vrot.lane.b32.xlu0 %v4095_v16, %s3971_s13 }
 0x22f   :  { %2319 = vrot.lane.b32.xlu1 %v4233_v47, %s3972_s16 }
 0x230   :  { %2226 = vrot.lane.b32.xlu0 %v4203_v39, %s3972_s16 }
 0x233   :  { %2602 = vrot.lane.b32.xlu1 %v3993_v0, %s3973_s21  ;;  %v4498_v0 = vpop.permute.xlu1 %1773 }
 0x234   :  { %2228 = vrot.lane.b32.xlu0 %v4223_v46, %s3972_s16 }
 0x237   :  { %2600 = vrot.lane.b32.xlu1 %v3998_v1, %s3973_s21  ;;  %v4500_v1 = vpop.permute.xlu0 %1682 }
 0x238   :  { %2689 = vrot.lane.b32.xlu0 %v4013_v4, %s3973_s21 }
 0x23b   :  { %2687 = vrot.lane.b32.xlu1 %v4007_v2, %s3973_s21  ;;  %v4502_v2 = vpop.permute.xlu1 %1957  ;;  %v4504_v4 = vpop.permute.xlu0 %1866 }
 0x23c   :  { %2776 = vrot.lane.b32.xlu0 %v4025_v6, %s3973_s21 }
 0x23f   :  { %2863 = vrot.lane.b32.xlu1 %v4030_v7, %s3973_s21  ;;  %v4506_v6 = vpop.permute.xlu1 %1953  ;;  %v4508_v7 = vpop.permute.xlu0 %1862 }
 0x240   :  { %2774 = vrot.lane.b32.xlu0 %v4039_v8, %s3973_s21 }
 0x243   :  { %2861 = vrot.lane.b32.xlu1 %v4044_v9, %s3973_s21 }
 0x244   :  { %2950 = vrot.lane.b32.xlu0 %v4053_v10, %s3973_s21 }
 0x247   :  { %3037 = vrot.lane.b32.xlu1 %v4058_v11, %s3973_s21 }
 0x267   :  { %v893_v8 = vpop.xlane.xlu1 %892 }
 0x268   :  { %3867 = vrcp.f32 %v893_v8  ;;  %v5059_v8 = vld [vmem:[#allocation7_spill] sm:$0xff] }
 0x26b   :  { %v899_v10 = vpop.xlane.xlu0 %898 }
 0x26c   :  { %3869 = vrcp.f32 %v899_v10 }
 0x26f   :  { %v896_v9 = vpop.xlane.xlu0 %895  ;;  %v890_v12 = vpop.xlane.xlu1 %889 }
 0x270   :  { %3871 = vrcp.f32 %v896_v9  ;;  %v5060_v9 = vld [vmem:[#allocation6_spill] sm:$0xff] }
 0x271   :  { %3873 = vrcp.f32 %v890_v12 }
 0x273   :  { %v911_v11 = vpop.xlane.xlu0 %910  ;;  %v905_v13 = vpop.xlane.xlu1 %904 }
 0x274   :  { %3875 = vrcp.f32 %v911_v11 }
 0x275   :  { %3877 = vrcp.f32 %v905_v13  ;;  %v3868_v16 = vpop.eup %3867 }
 0x276   :  { %v953_v47 = vmul.f32 %v3868_v16, %v4370_v57 }
 0x277   :  { %v908_v14 = vpop.xlane.xlu0 %907  ;;  %v902_v15 = vpop.xlane.xlu1 %901 }
 0x278   :  { %3879 = vrcp.f32 %v908_v14 }
 0x279   :  { %3881 = vrcp.f32 %v902_v15  ;;  %v3870_v31 = vpop.eup %3869 }
 0x27a   :  { %v955_v46 = vmul.f32 %v3870_v31, %v4376_v25  ;;  %v5065_v31 = vld [vmem:[#allocation12_spill] sm:$0xff] }
 0x27b   :  { %v923_v17 = vpop.xlane.xlu0 %922  ;;  %v917_v30 = vpop.xlane.xlu1 %916 }
 0x27c   :  { %3883 = vrcp.f32 %v923_v17 }
 0x27d   :  { %v3872_v34 = vpop.eup %3871  ;;  %3885 = vrcp.f32 %v917_v30 }
 0x27e   :  { %v3874_v35 = vpop.eup %3873  ;;  %v954_v38 = vmul.f32 %v3872_v34, %v4381_v44 }
 0x27f   :  { %v920_v39 = vpop.xlane.xlu0 %919  ;;  %v914_v42 = vpop.xlane.xlu1 %913  ;;  %v952_v43 = vmul.f32 %v3874_v35, %v4384_v62 }
 0x280   :  { %3887 = vrcp.f32 %v920_v39  ;;  %3672 = vmatprep.mubr.msk.f32.mxu1 %vm53_vm0, %v954_v38 }
 0x281   :  { %3889 = vrcp.f32 %v914_v42  ;;  %3665 = vmatprep.mubr.msk.f32.mxu0 %vm53_vm0, %v952_v43  ;;  %3673 = vmatmul.mubr.msk.f32.vlgmr.msra.gmra.mxu1 %vm53_vm0, %v955_v46  ;;  %v3876_v44 = vpop.eup %3875 }
 0x282   :  { %3666 = vmatmul.mubr.msk.f32.vlgmr.msra.gmra.mxu0 %vm53_vm0, %v953_v47  ;;  %3683 = vmatpush3.msra.mxu1 %v4241_v53  ;;  %v3878_v28 = vpop.eup %3877  ;;  %v959_v33 = vmul.f32 %v3876_v44, %v4394_v27 }
 0x283   :  { %3676 = vmatpush3.msra.mxu0 %v4238_v51  ;;  %3684 = vmatprep.subr.mxu1 %v4328_v58  ;;  %v935_v25 = vpop.xlane.xlu0 %934  ;;  %v929_v62 = vpop.xlane.xlu1 %928 }
 0x284   :  { %3677 = vmatprep.subr.mxu0 %v4326_v54  ;;  %3685 = vmatpush3.msra.mxu1 %v4328_v58  ;;  %3891 = vrcp.f32 %v935_v25 }
 0x285   :  { %v3880_v57 = vpop.eup %3879  ;;  %3678 = vmatpush3.msra.mxu0 %v4326_v54  ;;  %3696 = vmatprep.subr.mxu1 %v4332_v49  ;;  %3893 = vrcp.f32 %v929_v62  ;;  %v957_v54 = vmul.f32 %v3878_v28, %v4391_v63 }
 0x286   :  { %v3882_v56 = vpop.eup %3881  ;;  %3689 = vmatprep.subr.mxu0 %v4330_v26  ;;  %v958_v51 = vmul.f32 %v3880_v57, %v4404_v41 }
 0x287   :  { %v932_v53 = vpop.xlane.xlu0 %931  ;;  %v926_v45 = vpop.xlane.xlu1 %925  ;;  %v956_v60 = vmul.f32 %v3882_v56, %v4401_v37 }
 0x288   :  { %3895 = vrcp.f32 %v932_v53  ;;  %3686 = vmatprep.mubr.msk.f32.mxu1 %vm53_vm0, %v958_v51 }
 0x289   :  { %3897 = vrcp.f32 %v926_v45  ;;  %3679 = vmatprep.mubr.msk.f32.mxu0 %vm53_vm0, %v956_v60  ;;  %3687 = vmatmul.mubr.msk.f32.vlgmr.msra.gmra.mxu1 %vm53_vm0, %v959_v33  ;;  %v3884_v58 = vpop.eup %3883 }
 0x28a   :  { %3680 = vmatmul.mubr.msk.f32.vlgmr.msra.gmra.mxu0 %vm53_vm0, %v957_v54  ;;  %3697 = vmatpush3.msra.mxu1 %v4332_v49  ;;  %v3886_v41 = vpop.eup %3885  ;;  %v963_v19 = vmul.f32 %v3884_v58, %v4412_v52 }
 0x28b   :  { %3690 = vmatpush3.msra.mxu0 %v4330_v26  ;;  %3698 = vmatprep.subr.mxu1 %v4336_v22  ;;  %v4537_v27 = vpop.permute.xlu0 %2050  ;;  %v4539_v37 = vpop.permute.xlu1 %2141 }
 0x28c   :  { %3691 = vmatprep.subr.mxu0 %v4334_v50  ;;  %3699 = vmatpush3.msra.mxu1 %v4336_v22  ;;  %v961_v22 = vmul.f32 %v3886_v41, %v4410_v61  ;;  %v30_v41 = vld [vmem:[%s5033_s1 + $0x18] sm:$0xff] }
 0x28d   :  { %v3888_v63 = vpop.eup %3887  ;;  %3692 = vmatpush3.msra.mxu0 %v4334_v50  ;;  %3710 = vmatprep.subr.mxu1 %v5055_v40 }
 0x28e   :  { %v3890_v49 = vpop.eup %3889  ;;  %3703 = vmatprep.subr.mxu0 %v5056_v3  ;;  %v962_v26 = vmul.f32 %v3888_v63, %v4420_v55 }
 0x28f   :  { %v960_v5 = vmul.f32 %v3890_v49, %v4418_v23  ;;  %v1865_v29 = vpop.permute.xlu0 %1864  ;;  %v1956_v21 = vpop.permute.xlu1 %1955  ;;  %v5057_v23 = vld [vmem:[#allocation5_spill] sm:$0xff] }
 0x290   :  { %3700 = vmatprep.mubr.msk.f32.mxu1 %vm53_vm0, %v962_v26 }
 0x291   :  { %3693 = vmatprep.mubr.msk.f32.mxu0 %vm53_vm0, %v960_v5  ;;  %3701 = vmatmul.mubr.msk.f32.vlgmr.msra.gmra.mxu1 %vm53_vm0, %v963_v19  ;;  %v3892_v50 = vpop.eup %3891 }
 0x292   :  { %3694 = vmatmul.mubr.msk.f32.vlgmr.msra.gmra.mxu0 %vm53_vm0, %v961_v22  ;;  %3711 = vmatpush3.msra.mxu1 %v5055_v40  ;;  %v3894_v32 = vpop.eup %3893  ;;  %v967_v13 = vmul.f32 %v3892_v50, %v4428_v20  ;;  %v5062_v20 = vld [vmem:[#allocation8_spill] sm:$0xff] }
 0x293   :  { %3704 = vmatpush3.msra.mxu0 %v5056_v3  ;;  %3712 = vmatprep.subr.mxu1 %v5057_v23  ;;  %v2049_v52 = vpop.permute.xlu0 %2048  ;;  %v2140_v55 = vpop.permute.xlu1 %2139  ;;  %v965_v14 = vmul.f32 %v3894_v32, %v4426_v59  ;;  %v5063_v59 = vld [vmem:[#allocation9_spill] sm:$0xff]  ;;  %v29_v40 = vld [vmem:[%s5033_s1 + $0x10] sm:$0xff] }
 0x294   :  { %3705 = vmatprep.subr.mxu0 %v5058_v36  ;;  %3713 = vmatpush3.msra.mxu1 %v5057_v23 }
 0x295   :  { %v3896_v61 = vpop.eup %3895  ;;  %3706 = vmatpush3.msra.mxu0 %v5058_v36  ;;  %3724 = vmatprep.subr.msk.mxu1 %vm53_vm0, %v5059_v8 }
 0x296   :  { %v3898_v10 = vpop.eup %3897  ;;  %3717 = vmatprep.subr.msk.mxu0 %vm53_vm0, %v5060_v9  ;;  %v966_v12 = vmul.f32 %v3896_v61, %v4436_v24  ;;  %v5064_v24 = vld [vmem:[#allocation11_spill] sm:$0xff] }
 0x297   :  { %v964_v11 = vmul.f32 %v3898_v10, %v4434_v18  ;;  %v2136_v15 = vpop.permute.xlu1 %2135  ;;  %v2045_v16 = vpop.permute.xlu0 %2044  ;;  %v5061_v18 = vld [vmem:[#allocation10_spill] sm:$0xff] }
 0x298   :  { %3714 = vmatprep.mubr.msk.f32.mxu1 %vm53_vm0, %v966_v12 }
 0x299   :  { %3707 = vmatprep.mubr.msk.f32.mxu0 %vm53_vm0, %v964_v11  ;;  %3715 = vmatmul.mubr.msk.f32.vlgmr.msra.gmra.mxu1 %vm53_vm0, %v967_v13 }
 0x29a   :  { %3708 = vmatmul.mubr.msk.f32.vlgmr.msra.gmra.mxu0 %vm53_vm0, %v965_v14  ;;  %3725 = vmatpush3.xpose.msk.msra.mxu1 %vm53_vm0, %v5059_v8 }
 0x29b   :  { %3718 = vmatpush3.xpose.msk.msra.mxu0 %vm53_vm0, %v5060_v9  ;;  %3721 = vmatprep.mubr.msk.f32.mxu0 %vm53_vm0, %v5061_v18  ;;  %v2324_v17 = vpop.permute.xlu1 %2323  ;;  %v2233_v30 = vpop.permute.xlu0 %2232 }
 0x29c   :  { %3719 = vmatprep.subr.msk.mxu0 %vm53_vm0, %v5062_v20  ;;  %3726 = vmatprep.subr.msk.mxu1 %vm53_vm0, %v5063_v59 }
 0x29d   :  { %3728 = vmatprep.mubr.msk.f32.mxu1 %vm53_vm0, %v5064_v24 }
 0x29e   :  { %3727 = vmatpush3.xpose.msk.msra.mxu1 %vm53_vm0, %v5063_v59 }
 0x29f   :  { %3720 = vmatpush3.xpose.msk.msra.mxu0 %vm53_vm0, %v5062_v20  ;;  %3738 = vmatprep.subr.msk.mxu1 %vm53_vm0, %v4361_v48  ;;  %v2138_v34 = vpop.permute.xlu1 %2137 }
 0x2a0   :  { %3731 = vmatprep.subr.msk.mxu0 %vm53_vm0, %v5065_v31 }
 0x2a1   :  { %3729 = vmatmul.mubr.msk.f32.vlgmr.msra.gmra.mxu1 %vm53_vm0, %v4498_v0  ;;  %v2047_v0 = vpop.permute.xlu0 %2046 }
 0x2a2   :  { %3722 = vmatmul.mubr.msk.f32.vlgmr.msra.gmra.mxu0 %vm53_vm0, %v4500_v1  ;;  %3739 = vmatpush3.xpose.msk.msra.mxu1 %vm53_vm0, %v4361_v48 }
 0x2a3   :  { %3732 = vmatpush3.xpose.msk.msra.mxu0 %vm53_vm0, %v5065_v31  ;;  %3735 = vmatprep.mubr.msk.f32.mxu0 %vm53_vm0, %v4508_v7  ;;  %v2322_v48 = vpop.permute.xlu1 %2321 }
 0x2a4   :  { %3742 = vmatprep.mubr.msk.f32.mxu1 %vm53_vm0, %v4506_v6  ;;  %3733 = vmatprep.subr.msk.mxu0 %vm53_vm0, %v4504_v4 }
 0x2a5   :  { %3740 = vmatprep.subr.msk.mxu1 %vm53_vm0, %v4502_v2  ;;  %v2231_v1 = vpop.permute.xlu0 %2230 }
 0x2a6   :  { %3741 = vmatpush3.xpose.msk.msra.mxu1 %vm53_vm0, %v4502_v2 }
 0x2a7   :  { %3734 = vmatpush3.xpose.msk.msra.mxu0 %vm53_vm0, %v4504_v4  ;;  %3752 = vmatprep.subr.msk.mxu1 %vm53_vm0, %v4539_v37  ;;  %v2318_v2 = vpop.permute.xlu1 %2317 }
 0x2a8   :  { %3745 = vmatprep.subr.msk.mxu0 %vm53_vm0, %v4537_v27 }
 0x2a9   :  { %3743 = vmatmul.mubr.msk.f32.vlgmr.msra.gmra.mxu1 %vm53_vm0, %v1956_v21  ;;  %v2227_v4 = vpop.permute.xlu0 %2226 }
 0x2aa   :  { %3736 = vmatmul.mubr.msk.f32.vlgmr.msra.gmra.mxu0 %vm53_vm0, %v1865_v29  ;;  %3753 = vmatpush3.xpose.msk.msra.mxu1 %vm53_vm0, %v4539_v37 }
 0x2ab   :  { %3746 = vmatpush3.xpose.msk.msra.mxu0 %vm53_vm0, %v4537_v27  ;;  %3749 = vmatprep.mubr.msk.f32.mxu0 %vm53_vm0, %v2045_v16  ;;  %v2320_v6 = vpop.permute.xlu1 %2319 }
 0x2ac   :  { %3747 = vmatprep.subr.msk.mxu0 %vm53_vm0, %v2049_v52  ;;  %3754 = vmatprep.subr.msk.mxu1 %vm53_vm0, %v2140_v55 }
 0x2ad   :  { %3756 = vmatprep.mubr.msk.f32.mxu1 %vm53_vm0, %v2136_v15  ;;  %v2229_v7 = vpop.permute.xlu0 %2228 }
 0x2ae   :  { %3755 = vmatpush3.xpose.msk.msra.mxu1 %vm53_vm0, %v2140_v55 }
 0x2af   :  { %3748 = vmatpush3.xpose.msk.msra.mxu0 %vm53_vm0, %v2049_v52  ;;  %3766 = vmatprep.subr.msk.mxu1 %vm53_vm0, %v2324_v17  ;;  %v2603_v35 = vpop.permute.xlu1 %2602 }
 0x2b0   :  { %3759 = vmatprep.subr.msk.mxu0 %vm53_vm0, %v2233_v30 }
 0x2b1   :  { %3757 = vmatmul.mubr.msk.f32.vlgmr.msra.gmra.mxu1 %vm53_vm0, %v2138_v34  ;;  %v2690_v38 = vpop.permute.xlu0 %2689 }
 0x2b2   :  { %3750 = vmatmul.mubr.msk.f32.vlgmr.msra.gmra.mxu0 %vm53_vm0, %v2047_v0  ;;  %3767 = vmatpush3.xpose.msk.msra.mxu1 %vm53_vm0, %v2324_v17 }
 0x2b3   :  { %3760 = vmatpush3.xpose.msk.msra.mxu0 %vm53_vm0, %v2233_v30  ;;  %3763 = vmatprep.mubr.msk.f32.mxu0 %vm53_vm0, %v2227_v4  ;;  %v2601_v39 = vpop.permute.xlu1 %2600 }
 0x2b4   :  { %3761 = vmatprep.subr.msk.mxu0 %vm53_vm0, %v2231_v1  ;;  %3768 = vmatprep.subr.msk.mxu1 %vm53_vm0, %v2322_v48 }
 0x2b5   :  { %3770 = vmatprep.mubr.msk.f32.mxu1 %vm53_vm0, %v2318_v2  ;;  %v4642_v42 = vpop.permute.xlu0 %2776 }
 0x2b6   :  { %3769 = vmatpush3.xpose.msk.msra.mxu1 %vm53_vm0, %v2322_v48 }
 0x2b7   :  { %3762 = vmatpush3.xpose.msk.msra.mxu0 %vm53_vm0, %v2231_v1  ;;  %3780 = vmatprep.subr.mxu1 %v2690_v38  ;;  %v2688_v43 = vpop.permute.xlu1 %2687 }
 0x2b8   :  { %3773 = vmatprep.subr.mxu0 %v2603_v35 }
 0x2b9   :  { %3771 = vmatmul.mubr.msk.f32.vlgmr.msra.gmra.mxu1 %vm53_vm0, %v2320_v6 }
 0x2ba   :  { %3764 = vmatmul.mubr.msk.f32.vlgmr.msra.gmra.mxu0 %vm53_vm0, %v2229_v7  ;;  %3781 = vmatpush3.msra.mxu1 %v2690_v38 }
 0x2bb   :  { %3774 = vmatpush3.msra.mxu0 %v2603_v35  ;;  %3782 = vmatprep.subr.mxu1 %v2688_v43  ;;  %v4645_v46 = vpop.permute.xlu1 %2863 }
 0x2bc   :  { %3775 = vmatprep.subr.mxu0 %v2601_v39  ;;  %3783 = vmatpush3.msra.mxu1 %v2688_v43 }
 0x2bd   :  { %3776 = vmatpush3.msra.mxu0 %v2601_v39  ;;  %3794 = vmatprep.subr.mxu1 %v4645_v46 }
 0x2be   :  { %3787 = vmatprep.subr.mxu0 %v4642_v42 }
 0x341   :  { %v3674_v47 = vpop.f32.mrf.mxu1 }
 0x342   :  { %v3667_v44 = vpop.f32.mrf.mxu0  ;;  %1667 = vst.msk [vmem:[%s5034_s2 + $0x18] sm:$0xff] %vm53_vm0, %v3674_v47 }
 0x343   :  { %1665 = vst.msk [vmem:[%s5034_s2 + $0x8] sm:$0xff] %vm53_vm0, %v3667_v44  ;;  %v1133_v25 = vpop.f32.mrf.mxu1 }
 0x344   :  { %v1046_v62 = vpop.f32.mrf.mxu0  ;;  %1666 = vst.msk [vmem:[%s5034_s2 + $0x10] sm:$0xff] %vm53_vm0, %v1133_v25 }
 0x345   :  { %1664 = vst.msk [vmem:[%s5034_s2] sm:$0xff] %vm53_vm0, %v1046_v62 }
 0x349   :  { %v3688_v28 = vpop.f32.mrf.mxu1 }
 0x34a   :  { %v3681_v57 = vpop.f32.mrf.mxu0  ;;  %1671 = vst.msk [vmem:[%s5034_s2 + $0x38] sm:$0xff] %vm53_vm0, %v3688_v28  ;;  %v3963_v28 = vld [vmem:[%s5032_s0 + $0x50] sm:$0xff] }
 0x34b   :  { %1669 = vst.msk [vmem:[%s5034_s2 + $0x28] sm:$0xff] %vm53_vm0, %v3681_v57  ;;  %v1307_v56 = vpop.f32.mrf.mxu1  ;;  %v3964_v57 = vld [vmem:[%s5032_s0 + $0x78] sm:$0xff] }
 0x34c   :  { %v1220_v51 = vpop.f32.mrf.mxu0  ;;  %1670 = vst.msk [vmem:[%s5034_s2 + $0x30] sm:$0xff] %vm53_vm0, %v1307_v56  ;;  %v3965_v56 = vld [vmem:[%s5032_s0 + $0x40] sm:$0xff] }
 0x34d   :  { %1668 = vst.msk [vmem:[%s5034_s2 + $0x20] sm:$0xff] %vm53_vm0, %v1220_v51  ;;  %v3966_v51 = vld [vmem:[%s5032_s0 + $0x68] sm:$0xff] }
 0x351   :  { %v3702_v53 = vpop.f32.mrf.mxu1 }
 0x352   :  { %v3695_v45 = vpop.f32.mrf.mxu0  ;;  %1675 = vst.msk [vmem:[%s5034_s2 + $0x58] sm:$0xff] %vm53_vm0, %v3702_v53  ;;  %v4798_v53 = vpop.permute.xlu0 %2774 }
 0x353   :  { %1673 = vst.msk [vmem:[%s5034_s2 + $0x48] sm:$0xff] %vm53_vm0, %v3695_v45  ;;  %v1481_v60 = vpop.f32.mrf.mxu1  ;;  %v4800_v45 = vpop.permute.xlu1 %2861 }
 0x354   :  { %v1394_v33 = vpop.f32.mrf.mxu0  ;;  %1674 = vst.msk [vmem:[%s5034_s2 + $0x50] sm:$0xff] %vm53_vm0, %v1481_v60 }
 0x355   :  { %1672 = vst.msk [vmem:[%s5034_s2 + $0x40] sm:$0xff] %vm53_vm0, %v1394_v33 }
 0x356   :  { %v4802_v60 = vpop.permute.xlu0 %2950 }
 0x357   :  { %v4804_v33 = vpop.permute.xlu1 %3037 }
 0x359   :  { %v3716_v54 = vpop.f32.mrf.mxu1 }
 0x35a   :  { %v3709_v58 = vpop.f32.mrf.mxu0  ;;  %1679 = vst.msk [vmem:[%s5034_s2 + $0x78] sm:$0xff] %vm53_vm0, %v3716_v54 }
 0x35b   :  { %1677 = vst.msk [vmem:[%s5034_s2 + $0x68] sm:$0xff] %vm53_vm0, %v3709_v58  ;;  %v1655_v27 = vpop.f32.mrf.mxu1 }
 0x35c   :  { %v1568_v37 = vpop.f32.mrf.mxu0  ;;  %1678 = vst.msk [vmem:[%s5034_s2 + $0x70] sm:$0xff] %vm53_vm0, %v1655_v27 }
 0x35d   :  { %1676 = vst.msk [vmem:[%s5034_s2 + $0x60] sm:$0xff] %vm53_vm0, %v1568_v37 }
 0x361   :  { %v3730_v63 = vpop.f32.mrf.mxu1 }
 0x362   :  { %v3723_v49 = vpop.f32.mrf.mxu0  ;;  %v4722_v19 = vadd.f32 %v3730_v63, %v30_v41 }
 0x363   :  { %v4718_v3 = vadd.f32 %v3723_v49, %v30_v41  ;;  %v1853_v26 = vpop.f32.mrf.mxu1 }
 0x364   :  { %v4720_v5 = vadd.f32 %v1853_v26, %v29_v40  ;;  %v1762_v21 = vpop.f32.mrf.mxu0  ;;  %v2433_v23 = vsel %vm53_vm0, %v4722_v19, -inf }
 0x365   :  { %v2427_v29 = vsel %vm53_vm0, %v4718_v3, -inf  ;;  %v4728_v50 = vadd.f32 %v1762_v21, %v29_v40 }
 0x366   :  { %2428 = vmax.xlane.f32.xlu0 %v2427_v29  ;;  %v2430_v22 = vsel %vm53_vm0, %v4720_v5, -inf }
 0x367   :  { %2431 = vmax.xlane.f32.xlu1 %v2430_v22  ;;  %v2424_v10 = vsel %vm53_vm0, %v4728_v50, -inf }
 0x369   :  { %v3744_v55 = vpop.f32.mrf.mxu1 }
 0x36a   :  { %2434 = vmax.xlane.f32.xlu0 %v2433_v23  ;;  %v3737_v52 = vpop.f32.mrf.mxu0  ;;  %v4734_v61 = vadd.f32 %v3744_v55, %v30_v41 }
 0x36b   :  { %v4732_v32 = vadd.f32 %v3737_v52, %v30_v41  ;;  %v2035_v12 = vpop.f32.mrf.mxu1 }
 0x36c   :  { %v1944_v36 = vpop.f32.mrf.mxu0  ;;  %v4742_v11 = vadd.f32 %v2035_v12, %v29_v40  ;;  %v2445_v14 = vsel %vm53_vm0, %v4734_v61, -inf }
 0x36d   :  { %v4736_v8 = vadd.f32 %v1944_v36, %v29_v40  ;;  %v2439_v9 = vsel %vm53_vm0, %v4732_v32, -inf }
 0x36e   :  { %2425 = vmax.xlane.f32.xlu0 %v2424_v10  ;;  %2440 = vmax.xlane.f32.xlu1 %v2439_v9  ;;  %v2442_v30 = vsel %vm53_vm0, %v4742_v11, -inf }
 0x36f   :  { %v2436_v13 = vsel %vm53_vm0, %v4736_v8, -inf }
 0x371   :  { %v3758_v16 = vpop.f32.mrf.mxu1 }
 0x372   :  { %2437 = vmax.xlane.f32.xlu1 %v2436_v13  ;;  %v3751_v15 = vpop.f32.mrf.mxu0  ;;  %2446 = vmax.xlane.f32.xlu0 %v2445_v14  ;;  %v4750_v20 = vadd.f32 %v3758_v16, %v30_v41 }
 0x373   :  { %v4748_v18 = vadd.f32 %v3751_v15, %v30_v41  ;;  %v2217_v31 = vpop.f32.mrf.mxu1 }
 0x374   :  { %v2126_v59 = vpop.f32.mrf.mxu0  ;;  %v2457_v34 = vsel %vm53_vm0, %v4750_v20, -inf  ;;  %v4760_v0 = vadd.f32 %v2217_v31, %v29_v40 }
 0x375   :  { %v4752_v24 = vadd.f32 %v2126_v59, %v29_v40  ;;  %v2451_v17 = vsel %vm53_vm0, %v4748_v18, -inf }
 0x376   :  { %2452 = vmax.xlane.f32.xlu1 %v2451_v17  ;;  %2443 = vmax.xlane.f32.xlu0 %v2442_v30  ;;  %v2454_v43 = vsel %vm53_vm0, %v4760_v0, -inf }
 0x377   :  { %v2448_v48 = vsel %vm53_vm0, %v4752_v24, -inf }
 0x379   :  { %v3772_v1 = vpop.f32.mrf.mxu1 }
 0x37a   :  { %2449 = vmax.xlane.f32.xlu1 %v2448_v48  ;;  %v3765_v2 = vpop.f32.mrf.mxu0  ;;  %2458 = vmax.xlane.f32.xlu0 %v2457_v34  ;;  %v4766_v6 = vadd.f32 %v3772_v1, %v30_v41 }
 0x37b   :  { %v4764_v4 = vadd.f32 %v3765_v2, %v30_v41  ;;  %v2399_v35 = vpop.f32.mrf.mxu1 }
 0x37c   :  { %v2308_v7 = vpop.f32.mrf.mxu0  ;;  %v2469_v44 = vsel %vm53_vm0, %v4766_v6, -inf  ;;  %v4778_v25 = vadd.f32 %v2399_v35, %v29_v40 }
 0x37d   :  { %v2463_v38 = vsel %vm53_vm0, %v4764_v4, -inf  ;;  %v4770_v39 = vadd.f32 %v2308_v7, %v29_v40 }
 0x37e   :  { %2464 = vmax.xlane.f32.xlu1 %v2463_v38  ;;  %2455 = vmax.xlane.f32.xlu0 %v2454_v43  ;;  %v2466_v62 = vsel %vm53_vm0, %v4778_v25, -inf }
 0x37f   :  { %v2460_v47 = vsel %vm53_vm0, %v4770_v39, -inf }
 0x382   :  { %2461 = vmax.xlane.f32.xlu1 %v2460_v47  ;;  %2470 = vmax.xlane.f32.xlu0 %v2469_v44 }
 0x386   :  { %2467 = vmax.xlane.f32.xlu0 %v2466_v62 }
 0x393   :  { %3035 = vrot.lane.b32.xlu1 %v3963_v28, %s3973_s21 }
 0x397   :  { %3211 = vrot.lane.b32.xlu1 %v3964_v57, %s3973_s21 }
 0x39c   :  { %2948 = vrot.lane.b32.xlu0 %v3965_v56, %s3973_s21 }
 0x3a0   :  { %3124 = vrot.lane.b32.xlu0 %v3966_v51, %s3973_s21 }
 0x3ef   :  { %v2429_v54 = vpop.xlane.xlu0 %2428 }
 0x3f0   :  { %v2473_v58 = vsub.f32 %v4718_v3, %v2429_v54  ;;  %v2432_v27 = vpop.xlane.xlu1 %2431 }
 0x3f1   :  { %v2474_v37 = vsub.f32 %v4720_v5, %v2432_v27 }
 0x3f2   :  { %v2490_v41 = vmul.f32 1.442695, %v2473_v58 }
 0x3f3   :  { %v2435_v63 = vpop.xlane.xlu0 %2434  ;;  %v2492_v49 = vmul.f32 1.442695, %v2474_v37 }
 0x3f4   :  { %3899 = vpow2.f32 %v2490_v41  ;;  %v2475_v40 = vsub.f32 %v4722_v19, %v2435_v63 }
 0x3f6   :  { %v2494_v26 = vmul.f32 1.442695, %v2475_v40 }
 0x3f7   :  { %v2426_v29 = vpop.xlane.xlu0 %2425  ;;  %v2441_v21 = vpop.xlane.xlu1 %2440 }
 0x3f8   :  { %3901 = vpow2.f32 %v2494_v26  ;;  %v2472_v22 = vsub.f32 %v4728_v50, %v2426_v29  ;;  %v2477_v23 = vsub.f32 %v4732_v32, %v2441_v21 }
 0x3f9   :  { %3903 = vpow2.f32 %v2492_v49 }
 0x3fa   :  { %v2488_v52 = vmul.f32 1.442695, %v2472_v22  ;;  %v2498_v3 = vmul.f32 1.442695, %v2477_v23 }
 0x3fb   :  { %v2447_v55 = vpop.xlane.xlu0 %2446  ;;  %v2438_v36 = vpop.xlane.xlu1 %2437 }
 0x3fc   :  { %3905 = vpow2.f32 %v2488_v52  ;;  %v2479_v5 = vsub.f32 %v4734_v61, %v2447_v55  ;;  %v2476_v10 = vsub.f32 %v4736_v8, %v2438_v36 }
 0x3fd   :  { %3907 = vpow2.f32 %v2498_v3 }
 0x3fe   :  { %v2502_v19 = vmul.f32 1.442695, %v2479_v5  ;;  %v2496_v9 = vmul.f32 1.442695, %v2476_v10 }
 0x3ff   :  { %v2444_v12 = vpop.xlane.xlu0 %2443  ;;  %v2453_v13 = vpop.xlane.xlu1 %2452 }
 0x400   :  { %3909 = vpow2.f32 %v2502_v19  ;;  %v2478_v50 = vsub.f32 %v4742_v11, %v2444_v12  ;;  %v2481_v32 = vsub.f32 %v4748_v18, %v2453_v13  ;;  %v3967_v13 = vld [vmem:[%s5032_s0 + $0x70] sm:$0xff] }
 0x401   :  { %v4815_v14 = vpop.eup %3899  ;;  %3911 = vpow2.f32 %v2496_v9 }
 0x402   :  { %v2500_v15 = vmul.f32 1.442695, %v2478_v50  ;;  %v2506_v16 = vmul.f32 1.442695, %v2481_v32  ;;  %v2523_v61 = vsel %vm53_vm0, %v4815_v14, 0.0  ;;  %v3968_v50 = vld [vmem:[%s5032_s0 + $0x60] sm:$0xff] }
 0x403   :  { %2524 = vadd.xlane.f32.xlu1 %v2523_v61  ;;  %v2459_v8 = vpop.xlane.xlu0 %2458  ;;  %v2450_v59 = vpop.xlane.xlu1 %2449  ;;  %s3974_s0 = smov 16  }
 0x404   :  { %3913 = vpow2.f32 %v2500_v15  ;;  %v2483_v17 = vsub.f32 %v4750_v20, %v2459_v8  ;;  %v2480_v30 = vsub.f32 %v4752_v24, %v2450_v59 }
 0x405   :  { %v4821_v31 = vpop.eup %3901  ;;  %3915 = vpow2.f32 %v2506_v16 }
 0x406   :  { %v4823_v11 = vpop.eup %3903  ;;  %v2510_v18 = vmul.f32 1.442695, %v2483_v17  ;;  %v2504_v34 = vmul.f32 1.442695, %v2480_v30  ;;  %v2529_v48 = vsel %vm53_vm0, %v4821_v31, 0.0 }
 0x407   :  { %v2456_v1 = vpop.xlane.xlu0 %2455  ;;  %2530 = vadd.xlane.f32.xlu0 %v2529_v48  ;;  %v2465_v2 = vpop.xlane.xlu1 %2464  ;;  %v2526_v24 = vsel %vm53_vm0, %v4823_v11, 0.0 }
 0x408   :  { %3917 = vpow2.f32 %v2510_v18  ;;  %v2482_v7 = vsub.f32 %v4760_v0, %v2456_v1  ;;  %v2485_v20 = vsub.f32 %v4764_v4, %v2465_v2 }
 0x409   :  { %v4829_v35 = vpop.eup %3905  ;;  %3919 = vpow2.f32 %v2504_v34 }
 0x40a   :  { %v4833_v38 = vpop.eup %3907  ;;  %v2508_v43 = vmul.f32 1.442695, %v2482_v7  ;;  %v2514_v47 = vmul.f32 1.442695, %v2485_v20  ;;  %v2520_v44 = vsel %vm53_vm0, %v4829_v35, 0.0 }
 0x40b   :  { %2521 = vadd.xlane.f32.xlu1 %v2520_v44  ;;  %v2471_v62 = vpop.xlane.xlu0 %2470  ;;  %2527 = vadd.xlane.f32.xlu0 %v2526_v24  ;;  %v2462_v28 = vpop.xlane.xlu1 %2461  ;;  %v2535_v56 = vsel %vm53_vm0, %v4833_v38, 0.0 }
 0x40c   :  { %3921 = vpow2.f32 %v2508_v43  ;;  %v2487_v0 = vsub.f32 %v4766_v6, %v2471_v62  ;;  %v2484_v4 = vsub.f32 %v4770_v39, %v2462_v28 }
 0x40d   :  { %v4839_v57 = vpop.eup %3909  ;;  %3923 = vpow2.f32 %v2514_v47 }
 0x40e   :  { %v2518_v51 = vmul.f32 1.442695, %v2487_v0  ;;  %v2512_v54 = vmul.f32 1.442695, %v2484_v4  ;;  %v2541_v58 = vsel %vm53_vm0, %v4839_v57, 0.0  ;;  %v4845_v27 = vpop.eup %3911 }
 0x40f   :  { %v2468_v37 = vpop.xlane.xlu0 %2467  ;;  %2542 = vadd.xlane.f32.xlu0 %v2541_v58  ;;  %2536 = vadd.xlane.f32.xlu1 %v2535_v56  ;;  %v2532_v40 = vsel %vm53_vm0, %v4845_v27, 0.0  ;;  %v4894_v32 = vpop.permute.xlu1 %3035 }
 0x410   :  { %3925 = vpow2.f32 %v2518_v51  ;;  %v2486_v6 = vsub.f32 %v4778_v25, %v2468_v37 }
 0x411   :  { %v4848_v39 = vpop.eup %3913  ;;  %3927 = vpow2.f32 %v2512_v54 }
 0x412   :  { %v2516_v41 = vmul.f32 1.442695, %v2486_v6  ;;  %v2538_v63 = vsel %vm53_vm0, %v4848_v39, 0.0  ;;  %v4854_v49 = vpop.eup %3915 }
 0x413   :  { %2539 = vadd.xlane.f32.xlu0 %v2538_v63  ;;  %2533 = vadd.xlane.f32.xlu1 %v2532_v40  ;;  %v2547_v29 = vsel %vm53_vm0, %v4854_v49, 0.0  ;;  %v4896_v15 = vpop.permute.xlu0 %2948  ;;  %v4898_v16 = vpop.permute.xlu1 %3211 }
 0x414   :  { %3929 = vpow2.f32 %v2516_v41 }
 0x415   :  { %v4856_v26 = vpop.eup %3917 }
 0x416   :  { %v2553_v25 = vsel %vm53_vm0, %v4856_v26, 0.0  ;;  %v4862_v21 = vpop.eup %3919 }
 0x417   :  { %2554 = vadd.xlane.f32.xlu0 %v2553_v25  ;;  %2548 = vadd.xlane.f32.xlu1 %v2547_v29  ;;  %v2544_v52 = vsel %vm53_vm0, %v4862_v21, 0.0  ;;  %v4900_v61 = vpop.permute.xlu0 %3124 }
 0x419   :  { %v4864_v22 = vpop.eup %3921 }
 0x41a   :  { %v2550_v23 = vsel %vm53_vm0, %v4864_v22, 0.0  ;;  %v4870_v3 = vpop.eup %3923 }
 0x41b   :  { %2551 = vadd.xlane.f32.xlu0 %v2550_v23  ;;  %2545 = vadd.xlane.f32.xlu1 %v2544_v52  ;;  %v2559_v5 = vsel %vm53_vm0, %v4870_v3, 0.0 }
 0x41d   :  { %v4872_v55 = vpop.eup %3925 }
 0x41e   :  { %v2565_v36 = vsel %vm53_vm0, %v4872_v55, 0.0  ;;  %v4878_v10 = vpop.eup %3927 }
 0x41f   :  { %2566 = vadd.xlane.f32.xlu0 %v2565_v36  ;;  %2560 = vadd.xlane.f32.xlu1 %v2559_v5  ;;  %v2556_v12 = vsel %vm53_vm0, %v4878_v10, 0.0 }
 0x421   :  { %v4880_v19 = vpop.eup %3929 }
 0x422   :  { %v2562_v9 = vsel %vm53_vm0, %v4880_v19, 0.0 }
 0x423   :  { %2563 = vadd.xlane.f32.xlu0 %v2562_v9  ;;  %2557 = vadd.xlane.f32.xlu1 %v2556_v12 }
 0x434   :  { %3209 = vrot.lane.b32.xlu1 %v3967_v13, %s3973_s21 }
 0x439   :  { %3122 = vrot.lane.b32.xlu0 %v3968_v50, %s3973_s21 }
 0x48c   :  { %v2525_v8 = vpop.xlane.xlu1 %2524 }
 0x48d   :  { %3931 = vrcp.f32 %v2525_v8 }
 0x490   :  { %v2531_v59 = vpop.xlane.xlu0 %2530 }
 0x491   :  { %3933 = vrcp.f32 %v2531_v59 }
 0x494   :  { %v2528_v17 = vpop.xlane.xlu0 %2527  ;;  %v2522_v30 = vpop.xlane.xlu1 %2521 }
 0x495   :  { %3935 = vrcp.f32 %v2528_v17 }
 0x496   :  { %3937 = vrcp.f32 %v2522_v30 }
 0x498   :  { %v2543_v18 = vpop.xlane.xlu0 %2542  ;;  %v2537_v34 = vpop.xlane.xlu1 %2536 }
 0x499   :  { %3939 = vrcp.f32 %v2543_v18 }
 0x49a   :  { %3941 = vrcp.f32 %v2537_v34  ;;  %v3932_v2 = vpop.eup %3931 }
 0x49b   :  { %v2585_v56 = vmul.f32 %v3932_v2, %v4815_v14 }
 0x49c   :  { %v2540_v48 = vpop.xlane.xlu0 %2539  ;;  %v2534_v1 = vpop.xlane.xlu1 %2533 }
 0x49d   :  { %3943 = vrcp.f32 %v2540_v48 }
 0x49e   :  { %3945 = vrcp.f32 %v2534_v1  ;;  %v3934_v24 = vpop.eup %3933 }
 0x49f   :  { %v2587_v4 = vmul.f32 %v3934_v24, %v4821_v31 }
 0x4a0   :  { %v2555_v7 = vpop.xlane.xlu0 %2554  ;;  %v2549_v20 = vpop.xlane.xlu1 %2548 }
 0x4a1   :  { %3947 = vrcp.f32 %v2555_v7 }
 0x4a2   :  { %v3936_v43 = vpop.eup %3935  ;;  %3949 = vrcp.f32 %v2549_v20 }
 0x4a3   :  { %v3938_v47 = vpop.eup %3937  ;;  %v2586_v44 = vmul.f32 %v3936_v43, %v4823_v11 }
 0x4a4   :  { %v2552_v62 = vpop.xlane.xlu0 %2551  ;;  %v2546_v28 = vpop.xlane.xlu1 %2545  ;;  %v2584_v0 = vmul.f32 %v3938_v47, %v4829_v35 }
 0x4a5   :  { %3951 = vrcp.f32 %v2552_v62  ;;  %3784 = vmatprep.mubr.msk.f32.mxu1 %vm53_vm0, %v2586_v44 }
 0x4a6   :  { %3953 = vrcp.f32 %v2546_v28  ;;  %3777 = vmatprep.mubr.msk.f32.mxu0 %vm53_vm0, %v2584_v0  ;;  %3785 = vmatmul.mubr.msk.f32.vlgmr.msra.gmra.mxu1 %vm53_vm0, %v2587_v4  ;;  %v3940_v11 = vpop.eup %3939 }
 0x4a7   :  { %3778 = vmatmul.mubr.msk.f32.vlgmr.msra.gmra.mxu0 %vm53_vm0, %v2585_v56  ;;  %3795 = vmatpush3.msra.mxu1 %v4645_v46  ;;  %v3942_v51 = vpop.eup %3941  ;;  %v2591_v6 = vmul.f32 %v3940_v11, %v4839_v57 }
 0x4a8   :  { %3788 = vmatpush3.msra.mxu0 %v4642_v42  ;;  %3796 = vmatprep.subr.mxu1 %v4800_v45  ;;  %v2567_v31 = vpop.xlane.xlu0 %2566  ;;  %v2561_v35 = vpop.xlane.xlu1 %2560 }
 0x4a9   :  { %3789 = vmatprep.subr.mxu0 %v4798_v53  ;;  %3797 = vmatpush3.msra.mxu1 %v4800_v45  ;;  %3955 = vrcp.f32 %v2567_v31 }
 0x4aa   :  { %v3944_v14 = vpop.eup %3943  ;;  %3790 = vmatpush3.msra.mxu0 %v4798_v53  ;;  %3808 = vmatprep.subr.mxu1 %v4804_v33  ;;  %3957 = vrcp.f32 %v2561_v35  ;;  %v2589_v53 = vmul.f32 %v3942_v51, %v4833_v38 }
 0x4ab   :  { %v3946_v54 = vpop.eup %3945  ;;  %3801 = vmatprep.subr.mxu0 %v4802_v60  ;;  %v2590_v42 = vmul.f32 %v3944_v14, %v4848_v39 }
 0x4ac   :  { %v2564_v46 = vpop.xlane.xlu0 %2563  ;;  %v2558_v58 = vpop.xlane.xlu1 %2557  ;;  %v2588_v37 = vmul.f32 %v3946_v54, %v4845_v27 }
 0x4ad   :  { %3959 = vrcp.f32 %v2564_v46  ;;  %3798 = vmatprep.mubr.msk.f32.mxu1 %vm53_vm0, %v2590_v42 }
 0x4ae   :  { %3961 = vrcp.f32 %v2558_v58  ;;  %3791 = vmatprep.mubr.msk.f32.mxu0 %vm53_vm0, %v2588_v37  ;;  %3799 = vmatmul.mubr.msk.f32.vlgmr.msra.gmra.mxu1 %vm53_vm0, %v2591_v6  ;;  %v3948_v45 = vpop.eup %3947 }
 0x4af   :  { %3792 = vmatmul.mubr.msk.f32.vlgmr.msra.gmra.mxu0 %vm53_vm0, %v2589_v53  ;;  %3809 = vmatpush3.msra.mxu1 %v4804_v33  ;;  %v3950_v57 = vpop.eup %3949 }
 0x4b0   :  { %3802 = vmatpush3.msra.mxu0 %v4802_v60  ;;  %3810 = vmatprep.subr.mxu1 %v4894_v32  ;;  %v2595_v60 = vmul.f32 %v3948_v45, %v4856_v26  ;;  %v2593_v41 = vmul.f32 %v3950_v57, %v4854_v49  ;;  %v3210_v63 = vpop.permute.xlu1 %3209  ;;  %v3123_v40 = vpop.permute.xlu0 %3122 }
 0x4b1   :  { %3803 = vmatprep.subr.mxu0 %v4896_v15  ;;  %3811 = vmatpush3.msra.mxu1 %v4894_v32 }
 0x4b2   :  { %v3952_v38 = vpop.eup %3951  ;;  %3804 = vmatpush3.msra.mxu0 %v4896_v15  ;;  %3822 = vmatprep.subr.mxu1 %v4898_v16 }
 0x4b3   :  { %v3954_v27 = vpop.eup %3953  ;;  %3815 = vmatprep.subr.mxu0 %v4900_v61  ;;  %v2594_v33 = vmul.f32 %v3952_v38, %v4864_v22 }
 0x4b4   :  { %v2592_v39 = vmul.f32 %v3954_v27, %v4862_v21 }
 0x4b5   :  { %3812 = vmatprep.mubr.msk.f32.mxu1 %vm53_vm0, %v2594_v33 }
 0x4b6   :  { %3805 = vmatprep.mubr.msk.f32.mxu0 %vm53_vm0, %v2592_v39  ;;  %3813 = vmatmul.mubr.msk.f32.vlgmr.msra.gmra.mxu1 %vm53_vm0, %v2595_v60  ;;  %v3956_v25 = vpop.eup %3955 }
 0x4b7   :  { %3806 = vmatmul.mubr.msk.f32.vlgmr.msra.gmra.mxu0 %vm53_vm0, %v2593_v41  ;;  %3823 = vmatpush3.msra.mxu1 %v4898_v16  ;;  %v3958_v29 = vpop.eup %3957  ;;  %v2599_v23 = vmul.f32 %v3956_v25, %v4872_v55 }
 0x4b8   :  { %3816 = vmatpush3.msra.mxu0 %v4900_v61  ;;  %3824 = vmatprep.subr.mxu1 %v3210_v63  ;;  %v2597_v52 = vmul.f32 %v3958_v29, %v4870_v3 }
 0x4b9   :  { %3817 = vmatprep.subr.mxu0 %v3123_v40  ;;  %3825 = vmatpush3.msra.mxu1 %v3210_v63 }
 0x4ba   :  { %v3960_v26 = vpop.eup %3959  ;;  %3818 = vmatpush3.msra.mxu0 %v3123_v40 }
 0x4bb   :  { %v3962_v49 = vpop.eup %3961  ;;  %v2598_v21 = vmul.f32 %v3960_v26, %v4880_v19 }
 0x4bc   :  { %v2596_v22 = vmul.f32 %v3962_v49, %v4878_v10 }
 0x4bd   :  { %3826 = vmatprep.mubr.msk.f32.mxu1 %vm53_vm0, %v2598_v21 }
 0x4be   :  { %3819 = vmatprep.mubr.msk.f32.mxu0 %vm53_vm0, %v2596_v22  ;;  %3827 = vmatmul.mubr.msk.f32.vlgmr.msra.gmra.mxu1 %vm53_vm0, %v2599_v23 }
 0x4bf   :  { %3820 = vmatmul.mubr.msk.f32.vlgmr.msra.gmra.mxu0 %vm53_vm0, %v2597_v52 }
 0x566   :  { %v3786_v5 = vpop.f32.mrf.mxu1 }
 0x567   :  { %v3779_v36 = vpop.f32.mrf.mxu0 }
 0x568   :  { %3314 = vrot.lane.b32.xlu1 %v3779_v36, %s3974_s0  ;;  %v2765_v55 = vpop.f32.mrf.mxu1 }
 0x569   :  { %v2678_v19 = vpop.f32.mrf.mxu0 }
 0x56a   :  { %3312 = vrot.lane.b32.xlu0 %v2678_v19, %s3974_s0 }
 0x56c   :  { %3318 = vrot.lane.b32.xlu1 %v3786_v5, %s3974_s0 }
 0x56e   :  { %3316 = vrot.lane.b32.xlu0 %v2765_v55, %s3974_s0  ;;  %v3800_v10 = vpop.f32.mrf.mxu1 }
 0x56f   :  { %v3793_v3 = vpop.f32.mrf.mxu0 }
 0x570   :  { %3322 = vrot.lane.b32.xlu1 %v3793_v3, %s3974_s0  ;;  %v2939_v12 = vpop.f32.mrf.mxu1 }
 0x571   :  { %v2852_v9 = vpop.f32.mrf.mxu0 }
 0x572   :  { %3320 = vrot.lane.b32.xlu0 %v2852_v9, %s3974_s0 }
 0x574   :  { %3326 = vrot.lane.b32.xlu1 %v3800_v10, %s3974_s0 }
 0x576   :  { %3324 = vrot.lane.b32.xlu0 %v2939_v12, %s3974_s0  ;;  %v3814_v50 = vpop.f32.mrf.mxu1 }
 0x577   :  { %v3807_v13 = vpop.f32.mrf.mxu0 }
 0x578   :  { %3330 = vrot.lane.b32.xlu1 %v3807_v13, %s3974_s0  ;;  %v3113_v15 = vpop.f32.mrf.mxu1 }
 0x579   :  { %v3026_v32 = vpop.f32.mrf.mxu0 }
 0x57a   :  { %3328 = vrot.lane.b32.xlu0 %v3026_v32, %s3974_s0 }
 0x57c   :  { %3334 = vrot.lane.b32.xlu1 %v3814_v50, %s3974_s0 }
 0x57e   :  { %3332 = vrot.lane.b32.xlu0 %v3113_v15, %s3974_s0  ;;  %v3828_v61 = vpop.f32.mrf.mxu1 }
 0x57f   :  { %v3821_v16 = vpop.f32.mrf.mxu0 }
 0x580   :  { %3338 = vrot.lane.b32.xlu1 %v3821_v16, %s3974_s0  ;;  %v3287_v59 = vpop.f32.mrf.mxu1 }
 0x581   :  { %v3200_v8 = vpop.f32.mrf.mxu0 }
 0x582   :  { %3336 = vrot.lane.b32.xlu0 %v3200_v8, %s3974_s0 }
 0x584   :  { %3342 = vrot.lane.b32.xlu1 %v3828_v61, %s3974_s0 }
 0x586   :  { %3340 = vrot.lane.b32.xlu0 %v3287_v59, %s3974_s0 }
 0x5da   :  { %v3315_v17 = vpop.permute.xlu1 %3314 }
 0x5db   :  { %3362 = vst.msk [vmem:[%s5034_s2 + $0x8] sm:$0xff] %vm3360_vm1, %v3315_v17 }
 0x5dc   :  { %v3313_v30 = vpop.permute.xlu0 %3312 }
 0x5dd   :  { %3361 = vst.msk [vmem:[%s5034_s2] sm:$0xff] %vm3360_vm1, %v3313_v30 }
 0x5de   :  { %v3319_v18 = vpop.permute.xlu1 %3318 }
 0x5df   :  { %3364 = vst.msk [vmem:[%s5034_s2 + $0x18] sm:$0xff] %vm3360_vm1, %v3319_v18 }
 0x5e0   :  { %v3317_v34 = vpop.permute.xlu0 %3316 }
 0x5e1   :  { %3363 = vst.msk [vmem:[%s5034_s2 + $0x10] sm:$0xff] %vm3360_vm1, %v3317_v34 }
 0x5e2   :  { %v3323_v48 = vpop.permute.xlu1 %3322 }
 0x5e3   :  { %3366 = vst.msk [vmem:[%s5034_s2 + $0x28] sm:$0xff] %vm3360_vm1, %v3323_v48 }
 0x5e4   :  { %v3321_v1 = vpop.permute.xlu0 %3320 }
 0x5e5   :  { %3365 = vst.msk [vmem:[%s5034_s2 + $0x20] sm:$0xff] %vm3360_vm1, %v3321_v1 }
 0x5e6   :  { %v3327_v2 = vpop.permute.xlu1 %3326 }
 0x5e7   :  { %3368 = vst.msk [vmem:[%s5034_s2 + $0x38] sm:$0xff] %vm3360_vm1, %v3327_v2 }
 0x5e8   :  { %v3325_v7 = vpop.permute.xlu0 %3324 }
 0x5e9   :  { %3367 = vst.msk [vmem:[%s5034_s2 + $0x30] sm:$0xff] %vm3360_vm1, %v3325_v7 }
 0x5ea   :  { %v3331_v20 = vpop.permute.xlu1 %3330 }
 0x5eb   :  { %3370 = vst.msk [vmem:[%s5034_s2 + $0x48] sm:$0xff] %vm3360_vm1, %v3331_v20 }
 0x5ec   :  { %v3329_v24 = vpop.permute.xlu0 %3328 }
 0x5ed   :  { %3369 = vst.msk [vmem:[%s5034_s2 + $0x40] sm:$0xff] %vm3360_vm1, %v3329_v24 }
 0x5ee   :  { %v3335_v43 = vpop.permute.xlu1 %3334 }
 0x5ef   :  { %3372 = vst.msk [vmem:[%s5034_s2 + $0x58] sm:$0xff] %vm3360_vm1, %v3335_v43 }
 0x5f0   :  { %v3333_v47 = vpop.permute.xlu0 %3332 }
 0x5f1   :  { %3371 = vst.msk [vmem:[%s5034_s2 + $0x50] sm:$0xff] %vm3360_vm1, %v3333_v47 }
 0x5f2   :  { %v3339_v44 = vpop.permute.xlu1 %3338 }
 0x5f3   :  { %3374 = vst.msk [vmem:[%s5034_s2 + $0x68] sm:$0xff] %vm3360_vm1, %v3339_v44 }
 0x5f4   :  { %v3337_v62 = vpop.permute.xlu0 %3336 }
 0x5f5   :  { %3373 = vst.msk [vmem:[%s5034_s2 + $0x60] sm:$0xff] %vm3360_vm1, %v3337_v62 }
 0x5f6   :  { %v3343_v28 = vpop.permute.xlu1 %3342 }
 0x5f7   :  { %3376 = vst.msk [vmem:[%s5034_s2 + $0x78] sm:$0xff] %vm3360_vm1, %v3343_v28 }
 0x5f8   :  { %v3341_v0 = vpop.permute.xlu0 %3340 }
 0x5f9   :  { %3375 = vst.msk [vmem:[%s5034_s2 + $0x70] sm:$0xff] %vm3360_vm1, %v3341_v0 }

// kernel: encoder_rgbt_swin.44
= control target key start
LH: loop header
LB: loop body
LE: loop exit
PB: predicated region body
PF: predicated region fallthrough
CT: control target
= control target key end

     0   :  { %vm44_vm0 = vcmask 261120   ;;  %s1648_s0 = inlined_call_operand.vmem [shape: f32[128,32], index: 0, kind: input, shape index: {}]   ;;  %s1649_s3 = inlined_call_operand.vmem [shape: f32[32,128], index: 3, kind: input, shape index: {}]   ;;  %s1650_s1 = inlined_call_operand.vmem [shape: f32[1,32], index: 1, kind: input, shape index: {}]   ;;  %s1651_s2 = inlined_call_operand.vmem [shape: f32[1,32], index: 2, kind: input, shape index: {}, may-alias: {2,6}]   ;;  %s1652_s5 = inlined_call_operand.vmem [shape: f32[128,32], index: 5, kind: input, shape index: {}]   ;;  %s1653_s4 = inlined_call_operand.vmem [shape: f32[1,128], index: 4, kind: input, shape index: {}]   ;;  %s1654_s6 = inlined_call_operand.vmem [shape: f32[1,32], index: 6, kind: input, shape index: {}, may-alias: {2,6}]   ;;  %s1655_s7 = inlined_call_operand.vmem [shape: f32[128,32], index: 7, kind: output, shape index: {}]  }
   0x1   :  { %v26_v0 = vld [vmem:[%s1648_s0] sm:$0xff]  ;;  %v28_v1 = vld [vmem:[%s1648_s0 + $0x10] sm:$0xff]  ;;  %v27_v2 = vld [vmem:[%s1648_s0 + $0x8] sm:$0xff] }
   0x2   :  { %v45_v3 = vsel %vm44_vm0, %v26_v0, 0.0  ;;  %v51_v4 = vsel %vm44_vm0, %v28_v1, 0.0  ;;  %v29_v5 = vld [vmem:[%s1648_s0 + $0x18] sm:$0xff]  ;;  %v48_v6 = vsel %vm44_vm0, %v27_v2, 0.0  ;;  %v30_v8 = vld [vmem:[%s1648_s0 + $0x20] sm:$0xff]  ;;  %v31_v9 = vld [vmem:[%s1648_s0 + $0x28] sm:$0xff] }
   0x3   :  { %46 = vadd.xlane.f32.xlu0 %v45_v3  ;;  %52 = vadd.xlane.f32.xlu1 %v51_v4  ;;  %v54_v7 = vsel %vm44_vm0, %v29_v5, 0.0  ;;  %v57_v10 = vsel %vm44_vm0, %v30_v8, 0.0  ;;  %v60_v11 = vsel %vm44_vm0, %v31_v9, 0.0  ;;  %v1157_v12 = vld [vmem:[%s1648_s0 + $0x30] sm:$0xff]  ;;  %v1162_v13 = vld [vmem:[%s1648_s0 + $0x38] sm:$0xff]  ;;  %v1171_v16 = vld [vmem:[%s1648_s0 + $0x40] sm:$0xff] }
   0x4   :  { %v63_v14 = vsel %vm44_vm0, %v1157_v12, 0.0  ;;  %v66_v15 = vsel %vm44_vm0, %v1162_v13, 0.0  ;;  %v1176_v17 = vld [vmem:[%s1648_s0 + $0x48] sm:$0xff]  ;;  %v69_v18 = vsel %vm44_vm0, %v1171_v16, 0.0  ;;  %v1185_v20 = vld [vmem:[%s1648_s0 + $0x50] sm:$0xff]  ;;  %v1190_v21 = vld [vmem:[%s1648_s0 + $0x58] sm:$0xff] }
   0x5   :  { %v72_v19 = vsel %vm44_vm0, %v1176_v17, 0.0  ;;  %v75_v22 = vsel %vm44_vm0, %v1185_v20, 0.0  ;;  %v78_v23 = vsel %vm44_vm0, %v1190_v21, 0.0  ;;  %v1199_v24 = vld [vmem:[%s1648_s0 + $0x60] sm:$0xff]  ;;  %v1204_v25 = vld [vmem:[%s1648_s0 + $0x68] sm:$0xff]  ;;  %v1213_v28 = vld [vmem:[%s1648_s0 + $0x70] sm:$0xff] }
   0x6   :  { %v81_v26 = vsel %vm44_vm0, %v1199_v24, 0.0  ;;  %v84_v27 = vsel %vm44_vm0, %v1204_v25, 0.0  ;;  %v1218_v29 = vld [vmem:[%s1648_s0 + $0x78] sm:$0xff]  ;;  %v87_v30 = vsel %vm44_vm0, %v1213_v28, 0.0 }
   0x7   :  { %49 = vadd.xlane.f32.xlu0 %v48_v6  ;;  %55 = vadd.xlane.f32.xlu1 %v54_v7  ;;  %v90_v31 = vsel %vm44_vm0, %v1218_v29, 0.0 }
   0xb   :  { %58 = vadd.xlane.f32.xlu0 %v57_v10  ;;  %61 = vadd.xlane.f32.xlu1 %v60_v11 }
   0xf   :  { %64 = vadd.xlane.f32.xlu0 %v63_v14  ;;  %67 = vadd.xlane.f32.xlu1 %v66_v15 }
  0x13   :  { %70 = vadd.xlane.f32.xlu0 %v69_v18  ;;  %73 = vadd.xlane.f32.xlu1 %v72_v19 }
  0x17   :  { %76 = vadd.xlane.f32.xlu0 %v75_v22  ;;  %79 = vadd.xlane.f32.xlu1 %v78_v23 }
  0x1b   :  { %82 = vadd.xlane.f32.xlu0 %v81_v26  ;;  %85 = vadd.xlane.f32.xlu1 %v84_v27 }
  0x1f   :  { %88 = vadd.xlane.f32.xlu0 %v87_v30  ;;  %91 = vadd.xlane.f32.xlu1 %v90_v31 }
  0x8c   :  { %v47_v32 = vpop.xlane.xlu0 %46  ;;  %v53_v33 = vpop.xlane.xlu1 %52 }
  0x8d   :  { %v94_v34 = vmul.f32 0.03125, %v47_v32  ;;  %v96_v35 = vmul.f32 0.03125, %v53_v33 }
  0x8f   :  { %v1224_v36 = vsub.f32 %v26_v0, %v94_v34  ;;  %v1226_v37 = vsub.f32 %v28_v1, %v96_v35 }
  0x90   :  { %v50_v38 = vpop.xlane.xlu0 %49  ;;  %v56_v39 = vpop.xlane.xlu1 %55 }
  0x91   :  { %v95_v40 = vmul.f32 0.03125, %v50_v38  ;;  %v97_v41 = vmul.f32 0.03125, %v56_v39  ;;  %v126_v42 = vmul.f32 %v1224_v36, %v1224_v36  ;;  %v128_v43 = vmul.f32 %v1226_v37, %v1226_v37 }
  0x93   :  { %v1232_v44 = vsub.f32 %v27_v2, %v95_v40  ;;  %v1234_v45 = vsub.f32 %v29_v5, %v97_v41  ;;  %v142_v46 = vsel %vm44_vm0, %v126_v42, 0.0  ;;  %v148_v49 = vsel %vm44_vm0, %v128_v43, 0.0 }
  0x94   :  { %143 = vadd.xlane.f32.xlu0 %v142_v46  ;;  %v59_v47 = vpop.xlane.xlu0 %58  ;;  %v62_v48 = vpop.xlane.xlu1 %61 }
  0x95   :  { %v98_v50 = vmul.f32 0.03125, %v59_v47  ;;  %v99_v51 = vmul.f32 0.03125, %v62_v48  ;;  %v127_v52 = vmul.f32 %v1232_v44, %v1232_v44  ;;  %v129_v53 = vmul.f32 %v1234_v45, %v1234_v45 }
  0x97   :  { %v1242_v54 = vsub.f32 %v30_v8, %v98_v50  ;;  %v1244_v55 = vsub.f32 %v31_v9, %v99_v51  ;;  %v145_v56 = vsel %vm44_vm0, %v127_v52, 0.0  ;;  %v151_v59 = vsel %vm44_vm0, %v129_v53, 0.0  ;;  %v300_v53 = vld [vmem:[%s1649_s3 + $0x10] sm:$0xff] }
  0x98   :  { %149 = vadd.xlane.f32.xlu0 %v148_v49  ;;  %146 = vadd.xlane.f32.xlu1 %v145_v56  ;;  %v65_v57 = vpop.xlane.xlu0 %64  ;;  %v68_v58 = vpop.xlane.xlu1 %67  ;;  %v299_v56 = vld [vmem:[%s1649_s3 + $0x8] sm:$0xff] }
  0x99   :  { %v100_v60 = vmul.f32 0.03125, %v65_v57  ;;  %v101_v61 = vmul.f32 0.03125, %v68_v58  ;;  %v130_v62 = vmul.f32 %v1242_v54, %v1242_v54  ;;  %v131_v63 = vmul.f32 %v1244_v55, %v1244_v55  ;;  %v298_v57 = vld [vmem:[%s1649_s3] sm:$0xff] }
  0x9b   :  { %v1253_v0 = vsub.f32 %v1157_v12, %v100_v60  ;;  %v1256_v1 = vsub.f32 %v1162_v13, %v101_v61  ;;  %v154_v2 = vsel %vm44_vm0, %v130_v62, 0.0  ;;  %v157_v5 = vsel %vm44_vm0, %v131_v63, 0.0 }
  0x9c   :  { %152 = vadd.xlane.f32.xlu1 %v151_v59  ;;  %155 = vadd.xlane.f32.xlu0 %v154_v2  ;;  %v71_v3 = vpop.xlane.xlu0 %70  ;;  %v74_v4 = vpop.xlane.xlu1 %73 }
  0x9d   :  { %v102_v6 = vmul.f32 0.03125, %v71_v3  ;;  %v103_v7 = vmul.f32 0.03125, %v74_v4  ;;  %v132_v8 = vmul.f32 %v1253_v0, %v1253_v0  ;;  %v133_v9 = vmul.f32 %v1256_v1, %v1256_v1 }
  0x9f   :  { %v1265_v10 = vsub.f32 %v1171_v16, %v102_v6  ;;  %v1268_v11 = vsub.f32 %v1176_v17, %v103_v7  ;;  %v160_v12 = vsel %vm44_vm0, %v132_v8, 0.0  ;;  %v163_v15 = vsel %vm44_vm0, %v133_v9, 0.0 }
  0xa0   :  { %158 = vadd.xlane.f32.xlu1 %v157_v5  ;;  %161 = vadd.xlane.f32.xlu0 %v160_v12  ;;  %v77_v13 = vpop.xlane.xlu0 %76  ;;  %v80_v14 = vpop.xlane.xlu1 %79 }
  0xa1   :  { %v104_v18 = vmul.f32 0.03125, %v77_v13  ;;  %v105_v19 = vmul.f32 0.03125, %v80_v14  ;;  %v134_v22 = vmul.f32 %v1265_v10, %v1265_v10  ;;  %v135_v16 = vmul.f32 %v1268_v11, %v1268_v11 }
  0xa3   :  { %v1277_v23 = vsub.f32 %v1185_v20, %v104_v18  ;;  %v1280_v17 = vsub.f32 %v1190_v21, %v105_v19  ;;  %v166_v26 = vsel %vm44_vm0, %v134_v22, 0.0  ;;  %v169_v31 = vsel %vm44_vm0, %v135_v16, 0.0 }
  0xa4   :  { %164 = vadd.xlane.f32.xlu1 %v163_v15  ;;  %167 = vadd.xlane.f32.xlu0 %v166_v26  ;;  %v83_v27 = vpop.xlane.xlu0 %82  ;;  %v86_v30 = vpop.xlane.xlu1 %85 }
  0xa5   :  { %v106_v32 = vmul.f32 0.03125, %v83_v27  ;;  %v107_v33 = vmul.f32 0.03125, %v86_v30  ;;  %v136_v34 = vmul.f32 %v1277_v23, %v1277_v23  ;;  %v137_v20 = vmul.f32 %v1280_v17, %v1280_v17 }
  0xa7   :  { %v1289_v35 = vsub.f32 %v1199_v24, %v106_v32  ;;  %v1292_v21 = vsub.f32 %v1204_v25, %v107_v33  ;;  %v172_v38 = vsel %vm44_vm0, %v136_v34, 0.0  ;;  %v175_v41 = vsel %vm44_vm0, %v137_v20, 0.0  ;;  %v1329_v32 = vld [vmem:[%s1650_s1] ss:$0 sm:$0xff] }
  0xa8   :  { %170 = vadd.xlane.f32.xlu1 %v169_v31  ;;  %173 = vadd.xlane.f32.xlu0 %v172_v38  ;;  %v89_v39 = vpop.xlane.xlu0 %88  ;;  %v92_v40 = vpop.xlane.xlu1 %91 }
  0xa9   :  { %v108_v42 = vmul.f32 0.03125, %v89_v39  ;;  %v109_v43 = vmul.f32 0.03125, %v92_v40  ;;  %v138_v46 = vmul.f32 %v1289_v35, %v1289_v35  ;;  %v139_v24 = vmul.f32 %v1292_v21, %v1292_v21  ;;  %v1335_v40 = vld [vmem:[%s1651_s2] ss:$0 sm:$0xff] }
  0xab   :  { %v1301_v47 = vsub.f32 %v1213_v28, %v108_v42  ;;  %v1304_v25 = vsub.f32 %v1218_v29, %v109_v43  ;;  %v178_v48 = vsel %vm44_vm0, %v138_v46, 0.0  ;;  %v181_v49 = vsel %vm44_vm0, %v139_v24, 0.0  ;;  %v301_v29 = vld [vmem:[%s1649_s3 + $0x18] sm:$0xff] }
  0xac   :  { %176 = vadd.xlane.f32.xlu1 %v175_v41  ;;  %179 = vadd.xlane.f32.xlu0 %v178_v48 }
  0xad   :  { %v140_v50 = vmul.f32 %v1301_v47, %v1301_v47  ;;  %v141_v51 = vmul.f32 %v1304_v25, %v1304_v25  ;;  %906 = vmatprep.subr.mxu0 %v301_v29 }
  0xae   :  { %907 = vmatpush3.msra.mxu0 %v301_v29 }
  0xaf   :  { %v184_v52 = vsel %vm44_vm0, %v140_v50, 0.0  ;;  %v187_v28 = vsel %vm44_vm0, %v141_v51, 0.0  ;;  %908 = vmatprep.subr.mxu0 %v300_v53 }
  0xb0   :  { %182 = vadd.xlane.f32.xlu1 %v181_v49  ;;  %185 = vadd.xlane.f32.xlu0 %v184_v52 }
  0xb1   :  { %909 = vmatpush3.msra.mxu0 %v300_v53 }
  0xb2   :  { %910 = vmatprep.subr.mxu0 %v299_v56 }
  0xb3   :  { %911 = vmatpush3.msra.mxu0 %v299_v56 }
  0xb4   :  { %188 = vadd.xlane.f32.xlu1 %v187_v28  ;;  %912 = vmatprep.subr.mxu0 %v298_v57 }
  0xb5   :  { %913 = vmatpush3.msra.mxu0 %v298_v57 }
 0x11d   :  { %v144_v58 = vpop.xlane.xlu0 %143 }
 0x11e   :  { %v190_v59 = vmul.f32 0.03125, %v144_v58 }
 0x120   :  { %v206_v60 = vadd.f32 1e-05, %v190_v59 }
 0x121   :  { %v147_v61 = vpop.xlane.xlu1 %146  ;;  %v150_v62 = vpop.xlane.xlu0 %149 }
 0x122   :  { %1026 = vrsqrt.f32 %v206_v60  ;;  %v191_v63 = vmul.f32 0.03125, %v147_v61  ;;  %v192_v2 = vmul.f32 0.03125, %v150_v62 }
 0x124   :  { %v207_v3 = vadd.f32 1e-05, %v191_v63  ;;  %v208_v4 = vadd.f32 1e-05, %v192_v2 }
 0x125   :  { %v153_v5 = vpop.xlane.xlu1 %152  ;;  %v156_v6 = vpop.xlane.xlu0 %155 }
 0x126   :  { %1028 = vrsqrt.f32 %v207_v3  ;;  %v193_v7 = vmul.f32 0.03125, %v153_v5  ;;  %v194_v8 = vmul.f32 0.03125, %v156_v6 }
 0x127   :  { %1030 = vrsqrt.f32 %v208_v4 }
 0x128   :  { %v209_v9 = vadd.f32 1e-05, %v193_v7  ;;  %v210_v12 = vadd.f32 1e-05, %v194_v8 }
 0x129   :  { %v159_v13 = vpop.xlane.xlu1 %158  ;;  %v162_v14 = vpop.xlane.xlu0 %161 }
 0x12a   :  { %1032 = vrsqrt.f32 %v209_v9  ;;  %v195_v15 = vmul.f32 0.03125, %v159_v13  ;;  %v196_v18 = vmul.f32 0.03125, %v162_v14 }
 0x12b   :  { %1034 = vrsqrt.f32 %v210_v12 }
 0x12c   :  { %v211_v19 = vadd.f32 1e-05, %v195_v15  ;;  %v212_v22 = vadd.f32 1e-05, %v196_v18 }
 0x12d   :  { %v165_v16 = vpop.xlane.xlu1 %164  ;;  %v168_v26 = vpop.xlane.xlu0 %167 }
 0x12e   :  { %1036 = vrsqrt.f32 %v211_v19  ;;  %v197_v27 = vmul.f32 0.03125, %v165_v16  ;;  %v198_v30 = vmul.f32 0.03125, %v168_v26 }
 0x12f   :  { %v1027_v31 = vpop.eup %1026  ;;  %1038 = vrsqrt.f32 %v212_v22 }
 0x130   :  { %v213_v33 = vadd.f32 1e-05, %v197_v27  ;;  %v214_v34 = vadd.f32 1e-05, %v198_v30  ;;  %v238_v20 = vmul.f32 %v1027_v31, %v1224_v36 }
 0x131   :  { %v171_v38 = vpop.xlane.xlu1 %170  ;;  %v174_v39 = vpop.xlane.xlu0 %173 }
 0x132   :  { %1040 = vrsqrt.f32 %v213_v33  ;;  %v199_v41 = vmul.f32 0.03125, %v171_v38  ;;  %v200_v42 = vmul.f32 0.03125, %v174_v39  ;;  %v260_v43 = vmul.f32 %v1329_v32, %v238_v20 }
 0x133   :  { %v1029_v46 = vpop.eup %1028  ;;  %1042 = vrsqrt.f32 %v214_v34 }
 0x134   :  { %v1031_v24 = vpop.eup %1030  ;;  %v215_v48 = vadd.f32 1e-05, %v199_v41  ;;  %v216_v49 = vadd.f32 1e-05, %v200_v42  ;;  %v282_v50 = vadd.f32 %v1335_v40, %v260_v43  ;;  %v239_v36 = vmul.f32 %v1029_v46, %v1232_v44 }
 0x135   :  { %v177_v51 = vpop.xlane.xlu1 %176  ;;  %v180_v52 = vpop.xlane.xlu0 %179  ;;  %v240_v28 = vmul.f32 %v1031_v24, %v1226_v37 }
 0x136   :  { %1044 = vrsqrt.f32 %v215_v48  ;;  %v201_v29 = vmul.f32 0.03125, %v177_v51  ;;  %v202_v53 = vmul.f32 0.03125, %v180_v52  ;;  %914 = vmatprep.mubr.msk.f32.mxu0 %vm44_vm0, %v282_v50  ;;  %v261_v56 = vmul.f32 %v1329_v32, %v239_v36 }
 0x137   :  { %v1033_v57 = vpop.eup %1032  ;;  %1046 = vrsqrt.f32 %v216_v49  ;;  %v262_v58 = vmul.f32 %v1329_v32, %v240_v28 }
 0x138   :  { %v1035_v59 = vpop.eup %1034  ;;  %v217_v60 = vadd.f32 1e-05, %v201_v29  ;;  %v218_v61 = vadd.f32 1e-05, %v202_v53  ;;  %v283_v44 = vadd.f32 %v1335_v40, %v261_v56  ;;  %v241_v62 = vmul.f32 %v1033_v57, %v1234_v45 }
 0x139   :  { %v183_v63 = vpop.xlane.xlu1 %182  ;;  %v186_v37 = vpop.xlane.xlu0 %185  ;;  %v284_v2 = vadd.f32 %v1335_v40, %v262_v58  ;;  %v242_v3 = vmul.f32 %v1035_v59, %v1242_v54 }
 0x13a   :  { %1048 = vrsqrt.f32 %v217_v60  ;;  %v203_v4 = vmul.f32 0.03125, %v183_v63  ;;  %v204_v5 = vmul.f32 0.03125, %v186_v37  ;;  %915 = vmatmul.mubr.msk.f32.vlgmr.msra.gmra.mxu0 %vm44_vm0, %v283_v44  ;;  %v263_v6 = vmul.f32 %v1329_v32, %v241_v62  ;;  %v661_v44 = vld [vmem:[%s1652_s5 + $0x78] sm:$0xff]  ;;  %v656_v63 = vld [vmem:[%s1652_s5 + $0x50] sm:$0xff]  ;;  %v655_v37 = vld [vmem:[%s1652_s5 + $0x48] sm:$0xff] }
 0x13b   :  { %v1037_v7 = vpop.eup %1036  ;;  %1050 = vrsqrt.f32 %v218_v61  ;;  %917 = vmatprep.mubr.msk.f32.mxu0 %vm44_vm0, %v284_v2  ;;  %v264_v8 = vmul.f32 %v1329_v32, %v242_v3  ;;  %938 = vmatprep.subr.mxu0 %v661_v44  ;;  %v657_v62 = vld [vmem:[%s1652_s5 + $0x58] sm:$0xff]  ;;  %v654_v2 = vld [vmem:[%s1652_s5 + $0x40] sm:$0xff] }
 0x13c   :  { %v1039_v45 = vpop.eup %1038  ;;  %v219_v9 = vadd.f32 1e-05, %v203_v4  ;;  %v220_v12 = vadd.f32 1e-05, %v204_v5  ;;  %v285_v13 = vadd.f32 %v1335_v40, %v263_v6  ;;  %v243_v54 = vmul.f32 %v1037_v7, %v1244_v55  ;;  %994 = vmatprep.subr.mxu1 %v661_v44  ;;  %939 = vmatpush3.msra.mxu0 %v661_v44  ;;  %v653_v3 = vld [vmem:[%s1652_s5 + $0x38] sm:$0xff]  ;;  %v652_v4 = vld [vmem:[%s1652_s5 + $0x30] sm:$0xff] }
 0x13d   :  { %v189_v14 = vpop.xlane.xlu1 %188  ;;  %v286_v15 = vadd.f32 %v1335_v40, %v264_v8  ;;  %v244_v18 = vmul.f32 %v1039_v45, %v1253_v0  ;;  %1010 = vmatpush3.msra.mxu1 %v661_v44  ;;  %v651_v5 = vld [vmem:[%s1652_s5 + $0x28] sm:$0xff]  ;;  %v650_v6 = vld [vmem:[%s1652_s5 + $0x20] sm:$0xff]  ;;  %v649_v7 = vld [vmem:[%s1652_s5 + $0x18] sm:$0xff] }
 0x13e   :  { %1052 = vrsqrt.f32 %v219_v9  ;;  %v205_v19 = vmul.f32 0.03125, %v189_v14  ;;  %918 = vmatmul.mubr.msk.f32.gmra.mxu0 %vm44_vm0, %v285_v13  ;;  %v265_v22 = vmul.f32 %v1329_v32, %v243_v54  ;;  %v648_v8 = vld [vmem:[%s1652_s5 + $0x10] sm:$0xff]  ;;  %v647_v45 = vld [vmem:[%s1652_s5 + $0x8] sm:$0xff]  ;;  %v646_v9 = vld [vmem:[%s1652_s5] sm:$0xff] }
 0x13f   :  { %v1041_v16 = vpop.eup %1040  ;;  %1054 = vrsqrt.f32 %v220_v12  ;;  %920 = vmatprep.mubr.msk.f32.mxu0 %vm44_vm0, %v286_v15  ;;  %v266_v26 = vmul.f32 %v1329_v32, %v244_v18  ;;  %v1451_v12 = vld [vmem:[%s1653_s4] ss:$0 sm:$0xff] }
 0x140   :  { %v1043_v27 = vpop.eup %1042  ;;  %v221_v30 = vadd.f32 1e-05, %v205_v19  ;;  %v287_v55 = vadd.f32 %v1335_v40, %v265_v22  ;;  %v245_v31 = vmul.f32 %v1041_v16, %v1256_v1 }
 0x141   :  { %v288_v0 = vadd.f32 %v1335_v40, %v266_v26  ;;  %v246_v33 = vmul.f32 %v1043_v27, %v1265_v10 }
 0x142   :  { %1056 = vrsqrt.f32 %v221_v30  ;;  %921 = vmatmul.mubr.msk.f32.gmra.mxu0 %vm44_vm0, %v287_v55  ;;  %v267_v34 = vmul.f32 %v1329_v32, %v245_v31 }
 0x143   :  { %v1045_v20 = vpop.eup %1044  ;;  %923 = vmatprep.mubr.msk.f32.mxu0 %vm44_vm0, %v288_v0  ;;  %v268_v38 = vmul.f32 %v1329_v32, %v246_v33 }
 0x144   :  { %v1047_v39 = vpop.eup %1046  ;;  %v289_v41 = vadd.f32 %v1335_v40, %v267_v34  ;;  %v247_v42 = vmul.f32 %v1045_v20, %v1268_v11 }
 0x145   :  { %v290_v1 = vadd.f32 %v1335_v40, %v268_v38  ;;  %v248_v43 = vmul.f32 %v1047_v39, %v1277_v23 }
 0x146   :  { %924 = vmatmul.mubr.msk.f32.gmra.mxu0 %vm44_vm0, %v289_v41  ;;  %v269_v10 = vmul.f32 %v1329_v32, %v247_v42 }
 0x147   :  { %v1049_v46 = vpop.eup %1048  ;;  %926 = vmatprep.mubr.msk.f32.mxu0 %vm44_vm0, %v290_v1  ;;  %v270_v24 = vmul.f32 %v1329_v32, %v248_v43 }
 0x148   :  { %v1051_v48 = vpop.eup %1050  ;;  %v291_v49 = vadd.f32 %v1335_v40, %v269_v10  ;;  %v249_v50 = vmul.f32 %v1049_v46, %v1280_v17 }
 0x149   :  { %v292_v11 = vadd.f32 %v1335_v40, %v270_v24  ;;  %v250_v36 = vmul.f32 %v1051_v48, %v1289_v35 }
 0x14a   :  { %927 = vmatmul.mubr.msk.f32.gmra.mxu0 %vm44_vm0, %v291_v49  ;;  %v271_v23 = vmul.f32 %v1329_v32, %v249_v50 }
 0x14b   :  { %v1053_v51 = vpop.eup %1052  ;;  %929 = vmatprep.mubr.msk.f32.mxu0 %vm44_vm0, %v292_v11  ;;  %v272_v52 = vmul.f32 %v1329_v32, %v250_v36 }
 0x14c   :  { %v1055_v28 = vpop.eup %1054  ;;  %v293_v29 = vadd.f32 %v1335_v40, %v271_v23  ;;  %v251_v53 = vmul.f32 %v1053_v51, %v1292_v21 }
 0x14d   :  { %v294_v17 = vadd.f32 %v1335_v40, %v272_v52  ;;  %v252_v56 = vmul.f32 %v1055_v28, %v1301_v47 }
 0x14e   :  { %930 = vmatmul.mubr.msk.f32.gmra.mxu0 %vm44_vm0, %v293_v29  ;;  %v273_v35 = vmul.f32 %v1329_v32, %v251_v53 }
 0x14f   :  { %v1057_v57 = vpop.eup %1056  ;;  %932 = vmatprep.mubr.msk.f32.mxu0 %vm44_vm0, %v294_v17  ;;  %v274_v58 = vmul.f32 %v1329_v32, %v252_v56 }
 0x150   :  { %v295_v59 = vadd.f32 %v1335_v40, %v273_v35  ;;  %v253_v60 = vmul.f32 %v1057_v57, %v1304_v25  ;;  %v660_v25 = vld [vmem:[%s1652_s5 + $0x70] sm:$0xff] }
 0x151   :  { %v296_v61 = vadd.f32 %v1335_v40, %v274_v58  ;;  %940 = vmatprep.subr.mxu0 %v660_v25  ;;  %995 = vmatprep.subr.mxu1 %v660_v25 }
 0x152   :  { %933 = vmatmul.mubr.msk.f32.gmra.mxu0 %vm44_vm0, %v295_v59  ;;  %v275_v21 = vmul.f32 %v1329_v32, %v253_v60  ;;  %v659_v32 = vld [vmem:[%s1652_s5 + $0x68] sm:$0xff]  ;;  %1011 = vmatpush3.msra.mxu1 %v660_v25 }
 0x153   :  { %935 = vmatprep.mubr.msk.f32.mxu0 %vm44_vm0, %v296_v61  ;;  %941 = vmatpush3.msra.mxu0 %v660_v25 }
 0x154   :  { %v297_v47 = vadd.f32 %v1335_v40, %v275_v21  ;;  %942 = vmatprep.subr.mxu0 %v659_v32  ;;  %996 = vmatprep.subr.mxu1 %v659_v32  ;;  %v658_v40 = vld [vmem:[%s1652_s5 + $0x60] sm:$0xff] }
 0x155   :  { %943 = vmatpush3.msra.mxu0 %v659_v32  ;;  %1012 = vmatpush3.msra.mxu1 %v659_v32 }
 0x156   :  { %936 = vmatmul.mubr.msk.f32.gmra.mxu0 %vm44_vm0, %v297_v47  ;;  %944 = vmatprep.subr.mxu0 %v658_v40 }
 0x157   :  { %997 = vmatprep.subr.mxu1 %v658_v40  ;;  %945 = vmatpush3.msra.mxu0 %v658_v40 }
 0x158   :  { %1013 = vmatpush3.msra.mxu1 %v658_v40  ;;  %946 = vmatprep.subr.mxu0 %v657_v62 }
 0x159   :  { %998 = vmatprep.subr.mxu1 %v657_v62  ;;  %947 = vmatpush3.msra.mxu0 %v657_v62 }
 0x15a   :  { %1014 = vmatpush3.msra.mxu1 %v657_v62  ;;  %948 = vmatprep.subr.mxu0 %v656_v63 }
 0x15b   :  { %999 = vmatprep.subr.mxu1 %v656_v63  ;;  %949 = vmatpush3.msra.mxu0 %v656_v63 }
 0x15c   :  { %1015 = vmatpush3.msra.mxu1 %v656_v63  ;;  %950 = vmatprep.subr.mxu0 %v655_v37 }
 0x15d   :  { %1000 = vmatprep.subr.mxu1 %v655_v37  ;;  %951 = vmatpush3.msra.mxu0 %v655_v37 }
 0x15e   :  { %1016 = vmatpush3.msra.mxu1 %v655_v37  ;;  %952 = vmatprep.subr.mxu0 %v654_v2 }
 0x15f   :  { %1001 = vmatprep.subr.mxu1 %v654_v2  ;;  %953 = vmatpush3.msra.mxu0 %v654_v2 }
 0x160   :  { %1017 = vmatpush3.msra.mxu1 %v654_v2  ;;  %954 = vmatprep.subr.mxu0 %v653_v3 }
 0x161   :  { %1002 = vmatprep.subr.mxu1 %v653_v3  ;;  %955 = vmatpush3.msra.mxu0 %v653_v3 }
 0x162   :  { %1018 = vmatpush3.msra.mxu1 %v653_v3  ;;  %956 = vmatprep.subr.mxu0 %v652_v4 }
 0x163   :  { %1003 = vmatprep.subr.mxu1 %v652_v4  ;;  %957 = vmatpush3.msra.mxu0 %v652_v4 }
 0x164   :  { %1019 = vmatpush3.msra.mxu1 %v652_v4  ;;  %958 = vmatprep.subr.mxu0 %v651_v5 }
 0x165   :  { %1004 = vmatprep.subr.mxu1 %v651_v5  ;;  %959 = vmatpush3.msra.mxu0 %v651_v5 }
 0x166   :  { %1020 = vmatpush3.msra.mxu1 %v651_v5  ;;  %960 = vmatprep.subr.mxu0 %v650_v6 }
 0x167   :  { %1005 = vmatprep.subr.mxu1 %v650_v6  ;;  %961 = vmatpush3.msra.mxu0 %v650_v6 }
 0x168   :  { %1021 = vmatpush3.msra.mxu1 %v650_v6  ;;  %962 = vmatprep.subr.mxu0 %v649_v7 }
 0x169   :  { %1006 = vmatprep.subr.mxu1 %v649_v7  ;;  %963 = vmatpush3.msra.mxu0 %v649_v7 }
 0x16a   :  { %1022 = vmatpush3.msra.mxu1 %v649_v7  ;;  %964 = vmatprep.subr.mxu0 %v648_v8 }
 0x16b   :  { %1007 = vmatprep.subr.mxu1 %v648_v8  ;;  %965 = vmatpush3.msra.mxu0 %v648_v8 }
 0x16c   :  { %1023 = vmatpush3.msra.mxu1 %v648_v8  ;;  %966 = vmatprep.subr.mxu0 %v647_v45 }
 0x16d   :  { %1008 = vmatprep.subr.mxu1 %v647_v45  ;;  %967 = vmatpush3.msra.mxu0 %v647_v45 }
 0x16e   :  { %1024 = vmatpush3.msra.mxu1 %v647_v45  ;;  %968 = vmatprep.subr.mxu0 %v646_v9 }
 0x16f   :  { %1009 = vmatprep.subr.mxu1 %v646_v9  ;;  %969 = vmatpush3.msra.mxu0 %v646_v9 }
 0x170   :  { %1025 = vmatpush3.msra.mxu1 %v646_v9 }
 0x1fa   :  { %v916_v13 = vpop.f32.mrf.mxu0 }
 0x1fb   :  { %v1454_v54 = vadd.f32 %v916_v13, %v1451_v12 }
 0x1fc   :  { %v423_v14 = vpop.f32.mrf.mxu0 }
 0x1fd   :  { %v503_v15 = vmul.f32 %v1454_v54, %v1454_v54  ;;  %v1459_v18 = vadd.f32 %v1451_v12, %v423_v14 }
 0x1fe   :  { %v919_v19 = vpop.f32.mrf.mxu0 }
 0x1ff   :  { %v519_v22 = vmul.f32 %v503_v15, %v1454_v54  ;;  %v502_v16 = vmul.f32 %v1459_v18, %v1459_v18  ;;  %v1465_v26 = vadd.f32 %v919_v19, %v1451_v12 }
 0x200   :  { %v433_v27 = vpop.f32.mrf.mxu0 }
 0x201   :  { %v535_v30 = vmul.f32 0.044715, %v519_v22  ;;  %v518_v55 = vmul.f32 %v502_v16, %v1459_v18  ;;  %v505_v31 = vmul.f32 %v1465_v26, %v1465_v26  ;;  %v1471_v0 = vadd.f32 %v1451_v12, %v433_v27 }
 0x202   :  { %v922_v33 = vpop.f32.mrf.mxu0 }
 0x203   :  { %v551_v34 = vadd.f32 %v535_v30, %v1454_v54  ;;  %v534_v20 = vmul.f32 0.044715, %v518_v55  ;;  %v521_v38 = vmul.f32 %v505_v31, %v1465_v26  ;;  %v504_v39 = vmul.f32 %v1471_v0, %v1471_v0 }
 0x204   :  { %v1478_v41 = vadd.f32 %v922_v33, %v1451_v12  ;;  %v443_v42 = vpop.f32.mrf.mxu0 }
 0x205   :  { %v567_v1 = vmul.f32 0.7978846, %v551_v34  ;;  %v550_v43 = vadd.f32 %v534_v20, %v1459_v18  ;;  %v537_v10 = vmul.f32 0.044715, %v521_v38  ;;  %v520_v46 = vmul.f32 %v504_v39, %v1471_v0 }
 0x206   :  { %v507_v24 = vmul.f32 %v1478_v41, %v1478_v41  ;;  %v1485_v48 = vadd.f32 %v1451_v12, %v443_v42  ;;  %v925_v49 = vpop.f32.mrf.mxu0 }
 0x207   :  { %1058 = vtanh.f32 %v567_v1  ;;  %v566_v50 = vmul.f32 0.7978846, %v550_v43  ;;  %v553_v11 = vadd.f32 %v537_v10, %v1465_v26  ;;  %v536_v36 = vmul.f32 0.044715, %v520_v46 }
 0x208   :  { %v523_v23 = vmul.f32 %v507_v24, %v1478_v41  ;;  %v506_v51 = vmul.f32 %v1485_v48, %v1485_v48  ;;  %v1492_v52 = vadd.f32 %v925_v49, %v1451_v12  ;;  %v453_v28 = vpop.f32.mrf.mxu0 }
 0x209   :  { %v569_v29 = vmul.f32 0.7978846, %v553_v11  ;;  %v552_v53 = vadd.f32 %v536_v36, %v1471_v0  ;;  %v1496_v17 = vadd.f32 %v1451_v12, %v453_v28  ;;  %1060 = vtanh.f32 %v566_v50 }
 0x20a   :  { %v539_v56 = vmul.f32 0.044715, %v523_v23  ;;  %v522_v35 = vmul.f32 %v506_v51, %v1485_v48  ;;  %v509_v57 = vmul.f32 %v1492_v52, %v1492_v52  ;;  %v928_v58 = vpop.f32.mrf.mxu0 }
 0x20b   :  { %v568_v59 = vmul.f32 0.7978846, %v552_v53  ;;  %v508_v60 = vmul.f32 %v1496_v17, %v1496_v17  ;;  %v1504_v61 = vadd.f32 %v928_v58, %v1451_v12  ;;  %1062 = vtanh.f32 %v569_v29 }
 0x20c   :  { %v555_v21 = vadd.f32 %v539_v56, %v1478_v41  ;;  %v538_v47 = vmul.f32 0.044715, %v522_v35  ;;  %v525_v44 = vmul.f32 %v509_v57, %v1492_v52  ;;  %v463_v25 = vpop.f32.mrf.mxu0 }
 0x20d   :  { %1064 = vtanh.f32 %v568_v59  ;;  %v524_v32 = vmul.f32 %v508_v60, %v1496_v17  ;;  %v511_v40 = vmul.f32 %v1504_v61, %v1504_v61  ;;  %v1512_v62 = vadd.f32 %v1451_v12, %v463_v25 }
 0x20e   :  { %v571_v63 = vmul.f32 0.7978846, %v555_v21  ;;  %v554_v37 = vadd.f32 %v538_v47, %v1485_v48  ;;  %v541_v2 = vmul.f32 0.044715, %v525_v44  ;;  %v931_v3 = vpop.f32.mrf.mxu0 }
 0x20f   :  { %v527_v4 = vmul.f32 %v511_v40, %v1504_v61  ;;  %v510_v5 = vmul.f32 %v1512_v62, %v1512_v62  ;;  %v1519_v6 = vadd.f32 %v931_v3, %v1451_v12  ;;  %v540_v7 = vmul.f32 0.044715, %v524_v32 }
 0x210   :  { %1066 = vtanh.f32 %v571_v63  ;;  %v570_v8 = vmul.f32 0.7978846, %v554_v37  ;;  %v557_v45 = vadd.f32 %v541_v2, %v1492_v52  ;;  %v473_v9 = vpop.f32.mrf.mxu0 }
 0x211   :  { %v543_v13 = vmul.f32 0.044715, %v527_v4  ;;  %v526_v14 = vmul.f32 %v510_v5, %v1512_v62  ;;  %v513_v15 = vmul.f32 %v1519_v6, %v1519_v6  ;;  %v1526_v19 = vadd.f32 %v1451_v12, %v473_v9 }
 0x212   :  { %1068 = vtanh.f32 %v570_v8  ;;  %v573_v22 = vmul.f32 0.7978846, %v557_v45  ;;  %v934_v16 = vpop.f32.mrf.mxu0  ;;  %v556_v27 = vadd.f32 %v540_v7, %v1496_v17 }
 0x213   :  { %v559_v30 = vadd.f32 %v543_v13, %v1504_v61  ;;  %v542_v55 = vmul.f32 0.044715, %v526_v14  ;;  %v529_v31 = vmul.f32 %v513_v15, %v1519_v6  ;;  %v512_v33 = vmul.f32 %v1526_v19, %v1526_v19 }
 0x214   :  { %v1059_v34 = vpop.eup %1058  ;;  %1070 = vtanh.f32 %v573_v22  ;;  %v1534_v20 = vadd.f32 %v934_v16, %v1451_v12  ;;  %v483_v38 = vpop.f32.mrf.mxu0  ;;  %v572_v39 = vmul.f32 0.7978846, %v556_v27 }
 0x215   :  { %v599_v42 = vadd.f32 1.0, %v1059_v34  ;;  %v575_v1 = vmul.f32 0.7978846, %v559_v30  ;;  %v558_v43 = vadd.f32 %v542_v55, %v1512_v62  ;;  %v545_v10 = vmul.f32 0.044715, %v529_v31 }
 0x216   :  { %v528_v46 = vmul.f32 %v512_v33, %v1526_v19  ;;  %v515_v24 = vmul.f32 %v1534_v20, %v1534_v20  ;;  %v1541_v49 = vadd.f32 %v1451_v12, %v483_v38  ;;  %v937_v50 = vpop.f32.mrf.mxu0  ;;  %1072 = vtanh.f32 %v572_v39  ;;  %v1061_v51 = vpop.eup %1060 }
 0x217   :  { %v615_v11 = vmul.f32 0.5, %v599_v42  ;;  %1074 = vtanh.f32 %v575_v1  ;;  %v574_v36 = vmul.f32 0.7978846, %v558_v43  ;;  %v561_v23 = vadd.f32 %v545_v10, %v1519_v6 }
 0x218   :  { %v544_v28 = vmul.f32 0.044715, %v528_v46  ;;  %v531_v29 = vmul.f32 %v515_v24, %v1534_v20  ;;  %v514_v53 = vmul.f32 %v1541_v49, %v1541_v49  ;;  %v1548_v56 = vadd.f32 %v937_v50, %v1451_v12  ;;  %v493_v35 = vpop.f32.mrf.mxu0  ;;  %v1063_v57 = vpop.eup %1062 }
 0x219   :  { %v631_v58 = vmul.f32 %v615_v11, %v1454_v54  ;;  %1076 = vtanh.f32 %v574_v36  ;;  %v577_v59 = vmul.f32 0.7978846, %v561_v23  ;;  %v1552_v60 = vadd.f32 %v1451_v12, %v493_v35 }
 0x21a   :  { %v1065_v21 = vpop.eup %1064  ;;  %v560_v47 = vadd.f32 %v544_v28, %v1526_v19  ;;  %v547_v44 = vmul.f32 0.044715, %v531_v29  ;;  %v530_v25 = vmul.f32 %v514_v53, %v1541_v49  ;;  %v517_v32 = vmul.f32 %v1548_v56, %v1548_v56 }
 0x21b   :  { %1078 = vtanh.f32 %v577_v59  ;;  %v516_v40 = vmul.f32 %v1552_v60, %v1552_v60  ;;  %v598_v63 = vadd.f32 1.0, %v1061_v51  ;;  %v600_v54 = vadd.f32 1.0, %v1065_v21 }
 0x21c   :  { %v576_v37 = vmul.f32 0.7978846, %v560_v47  ;;  %v563_v2 = vadd.f32 %v547_v44, %v1534_v20  ;;  %v546_v12 = vmul.f32 0.044715, %v530_v25  ;;  %v533_v3 = vmul.f32 %v517_v32, %v1548_v56 }
 0x21d   :  { %v1067_v4 = vpop.eup %1066  ;;  %v532_v5 = vmul.f32 %v516_v40, %v1552_v60  ;;  %v614_v7 = vmul.f32 0.5, %v598_v63  ;;  %v616_v8 = vmul.f32 0.5, %v600_v54  ;;  %v601_v45 = vadd.f32 1.0, %v1063_v57 }
 0x21e   :  { %1080 = vtanh.f32 %v576_v37  ;;  %v579_v9 = vmul.f32 0.7978846, %v563_v2  ;;  %v562_v13 = vadd.f32 %v546_v12, %v1541_v49  ;;  %v549_v14 = vmul.f32 0.044715, %v533_v3 }
 0x21f   :  { %v1069_v15 = vpop.eup %1068  ;;  %v548_v22 = vmul.f32 0.044715, %v532_v5  ;;  %v630_v16 = vmul.f32 %v614_v7, %v1459_v18  ;;  %v632_v27 = vmul.f32 %v616_v8, %v1471_v0  ;;  %v617_v30 = vmul.f32 0.5, %v601_v45 }
 0x220   :  { %1082 = vtanh.f32 %v579_v9  ;;  %v578_v55 = vmul.f32 0.7978846, %v562_v13  ;;  %v565_v31 = vadd.f32 %v549_v14, %v1548_v56  ;;  %v602_v33 = vadd.f32 1.0, %v1069_v15  ;;  %v853_v9 = vld [vmem:[%s1654_s6] ss:$0 sm:$0xff] }
 0x221   :  { %v1071_v34 = vpop.eup %1070  ;;  %v564_v38 = vadd.f32 %v548_v22, %v1552_v60  ;;  %970 = vmatprep.mubr.f32.mxu0 %v630_v16  ;;  %v603_v39 = vadd.f32 1.0, %v1067_v4  ;;  %v633_v0 = vmul.f32 %v617_v30, %v1465_v26 }
 0x222   :  { %1084 = vtanh.f32 %v578_v55  ;;  %v581_v42 = vmul.f32 0.7978846, %v565_v31  ;;  %971 = vmatmul.mubr.f32.vlgmr.msra.gmra.mxu0 %v631_v58  ;;  %v618_v1 = vmul.f32 0.5, %v602_v33  ;;  %v605_v43 = vadd.f32 1.0, %v1071_v34 }
 0x223   :  { %v1073_v10 = vpop.eup %1072  ;;  %v580_v18 = vmul.f32 0.7978846, %v564_v38  ;;  %973 = vmatprep.mubr.f32.mxu0 %v632_v27  ;;  %v619_v50 = vmul.f32 0.5, %v603_v39 }
 0x224   :  { %v1075_v46 = vpop.eup %1074  ;;  %1086 = vtanh.f32 %v581_v42  ;;  %v634_v24 = vmul.f32 %v618_v1, %v1485_v48  ;;  %v604_v11 = vadd.f32 1.0, %v1073_v10  ;;  %v621_v36 = vmul.f32 0.5, %v605_v43 }
 0x225   :  { %1088 = vtanh.f32 %v580_v18  ;;  %v607_v23 = vadd.f32 1.0, %v1075_v46  ;;  %v635_v35 = vmul.f32 %v619_v50, %v1478_v41 }
 0x226   :  { %v1077_v51 = vpop.eup %1076  ;;  %974 = vmatmul.mubr.f32.gmra.mxu0 %v633_v0  ;;  %v620_v28 = vmul.f32 0.5, %v604_v11  ;;  %v637_v26 = vmul.f32 %v621_v36, %v1492_v52 }
 0x227   :  { %976 = vmatprep.mubr.f32.mxu0 %v634_v24  ;;  %v606_v29 = vadd.f32 1.0, %v1077_v51  ;;  %v623_v59 = vmul.f32 0.5, %v607_v23 }
 0x228   :  { %v1079_v53 = vpop.eup %1078  ;;  %v636_v57 = vmul.f32 %v620_v28, %v1496_v17 }
 0x229   :  { %v622_v58 = vmul.f32 0.5, %v606_v29  ;;  %v609_v48 = vadd.f32 1.0, %v1079_v53  ;;  %v639_v32 = vmul.f32 %v623_v59, %v1504_v61 }
 0x22a   :  { %977 = vmatmul.mubr.f32.gmra.mxu0 %v635_v35  ;;  %979 = vmatprep.mubr.f32.mxu1 %v636_v57 }
 0x22b   :  { %v1081_v21 = vpop.eup %1080  ;;  %980 = vmatmul.mubr.f32.vlgmr.msra.gmra.mxu1 %v637_v26  ;;  %v638_v47 = vmul.f32 %v622_v58, %v1512_v62  ;;  %v625_v40 = vmul.f32 0.5, %v609_v48 }
 0x22c   :  { %v608_v44 = vadd.f32 1.0, %v1081_v21 }
 0x22d   :  { %v1083_v25 = vpop.eup %1082  ;;  %982 = vmatprep.mubr.f32.mxu1 %v638_v47  ;;  %v641_v2 = vmul.f32 %v625_v40, %v1519_v6 }
 0x22e   :  { %v624_v41 = vmul.f32 0.5, %v608_v44  ;;  %v611_v63 = vadd.f32 1.0, %v1083_v25 }
 0x22f   :  { %v1085_v17 = vpop.eup %1084  ;;  %983 = vmatmul.mubr.f32.gmra.mxu1 %v639_v32 }
 0x230   :  { %v640_v52 = vmul.f32 %v624_v41, %v1526_v19  ;;  %v610_v54 = vadd.f32 1.0, %v1085_v17  ;;  %v627_v12 = vmul.f32 0.5, %v611_v63 }
 0x231   :  { %v1087_v37 = vpop.eup %1086 }
 0x232   :  { %v1089_v3 = vpop.eup %1088  ;;  %985 = vmatprep.mubr.f32.mxu1 %v640_v52  ;;  %v626_v62 = vmul.f32 0.5, %v610_v54  ;;  %v613_v4 = vadd.f32 1.0, %v1087_v37  ;;  %v643_v7 = vmul.f32 %v627_v12, %v1534_v20 }
 0x233   :  { %986 = vmatmul.mubr.f32.gmra.mxu1 %v641_v2  ;;  %v612_v5 = vadd.f32 1.0, %v1089_v3 }
 0x234   :  { %v642_v61 = vmul.f32 %v626_v62, %v1541_v49  ;;  %v629_v45 = vmul.f32 0.5, %v613_v4 }
 0x235   :  { %v628_v8 = vmul.f32 0.5, %v612_v5 }
 0x236   :  { %988 = vmatprep.mubr.f32.mxu1 %v642_v61  ;;  %v645_v6 = vmul.f32 %v629_v45, %v1548_v56 }
 0x237   :  { %989 = vmatmul.mubr.f32.gmra.mxu1 %v643_v7  ;;  %v644_v19 = vmul.f32 %v628_v8, %v1552_v60 }
 0x239   :  { %991 = vmatprep.mubr.f32.mxu1 %v644_v19 }
 0x23b   :  { %992 = vmatmul.mubr.f32.gmra.mxu1 %v645_v6 }
 0x2e2   :  { %v972_v13 = vpop.f32.mrf.mxu0 }
 0x2e3   :  { %v741_v14 = vadd.f32 %v972_v13, %v853_v9 }
 0x2e4   :  { %v735_v15 = vpop.f32.mrf.mxu0 }
 0x2e5   :  { %815 = vst.msk [vmem:[%s1655_s7 + $0x8] sm:$0xff] %vm44_vm0, %v741_v14  ;;  %v736_v20 = vadd.f32 %v853_v9, %v735_v15 }
 0x2e6   :  { %v975_v49 = vpop.f32.mrf.mxu0 }
 0x2e7   :  { %814 = vst.msk [vmem:[%s1655_s7] sm:$0xff] %vm44_vm0, %v736_v20  ;;  %v751_v56 = vadd.f32 %v975_v49, %v853_v9 }
 0x2e8   :  { %v745_v60 = vpop.f32.mrf.mxu0 }
 0x2e9   :  { %817 = vst.msk [vmem:[%s1655_s7 + $0x18] sm:$0xff] %vm44_vm0, %v751_v56  ;;  %v746_v22 = vadd.f32 %v853_v9, %v745_v60 }
 0x2ea   :  { %v978_v16 = vpop.f32.mrf.mxu0 }
 0x2eb   :  { %816 = vst.msk [vmem:[%s1655_s7 + $0x10] sm:$0xff] %vm44_vm0, %v746_v22  ;;  %v761_v27 = vadd.f32 %v978_v16, %v853_v9  ;;  %v981_v30 = vpop.f32.mrf.mxu1 }
 0x2ec   :  { %v755_v55 = vpop.f32.mrf.mxu0  ;;  %v771_v31 = vadd.f32 %v981_v30, %v853_v9 }
 0x2ed   :  { %819 = vst.msk [vmem:[%s1655_s7 + $0x28] sm:$0xff] %vm44_vm0, %v761_v27  ;;  %v756_v33 = vadd.f32 %v853_v9, %v755_v55  ;;  %v765_v34 = vpop.f32.mrf.mxu1 }
 0x2ee   :  { %821 = vst.msk [vmem:[%s1655_s7 + $0x38] sm:$0xff] %vm44_vm0, %v771_v31  ;;  %v766_v38 = vadd.f32 %v853_v9, %v765_v34 }
 0x2ef   :  { %818 = vst.msk [vmem:[%s1655_s7 + $0x20] sm:$0xff] %vm44_vm0, %v756_v33  ;;  %v984_v39 = vpop.f32.mrf.mxu1 }
 0x2f0   :  { %820 = vst.msk [vmem:[%s1655_s7 + $0x30] sm:$0xff] %vm44_vm0, %v766_v38  ;;  %v781_v42 = vadd.f32 %v984_v39, %v853_v9 }
 0x2f1   :  { %v775_v1 = vpop.f32.mrf.mxu1 }
 0x2f2   :  { %823 = vst.msk [vmem:[%s1655_s7 + $0x48] sm:$0xff] %vm44_vm0, %v781_v42  ;;  %v776_v43 = vadd.f32 %v853_v9, %v775_v1 }
 0x2f3   :  { %v987_v10 = vpop.f32.mrf.mxu1 }
 0x2f4   :  { %822 = vst.msk [vmem:[%s1655_s7 + $0x40] sm:$0xff] %vm44_vm0, %v776_v43  ;;  %v791_v18 = vadd.f32 %v987_v10, %v853_v9 }
 0x2f5   :  { %v785_v0 = vpop.f32.mrf.mxu1 }
 0x2f6   :  { %825 = vst.msk [vmem:[%s1655_s7 + $0x58] sm:$0xff] %vm44_vm0, %v791_v18  ;;  %v786_v46 = vadd.f32 %v853_v9, %v785_v0 }
 0x2f7   :  { %v990_v24 = vpop.f32.mrf.mxu1 }
 0x2f8   :  { %824 = vst.msk [vmem:[%s1655_s7 + $0x50] sm:$0xff] %vm44_vm0, %v786_v46  ;;  %v801_v50 = vadd.f32 %v990_v24, %v853_v9 }
 0x2f9   :  { %v795_v11 = vpop.f32.mrf.mxu1 }
 0x2fa   :  { %827 = vst.msk [vmem:[%s1655_s7 + $0x68] sm:$0xff] %vm44_vm0, %v801_v50  ;;  %v796_v36 = vadd.f32 %v853_v9, %v795_v11 }
 0x2fb   :  { %v993_v23 = vpop.f32.mrf.mxu1 }
 0x2fc   :  { %826 = vst.msk [vmem:[%s1655_s7 + $0x60] sm:$0xff] %vm44_vm0, %v796_v36  ;;  %v811_v51 = vadd.f32 %v993_v23, %v853_v9 }
 0x2fd   :  { %v805_v28 = vpop.f32.mrf.mxu1 }
 0x2fe   :  { %829 = vst.msk [vmem:[%s1655_s7 + $0x78] sm:$0xff] %vm44_vm0, %v811_v51  ;;  %v806_v29 = vadd.f32 %v853_v9, %v805_v28 }
 0x300   :  { %828 = vst.msk [vmem:[%s1655_s7 + $0x70] sm:$0xff] %vm44_vm0, %v806_v29 }

// kernel: encoder_rgbt_swin.50
= control target key start
LH: loop header
LB: loop body
LE: loop exit
PB: predicated region body
PF: predicated region fallthrough
CT: control target
= control target key end

     0   :  { %vm199_vm0 = vcmask 523264   ;;  %s440_s0 = inlined_call_operand.vmem [shape: f32[32,128], index: 0, kind: input, shape index: {}]   ;;  %s441_s3 = inlined_call_operand.vmem [shape: f32[128,64], index: 3, kind: input, shape index: {}]   ;;  %s442_s1 = inlined_call_operand.vmem [shape: f32[1,128], index: 1, kind: input, shape index: {}]   ;;  %s443_s2 = inlined_call_operand.vmem [shape: f32[1,128], index: 2, kind: input, shape index: {}]   ;;  %s444_s4 = inlined_call_operand.vmem [shape: f32[1,64], index: 4, kind: input, shape index: {}]   ;;  %s445_s5 = inlined_call_operand.vmem [shape: f32[32,64], index: 5, kind: output, shape index: {}]  }
   0x1   :  { %v20_v0 = vld [vmem:[%s440_s0] sm:$0xff]  ;;  %v21_v1 = vld [vmem:[%s440_s0 + $0x8] sm:$0xff]  ;;  %v22_v2 = vld [vmem:[%s440_s0 + $0x10] sm:$0xff] }
   0x2   :  { %26 = vadd.xlane.f32.xlu0 %v20_v0  ;;  %28 = vadd.xlane.f32.xlu1 %v21_v1  ;;  %v23_v3 = vld [vmem:[%s440_s0 + $0x18] sm:$0xff]  ;;  %v105_v5 = vld [vmem:[%s441_s3 + $0x70] sm:$0xff]  ;;  %v104_v22 = vld [vmem:[%s441_s3 + $0x68] sm:$0xff] }
   0x3   :  { %v106_v4 = vld [vmem:[%s441_s3 + $0x78] sm:$0xff]  ;;  %v103_v23 = vld [vmem:[%s441_s3 + $0x60] sm:$0xff]  ;;  %v101_v25 = vld [vmem:[%s441_s3 + $0x50] sm:$0xff] }
   0x4   :  { %231 = vmatprep.subr.mxu0 %v106_v4  ;;  %269 = vmatprep.subr.mxu1 %v106_v4  ;;  %v102_v24 = vld [vmem:[%s441_s3 + $0x58] sm:$0xff]  ;;  %v100_v26 = vld [vmem:[%s441_s3 + $0x48] sm:$0xff]  ;;  %v99_v27 = vld [vmem:[%s441_s3 + $0x40] sm:$0xff] }
   0x5   :  { %232 = vmatpush3.msra.mxu0 %v106_v4  ;;  %285 = vmatpush3.msra.mxu1 %v106_v4  ;;  %v98_v28 = vld [vmem:[%s441_s3 + $0x38] sm:$0xff]  ;;  %v97_v29 = vld [vmem:[%s441_s3 + $0x30] sm:$0xff]  ;;  %v96_v30 = vld [vmem:[%s441_s3 + $0x28] sm:$0xff] }
   0x6   :  { %30 = vadd.xlane.f32.xlu0 %v22_v2  ;;  %32 = vadd.xlane.f32.xlu1 %v23_v3  ;;  %v95_v31 = vld [vmem:[%s441_s3 + $0x20] sm:$0xff]  ;;  %v94_v32 = vld [vmem:[%s441_s3 + $0x18] sm:$0xff]  ;;  %v93_v33 = vld [vmem:[%s441_s3 + $0x10] sm:$0xff] }
   0x7   :  { %233 = vmatprep.subr.mxu0 %v105_v5  ;;  %270 = vmatprep.subr.mxu1 %v105_v5  ;;  %v92_v34 = vld [vmem:[%s441_s3 + $0x8] sm:$0xff]  ;;  %v91_v35 = vld [vmem:[%s441_s3] sm:$0xff] }
   0x8   :  { %234 = vmatpush3.msra.mxu0 %v105_v5  ;;  %286 = vmatpush3.msra.mxu1 %v105_v5  ;;  %v208_v49 = vld [vmem:[%s442_s1] ss:$0 sm:$0xff] }
   0x9   :  { %235 = vmatprep.subr.mxu0 %v104_v22  ;;  %271 = vmatprep.subr.mxu1 %v104_v22  ;;  %v209_v51 = vld [vmem:[%s443_s2] ss:$0 sm:$0xff] }
   0xa   :  { %236 = vmatpush3.msra.mxu0 %v104_v22  ;;  %287 = vmatpush3.msra.mxu1 %v104_v22 }
   0xb   :  { %237 = vmatprep.subr.mxu0 %v103_v23  ;;  %272 = vmatprep.subr.mxu1 %v103_v23 }
   0xc   :  { %238 = vmatpush3.msra.mxu0 %v103_v23  ;;  %288 = vmatpush3.msra.mxu1 %v103_v23 }
   0xd   :  { %239 = vmatprep.subr.mxu0 %v102_v24  ;;  %273 = vmatprep.subr.mxu1 %v102_v24 }
   0xe   :  { %240 = vmatpush3.msra.mxu0 %v102_v24  ;;  %289 = vmatpush3.msra.mxu1 %v102_v24 }
   0xf   :  { %241 = vmatprep.subr.mxu0 %v101_v25  ;;  %274 = vmatprep.subr.mxu1 %v101_v25 }
  0x10   :  { %242 = vmatpush3.msra.mxu0 %v101_v25  ;;  %290 = vmatpush3.msra.mxu1 %v101_v25 }
  0x11   :  { %243 = vmatprep.subr.mxu0 %v100_v26  ;;  %275 = vmatprep.subr.mxu1 %v100_v26 }
  0x12   :  { %244 = vmatpush3.msra.mxu0 %v100_v26  ;;  %291 = vmatpush3.msra.mxu1 %v100_v26 }
  0x13   :  { %245 = vmatprep.subr.mxu0 %v99_v27  ;;  %276 = vmatprep.subr.mxu1 %v99_v27 }
  0x14   :  { %246 = vmatpush3.msra.mxu0 %v99_v27  ;;  %292 = vmatpush3.msra.mxu1 %v99_v27 }
  0x15   :  { %247 = vmatprep.subr.mxu0 %v98_v28  ;;  %277 = vmatprep.subr.mxu1 %v98_v28 }
  0x16   :  { %248 = vmatpush3.msra.mxu0 %v98_v28  ;;  %293 = vmatpush3.msra.mxu1 %v98_v28 }
  0x17   :  { %249 = vmatprep.subr.mxu0 %v97_v29  ;;  %278 = vmatprep.subr.mxu1 %v97_v29 }
  0x18   :  { %250 = vmatpush3.msra.mxu0 %v97_v29  ;;  %294 = vmatpush3.msra.mxu1 %v97_v29 }
  0x19   :  { %251 = vmatprep.subr.mxu0 %v96_v30  ;;  %279 = vmatprep.subr.mxu1 %v96_v30 }
  0x1a   :  { %252 = vmatpush3.msra.mxu0 %v96_v30  ;;  %295 = vmatpush3.msra.mxu1 %v96_v30 }
  0x1b   :  { %253 = vmatprep.subr.mxu0 %v95_v31  ;;  %280 = vmatprep.subr.mxu1 %v95_v31 }
  0x1c   :  { %254 = vmatpush3.msra.mxu0 %v95_v31  ;;  %296 = vmatpush3.msra.mxu1 %v95_v31 }
  0x1d   :  { %255 = vmatprep.subr.mxu0 %v94_v32  ;;  %281 = vmatprep.subr.mxu1 %v94_v32 }
  0x1e   :  { %256 = vmatpush3.msra.mxu0 %v94_v32  ;;  %297 = vmatpush3.msra.mxu1 %v94_v32 }
  0x1f   :  { %257 = vmatprep.subr.mxu0 %v93_v33  ;;  %282 = vmatprep.subr.mxu1 %v93_v33 }
  0x20   :  { %258 = vmatpush3.msra.mxu0 %v93_v33  ;;  %298 = vmatpush3.msra.mxu1 %v93_v33 }
  0x21   :  { %259 = vmatprep.subr.mxu0 %v92_v34  ;;  %283 = vmatprep.subr.mxu1 %v92_v34 }
  0x22   :  { %260 = vmatpush3.msra.mxu0 %v92_v34  ;;  %299 = vmatpush3.msra.mxu1 %v92_v34 }
  0x23   :  { %261 = vmatprep.subr.mxu0 %v91_v35  ;;  %284 = vmatprep.subr.mxu1 %v91_v35 }
  0x24   :  { %262 = vmatpush3.msra.mxu0 %v91_v35  ;;  %300 = vmatpush3.msra.mxu1 %v91_v35 }
  0x8b   :  { %v27_v6 = vpop.xlane.xlu0 %26  ;;  %v29_v7 = vpop.xlane.xlu1 %28 }
  0x8c   :  { %v35_v8 = vmul.f32 0.0078125, %v27_v6  ;;  %v36_v9 = vmul.f32 0.0078125, %v29_v7 }
  0x8e   :  { %v357_v10 = vsub.f32 %v20_v0, %v35_v8  ;;  %v359_v11 = vsub.f32 %v21_v1, %v36_v9 }
  0x8f   :  { %v31_v12 = vpop.xlane.xlu0 %30  ;;  %v33_v13 = vpop.xlane.xlu1 %32 }
  0x90   :  { %v37_v14 = vmul.f32 0.0078125, %v31_v12  ;;  %v43_v15 = vmul.f32 %v357_v10, %v357_v10  ;;  %v38_v16 = vmul.f32 0.0078125, %v33_v13  ;;  %v44_v19 = vmul.f32 %v359_v11, %v359_v11 }
  0x92   :  { %v363_v17 = vsub.f32 %v22_v2, %v37_v14  ;;  %47 = vadd.xlane.f32.xlu0 %v43_v15  ;;  %v365_v18 = vsub.f32 %v23_v3, %v38_v16  ;;  %v210_v2 = vld [vmem:[%s444_s4] ss:$0 sm:$0xff] }
  0x94   :  { %v45_v20 = vmul.f32 %v363_v17, %v363_v17  ;;  %v46_v21 = vmul.f32 %v365_v18, %v365_v18 }
  0x96   :  { %49 = vadd.xlane.f32.xlu0 %v44_v19  ;;  %51 = vadd.xlane.f32.xlu1 %v45_v20 }
  0x9a   :  { %53 = vadd.xlane.f32.xlu1 %v46_v21 }
 0x11b   :  { %v48_v36 = vpop.xlane.xlu0 %47 }
 0x11c   :  { %v55_v37 = vmul.f32 0.0078125, %v48_v36 }
 0x11e   :  { %v59_v38 = vadd.f32 1e-05, %v55_v37 }
 0x11f   :  { %v52_v39 = vpop.xlane.xlu1 %51  ;;  %v50_v40 = vpop.xlane.xlu0 %49 }
 0x120   :  { %301 = vrsqrt.f32 %v59_v38  ;;  %v57_v41 = vmul.f32 0.0078125, %v52_v39  ;;  %v56_v42 = vmul.f32 0.0078125, %v50_v40 }
 0x122   :  { %v61_v43 = vadd.f32 1e-05, %v57_v41  ;;  %v60_v44 = vadd.f32 1e-05, %v56_v42 }
 0x123   :  { %v54_v45 = vpop.xlane.xlu1 %53 }
 0x124   :  { %303 = vrsqrt.f32 %v61_v43  ;;  %v58_v46 = vmul.f32 0.0078125, %v54_v45 }
 0x125   :  { %305 = vrsqrt.f32 %v60_v44 }
 0x126   :  { %v62_v47 = vadd.f32 1e-05, %v58_v46 }
 0x128   :  { %307 = vrsqrt.f32 %v62_v47 }
 0x12d   :  { %v302_v48 = vpop.eup %301 }
 0x12e   :  { %v67_v50 = vmul.f32 %v302_v48, %v357_v10 }
 0x130   :  { %v77_v52 = vmul.f32 %v208_v49, %v67_v50 }
 0x131   :  { %v304_v53 = vpop.eup %303 }
 0x132   :  { %v306_v54 = vpop.eup %305  ;;  %v87_v55 = vadd.f32 %v209_v51, %v77_v52  ;;  %v69_v56 = vmul.f32 %v304_v53, %v363_v17 }
 0x133   :  { %v68_v57 = vmul.f32 %v306_v54, %v359_v11 }
 0x134   :  { %263 = vmatprep.mubr.f32.mxu0 %v87_v55  ;;  %v79_v58 = vmul.f32 %v208_v49, %v69_v56 }
 0x135   :  { %v308_v59 = vpop.eup %307  ;;  %v78_v60 = vmul.f32 %v208_v49, %v68_v57 }
 0x136   :  { %v89_v61 = vadd.f32 %v209_v51, %v79_v58  ;;  %v70_v62 = vmul.f32 %v308_v59, %v365_v18 }
 0x137   :  { %v88_v63 = vadd.f32 %v209_v51, %v78_v60 }
 0x138   :  { %266 = vmatprep.mubr.f32.mxu1 %v89_v61  ;;  %v80_v0 = vmul.f32 %v208_v49, %v70_v62 }
 0x139   :  { %264 = vmatmul.mubr.f32.vlgmr.msra.gmra.mxu0 %v88_v63 }
 0x13a   :  { %v90_v1 = vadd.f32 %v209_v51, %v80_v0 }
 0x13c   :  { %267 = vmatmul.mubr.f32.vlgmr.msra.gmra.mxu1 %v90_v1 }
 0x1f9   :  { %v265_v3 = vpop.f32.mrf.mxu0 }
 0x1fa   :  { %v186_v4 = vadd.f32 %v265_v3, %v210_v2 }
 0x1fb   :  { %v180_v5 = vpop.f32.mrf.mxu0 }
 0x1fc   :  { %201 = vst.msk [vmem:[%s445_s5 + $0x8] sm:$0xff] %vm199_vm0, %v186_v4  ;;  %v181_v6 = vadd.f32 %v210_v2, %v180_v5  ;;  %v268_v7 = vpop.f32.mrf.mxu1 }
 0x1fd   :  { %v196_v8 = vadd.f32 %v268_v7, %v210_v2 }
 0x1fe   :  { %200 = vst.msk [vmem:[%s445_s5] sm:$0xff] %vm199_vm0, %v181_v6  ;;  %v190_v9 = vpop.f32.mrf.mxu1 }
 0x1ff   :  { %203 = vst.msk [vmem:[%s445_s5 + $0x18] sm:$0xff] %vm199_vm0, %v196_v8  ;;  %v191_v10 = vadd.f32 %v210_v2, %v190_v9 }
 0x201   :  { %202 = vst.msk [vmem:[%s445_s5 + $0x10] sm:$0xff] %vm199_vm0, %v191_v10 }

// kernel: encoder_rgbt_swin.49
= control target key start
LH: loop header
LB: loop body
LE: loop exit
PB: predicated region body
PF: predicated region fallthrough
CT: control target
= control target key end

     0   :  { %vm33_vm0 = vcmask 261120   ;;  %s662_s0 = inlined_call_operand.vmem [shape: f32[128,32], index: 0, kind: input, shape index: {}]   ;;  %s663_s1 = inlined_call_operand.vmem [shape: f32[1,32], index: 1, kind: input, shape index: {}]   ;;  %s664_s2 = inlined_call_operand.vmem [shape: f32[1,32], index: 2, kind: input, shape index: {}]   ;;  %s665_s3 = inlined_call_operand.hbm [shape: f32[128,32], index: 3, kind: output, shape index: {}]  }
   0x1   :  { %v15_v0 = vld [vmem:[%s662_s0] sm:$0xff]  ;;  %v17_v1 = vld [vmem:[%s662_s0 + $0x10] sm:$0xff]  ;;  %v16_v2 = vld [vmem:[%s662_s0 + $0x8] sm:$0xff] }
   0x2   :  { %v34_v3 = vsel %vm33_vm0, %v15_v0, 0.0  ;;  %v40_v4 = vsel %vm33_vm0, %v17_v1, 0.0  ;;  %v18_v5 = vld [vmem:[%s662_s0 + $0x18] sm:$0xff]  ;;  %v37_v6 = vsel %vm33_vm0, %v16_v2, 0.0  ;;  %v19_v8 = vld [vmem:[%s662_s0 + $0x20] sm:$0xff]  ;;  %v20_v9 = vld [vmem:[%s662_s0 + $0x28] sm:$0xff] }
   0x3   :  { %35 = vadd.xlane.f32.xlu0 %v34_v3  ;;  %41 = vadd.xlane.f32.xlu1 %v40_v4  ;;  %v43_v7 = vsel %vm33_vm0, %v18_v5, 0.0 }
   0x4   :  { %8 = vsyncpa [#allocation3], 0  ;;  %v46_v10 = vsel %vm33_vm0, %v19_v8, 0.0  ;;  %v49_v11 = vsel %vm33_vm0, %v20_v9, 0.0  ;;  %v428_v12 = vld [vmem:[%s662_s0 + $0x30] sm:$0xff]  ;;  %v433_v13 = vld [vmem:[%s662_s0 + $0x38] sm:$0xff] }
   0x5   :  { %v52_v14 = vsel %vm33_vm0, %v428_v12, 0.0  ;;  %v55_v15 = vsel %vm33_vm0, %v433_v13, 0.0  ;;  %v442_v16 = vld [vmem:[%s662_s0 + $0x40] sm:$0xff]  ;;  %v447_v17 = vld [vmem:[%s662_s0 + $0x48] sm:$0xff]  ;;  %v456_v20 = vld [vmem:[%s662_s0 + $0x50] sm:$0xff] }
   0x6   :  { %v58_v18 = vsel %vm33_vm0, %v442_v16, 0.0  ;;  %v61_v19 = vsel %vm33_vm0, %v447_v17, 0.0  ;;  %v461_v21 = vld [vmem:[%s662_s0 + $0x58] sm:$0xff]  ;;  %v64_v22 = vsel %vm33_vm0, %v456_v20, 0.0  ;;  %v470_v24 = vld [vmem:[%s662_s0 + $0x60] sm:$0xff]  ;;  %v475_v25 = vld [vmem:[%s662_s0 + $0x68] sm:$0xff] }
   0x7   :  { %38 = vadd.xlane.f32.xlu0 %v37_v6  ;;  %44 = vadd.xlane.f32.xlu1 %v43_v7  ;;  %v67_v23 = vsel %vm33_vm0, %v461_v21, 0.0  ;;  %v70_v26 = vsel %vm33_vm0, %v470_v24, 0.0  ;;  %v73_v27 = vsel %vm33_vm0, %v475_v25, 0.0  ;;  %v484_v28 = vld [vmem:[%s662_s0 + $0x70] sm:$0xff]  ;;  %v489_v29 = vld [vmem:[%s662_s0 + $0x78] sm:$0xff] }
   0x8   :  { %v76_v30 = vsel %vm33_vm0, %v484_v28, 0.0  ;;  %v79_v31 = vsel %vm33_vm0, %v489_v29, 0.0 }
   0xb   :  { %47 = vadd.xlane.f32.xlu0 %v46_v10  ;;  %50 = vadd.xlane.f32.xlu1 %v49_v11 }
   0xf   :  { %53 = vadd.xlane.f32.xlu0 %v52_v14  ;;  %56 = vadd.xlane.f32.xlu1 %v55_v15 }
  0x13   :  { %59 = vadd.xlane.f32.xlu0 %v58_v18  ;;  %62 = vadd.xlane.f32.xlu1 %v61_v19 }
  0x17   :  { %65 = vadd.xlane.f32.xlu0 %v64_v22  ;;  %68 = vadd.xlane.f32.xlu1 %v67_v23 }
  0x1b   :  { %71 = vadd.xlane.f32.xlu0 %v70_v26  ;;  %74 = vadd.xlane.f32.xlu1 %v73_v27 }
  0x1f   :  { %77 = vadd.xlane.f32.xlu0 %v76_v30  ;;  %80 = vadd.xlane.f32.xlu1 %v79_v31 }
  0x8c   :  { %v36_v32 = vpop.xlane.xlu0 %35  ;;  %v42_v33 = vpop.xlane.xlu1 %41 }
  0x8d   :  { %v83_v34 = vmul.f32 0.03125, %v36_v32  ;;  %v85_v35 = vmul.f32 0.03125, %v42_v33 }
  0x8f   :  { %v495_v36 = vsub.f32 %v15_v0, %v83_v34  ;;  %v497_v37 = vsub.f32 %v17_v1, %v85_v35 }
  0x90   :  { %v39_v38 = vpop.xlane.xlu0 %38  ;;  %v45_v39 = vpop.xlane.xlu1 %44 }
  0x91   :  { %v84_v40 = vmul.f32 0.03125, %v39_v38  ;;  %v86_v41 = vmul.f32 0.03125, %v45_v39  ;;  %v115_v42 = vmul.f32 %v495_v36, %v495_v36  ;;  %v117_v43 = vmul.f32 %v497_v37, %v497_v37 }
  0x93   :  { %v503_v44 = vsub.f32 %v16_v2, %v84_v40  ;;  %v505_v45 = vsub.f32 %v18_v5, %v86_v41  ;;  %v131_v46 = vsel %vm33_vm0, %v115_v42, 0.0  ;;  %v137_v49 = vsel %vm33_vm0, %v117_v43, 0.0 }
  0x94   :  { %132 = vadd.xlane.f32.xlu0 %v131_v46  ;;  %v48_v47 = vpop.xlane.xlu0 %47  ;;  %v51_v48 = vpop.xlane.xlu1 %50 }
  0x95   :  { %v87_v50 = vmul.f32 0.03125, %v48_v47  ;;  %v88_v51 = vmul.f32 0.03125, %v51_v48  ;;  %v116_v52 = vmul.f32 %v503_v44, %v503_v44  ;;  %v118_v53 = vmul.f32 %v505_v45, %v505_v45 }
  0x97   :  { %v513_v54 = vsub.f32 %v19_v8, %v87_v50  ;;  %v515_v55 = vsub.f32 %v20_v9, %v88_v51  ;;  %v134_v56 = vsel %vm33_vm0, %v116_v52, 0.0  ;;  %v140_v59 = vsel %vm33_vm0, %v118_v53, 0.0 }
  0x98   :  { %138 = vadd.xlane.f32.xlu0 %v137_v49  ;;  %135 = vadd.xlane.f32.xlu1 %v134_v56  ;;  %v54_v57 = vpop.xlane.xlu0 %53  ;;  %v57_v58 = vpop.xlane.xlu1 %56 }
  0x99   :  { %v89_v60 = vmul.f32 0.03125, %v54_v57  ;;  %v90_v61 = vmul.f32 0.03125, %v57_v58  ;;  %v119_v62 = vmul.f32 %v513_v54, %v513_v54  ;;  %v120_v63 = vmul.f32 %v515_v55, %v515_v55 }
  0x9b   :  { %v524_v0 = vsub.f32 %v428_v12, %v89_v60  ;;  %v527_v1 = vsub.f32 %v433_v13, %v90_v61  ;;  %v143_v2 = vsel %vm33_vm0, %v119_v62, 0.0  ;;  %v146_v5 = vsel %vm33_vm0, %v120_v63, 0.0 }
  0x9c   :  { %141 = vadd.xlane.f32.xlu1 %v140_v59  ;;  %144 = vadd.xlane.f32.xlu0 %v143_v2  ;;  %v60_v3 = vpop.xlane.xlu0 %59  ;;  %v63_v4 = vpop.xlane.xlu1 %62 }
  0x9d   :  { %v91_v6 = vmul.f32 0.03125, %v60_v3  ;;  %v92_v7 = vmul.f32 0.03125, %v63_v4  ;;  %v121_v8 = vmul.f32 %v524_v0, %v524_v0  ;;  %v122_v9 = vmul.f32 %v527_v1, %v527_v1 }
  0x9f   :  { %v536_v10 = vsub.f32 %v442_v16, %v91_v6  ;;  %v539_v11 = vsub.f32 %v447_v17, %v92_v7  ;;  %v149_v12 = vsel %vm33_vm0, %v121_v8, 0.0  ;;  %v152_v15 = vsel %vm33_vm0, %v122_v9, 0.0 }
  0xa0   :  { %147 = vadd.xlane.f32.xlu1 %v146_v5  ;;  %150 = vadd.xlane.f32.xlu0 %v149_v12  ;;  %v66_v13 = vpop.xlane.xlu0 %65  ;;  %v69_v14 = vpop.xlane.xlu1 %68 }
  0xa1   :  { %v93_v18 = vmul.f32 0.03125, %v66_v13  ;;  %v94_v19 = vmul.f32 0.03125, %v69_v14  ;;  %v123_v22 = vmul.f32 %v536_v10, %v536_v10  ;;  %v124_v16 = vmul.f32 %v539_v11, %v539_v11 }
  0xa3   :  { %v548_v23 = vsub.f32 %v456_v20, %v93_v18  ;;  %v551_v17 = vsub.f32 %v461_v21, %v94_v19  ;;  %v155_v26 = vsel %vm33_vm0, %v123_v22, 0.0  ;;  %v158_v31 = vsel %vm33_vm0, %v124_v16, 0.0 }
  0xa4   :  { %153 = vadd.xlane.f32.xlu1 %v152_v15  ;;  %156 = vadd.xlane.f32.xlu0 %v155_v26  ;;  %v72_v27 = vpop.xlane.xlu0 %71  ;;  %v75_v30 = vpop.xlane.xlu1 %74  ;;  %v588_v26 = vld [vmem:[%s663_s1] ss:$0 sm:$0xff]  ;;  %s378_s1 = smov [#allocation2]  }
  0xa5   :  { %v95_v32 = vmul.f32 0.03125, %v72_v27  ;;  %v96_v33 = vmul.f32 0.03125, %v75_v30  ;;  %v125_v34 = vmul.f32 %v548_v23, %v548_v23  ;;  %v126_v20 = vmul.f32 %v551_v17, %v551_v17 }
  0xa7   :  { %v560_v35 = vsub.f32 %v470_v24, %v95_v32  ;;  %v563_v21 = vsub.f32 %v475_v25, %v96_v33  ;;  %v161_v38 = vsel %vm33_vm0, %v125_v34, 0.0  ;;  %v164_v41 = vsel %vm33_vm0, %v126_v20, 0.0  ;;  %v594_v32 = vld [vmem:[%s664_s2] ss:$0 sm:$0xff]  ;;  %s308_s2 = sshll.u32 %s378_s1, 4  ;;  %s309_s2 = int_to_ptr.vmem [resolvable:$true] %s308_s2 }
  0xa8   :  { %159 = vadd.xlane.f32.xlu1 %v158_v31  ;;  %162 = vadd.xlane.f32.xlu0 %v161_v38  ;;  %v78_v39 = vpop.xlane.xlu0 %77  ;;  %v81_v40 = vpop.xlane.xlu1 %80  ;;  %s356_s20 = scalar_lea.vmem %s309_s2, 2048  ;;  %p361_p1 = scmp.lt.s32.totalorder %s309_s2, %s309_s2 }
  0xa9   :  { %v97_v42 = vmul.f32 0.03125, %v78_v39  ;;  %v98_v43 = vmul.f32 0.03125, %v81_v40  ;;  %v127_v46 = vmul.f32 %v560_v35, %v560_v35  ;;  %v128_v24 = vmul.f32 %v563_v21, %v563_v21  ;;  %p357_p0 = scmp.ne.s32.totalorder %s309_s2, %s356_s20  ;;  %p362_p2 = scmp.lt.s32.totalorder %s356_s20, %s356_s20 }
  0xab   :  { %v572_v47 = vsub.f32 %v484_v28, %v97_v42  ;;  %v575_v25 = vsub.f32 %v489_v29, %v98_v43  ;;  %v167_v48 = vsel %vm33_vm0, %v127_v46, 0.0  ;;  %v170_v49 = vsel %vm33_vm0, %v128_v24, 0.0  ;;  %p363_p3 = por %p362_p2, %p361_p1 }
  0xac   :  { %165 = vadd.xlane.f32.xlu1 %v164_v41  ;;  %168 = vadd.xlane.f32.xlu0 %v167_v48 }
  0xad   :  { %v129_v50 = vmul.f32 %v572_v47, %v572_v47  ;;  %v130_v51 = vmul.f32 %v575_v25, %v575_v25  ;;  %p364_p4 = pnand %p363_p3, %p357_p0 }
  0xaf   :  { %v173_v52 = vsel %vm33_vm0, %v129_v50, 0.0  ;;  %v176_v28 = vsel %vm33_vm0, %v130_v51, 0.0 }
  0xb0   :  { %171 = vadd.xlane.f32.xlu1 %v170_v49  ;;  %174 = vadd.xlane.f32.xlu0 %v173_v52 }
  0xb4   :  { %177 = vadd.xlane.f32.xlu1 %v176_v28 }
 0x11d   :  { %v133_v29 = vpop.xlane.xlu0 %132 }
 0x11e   :  { %v179_v53 = vmul.f32 0.03125, %v133_v29 }
 0x120   :  { %v195_v56 = vadd.f32 1e-05, %v179_v53 }
 0x121   :  { %v136_v57 = vpop.xlane.xlu1 %135  ;;  %v139_v58 = vpop.xlane.xlu0 %138 }
 0x122   :  { %324 = vrsqrt.f32 %v195_v56  ;;  %v180_v59 = vmul.f32 0.03125, %v136_v57  ;;  %v181_v60 = vmul.f32 0.03125, %v139_v58 }
 0x124   :  { %v196_v61 = vadd.f32 1e-05, %v180_v59  ;;  %v197_v62 = vadd.f32 1e-05, %v181_v60 }
 0x125   :  { %v142_v63 = vpop.xlane.xlu1 %141  ;;  %v145_v2 = vpop.xlane.xlu0 %144 }
 0x126   :  { %326 = vrsqrt.f32 %v196_v61  ;;  %v182_v3 = vmul.f32 0.03125, %v142_v63  ;;  %v183_v4 = vmul.f32 0.03125, %v145_v2 }
 0x127   :  { %328 = vrsqrt.f32 %v197_v62 }
 0x128   :  { %v198_v5 = vadd.f32 1e-05, %v182_v3  ;;  %v199_v6 = vadd.f32 1e-05, %v183_v4 }
 0x129   :  { %v148_v7 = vpop.xlane.xlu1 %147  ;;  %v151_v8 = vpop.xlane.xlu0 %150 }
 0x12a   :  { %330 = vrsqrt.f32 %v198_v5  ;;  %v184_v9 = vmul.f32 0.03125, %v148_v7  ;;  %v185_v12 = vmul.f32 0.03125, %v151_v8 }
 0x12b   :  { %332 = vrsqrt.f32 %v199_v6 }
 0x12c   :  { %v200_v13 = vadd.f32 1e-05, %v184_v9  ;;  %v201_v14 = vadd.f32 1e-05, %v185_v12 }
 0x12d   :  { %v154_v15 = vpop.xlane.xlu1 %153  ;;  %v157_v18 = vpop.xlane.xlu0 %156 }
 0x12e   :  { %334 = vrsqrt.f32 %v200_v13  ;;  %v186_v19 = vmul.f32 0.03125, %v154_v15  ;;  %v187_v22 = vmul.f32 0.03125, %v157_v18 }
 0x12f   :  { %v325_v16 = vpop.eup %324  ;;  %336 = vrsqrt.f32 %v201_v14 }
 0x130   :  { %v227_v27 = vmul.f32 %v325_v16, %v495_v36  ;;  %v202_v30 = vadd.f32 1e-05, %v186_v19  ;;  %v203_v31 = vadd.f32 1e-05, %v187_v22 }
 0x131   :  { %v160_v33 = vpop.xlane.xlu1 %159  ;;  %v163_v34 = vpop.xlane.xlu0 %162 }
 0x132   :  { %v249_v20 = vmul.f32 %v588_v26, %v227_v27  ;;  %338 = vrsqrt.f32 %v202_v30  ;;  %v188_v38 = vmul.f32 0.03125, %v160_v33  ;;  %v189_v39 = vmul.f32 0.03125, %v163_v34 }
 0x133   :  { %v327_v40 = vpop.eup %326  ;;  %340 = vrsqrt.f32 %v203_v31 }
 0x134   :  { %v329_v41 = vpop.eup %328  ;;  %v271_v42 = vadd.f32 %v594_v32, %v249_v20  ;;  %v228_v36 = vmul.f32 %v327_v40, %v503_v44  ;;  %v204_v43 = vadd.f32 1e-05, %v188_v38  ;;  %v205_v46 = vadd.f32 1e-05, %v189_v39 }
 0x135   :  { %v229_v24 = vmul.f32 %v329_v41, %v497_v37  ;;  %v166_v48 = vpop.xlane.xlu1 %165  ;;  %v169_v49 = vpop.xlane.xlu0 %168 }
 0x136   :  { %287 = vst.msk [vmem:[#allocation2] sm:$0xff] %vm33_vm0, %v271_v42  ;;  %v250_v50 = vmul.f32 %v588_v26, %v228_v36  ;;  %342 = vrsqrt.f32 %v204_v43  ;;  %v190_v51 = vmul.f32 0.03125, %v166_v48  ;;  %v191_v52 = vmul.f32 0.03125, %v169_v49 }
 0x137   :  { %v331_v28 = vpop.eup %330  ;;  %v251_v29 = vmul.f32 %v588_v26, %v229_v24  ;;  %344 = vrsqrt.f32 %v205_v46 }
 0x138   :  { %v333_v53 = vpop.eup %332  ;;  %v272_v44 = vadd.f32 %v594_v32, %v250_v50  ;;  %v230_v56 = vmul.f32 %v331_v28, %v505_v45  ;;  %v206_v57 = vadd.f32 1e-05, %v190_v51  ;;  %v207_v37 = vadd.f32 1e-05, %v191_v52 }
 0x139   :  { %v273_v58 = vadd.f32 %v594_v32, %v251_v29  ;;  %v231_v59 = vmul.f32 %v333_v53, %v513_v54  ;;  %v172_v60 = vpop.xlane.xlu1 %171  ;;  %v175_v61 = vpop.xlane.xlu0 %174 }
 0x13a   :  { %288 = vst.msk [vmem:[#allocation2 + $0x8] sm:$0xff] %vm33_vm0, %v272_v44  ;;  %v252_v62 = vmul.f32 %v588_v26, %v230_v56  ;;  %346 = vrsqrt.f32 %v206_v57  ;;  %v192_v63 = vmul.f32 0.03125, %v172_v60  ;;  %v193_v2 = vmul.f32 0.03125, %v175_v61 }
 0x13b   :  { %v335_v3 = vpop.eup %334  ;;  %289 = vst.msk [vmem:[#allocation2 + $0x10] sm:$0xff] %vm33_vm0, %v273_v58  ;;  %v253_v45 = vmul.f32 %v588_v26, %v231_v59  ;;  %348 = vrsqrt.f32 %v207_v37 }
 0x13c   :  { %v337_v4 = vpop.eup %336  ;;  %v274_v5 = vadd.f32 %v594_v32, %v252_v62  ;;  %v232_v54 = vmul.f32 %v335_v3, %v515_v55  ;;  %v208_v6 = vadd.f32 1e-05, %v192_v63  ;;  %v209_v7 = vadd.f32 1e-05, %v193_v2 }
 0x13d   :  { %v275_v8 = vadd.f32 %v594_v32, %v253_v45  ;;  %v233_v9 = vmul.f32 %v337_v4, %v524_v0  ;;  %v178_v12 = vpop.xlane.xlu1 %177 }
 0x13e   :  { %290 = vst.msk [vmem:[#allocation2 + $0x18] sm:$0xff] %vm33_vm0, %v274_v5  ;;  %v254_v13 = vmul.f32 %v588_v26, %v232_v54  ;;  %350 = vrsqrt.f32 %v208_v6  ;;  %v194_v14 = vmul.f32 0.03125, %v178_v12 }
 0x13f   :  { %v339_v15 = vpop.eup %338  ;;  %291 = vst.msk [vmem:[#allocation2 + $0x20] sm:$0xff] %vm33_vm0, %v275_v8  ;;  %v255_v18 = vmul.f32 %v588_v26, %v233_v9  ;;  %352 = vrsqrt.f32 %v209_v7 }
 0x140   :  { %v341_v55 = vpop.eup %340  ;;  %v276_v19 = vadd.f32 %v594_v32, %v254_v13  ;;  %v234_v22 = vmul.f32 %v339_v15, %v527_v1  ;;  %v210_v16 = vadd.f32 1e-05, %v194_v14 }
 0x141   :  { %v277_v0 = vadd.f32 %v594_v32, %v255_v18  ;;  %v235_v27 = vmul.f32 %v341_v55, %v536_v10 }
 0x142   :  { %292 = vst.msk [vmem:[#allocation2 + $0x28] sm:$0xff] %vm33_vm0, %v276_v19  ;;  %v256_v30 = vmul.f32 %v588_v26, %v234_v22  ;;  %354 = vrsqrt.f32 %v210_v16 }
 0x143   :  { %v343_v31 = vpop.eup %342  ;;  %293 = vst.msk [vmem:[#allocation2 + $0x30] sm:$0xff] %vm33_vm0, %v277_v0  ;;  %v257_v33 = vmul.f32 %v588_v26, %v235_v27 }
 0x144   :  { %v345_v34 = vpop.eup %344  ;;  %v278_v20 = vadd.f32 %v594_v32, %v256_v30  ;;  %v236_v1 = vmul.f32 %v343_v31, %v539_v11 }
 0x145   :  { %v279_v38 = vadd.f32 %v594_v32, %v257_v33  ;;  %v237_v39 = vmul.f32 %v345_v34, %v548_v23 }
 0x146   :  { %294 = vst.msk [vmem:[#allocation2 + $0x38] sm:$0xff] %vm33_vm0, %v278_v20  ;;  %v258_v10 = vmul.f32 %v588_v26, %v236_v1 }
 0x147   :  { %v347_v40 = vpop.eup %346  ;;  %295 = vst.msk [vmem:[#allocation2 + $0x40] sm:$0xff] %vm33_vm0, %v279_v38  ;;  %v259_v41 = vmul.f32 %v588_v26, %v237_v39 }
 0x148   :  { %v349_v42 = vpop.eup %348  ;;  %v280_v36 = vadd.f32 %v594_v32, %v258_v10  ;;  %v238_v43 = vmul.f32 %v347_v40, %v551_v17 }
 0x149   :  { %v281_v11 = vadd.f32 %v594_v32, %v259_v41  ;;  %v239_v46 = vmul.f32 %v349_v42, %v560_v35 }
 0x14a   :  { %296 = vst.msk [vmem:[#allocation2 + $0x48] sm:$0xff] %vm33_vm0, %v280_v36  ;;  %v260_v23 = vmul.f32 %v588_v26, %v238_v43 }
 0x14b   :  { %v351_v24 = vpop.eup %350  ;;  %297 = vst.msk [vmem:[#allocation2 + $0x50] sm:$0xff] %vm33_vm0, %v281_v11  ;;  %v261_v48 = vmul.f32 %v588_v26, %v239_v46 }
 0x14c   :  { %v353_v49 = vpop.eup %352  ;;  %v282_v50 = vadd.f32 %v594_v32, %v260_v23  ;;  %v240_v51 = vmul.f32 %v351_v24, %v563_v21 }
 0x14d   :  { %v283_v17 = vadd.f32 %v594_v32, %v261_v48  ;;  %v241_v52 = vmul.f32 %v353_v49, %v572_v47 }
 0x14e   :  { %298 = vst.msk [vmem:[#allocation2 + $0x58] sm:$0xff] %vm33_vm0, %v282_v50  ;;  %v262_v35 = vmul.f32 %v588_v26, %v240_v51 }
 0x14f   :  { %v355_v28 = vpop.eup %354  ;;  %299 = vst.msk [vmem:[#allocation2 + $0x60] sm:$0xff] %vm33_vm0, %v283_v17  ;;  %v263_v29 = vmul.f32 %v588_v26, %v241_v52 }
 0x150   :  { %v284_v53 = vadd.f32 %v594_v32, %v262_v35  ;;  %v242_v44 = vmul.f32 %v355_v28, %v575_v25 }
 0x151   :  { %v285_v56 = vadd.f32 %v594_v32, %v263_v29 }
 0x152   :  { %300 = vst.msk [vmem:[#allocation2 + $0x68] sm:$0xff] %vm33_vm0, %v284_v53  ;;  %v264_v21 = vmul.f32 %v588_v26, %v242_v44 }
 0x153   :  { %301 = vst.msk [vmem:[#allocation2 + $0x70] sm:$0xff] %vm33_vm0, %v285_v56 }
 0x154   :  { %v286_v47 = vadd.f32 %v594_v32, %v264_v21 }
 0x156   :  { %302 = vst.msk [vmem:[#allocation2 + $0x78] sm:$0xff] %vm33_vm0, %v286_v47 }
 0x157   :  { %367 = shalt.err (!%p364_p4)
}
 0x158   :  { %s379_s21 = smov 128   ;;  %s380_s22 = smov 8  }
 0x159   :  { %314 = dma.vmem_to_hbm [thread:$0]  %s309_s2, 2048, %s665_s3, [#allocation3], %s379_s21, %s379_s21, %s380_s22  }
 0x15a   :  { %376 = dma.done.wait [#allocation3], 2048  }
 0x15b   :  { %377 = vsyncadd [#allocation3], 4294965248 }
 0x15c   :  { %318 = vsyncpa [#allocation3], 1 }

// kernel: encoder_rgbt_swin.51
= control target key start
LH: loop header
LB: loop body
LE: loop exit
PB: predicated region body
PF: predicated region fallthrough
CT: control target
= control target key end

     0   :  { %vm26_vm0 = vcmask 523264   ;;  %v272_v44 = vmov 0.0   ;;  %s432_s0 = inlined_call_operand.vmem [shape: f32[32,64], index: 0, kind: input, shape index: {}]   ;;  %s433_s3 = inlined_call_operand.vmem [shape: f32[64,192], index: 3, kind: input, shape index: {}]   ;;  %s434_s1 = inlined_call_operand.vmem [shape: f32[1,64], index: 1, kind: input, shape index: {}]   ;;  %s435_s2 = inlined_call_operand.vmem [shape: f32[1,64], index: 2, kind: input, shape index: {}]   ;;  %s436_s4 = inlined_call_operand.vmem [shape: f32[1,192], index: 4, kind: input, shape index: {}]   ;;  %s437_s5 = inlined_call_operand.vmem [shape: f32[32,192], index: 5, kind: output, shape index: {}]  }
   0x1   :  { %v20_v0 = vld [vmem:[%s432_s0] sm:$0xff]  ;;  %v21_v1 = vld [vmem:[%s432_s0 + $0x8] sm:$0xff]  ;;  %v22_v2 = vld [vmem:[%s432_s0 + $0x10] sm:$0xff]  ;;  %204 = vmatprep.mubr.f32.mxu0 %v272_v44  ;;  %216 = vmatprep.mubr.f32.mxu1 %v272_v44 }
   0x2   :  { %v27_v3 = vsel %vm26_vm0, %v20_v0, 0.0  ;;  %v30_v4 = vsel %vm26_vm0, %v21_v1, 0.0  ;;  %v23_v5 = vld [vmem:[%s432_s0 + $0x18] sm:$0xff]  ;;  %v33_v6 = vsel %vm26_vm0, %v22_v2, 0.0  ;;  %v114_v29 = vld [vmem:[%s433_s3 + $0x70] sm:$0xff]  ;;  %v113_v30 = vld [vmem:[%s433_s3 + $0x68] sm:$0xff] }
   0x3   :  { %28 = vadd.xlane.f32.xlu0 %v27_v3  ;;  %31 = vadd.xlane.f32.xlu1 %v30_v4  ;;  %v36_v7 = vsel %vm26_vm0, %v23_v5, 0.0  ;;  %v115_v28 = vld [vmem:[%s433_s3 + $0x78] sm:$0xff]  ;;  %v112_v31 = vld [vmem:[%s433_s3 + $0x60] sm:$0xff]  ;;  %v110_v33 = vld [vmem:[%s433_s3 + $0x50] sm:$0xff] }
   0x4   :  { %156 = vmatprep.subr.mxu0 %v115_v28  ;;  %247 = vmatprep.subr.mxu1 %v115_v28  ;;  %v111_v32 = vld [vmem:[%s433_s3 + $0x58] sm:$0xff]  ;;  %v109_v34 = vld [vmem:[%s433_s3 + $0x48] sm:$0xff]  ;;  %v108_v35 = vld [vmem:[%s433_s3 + $0x40] sm:$0xff] }
   0x5   :  { %157 = vmatpush1.msra.mxu0 %v114_v29  ;;  %255 = vmatpush1.msra.mxu1 %v114_v29  ;;  %v107_v36 = vld [vmem:[%s433_s3 + $0x38] sm:$0xff]  ;;  %v106_v37 = vld [vmem:[%s433_s3 + $0x30] sm:$0xff]  ;;  %v105_v38 = vld [vmem:[%s433_s3 + $0x28] sm:$0xff] }
   0x6   :  { %158 = vmatprep.subr.mxu0 %v113_v30  ;;  %248 = vmatprep.subr.mxu1 %v113_v30  ;;  %v104_v39 = vld [vmem:[%s433_s3 + $0x20] sm:$0xff]  ;;  %v103_v40 = vld [vmem:[%s433_s3 + $0x18] sm:$0xff]  ;;  %v102_v41 = vld [vmem:[%s433_s3 + $0x10] sm:$0xff] }
   0x7   :  { %34 = vadd.xlane.f32.xlu0 %v33_v6  ;;  %37 = vadd.xlane.f32.xlu1 %v36_v7  ;;  %v101_v42 = vld [vmem:[%s433_s3 + $0x8] sm:$0xff]  ;;  %v100_v43 = vld [vmem:[%s433_s3] sm:$0xff] }
   0x8   :  { %159 = vmatpush1.msra.mxu0 %v112_v31  ;;  %256 = vmatpush1.msra.mxu1 %v112_v31  ;;  %v241_v58 = vld [vmem:[%s434_s1] ss:$0 sm:$0xff] }
   0x9   :  { %160 = vmatprep.subr.mxu0 %v111_v32  ;;  %249 = vmatprep.subr.mxu1 %v111_v32  ;;  %v242_v60 = vld [vmem:[%s435_s2] ss:$0 sm:$0xff] }
   0xa   :  { %161 = vmatpush1.msra.mxu0 %v110_v33  ;;  %257 = vmatpush1.msra.mxu1 %v110_v33 }
   0xb   :  { %162 = vmatprep.subr.mxu0 %v109_v34  ;;  %250 = vmatprep.subr.mxu1 %v109_v34 }
   0xc   :  { %163 = vmatpush1.msra.mxu0 %v108_v35  ;;  %258 = vmatpush1.msra.mxu1 %v108_v35 }
   0xd   :  { %164 = vmatprep.subr.mxu0 %v107_v36  ;;  %251 = vmatprep.subr.mxu1 %v107_v36 }
   0xe   :  { %165 = vmatpush1.msra.mxu0 %v106_v37  ;;  %259 = vmatpush1.msra.mxu1 %v106_v37 }
   0xf   :  { %166 = vmatprep.subr.mxu0 %v105_v38  ;;  %252 = vmatprep.subr.mxu1 %v105_v38 }
  0x10   :  { %167 = vmatpush1.msra.mxu0 %v104_v39  ;;  %260 = vmatpush1.msra.mxu1 %v104_v39 }
  0x11   :  { %168 = vmatprep.subr.mxu0 %v103_v40  ;;  %253 = vmatprep.subr.mxu1 %v103_v40 }
  0x12   :  { %169 = vmatpush1.msra.mxu0 %v102_v41  ;;  %261 = vmatpush1.msra.mxu1 %v102_v41 }
  0x13   :  { %170 = vmatprep.subr.mxu0 %v101_v42  ;;  %254 = vmatprep.subr.mxu1 %v101_v42 }
  0x14   :  { %171 = vmatpush1.msra.mxu0 %v100_v43  ;;  %262 = vmatpush1.msra.mxu1 %v100_v43 }
  0x8c   :  { %v29_v8 = vpop.xlane.xlu0 %28  ;;  %v32_v9 = vpop.xlane.xlu1 %31 }
  0x8d   :  { %v40_v10 = vmul.f32 0.015625, %v29_v8  ;;  %v41_v11 = vmul.f32 0.015625, %v32_v9 }
  0x8f   :  { %v319_v12 = vsub.f32 %v20_v0, %v40_v10  ;;  %v321_v13 = vsub.f32 %v21_v1, %v41_v11  ;;  %v118_v11 = vlaneseq }
  0x90   :  { %v35_v14 = vpop.xlane.xlu0 %34  ;;  %v38_v15 = vpop.xlane.xlu1 %37 }
  0x91   :  { %v42_v16 = vmul.f32 0.015625, %v35_v14  ;;  %v43_v17 = vmul.f32 0.015625, %v38_v15  ;;  %v48_v18 = vmul.f32 %v319_v12, %v319_v12  ;;  %v49_v19 = vmul.f32 %v321_v13, %v321_v13  ;;  %v116_v14 = vld [vmem:[%s436_s4] sm:$0x3] }
  0x93   :  { %v327_v20 = vsub.f32 %v22_v2, %v42_v16  ;;  %v329_v21 = vsub.f32 %v23_v5, %v43_v17  ;;  %v52_v22 = vsel %vm26_vm0, %v48_v18, 0.0  ;;  %v55_v23 = vsel %vm26_vm0, %v49_v19, 0.0 }
  0x94   :  { %53 = vadd.xlane.f32.xlu0 %v52_v22 }
  0x95   :  { %v50_v24 = vmul.f32 %v327_v20, %v327_v20  ;;  %v51_v25 = vmul.f32 %v329_v21, %v329_v21 }
  0x97   :  { %v58_v26 = vsel %vm26_vm0, %v50_v24, 0.0  ;;  %v61_v27 = vsel %vm26_vm0, %v51_v25, 0.0 }
  0x98   :  { %56 = vadd.xlane.f32.xlu0 %v55_v23  ;;  %59 = vadd.xlane.f32.xlu1 %v58_v26 }
  0x9c   :  { %62 = vadd.xlane.f32.xlu1 %v61_v27 }
 0x11d   :  { %v54_v45 = vpop.xlane.xlu0 %53 }
 0x11e   :  { %v64_v46 = vmul.f32 0.015625, %v54_v45 }
 0x120   :  { %v68_v47 = vadd.f32 1e-05, %v64_v46 }
 0x121   :  { %v60_v48 = vpop.xlane.xlu1 %59  ;;  %v57_v49 = vpop.xlane.xlu0 %56 }
 0x122   :  { %264 = vrsqrt.f32 %v68_v47  ;;  %v66_v50 = vmul.f32 0.015625, %v60_v48  ;;  %v65_v51 = vmul.f32 0.015625, %v57_v49 }
 0x124   :  { %v70_v52 = vadd.f32 1e-05, %v66_v50  ;;  %v69_v53 = vadd.f32 1e-05, %v65_v51 }
 0x125   :  { %v63_v54 = vpop.xlane.xlu1 %62 }
 0x126   :  { %266 = vrsqrt.f32 %v70_v52  ;;  %v67_v55 = vmul.f32 0.015625, %v63_v54 }
 0x127   :  { %268 = vrsqrt.f32 %v69_v53 }
 0x128   :  { %v71_v56 = vadd.f32 1e-05, %v67_v55 }
 0x12a   :  { %270 = vrsqrt.f32 %v71_v56 }
 0x12f   :  { %v265_v57 = vpop.eup %264 }
 0x130   :  { %v76_v59 = vmul.f32 %v265_v57, %v319_v12  ;;  %v119_v12 = vshrl.u32 %v118_v11, 7 }
 0x132   :  { %v86_v61 = vmul.f32 %v241_v58, %v76_v59  ;;  %v124_v15 = vsub.s32 1, %v119_v12 }
 0x133   :  { %v267_v62 = vpop.eup %266 }
 0x134   :  { %v269_v63 = vpop.eup %268  ;;  %v96_v0 = vadd.f32 %v242_v60, %v86_v61  ;;  %v78_v1 = vmul.f32 %v267_v62, %v327_v20  ;;  %v125_v17 = vrot.slane %v116_v14, %v124_v15 }
 0x135   :  { %v77_v2 = vmul.f32 %v269_v63, %v321_v13  ;;  %v120_v13 = vsub.s32 0, %v119_v12 }
 0x136   :  { %243 = vmatmul.mubr.msk.f32.vlgmr.msra.gmra.mxu0 %vm26_vm0, %v96_v0  ;;  %v88_v3 = vmul.f32 %v241_v58, %v78_v1 }
 0x137   :  { %v271_v4 = vpop.eup %270  ;;  %210 = vmatprep.mubr.f32.mxu0 %v272_v44  ;;  %v87_v5 = vmul.f32 %v241_v58, %v77_v2  ;;  %v121_v16 = vrot.slane %v116_v14, %v120_v13 }
 0x138   :  { %v98_v6 = vadd.f32 %v242_v60, %v88_v3  ;;  %v79_v7 = vmul.f32 %v271_v4, %v329_v21 }
 0x139   :  { %v97_v8 = vadd.f32 %v242_v60, %v87_v5 }
 0x13a   :  { %245 = vmatmul.mubr.msk.f32.vlgmr.msra.gmra.mxu1 %vm26_vm0, %v98_v6  ;;  %v89_v9 = vmul.f32 %v241_v58, %v79_v7 }
 0x13b   :  { %244 = vmatmul.mubr.msk.f32.gmra.mxu0 %vm26_vm0, %v97_v8  ;;  %222 = vmatprep.mubr.f32.mxu1 %v272_v44 }
 0x13c   :  { %v99_v10 = vadd.f32 %v242_v60, %v89_v9 }
 0x13e   :  { %246 = vmatmul.mubr.msk.f32.gmra.mxu1 %vm26_vm0, %v99_v10 }
 0x1f6   :  { %v206_v18 = vpop.f32.mrf.mxu0 }
 0x1f7   :  { %v207_v19 = vadd.f32 %v206_v18, %v121_v16 }
 0x1f8   :  { %v208_v20 = vpop.f32.mrf.mxu0 }
 0x1f9   :  { %229 = vst [vmem:[%s437_s5] sm:$0xff] %v207_v19  ;;  %v209_v21 = vadd.f32 %v208_v20, %v125_v17 }
 0x1fa   :  { %v218_v22 = vpop.f32.mrf.mxu1 }
 0x1fb   :  { %230 = vst.msk [vmem:[%s437_s5 + $0x8] sm:$0xff] %vm26_vm0, %v209_v21  ;;  %v212_v23 = vpop.f32.mrf.mxu0  ;;  %v219_v24 = vadd.f32 %v218_v22, %v121_v16 }
 0x1fc   :  { %v213_v25 = vadd.f32 %v212_v23, %v121_v16  ;;  %v220_v26 = vpop.f32.mrf.mxu1 }
 0x1fd   :  { %233 = vst [vmem:[%s437_s5 + $0x20] sm:$0xff] %v219_v24  ;;  %v214_v27 = vpop.f32.mrf.mxu0  ;;  %v221_v28 = vadd.f32 %v220_v26, %v125_v17 }
 0x1fe   :  { %231 = vst [vmem:[%s437_s5 + $0x10] sm:$0xff] %v213_v25  ;;  %v215_v29 = vadd.f32 %v214_v27, %v125_v17  ;;  %v224_v30 = vpop.f32.mrf.mxu1 }
 0x1ff   :  { %234 = vst.msk [vmem:[%s437_s5 + $0x28] sm:$0xff] %vm26_vm0, %v221_v28  ;;  %v225_v31 = vadd.f32 %v224_v30, %v121_v16 }
 0x200   :  { %232 = vst.msk [vmem:[%s437_s5 + $0x18] sm:$0xff] %vm26_vm0, %v215_v29  ;;  %v226_v32 = vpop.f32.mrf.mxu1 }
 0x201   :  { %235 = vst [vmem:[%s437_s5 + $0x30] sm:$0xff] %v225_v31  ;;  %v227_v33 = vadd.f32 %v226_v32, %v125_v17 }
 0x203   :  { %236 = vst.msk [vmem:[%s437_s5 + $0x38] sm:$0xff] %vm26_vm0, %v227_v33 }

// kernel: encoder_rgbt_swin.46
= control target key start
LH: loop header
LB: loop body
LE: loop exit
PB: predicated region body
PF: predicated region fallthrough
CT: control target
= control target key end

     0   :  { %s3981_s13 = smov 96   ;;  %vm65_vm0 = vcmask 130048   ;;  %s3982_s15 = smov 64   ;;  %vm3372_vm1 = vcmask 261248   ;;  %s5080_s0 = inlined_call_operand.vmem [shape: f32[8,16,96], index: 0, kind: input, shape index: {}]   ;;  %s5081_s1 = inlined_call_operand.vmem [shape: f32[4,2,16,16], index: 1, kind: input, shape index: {}]   ;;  %s5082_s2 = inlined_call_operand.vmem [shape: f32[8,16,32], index: 2, kind: output, shape index: {}]  }
   0x1   :  { %v4005_v0 = vld [vmem:[%s5080_s0 + $0x8] sm:$0xff]  ;;  %v4010_v1 = vld [vmem:[%s5080_s0] sm:$0xff]  ;;  %v4019_v2 = vld [vmem:[%s5080_s0 + $0x10] sm:$0xff]  ;;  %s3984_s16 = smov 112   ;;  %s3985_s5 = smov 48  }
   0x2   :  { %63 = vrot.lane.b32.xlu0 %v4005_v0, %s3981_s13  ;;  %61 = vrot.lane.b32.xlu1 %v4010_v1, %s3981_s13  ;;  %v43_v3 = vmul.f32 0.25, %v4010_v1  ;;  %v4025_v4 = vld [vmem:[%s5080_s0 + $0x18] sm:$0xff]  ;;  %v45_v5 = vmul.f32 0.25, %v4019_v2  ;;  %v4037_v6 = vld [vmem:[%s5080_s0 + $0x28] sm:$0xff]  ;;  %v4153_v22 = vmul.f32 0.25, %v4005_v0 }
   0x3   :  { %v4042_v7 = vld [vmem:[%s5080_s0 + $0x38] sm:$0xff]  ;;  %v4051_v8 = vld [vmem:[%s5080_s0 + $0x20] sm:$0xff]  ;;  %v4056_v9 = vld [vmem:[%s5080_s0 + $0x30] sm:$0xff]  ;;  %v4165_v26 = vmul.f32 0.25, %v4025_v4  ;;  %v4179_v30 = vmul.f32 0.25, %v4037_v6 }
   0x4   :  { %3621 = vmatprep.mubr.msk.f32.mxu0 %vm65_vm0, %v43_v3  ;;  %3628 = vmatprep.mubr.msk.f32.mxu1 %vm65_vm0, %v45_v5  ;;  %v4065_v10 = vld [vmem:[%s5080_s0 + $0x48] sm:$0xff]  ;;  %v4070_v11 = vld [vmem:[%s5080_s0 + $0x58] sm:$0xff]  ;;  %v4079_v12 = vld [vmem:[%s5080_s0 + $0x40] sm:$0xff]  ;;  %v4159_v23 = vmul.f32 0.25, %v4051_v8  ;;  %v4173_v27 = vmul.f32 0.25, %v4056_v9  ;;  %v4193_v34 = vmul.f32 0.25, %v4042_v7 }
   0x5   :  { %v4084_v13 = vld [vmem:[%s5080_s0 + $0x50] sm:$0xff]  ;;  %v4093_v14 = vld [vmem:[%s5080_s0 + $0x68] sm:$0xff]  ;;  %v4098_v15 = vld [vmem:[%s5080_s0 + $0x78] sm:$0xff]  ;;  %v4187_v31 = vmul.f32 0.25, %v4079_v12  ;;  %v4207_v38 = vmul.f32 0.25, %v4065_v10  ;;  %v4221_v42 = vmul.f32 0.25, %v4070_v11 }
   0x6   :  { %155 = vrot.lane.b32.xlu0 %v4025_v4, %s3981_s13  ;;  %153 = vrot.lane.b32.xlu1 %v4019_v2, %s3981_s13  ;;  %v4107_v16 = vld [vmem:[%s5080_s0 + $0x60] sm:$0xff]  ;;  %v4112_v17 = vld [vmem:[%s5080_s0 + $0x70] sm:$0xff]  ;;  %v4201_v35 = vmul.f32 0.25, %v4084_v13  ;;  %v4235_v46 = vmul.f32 0.25, %v4093_v14  ;;  %v4245_v47 = vmul.f32 0.25, %v4098_v15 }
   0x7   :  { %v4215_v39 = vmul.f32 0.25, %v4107_v16  ;;  %v4229_v43 = vmul.f32 0.25, %v4112_v17  ;;  %v28_v54 = vld [vmem:[%s5081_s1 + $0x8] sm:$0xff]  ;;  %v27_v59 = vld [vmem:[%s5081_s1] sm:$0xff] }
   0x8   :  { %v32_v57 = vld [vmem:[%s5081_s1 + $0x28] sm:$0xff]  ;;  %v31_v62 = vld [vmem:[%s5081_s1 + $0x20] sm:$0xff] }
   0xa   :  { %246 = vrot.lane.b32.xlu0 %v4037_v6, %s3981_s13  ;;  %337 = vrot.lane.b32.xlu1 %v4042_v7, %s3981_s13 }
   0xe   :  { %244 = vrot.lane.b32.xlu0 %v4051_v8, %s3981_s13  ;;  %335 = vrot.lane.b32.xlu1 %v4056_v9, %s3981_s13 }
  0x12   :  { %428 = vrot.lane.b32.xlu0 %v4065_v10, %s3981_s13  ;;  %519 = vrot.lane.b32.xlu1 %v4070_v11, %s3981_s13 }
  0x16   :  { %426 = vrot.lane.b32.xlu0 %v4079_v12, %s3981_s13  ;;  %517 = vrot.lane.b32.xlu1 %v4084_v13, %s3981_s13 }
  0x1a   :  { %610 = vrot.lane.b32.xlu0 %v4093_v14, %s3981_s13  ;;  %701 = vrot.lane.b32.xlu1 %v4098_v15, %s3981_s13 }
  0x1e   :  { %608 = vrot.lane.b32.xlu0 %v4107_v16, %s3981_s13  ;;  %699 = vrot.lane.b32.xlu1 %v4112_v17, %s3981_s13  ;;  %s3983_s13 = smov 80  }
  0x22   :  { %982 = vrot.lane.b32.xlu1 %v4005_v0, %s3982_s15  ;;  %1069 = vrot.lane.b32.xlu0 %v4025_v4, %s3982_s15 }
  0x26   :  { %980 = vrot.lane.b32.xlu1 %v4010_v1, %s3982_s15  ;;  %1156 = vrot.lane.b32.xlu0 %v4037_v6, %s3982_s15 }
  0x2a   :  { %1067 = vrot.lane.b32.xlu1 %v4019_v2, %s3982_s15  ;;  %1154 = vrot.lane.b32.xlu0 %v4051_v8, %s3982_s15 }
  0x2e   :  { %1243 = vrot.lane.b32.xlu1 %v4042_v7, %s3982_s15  ;;  %1330 = vrot.lane.b32.xlu0 %v4065_v10, %s3982_s15 }
  0x32   :  { %1241 = vrot.lane.b32.xlu1 %v4056_v9, %s3982_s15  ;;  %1328 = vrot.lane.b32.xlu0 %v4079_v12, %s3982_s15 }
  0x36   :  { %1417 = vrot.lane.b32.xlu1 %v4070_v11, %s3982_s15  ;;  %1504 = vrot.lane.b32.xlu0 %v4093_v14, %s3982_s15 }
  0x3a   :  { %1415 = vrot.lane.b32.xlu1 %v4084_v13, %s3982_s15  ;;  %1502 = vrot.lane.b32.xlu0 %v4107_v16, %s3982_s15 }
  0x3e   :  { %1591 = vrot.lane.b32.xlu1 %v4098_v15, %s3982_s15  ;;  %1698 = vrot.lane.b32.xlu0 %v4005_v0, %s3983_s13 }
  0x42   :  { %1589 = vrot.lane.b32.xlu1 %v4112_v17, %s3982_s15  ;;  %1696 = vrot.lane.b32.xlu0 %v4010_v1, %s3983_s13 }
  0x46   :  { %1789 = vrot.lane.b32.xlu1 %v4025_v4, %s3983_s13  ;;  %1692 = vrot.lane.b32.xlu0 %v43_v3, %s3984_s16 }
  0x4a   :  { %1787 = vrot.lane.b32.xlu1 %v4019_v2, %s3983_s13  ;;  %1880 = vrot.lane.b32.xlu0 %v4037_v6, %s3983_s13 }
  0x4e   :  { %1783 = vrot.lane.b32.xlu1 %v45_v5, %s3984_s16  ;;  %v36_v5 = vld [vmem:[%s5081_s1 + $0x48] sm:$0xff] }
  0x52   :  { %1971 = vrot.lane.b32.xlu1 %v4042_v7, %s3983_s13 }
  0x74   :  { %v64_v18 = vpop.permute.xlu0 %63  ;;  %v62_v19 = vpop.permute.xlu1 %61 }
  0x75   :  { %3617 = vmatprep.subr.msk.mxu0 %vm65_vm0, %v64_v18 }
  0x76   :  { %3618 = vmatpush3.xpose.msk.msra.mxu0 %vm65_vm0, %v64_v18 }
  0x77   :  { %3619 = vmatprep.subr.msk.mxu0 %vm65_vm0, %v62_v19 }
  0x78   :  { %v156_v20 = vpop.permute.xlu0 %155  ;;  %v154_v21 = vpop.permute.xlu1 %153 }
  0x79   :  { %3624 = vmatprep.subr.msk.mxu1 %vm65_vm0, %v156_v20 }
  0x7a   :  { %3620 = vmatpush3.xpose.msk.msra.mxu0 %vm65_vm0, %v62_v19  ;;  %3625 = vmatpush3.xpose.msk.msra.mxu1 %vm65_vm0, %v156_v20 }
  0x7b   :  { %3626 = vmatprep.subr.msk.mxu1 %vm65_vm0, %v154_v21 }
  0x7c   :  { %v247_v24 = vpop.permute.xlu0 %246  ;;  %v338_v25 = vpop.permute.xlu1 %337 }
  0x7d   :  { %3622 = vmatmul.mubr.msk.f32.vlgmr.msra.gmra.mxu0 %vm65_vm0, %v4153_v22  ;;  %3631 = vmatprep.subr.msk.mxu0 %vm65_vm0, %v247_v24 }
  0x7e   :  { %3627 = vmatpush3.xpose.msk.msra.mxu1 %vm65_vm0, %v154_v21  ;;  %3632 = vmatpush3.xpose.msk.msra.mxu0 %vm65_vm0, %v247_v24 }
  0x7f   :  { %3638 = vmatprep.subr.msk.mxu1 %vm65_vm0, %v338_v25  ;;  %3635 = vmatprep.mubr.msk.f32.mxu0 %vm65_vm0, %v4159_v23 }
  0x80   :  { %v245_v28 = vpop.permute.xlu0 %244  ;;  %v336_v29 = vpop.permute.xlu1 %335 }
  0x81   :  { %3629 = vmatmul.mubr.msk.f32.vlgmr.msra.gmra.mxu1 %vm65_vm0, %v4165_v26  ;;  %3633 = vmatprep.subr.msk.mxu0 %vm65_vm0, %v245_v28 }
  0x82   :  { %3639 = vmatpush3.xpose.msk.msra.mxu1 %vm65_vm0, %v338_v25  ;;  %3634 = vmatpush3.xpose.msk.msra.mxu0 %vm65_vm0, %v245_v28  ;;  %v40_v28 = vld [vmem:[%s5081_s1 + $0x68] sm:$0xff] }
  0x83   :  { %3640 = vmatprep.subr.msk.mxu1 %vm65_vm0, %v336_v29  ;;  %3642 = vmatprep.mubr.msk.f32.mxu1 %vm65_vm0, %v4173_v27 }
  0x84   :  { %v429_v32 = vpop.permute.xlu0 %428  ;;  %v520_v33 = vpop.permute.xlu1 %519 }
  0x85   :  { %3636 = vmatmul.mubr.msk.f32.vlgmr.msra.gmra.mxu0 %vm65_vm0, %v4179_v30  ;;  %3645 = vmatprep.subr.msk.mxu0 %vm65_vm0, %v429_v32 }
  0x86   :  { %3641 = vmatpush3.xpose.msk.msra.mxu1 %vm65_vm0, %v336_v29  ;;  %3646 = vmatpush3.xpose.msk.msra.mxu0 %vm65_vm0, %v429_v32  ;;  %v35_v29 = vld [vmem:[%s5081_s1 + $0x40] sm:$0xff] }
  0x87   :  { %3652 = vmatprep.subr.msk.mxu1 %vm65_vm0, %v520_v33  ;;  %3649 = vmatprep.mubr.msk.f32.mxu0 %vm65_vm0, %v4187_v31 }
  0x88   :  { %v427_v36 = vpop.permute.xlu0 %426  ;;  %v518_v37 = vpop.permute.xlu1 %517 }
  0x89   :  { %3643 = vmatmul.mubr.msk.f32.vlgmr.msra.gmra.mxu1 %vm65_vm0, %v4193_v34  ;;  %3647 = vmatprep.subr.msk.mxu0 %vm65_vm0, %v427_v36 }
  0x8a   :  { %3653 = vmatpush3.xpose.msk.msra.mxu1 %vm65_vm0, %v520_v33  ;;  %3648 = vmatpush3.xpose.msk.msra.mxu0 %vm65_vm0, %v427_v36 }
  0x8b   :  { %3654 = vmatprep.subr.msk.mxu1 %vm65_vm0, %v518_v37  ;;  %3656 = vmatprep.mubr.msk.f32.mxu1 %vm65_vm0, %v4201_v35 }
  0x8c   :  { %v611_v40 = vpop.permute.xlu0 %610  ;;  %v702_v41 = vpop.permute.xlu1 %701 }
  0x8d   :  { %3650 = vmatmul.mubr.msk.f32.vlgmr.msra.gmra.mxu0 %vm65_vm0, %v4207_v38  ;;  %3659 = vmatprep.subr.msk.mxu0 %vm65_vm0, %v611_v40 }
  0x8e   :  { %3655 = vmatpush3.xpose.msk.msra.mxu1 %vm65_vm0, %v518_v37  ;;  %3660 = vmatpush3.xpose.msk.msra.mxu0 %vm65_vm0, %v611_v40  ;;  %v39_v40 = vld [vmem:[%s5081_s1 + $0x60] sm:$0xff] }
  0x8f   :  { %3666 = vmatprep.subr.msk.mxu1 %vm65_vm0, %v702_v41  ;;  %3663 = vmatprep.mubr.msk.f32.mxu0 %vm65_vm0, %v4215_v39 }
  0x90   :  { %v609_v44 = vpop.permute.xlu0 %608  ;;  %v700_v45 = vpop.permute.xlu1 %699 }
  0x91   :  { %3657 = vmatmul.mubr.msk.f32.vlgmr.msra.gmra.mxu1 %vm65_vm0, %v4221_v42  ;;  %3661 = vmatprep.subr.msk.mxu0 %vm65_vm0, %v609_v44 }
  0x92   :  { %3667 = vmatpush3.xpose.msk.msra.mxu1 %vm65_vm0, %v702_v41  ;;  %3662 = vmatpush3.xpose.msk.msra.mxu0 %vm65_vm0, %v609_v44 }
  0x93   :  { %3668 = vmatprep.subr.msk.mxu1 %vm65_vm0, %v700_v45  ;;  %3670 = vmatprep.mubr.msk.f32.mxu1 %vm65_vm0, %v4229_v43 }
  0x94   :  { %v983_v48 = vpop.permute.xlu1 %982  ;;  %v1070_v49 = vpop.permute.xlu0 %1069 }
  0x95   :  { %3664 = vmatmul.mubr.msk.f32.vlgmr.msra.gmra.mxu0 %vm65_vm0, %v4235_v46  ;;  %3673 = vmatprep.subr.mxu0 %v983_v48 }
  0x96   :  { %3669 = vmatpush3.xpose.msk.msra.mxu1 %vm65_vm0, %v700_v45  ;;  %3674 = vmatpush3.msra.mxu0 %v983_v48 }
  0x97   :  { %3680 = vmatprep.subr.mxu1 %v1070_v49 }
  0x98   :  { %v981_v50 = vpop.permute.xlu1 %980  ;;  %v4250_v51 = vpop.permute.xlu0 %1156 }
  0x99   :  { %3671 = vmatmul.mubr.msk.f32.vlgmr.msra.gmra.mxu1 %vm65_vm0, %v4245_v47  ;;  %3675 = vmatprep.subr.mxu0 %v981_v50 }
  0x9a   :  { %3681 = vmatpush3.msra.mxu1 %v1070_v49  ;;  %3676 = vmatpush3.msra.mxu0 %v981_v50 }
  0x9b   :  { %3687 = vmatprep.subr.mxu0 %v4250_v51 }
  0x9c   :  { %v1068_v52 = vpop.permute.xlu1 %1067 }
  0x9d   :  { %3682 = vmatprep.subr.mxu1 %v1068_v52 }
  0x9e   :  { %3683 = vmatpush3.msra.mxu1 %v1068_v52 }
  0xa0   :  { %v4253_v53 = vpop.permute.xlu1 %1243 }
  0xa1   :  { %3694 = vmatprep.subr.mxu1 %v4253_v53 }
 0x13d   :  { %v3623_v55 = vpop.f32.mrf.mxu0 }
 0x13e   :  { %v4259_v56 = vadd.f32 %v3623_v55, %v28_v54 }
 0x13f   :  { %v142_v60 = vpop.f32.mrf.mxu0 }
 0x140   :  { %v807_v58 = vsel %vm65_vm0, %v4259_v56, -inf  ;;  %v4277_v18 = vadd.f32 %v142_v60, %v27_v59 }
 0x141   :  { %v3630_v61 = vpop.f32.mrf.mxu1  ;;  %808 = vmax.xlane.f32.xlu0 %v807_v58 }
 0x142   :  { %v4272_v63 = vadd.f32 %v3630_v61, %v32_v57  ;;  %v804_v33 = vsel %vm65_vm0, %v4277_v18, -inf }
 0x143   :  { %v233_v3 = vpop.f32.mrf.mxu1 }
 0x144   :  { %v4279_v19 = vadd.f32 %v233_v3, %v31_v62  ;;  %v813_v20 = vsel %vm65_vm0, %v4272_v63, -inf }
 0x145   :  { %814 = vmax.xlane.f32.xlu0 %v813_v20  ;;  %v3637_v21 = vpop.f32.mrf.mxu0 }
 0x146   :  { %v810_v24 = vsel %vm65_vm0, %v4279_v19, -inf  ;;  %v4285_v25 = vadd.f32 %v3637_v21, %v36_v5 }
 0x147   :  { %811 = vmax.xlane.f32.xlu1 %v810_v24  ;;  %v324_v32 = vpop.f32.mrf.mxu0 }
 0x148   :  { %v819_v36 = vsel %vm65_vm0, %v4285_v25, -inf  ;;  %v4302_v44 = vadd.f32 %v324_v32, %v35_v29 }
 0x149   :  { %v3644_v37 = vpop.f32.mrf.mxu1  ;;  %805 = vmax.xlane.f32.xlu0 %v804_v33 }
 0x14a   :  { %v4300_v41 = vadd.f32 %v3644_v37, %v40_v28  ;;  %v816_v52 = vsel %vm65_vm0, %v4302_v44, -inf }
 0x14b   :  { %820 = vmax.xlane.f32.xlu1 %v819_v36  ;;  %v415_v45 = vpop.f32.mrf.mxu1 }
 0x14c   :  { %v4304_v48 = vadd.f32 %v415_v45, %v39_v40  ;;  %v825_v49 = vsel %vm65_vm0, %v4300_v41, -inf }
 0x14d   :  { %826 = vmax.xlane.f32.xlu0 %v825_v49  ;;  %v3651_v50 = vpop.f32.mrf.mxu0 }
 0x14e   :  { %v4310_v55 = vadd.f32 %v3651_v50, %v28_v54  ;;  %v822_v58 = vsel %vm65_vm0, %v4304_v48, -inf }
 0x14f   :  { %817 = vmax.xlane.f32.xlu1 %v816_v52  ;;  %v506_v60 = vpop.f32.mrf.mxu0 }
 0x150   :  { %v831_v61 = vsel %vm65_vm0, %v4310_v55, -inf  ;;  %v4318_v21 = vadd.f32 %v506_v60, %v27_v59 }
 0x151   :  { %v3658_v3 = vpop.f32.mrf.mxu1  ;;  %823 = vmax.xlane.f32.xlu0 %v822_v58 }
 0x152   :  { %v4316_v20 = vadd.f32 %v3658_v3, %v32_v57  ;;  %v828_v36 = vsel %vm65_vm0, %v4318_v21, -inf }
 0x153   :  { %832 = vmax.xlane.f32.xlu1 %v831_v61  ;;  %v597_v24 = vpop.f32.mrf.mxu1 }
 0x154   :  { %v4320_v32 = vadd.f32 %v597_v24, %v31_v62  ;;  %v837_v54 = vsel %vm65_vm0, %v4316_v20, -inf }
 0x155   :  { %838 = vmax.xlane.f32.xlu0 %v837_v54  ;;  %v3665_v33 = vpop.f32.mrf.mxu0 }
 0x156   :  { %v4326_v37 = vadd.f32 %v3665_v33, %v36_v5  ;;  %v834_v57 = vsel %vm65_vm0, %v4320_v32, -inf }
 0x157   :  { %829 = vmax.xlane.f32.xlu1 %v828_v36  ;;  %v688_v59 = vpop.f32.mrf.mxu0 }
 0x158   :  { %v843_v45 = vsel %vm65_vm0, %v4326_v37, -inf  ;;  %v4334_v50 = vadd.f32 %v688_v59, %v35_v29  ;;  %v4358_v29 = vpop.permute.xlu1 %1241 }
 0x159   :  { %v3672_v62 = vpop.f32.mrf.mxu1  ;;  %835 = vmax.xlane.f32.xlu0 %v834_v57 }
 0x15a   :  { %v4332_v49 = vadd.f32 %v3672_v62, %v40_v28  ;;  %v840_v60 = vsel %vm65_vm0, %v4334_v50, -inf  ;;  %v4356_v28 = vpop.permute.xlu0 %1154 }
 0x15b   :  { %844 = vmax.xlane.f32.xlu1 %v843_v45  ;;  %v779_v52 = vpop.f32.mrf.mxu1 }
 0x15c   :  { %v4336_v58 = vadd.f32 %v779_v52, %v39_v40  ;;  %v849_v5 = vsel %vm65_vm0, %v4332_v49, -inf  ;;  %v4362_v40 = vpop.permute.xlu1 %1417 }
 0x15d   :  { %850 = vmax.xlane.f32.xlu0 %v849_v5 }
 0x15e   :  { %v846_v61 = vsel %vm65_vm0, %v4336_v58, -inf }
 0x15f   :  { %841 = vmax.xlane.f32.xlu1 %v840_v60 }
 0x161   :  { %847 = vmax.xlane.f32.xlu0 %v846_v61 }
 0x170   :  { %1785 = vrot.lane.b32.xlu1 %v4165_v26, %s3984_s16  ;;  %v4360_v26 = vpop.permute.xlu0 %1330 }
 0x174   :  { %1969 = vrot.lane.b32.xlu1 %v4056_v9, %s3983_s13  ;;  %v4364_v3 = vpop.permute.xlu0 %1328 }
 0x177   :  { %1694 = vrot.lane.b32.xlu0 %v4153_v22, %s3984_s16  ;;  %v4366_v22 = vpop.permute.xlu1 %1415 }
 0x178   :  { %1965 = vrot.lane.b32.xlu1 %v4173_v27, %s3984_s16  ;;  %v4368_v24 = vpop.permute.xlu0 %1504 }
 0x179   :  { %5092 = vst [vmem:[#allocation2_spill] sm:$0xff] %v4368_v24 }
 0x17b   :  { %1878 = vrot.lane.b32.xlu0 %v4051_v8, %s3983_s13  ;;  %v4370_v27 = vpop.permute.xlu1 %1591 }
 0x17c   :  { %5093 = vst [vmem:[#allocation3_spill] sm:$0xff] %v4370_v27  ;;  %v4372_v54 = vpop.permute.xlu0 %1502 }
 0x17d   :  { %5094 = vst [vmem:[#allocation4_spill] sm:$0xff] %v4372_v54 }
 0x17f   :  { %1874 = vrot.lane.b32.xlu0 %v4159_v23, %s3984_s16  ;;  %v4374_v33 = vpop.permute.xlu1 %1589 }
 0x180   :  { %5095 = vst [vmem:[#allocation5_spill] sm:$0xff] %v4374_v33  ;;  %v4376_v23 = vpop.permute.xlu0 %1698 }
 0x181   :  { %5096 = vst [vmem:[#allocation6_spill] sm:$0xff] %v4376_v23 }
 0x183   :  { %v4378_v36 = vpop.permute.xlu1 %1789 }
 0x184   :  { %5097 = vst [vmem:[#allocation7_spill] sm:$0xff] %v4378_v36  ;;  %v4380_v57 = vpop.permute.xlu0 %1696 }
 0x185   :  { %5098 = vst [vmem:[#allocation8_spill] sm:$0xff] %v4380_v57 }
 0x187   :  { %v4382_v59 = vpop.permute.xlu1 %1787 }
 0x188   :  { %5099 = vst [vmem:[#allocation9_spill] sm:$0xff] %v4382_v59  ;;  %v4384_v45 = vpop.permute.xlu0 %1692 }
 0x189   :  { %5100 = vst [vmem:[#allocation10_spill] sm:$0xff] %v4384_v45 }
 0x18b   :  { %v4386_v62 = vpop.permute.xlu1 %1783 }
 0x18c   :  { %5101 = vst [vmem:[#allocation11_spill] sm:$0xff] %v4386_v62  ;;  %v4388_v52 = vpop.permute.xlu0 %1880 }
 0x18d   :  { %5102 = vst [vmem:[#allocation12_spill] sm:$0xff] %v4388_v52 }
 0x18f   :  { %v4391_v61 = vpop.permute.xlu1 %1971 }
 0x1ca   :  { %v809_v5 = vpop.xlane.xlu0 %808 }
 0x1cb   :  { %v853_v60 = vsub.f32 %v4259_v56, %v809_v5 }
 0x1cd   :  { %v870_v54 = vmul.f32 1.442695, %v853_v60 }
 0x1ce   :  { %v815_v33 = vpop.xlane.xlu0 %814 }
 0x1cf   :  { %3847 = vpow2.f32 %v870_v54  ;;  %v855_v23 = vsub.f32 %v4272_v63, %v815_v33 }
 0x1d0   :  { %v812_v36 = vpop.xlane.xlu1 %811 }
 0x1d1   :  { %v874_v57 = vmul.f32 1.442695, %v855_v23  ;;  %v854_v59 = vsub.f32 %v4279_v19, %v812_v36 }
 0x1d2   :  { %v806_v24 = vpop.xlane.xlu0 %805 }
 0x1d3   :  { %3849 = vpow2.f32 %v874_v57  ;;  %v872_v45 = vmul.f32 1.442695, %v854_v59  ;;  %v852_v62 = vsub.f32 %v4277_v18, %v806_v24 }
 0x1d4   :  { %v821_v52 = vpop.xlane.xlu1 %820 }
 0x1d5   :  { %3851 = vpow2.f32 %v872_v45  ;;  %v868_v27 = vmul.f32 1.442695, %v852_v62  ;;  %v857_v56 = vsub.f32 %v4285_v25, %v821_v52 }
 0x1d6   :  { %v827_v5 = vpop.xlane.xlu0 %826 }
 0x1d7   :  { %3853 = vpow2.f32 %v868_v27  ;;  %v878_v60 = vmul.f32 1.442695, %v857_v56  ;;  %v859_v54 = vsub.f32 %v4300_v41, %v827_v5 }
 0x1d8   :  { %v818_v63 = vpop.xlane.xlu1 %817 }
 0x1d9   :  { %3855 = vpow2.f32 %v878_v60  ;;  %v882_v33 = vmul.f32 1.442695, %v859_v54  ;;  %v856_v19 = vsub.f32 %v4302_v44, %v818_v63 }
 0x1da   :  { %v824_v23 = vpop.xlane.xlu0 %823 }
 0x1db   :  { %3857 = vpow2.f32 %v882_v33  ;;  %v876_v36 = vmul.f32 1.442695, %v856_v19  ;;  %v858_v18 = vsub.f32 %v4304_v48, %v824_v23 }
 0x1dc   :  { %v4400_v24 = vpop.eup %3847  ;;  %v833_v57 = vpop.xlane.xlu1 %832 }
 0x1dd   :  { %3859 = vpow2.f32 %v876_v36  ;;  %v880_v25 = vmul.f32 1.442695, %v858_v18  ;;  %v861_v27 = vsub.f32 %v4310_v55, %v833_v57  ;;  %v903_v41 = vsel %vm65_vm0, %v4400_v24, 0.0 }
 0x1de   :  { %v839_v59 = vpop.xlane.xlu0 %838  ;;  %904 = vadd.xlane.f32.xlu1 %v903_v41 }
 0x1df   :  { %3861 = vpow2.f32 %v880_v25  ;;  %v886_v45 = vmul.f32 1.442695, %v861_v27  ;;  %v863_v44 = vsub.f32 %v4316_v20, %v839_v59 }
 0x1e0   :  { %v4406_v62 = vpop.eup %3849  ;;  %v830_v52 = vpop.xlane.xlu1 %829 }
 0x1e1   :  { %3863 = vpow2.f32 %v886_v45  ;;  %v890_v48 = vmul.f32 1.442695, %v863_v44  ;;  %v860_v56 = vsub.f32 %v4318_v21, %v830_v52  ;;  %v909_v5 = vsel %vm65_vm0, %v4406_v62, 0.0 }
 0x1e2   :  { %v4411_v55 = vpop.eup %3851  ;;  %910 = vadd.xlane.f32.xlu0 %v909_v5  ;;  %v836_v60 = vpop.xlane.xlu0 %835 }
 0x1e3   :  { %3865 = vpow2.f32 %v890_v48  ;;  %v884_v54 = vmul.f32 1.442695, %v860_v56  ;;  %v862_v63 = vsub.f32 %v4320_v32, %v836_v60  ;;  %v906_v19 = vsel %vm65_vm0, %v4411_v55, 0.0 }
 0x1e4   :  { %v4414_v33 = vpop.eup %3853  ;;  %v845_v20 = vpop.xlane.xlu1 %844 }
 0x1e5   :  { %3867 = vpow2.f32 %v884_v54  ;;  %v888_v23 = vmul.f32 1.442695, %v862_v63  ;;  %v865_v21 = vsub.f32 %v4326_v37, %v845_v20  ;;  %v900_v36 = vsel %vm65_vm0, %v4414_v33, 0.0 }
 0x1e6   :  { %v4421_v18 = vpop.eup %3855  ;;  %907 = vadd.xlane.f32.xlu0 %v906_v19  ;;  %v851_v57 = vpop.xlane.xlu0 %850  ;;  %901 = vadd.xlane.f32.xlu1 %v900_v36 }
 0x1e7   :  { %3869 = vpow2.f32 %v888_v23  ;;  %v894_v32 = vmul.f32 1.442695, %v865_v21  ;;  %v867_v25 = vsub.f32 %v4332_v49, %v851_v57  ;;  %v915_v59 = vsel %vm65_vm0, %v4421_v18, 0.0 }
 0x1e8   :  { %v4424_v27 = vpop.eup %3857  ;;  %v842_v41 = vpop.xlane.xlu1 %841 }
 0x1e9   :  { %3871 = vpow2.f32 %v894_v32  ;;  %v898_v37 = vmul.f32 1.442695, %v867_v25  ;;  %v864_v45 = vsub.f32 %v4334_v50, %v842_v41  ;;  %v921_v44 = vsel %vm65_vm0, %v4424_v27, 0.0 }
 0x1ea   :  { %v4431_v52 = vpop.eup %3859  ;;  %922 = vadd.xlane.f32.xlu0 %v921_v44  ;;  %v848_v48 = vpop.xlane.xlu0 %847  ;;  %916 = vadd.xlane.f32.xlu1 %v915_v59 }
 0x1eb   :  { %3873 = vpow2.f32 %v898_v37  ;;  %v892_v49 = vmul.f32 1.442695, %v864_v45  ;;  %v866_v56 = vsub.f32 %v4336_v58, %v848_v48  ;;  %v912_v50 = vsel %vm65_vm0, %v4431_v52, 0.0 }
 0x1ec   :  { %v4434_v5 = vpop.eup %3861 }
 0x1ed   :  { %3875 = vpow2.f32 %v892_v49  ;;  %v896_v60 = vmul.f32 1.442695, %v866_v56  ;;  %v918_v54 = vsel %vm65_vm0, %v4434_v5, 0.0 }
 0x1ee   :  { %v4440_v63 = vpop.eup %3863  ;;  %919 = vadd.xlane.f32.xlu0 %v918_v54  ;;  %913 = vadd.xlane.f32.xlu1 %v912_v50 }
 0x1ef   :  { %3877 = vpow2.f32 %v896_v60  ;;  %v927_v19 = vsel %vm65_vm0, %v4440_v63, 0.0 }
 0x1f0   :  { %v4442_v20 = vpop.eup %3865 }
 0x1f1   :  { %v933_v58 = vsel %vm65_vm0, %v4442_v20, 0.0 }
 0x1f2   :  { %v4448_v23 = vpop.eup %3867  ;;  %934 = vadd.xlane.f32.xlu0 %v933_v58  ;;  %928 = vadd.xlane.f32.xlu1 %v927_v19  ;;  %v5103_v58 = vld [vmem:[#allocation3_spill] sm:$0xff]  ;;  %v5104_v19 = vld [vmem:[#allocation2_spill] sm:$0xff] }
 0x1f3   :  { %v924_v57 = vsel %vm65_vm0, %v4448_v23, 0.0 }
 0x1f4   :  { %v4450_v21 = vpop.eup %3869 }
 0x1f5   :  { %v930_v36 = vsel %vm65_vm0, %v4450_v21, 0.0 }
 0x1f6   :  { %v4456_v32 = vpop.eup %3871  ;;  %931 = vadd.xlane.f32.xlu0 %v930_v36  ;;  %925 = vadd.xlane.f32.xlu1 %v924_v57 }
 0x1f7   :  { %v939_v59 = vsel %vm65_vm0, %v4456_v32, 0.0 }
 0x1f8   :  { %v4458_v25 = vpop.eup %3873 }
 0x1f9   :  { %v945_v41 = vsel %vm65_vm0, %v4458_v25, 0.0 }
 0x1fa   :  { %v4464_v37 = vpop.eup %3875  ;;  %946 = vadd.xlane.f32.xlu0 %v945_v41  ;;  %940 = vadd.xlane.f32.xlu1 %v939_v59 }
 0x1fb   :  { %v936_v48 = vsel %vm65_vm0, %v4464_v37, 0.0 }
 0x1fc   :  { %v4466_v45 = vpop.eup %3877 }
 0x1fd   :  { %v942_v44 = vsel %vm65_vm0, %v4466_v45, 0.0 }
 0x1fe   :  { %943 = vadd.xlane.f32.xlu0 %v942_v44  ;;  %937 = vadd.xlane.f32.xlu1 %v936_v48  ;;  %v5106_v48 = vld [vmem:[#allocation4_spill] sm:$0xff] }
 0x20f   :  { %2153 = vrot.lane.b32.xlu1 %v4070_v11, %s3983_s13 }
 0x213   :  { %1967 = vrot.lane.b32.xlu1 %v4193_v34, %s3984_s16 }
 0x214   :  { %2062 = vrot.lane.b32.xlu0 %v4065_v10, %s3983_s13 }
 0x217   :  { %2151 = vrot.lane.b32.xlu1 %v4084_v13, %s3983_s13 }
 0x218   :  { %1876 = vrot.lane.b32.xlu0 %v4179_v30, %s3984_s16 }
 0x21b   :  { %2147 = vrot.lane.b32.xlu1 %v4201_v35, %s3984_s16 }
 0x21c   :  { %2060 = vrot.lane.b32.xlu0 %v4079_v12, %s3983_s13 }
 0x21f   :  { %2335 = vrot.lane.b32.xlu1 %v4098_v15, %s3983_s13 }
 0x220   :  { %2056 = vrot.lane.b32.xlu0 %v4187_v31, %s3984_s16 }
 0x223   :  { %2149 = vrot.lane.b32.xlu1 %v4221_v42, %s3984_s16 }
 0x224   :  { %2244 = vrot.lane.b32.xlu0 %v4093_v14, %s3983_s13 }
 0x227   :  { %2333 = vrot.lane.b32.xlu1 %v4112_v17, %s3983_s13 }
 0x228   :  { %2058 = vrot.lane.b32.xlu0 %v4207_v38, %s3984_s16 }
 0x22b   :  { %2329 = vrot.lane.b32.xlu1 %v4229_v43, %s3984_s16 }
 0x22c   :  { %2242 = vrot.lane.b32.xlu0 %v4107_v16, %s3983_s13 }
 0x22f   :  { %2331 = vrot.lane.b32.xlu1 %v4245_v47, %s3984_s16 }
 0x230   :  { %2238 = vrot.lane.b32.xlu0 %v4215_v39, %s3984_s16 }
 0x233   :  { %2614 = vrot.lane.b32.xlu1 %v4005_v0, %s3985_s5  ;;  %v4528_v0 = vpop.permute.xlu1 %1785 }
 0x234   :  { %2240 = vrot.lane.b32.xlu0 %v4235_v46, %s3984_s16 }
 0x237   :  { %2612 = vrot.lane.b32.xlu1 %v4010_v1, %s3985_s5  ;;  %v4530_v1 = vpop.permute.xlu0 %1694 }
 0x238   :  { %2701 = vrot.lane.b32.xlu0 %v4025_v4, %s3985_s5 }
 0x23b   :  { %2699 = vrot.lane.b32.xlu1 %v4019_v2, %s3985_s5  ;;  %v4532_v2 = vpop.permute.xlu1 %1969  ;;  %v4534_v4 = vpop.permute.xlu0 %1878 }
 0x23c   :  { %2788 = vrot.lane.b32.xlu0 %v4037_v6, %s3985_s5 }
 0x23f   :  { %2875 = vrot.lane.b32.xlu1 %v4042_v7, %s3985_s5  ;;  %v4536_v6 = vpop.permute.xlu1 %1965  ;;  %v4538_v7 = vpop.permute.xlu0 %1874 }
 0x240   :  { %2786 = vrot.lane.b32.xlu0 %v4051_v8, %s3985_s5 }
 0x243   :  { %2873 = vrot.lane.b32.xlu1 %v4056_v9, %s3985_s5 }
 0x244   :  { %2962 = vrot.lane.b32.xlu0 %v4065_v10, %s3985_s5 }
 0x247   :  { %3049 = vrot.lane.b32.xlu1 %v4070_v11, %s3985_s5 }
 0x267   :  { %v905_v8 = vpop.xlane.xlu1 %904 }
 0x268   :  { %3879 = vrcp.f32 %v905_v8  ;;  %v5107_v8 = vld [vmem:[#allocation7_spill] sm:$0xff] }
 0x26b   :  { %v911_v10 = vpop.xlane.xlu0 %910 }
 0x26c   :  { %3881 = vrcp.f32 %v911_v10 }
 0x26f   :  { %v908_v9 = vpop.xlane.xlu0 %907  ;;  %v902_v12 = vpop.xlane.xlu1 %901 }
 0x270   :  { %3883 = vrcp.f32 %v908_v9  ;;  %v5108_v9 = vld [vmem:[#allocation6_spill] sm:$0xff] }
 0x271   :  { %3885 = vrcp.f32 %v902_v12 }
 0x273   :  { %v923_v11 = vpop.xlane.xlu0 %922  ;;  %v917_v13 = vpop.xlane.xlu1 %916 }
 0x274   :  { %3887 = vrcp.f32 %v923_v11 }
 0x275   :  { %3889 = vrcp.f32 %v917_v13  ;;  %v3880_v16 = vpop.eup %3879 }
 0x276   :  { %v965_v47 = vmul.f32 %v3880_v16, %v4400_v24 }
 0x277   :  { %v920_v14 = vpop.xlane.xlu0 %919  ;;  %v914_v15 = vpop.xlane.xlu1 %913 }
 0x278   :  { %3891 = vrcp.f32 %v920_v14 }
 0x279   :  { %3893 = vrcp.f32 %v914_v15  ;;  %v3882_v31 = vpop.eup %3881 }
 0x27a   :  { %v967_v46 = vmul.f32 %v3882_v31, %v4406_v62  ;;  %v5113_v31 = vld [vmem:[#allocation12_spill] sm:$0xff] }
 0x27b   :  { %v935_v17 = vpop.xlane.xlu0 %934  ;;  %v929_v30 = vpop.xlane.xlu1 %928 }
 0x27c   :  { %3895 = vrcp.f32 %v935_v17 }
 0x27d   :  { %v3884_v34 = vpop.eup %3883  ;;  %3897 = vrcp.f32 %v929_v30 }
 0x27e   :  { %v3886_v35 = vpop.eup %3885  ;;  %v966_v38 = vmul.f32 %v3884_v34, %v4411_v55 }
 0x27f   :  { %v932_v39 = vpop.xlane.xlu0 %931  ;;  %v926_v42 = vpop.xlane.xlu1 %925  ;;  %v964_v43 = vmul.f32 %v3886_v35, %v4414_v33 }
 0x280   :  { %3899 = vrcp.f32 %v932_v39  ;;  %3684 = vmatprep.mubr.msk.f32.mxu1 %vm65_vm0, %v966_v38 }
 0x281   :  { %3901 = vrcp.f32 %v926_v42  ;;  %3677 = vmatprep.mubr.msk.f32.mxu0 %vm65_vm0, %v964_v43  ;;  %3685 = vmatmul.mubr.msk.f32.vlgmr.msra.gmra.mxu1 %vm65_vm0, %v967_v46  ;;  %v3888_v55 = vpop.eup %3887 }
 0x282   :  { %3678 = vmatmul.mubr.msk.f32.vlgmr.msra.gmra.mxu0 %vm65_vm0, %v965_v47  ;;  %3695 = vmatpush3.msra.mxu1 %v4253_v53  ;;  %v3890_v49 = vpop.eup %3889  ;;  %v971_v50 = vmul.f32 %v3888_v55, %v4424_v27 }
 0x283   :  { %3688 = vmatpush3.msra.mxu0 %v4250_v51  ;;  %3696 = vmatprep.subr.mxu1 %v4358_v29  ;;  %v947_v62 = vpop.xlane.xlu0 %946  ;;  %v941_v33 = vpop.xlane.xlu1 %940 }
 0x284   :  { %3689 = vmatprep.subr.mxu0 %v4356_v28  ;;  %3697 = vmatpush3.msra.mxu1 %v4358_v29  ;;  %3903 = vrcp.f32 %v947_v62 }
 0x285   :  { %v3892_v24 = vpop.eup %3891  ;;  %3690 = vmatpush3.msra.mxu0 %v4356_v28  ;;  %3708 = vmatprep.subr.mxu1 %v4362_v40  ;;  %3905 = vrcp.f32 %v941_v33  ;;  %v969_v28 = vmul.f32 %v3890_v49, %v4421_v18 }
 0x286   :  { %v3894_v56 = vpop.eup %3893  ;;  %3701 = vmatprep.subr.mxu0 %v4360_v26  ;;  %v970_v51 = vmul.f32 %v3892_v24, %v4434_v5 }
 0x287   :  { %v944_v53 = vpop.xlane.xlu0 %943  ;;  %v938_v60 = vpop.xlane.xlu1 %937  ;;  %v968_v54 = vmul.f32 %v3894_v56, %v4431_v52 }
 0x288   :  { %3907 = vrcp.f32 %v944_v53  ;;  %3698 = vmatprep.mubr.msk.f32.mxu1 %vm65_vm0, %v970_v51 }
 0x289   :  { %3909 = vrcp.f32 %v938_v60  ;;  %3691 = vmatprep.mubr.msk.f32.mxu0 %vm65_vm0, %v968_v54  ;;  %3699 = vmatmul.mubr.msk.f32.vlgmr.msra.gmra.mxu1 %vm65_vm0, %v971_v50  ;;  %v3896_v29 = vpop.eup %3895 }
 0x28a   :  { %3692 = vmatmul.mubr.msk.f32.vlgmr.msra.gmra.mxu0 %vm65_vm0, %v969_v28  ;;  %3709 = vmatpush3.msra.mxu1 %v4362_v40  ;;  %v3898_v5 = vpop.eup %3897  ;;  %v975_v57 = vmul.f32 %v3896_v29, %v4442_v20 }
 0x28b   :  { %3702 = vmatpush3.msra.mxu0 %v4360_v26  ;;  %3710 = vmatprep.subr.mxu1 %v4366_v22  ;;  %v4567_v27 = vpop.permute.xlu0 %2062  ;;  %v4569_v52 = vpop.permute.xlu1 %2153 }
 0x28c   :  { %3703 = vmatprep.subr.mxu0 %v4364_v3  ;;  %3711 = vmatpush3.msra.mxu1 %v4366_v22  ;;  %v973_v22 = vmul.f32 %v3898_v5, %v4440_v63  ;;  %v30_v5 = vld [vmem:[%s5081_s1 + $0x18] sm:$0xff] }
 0x28d   :  { %v3900_v18 = vpop.eup %3899  ;;  %3704 = vmatpush3.msra.mxu0 %v4364_v3  ;;  %3722 = vmatprep.subr.mxu1 %v5103_v58 }
 0x28e   :  { %v3902_v40 = vpop.eup %3901  ;;  %3715 = vmatprep.subr.mxu0 %v5104_v19  ;;  %v974_v26 = vmul.f32 %v3900_v18, %v4450_v21 }
 0x28f   :  { %v972_v36 = vmul.f32 %v3902_v40, %v4448_v23  ;;  %v1877_v41 = vpop.permute.xlu0 %1876  ;;  %v1968_v59 = vpop.permute.xlu1 %1967  ;;  %v5105_v23 = vld [vmem:[#allocation5_spill] sm:$0xff] }
 0x290   :  { %3712 = vmatprep.mubr.msk.f32.mxu1 %vm65_vm0, %v974_v26 }
 0x291   :  { %3705 = vmatprep.mubr.msk.f32.mxu0 %vm65_vm0, %v972_v36  ;;  %3713 = vmatmul.mubr.msk.f32.vlgmr.msra.gmra.mxu1 %vm65_vm0, %v975_v57  ;;  %v3904_v3 = vpop.eup %3903 }
 0x292   :  { %3706 = vmatmul.mubr.msk.f32.vlgmr.msra.gmra.mxu0 %vm65_vm0, %v973_v22  ;;  %3723 = vmatpush3.msra.mxu1 %v5103_v58  ;;  %v3906_v44 = vpop.eup %3905  ;;  %v979_v13 = vmul.f32 %v3904_v3, %v4458_v25  ;;  %v5110_v25 = vld [vmem:[#allocation8_spill] sm:$0xff] }
 0x293   :  { %3716 = vmatpush3.msra.mxu0 %v5104_v19  ;;  %3724 = vmatprep.subr.mxu1 %v5105_v23  ;;  %v2061_v20 = vpop.permute.xlu0 %2060  ;;  %v2152_v21 = vpop.permute.xlu1 %2151  ;;  %v977_v14 = vmul.f32 %v3906_v44, %v4456_v32  ;;  %v5111_v32 = vld [vmem:[#allocation9_spill] sm:$0xff]  ;;  %v33_v58 = vld [vmem:[%s5081_s1 + $0x30] sm:$0xff] }
 0x294   :  { %3717 = vmatprep.subr.mxu0 %v5106_v48  ;;  %3725 = vmatpush3.msra.mxu1 %v5105_v23  ;;  %v34_v19 = vld [vmem:[%s5081_s1 + $0x38] sm:$0xff]  ;;  %v29_v22 = vld [vmem:[%s5081_s1 + $0x10] sm:$0xff] }
 0x295   :  { %v3908_v63 = vpop.eup %3907  ;;  %3718 = vmatpush3.msra.mxu0 %v5106_v48  ;;  %3736 = vmatprep.subr.msk.mxu1 %vm65_vm0, %v5107_v8 }
 0x296   :  { %v3910_v10 = vpop.eup %3909  ;;  %3729 = vmatprep.subr.msk.mxu0 %vm65_vm0, %v5108_v9  ;;  %v978_v12 = vmul.f32 %v3908_v63, %v4466_v45  ;;  %v5112_v45 = vld [vmem:[#allocation11_spill] sm:$0xff]  ;;  %v42_v63 = vld [vmem:[%s5081_s1 + $0x78] sm:$0xff] }
 0x297   :  { %v976_v11 = vmul.f32 %v3910_v10, %v4464_v37  ;;  %v2148_v15 = vpop.permute.xlu1 %2147  ;;  %v2057_v16 = vpop.permute.xlu0 %2056  ;;  %v5109_v37 = vld [vmem:[#allocation10_spill] sm:$0xff]  ;;  %v37_v10 = vld [vmem:[%s5081_s1 + $0x50] sm:$0xff] }
 0x298   :  { %3726 = vmatprep.mubr.msk.f32.mxu1 %vm65_vm0, %v978_v12 }
 0x299   :  { %3719 = vmatprep.mubr.msk.f32.mxu0 %vm65_vm0, %v976_v11  ;;  %3727 = vmatmul.mubr.msk.f32.vlgmr.msra.gmra.mxu1 %vm65_vm0, %v979_v13 }
 0x29a   :  { %3720 = vmatmul.mubr.msk.f32.vlgmr.msra.gmra.mxu0 %vm65_vm0, %v977_v14  ;;  %3737 = vmatpush3.xpose.msk.msra.mxu1 %vm65_vm0, %v5107_v8 }
 0x29b   :  { %3730 = vmatpush3.xpose.msk.msra.mxu0 %vm65_vm0, %v5108_v9  ;;  %3733 = vmatprep.mubr.msk.f32.mxu0 %vm65_vm0, %v5109_v37  ;;  %v2336_v17 = vpop.permute.xlu1 %2335  ;;  %v2245_v30 = vpop.permute.xlu0 %2244 }
 0x29c   :  { %3731 = vmatprep.subr.msk.mxu0 %vm65_vm0, %v5110_v25  ;;  %3738 = vmatprep.subr.msk.mxu1 %vm65_vm0, %v5111_v32 }
 0x29d   :  { %3740 = vmatprep.mubr.msk.f32.mxu1 %vm65_vm0, %v5112_v45 }
 0x29e   :  { %3739 = vmatpush3.xpose.msk.msra.mxu1 %vm65_vm0, %v5111_v32 }
 0x29f   :  { %3732 = vmatpush3.xpose.msk.msra.mxu0 %vm65_vm0, %v5110_v25  ;;  %3750 = vmatprep.subr.msk.mxu1 %vm65_vm0, %v4391_v61  ;;  %v2150_v34 = vpop.permute.xlu1 %2149 }
 0x2a0   :  { %3743 = vmatprep.subr.msk.mxu0 %vm65_vm0, %v5113_v31 }
 0x2a1   :  { %3741 = vmatmul.mubr.msk.f32.vlgmr.msra.gmra.mxu1 %vm65_vm0, %v4528_v0  ;;  %v2059_v0 = vpop.permute.xlu0 %2058 }
 0x2a2   :  { %3734 = vmatmul.mubr.msk.f32.vlgmr.msra.gmra.mxu0 %vm65_vm0, %v4530_v1  ;;  %3751 = vmatpush3.xpose.msk.msra.mxu1 %vm65_vm0, %v4391_v61 }
 0x2a3   :  { %3744 = vmatpush3.xpose.msk.msra.mxu0 %vm65_vm0, %v5113_v31  ;;  %3747 = vmatprep.mubr.msk.f32.mxu0 %vm65_vm0, %v4538_v7  ;;  %v2334_v61 = vpop.permute.xlu1 %2333 }
 0x2a4   :  { %3754 = vmatprep.mubr.msk.f32.mxu1 %vm65_vm0, %v4536_v6  ;;  %3745 = vmatprep.subr.msk.mxu0 %vm65_vm0, %v4534_v4 }
 0x2a5   :  { %3752 = vmatprep.subr.msk.mxu1 %vm65_vm0, %v4532_v2  ;;  %v2243_v1 = vpop.permute.xlu0 %2242 }
 0x2a6   :  { %3753 = vmatpush3.xpose.msk.msra.mxu1 %vm65_vm0, %v4532_v2 }
 0x2a7   :  { %3746 = vmatpush3.xpose.msk.msra.mxu0 %vm65_vm0, %v4534_v4  ;;  %3764 = vmatprep.subr.msk.mxu1 %vm65_vm0, %v4569_v52  ;;  %v2330_v2 = vpop.permute.xlu1 %2329 }
 0x2a8   :  { %3757 = vmatprep.subr.msk.mxu0 %vm65_vm0, %v4567_v27 }
 0x2a9   :  { %3755 = vmatmul.mubr.msk.f32.vlgmr.msra.gmra.mxu1 %vm65_vm0, %v1968_v59  ;;  %v2239_v4 = vpop.permute.xlu0 %2238 }
 0x2aa   :  { %3748 = vmatmul.mubr.msk.f32.vlgmr.msra.gmra.mxu0 %vm65_vm0, %v1877_v41  ;;  %3765 = vmatpush3.xpose.msk.msra.mxu1 %vm65_vm0, %v4569_v52 }
 0x2ab   :  { %3758 = vmatpush3.xpose.msk.msra.mxu0 %vm65_vm0, %v4567_v27  ;;  %3761 = vmatprep.mubr.msk.f32.mxu0 %vm65_vm0, %v2057_v16  ;;  %v2332_v6 = vpop.permute.xlu1 %2331  ;;  %v41_v16 = vld [vmem:[%s5081_s1 + $0x70] sm:$0xff] }
 0x2ac   :  { %3759 = vmatprep.subr.msk.mxu0 %vm65_vm0, %v2061_v20  ;;  %3766 = vmatprep.subr.msk.mxu1 %vm65_vm0, %v2152_v21 }
 0x2ad   :  { %3768 = vmatprep.mubr.msk.f32.mxu1 %vm65_vm0, %v2148_v15  ;;  %v2241_v7 = vpop.permute.xlu0 %2240 }
 0x2ae   :  { %3767 = vmatpush3.xpose.msk.msra.mxu1 %vm65_vm0, %v2152_v21 }
 0x2af   :  { %3760 = vmatpush3.xpose.msk.msra.mxu0 %vm65_vm0, %v2061_v20  ;;  %3778 = vmatprep.subr.msk.mxu1 %vm65_vm0, %v2336_v17  ;;  %v2615_v35 = vpop.permute.xlu1 %2614  ;;  %v38_v20 = vld [vmem:[%s5081_s1 + $0x58] sm:$0xff] }
 0x2b0   :  { %3771 = vmatprep.subr.msk.mxu0 %vm65_vm0, %v2245_v30 }
 0x2b1   :  { %3769 = vmatmul.mubr.msk.f32.vlgmr.msra.gmra.mxu1 %vm65_vm0, %v2150_v34  ;;  %v2702_v38 = vpop.permute.xlu0 %2701 }
 0x2b2   :  { %3762 = vmatmul.mubr.msk.f32.vlgmr.msra.gmra.mxu0 %vm65_vm0, %v2059_v0  ;;  %3779 = vmatpush3.xpose.msk.msra.mxu1 %vm65_vm0, %v2336_v17 }
 0x2b3   :  { %3772 = vmatpush3.xpose.msk.msra.mxu0 %vm65_vm0, %v2245_v30  ;;  %3775 = vmatprep.mubr.msk.f32.mxu0 %vm65_vm0, %v2239_v4  ;;  %v2613_v39 = vpop.permute.xlu1 %2612 }
 0x2b4   :  { %3773 = vmatprep.subr.msk.mxu0 %vm65_vm0, %v2243_v1  ;;  %3780 = vmatprep.subr.msk.mxu1 %vm65_vm0, %v2334_v61 }
 0x2b5   :  { %3782 = vmatprep.mubr.msk.f32.mxu1 %vm65_vm0, %v2330_v2  ;;  %v4672_v42 = vpop.permute.xlu0 %2788 }
 0x2b6   :  { %3781 = vmatpush3.xpose.msk.msra.mxu1 %vm65_vm0, %v2334_v61 }
 0x2b7   :  { %3774 = vmatpush3.xpose.msk.msra.mxu0 %vm65_vm0, %v2243_v1  ;;  %3792 = vmatprep.subr.mxu1 %v2702_v38  ;;  %v2700_v43 = vpop.permute.xlu1 %2699 }
 0x2b8   :  { %3785 = vmatprep.subr.mxu0 %v2615_v35 }
 0x2b9   :  { %3783 = vmatmul.mubr.msk.f32.vlgmr.msra.gmra.mxu1 %vm65_vm0, %v2332_v6 }
 0x2ba   :  { %3776 = vmatmul.mubr.msk.f32.vlgmr.msra.gmra.mxu0 %vm65_vm0, %v2241_v7  ;;  %3793 = vmatpush3.msra.mxu1 %v2702_v38 }
 0x2bb   :  { %3786 = vmatpush3.msra.mxu0 %v2615_v35  ;;  %3794 = vmatprep.subr.mxu1 %v2700_v43  ;;  %v4675_v46 = vpop.permute.xlu1 %2875 }
 0x2bc   :  { %3787 = vmatprep.subr.mxu0 %v2613_v39  ;;  %3795 = vmatpush3.msra.mxu1 %v2700_v43 }
 0x2bd   :  { %3788 = vmatpush3.msra.mxu0 %v2613_v39  ;;  %3806 = vmatprep.subr.mxu1 %v4675_v46 }
 0x2be   :  { %3799 = vmatprep.subr.mxu0 %v4672_v42 }
 0x341   :  { %v3686_v47 = vpop.f32.mrf.mxu1 }
 0x342   :  { %v3679_v55 = vpop.f32.mrf.mxu0  ;;  %1679 = vst.msk [vmem:[%s5082_s2 + $0x18] sm:$0xff] %vm65_vm0, %v3686_v47 }
 0x343   :  { %1677 = vst.msk [vmem:[%s5082_s2 + $0x8] sm:$0xff] %vm65_vm0, %v3679_v55  ;;  %v1145_v62 = vpop.f32.mrf.mxu1 }
 0x344   :  { %v1058_v33 = vpop.f32.mrf.mxu0  ;;  %1678 = vst.msk [vmem:[%s5082_s2 + $0x10] sm:$0xff] %vm65_vm0, %v1145_v62 }
 0x345   :  { %1676 = vst.msk [vmem:[%s5082_s2] sm:$0xff] %vm65_vm0, %v1058_v33 }
 0x349   :  { %v3700_v49 = vpop.f32.mrf.mxu1 }
 0x34a   :  { %v3693_v24 = vpop.f32.mrf.mxu0  ;;  %1683 = vst.msk [vmem:[%s5082_s2 + $0x38] sm:$0xff] %vm65_vm0, %v3700_v49 }
 0x34b   :  { %1681 = vst.msk [vmem:[%s5082_s2 + $0x28] sm:$0xff] %vm65_vm0, %v3693_v24  ;;  %v1319_v56 = vpop.f32.mrf.mxu1 }
 0x34c   :  { %v1232_v51 = vpop.f32.mrf.mxu0  ;;  %1682 = vst.msk [vmem:[%s5082_s2 + $0x30] sm:$0xff] %vm65_vm0, %v1319_v56 }
 0x34d   :  { %1680 = vst.msk [vmem:[%s5082_s2 + $0x20] sm:$0xff] %vm65_vm0, %v1232_v51 }
 0x351   :  { %v3714_v53 = vpop.f32.mrf.mxu1 }
 0x352   :  { %v3707_v60 = vpop.f32.mrf.mxu0  ;;  %1687 = vst.msk [vmem:[%s5082_s2 + $0x58] sm:$0xff] %vm65_vm0, %v3714_v53 }
 0x353   :  { %1685 = vst.msk [vmem:[%s5082_s2 + $0x48] sm:$0xff] %vm65_vm0, %v3707_v60  ;;  %v1493_v54 = vpop.f32.mrf.mxu1 }
 0x354   :  { %v1406_v50 = vpop.f32.mrf.mxu0  ;;  %1686 = vst.msk [vmem:[%s5082_s2 + $0x50] sm:$0xff] %vm65_vm0, %v1493_v54  ;;  %v3975_v54 = vld [vmem:[%s5080_s0 + $0x50] sm:$0xff] }
 0x355   :  { %1684 = vst.msk [vmem:[%s5082_s2 + $0x40] sm:$0xff] %vm65_vm0, %v1406_v50  ;;  %v3976_v50 = vld [vmem:[%s5080_s0 + $0x78] sm:$0xff] }
 0x359   :  { %v3728_v28 = vpop.f32.mrf.mxu1 }
 0x35a   :  { %v3721_v29 = vpop.f32.mrf.mxu0  ;;  %1691 = vst.msk [vmem:[%s5082_s2 + $0x78] sm:$0xff] %vm65_vm0, %v3728_v28  ;;  %v3977_v28 = vld [vmem:[%s5080_s0 + $0x40] sm:$0xff] }
 0x35b   :  { %1689 = vst.msk [vmem:[%s5082_s2 + $0x68] sm:$0xff] %vm65_vm0, %v3721_v29  ;;  %v1667_v27 = vpop.f32.mrf.mxu1  ;;  %v3978_v29 = vld [vmem:[%s5080_s0 + $0x68] sm:$0xff] }
 0x35c   :  { %v1580_v52 = vpop.f32.mrf.mxu0  ;;  %1690 = vst.msk [vmem:[%s5082_s2 + $0x70] sm:$0xff] %vm65_vm0, %v1667_v27  ;;  %v4846_v27 = vpop.permute.xlu0 %2786 }
 0x35d   :  { %1688 = vst.msk [vmem:[%s5082_s2 + $0x60] sm:$0xff] %vm65_vm0, %v1580_v52  ;;  %v4848_v52 = vpop.permute.xlu1 %2873 }
 0x361   :  { %v3742_v18 = vpop.f32.mrf.mxu1 }
 0x362   :  { %v3735_v40 = vpop.f32.mrf.mxu0  ;;  %v4755_v41 = vadd.f32 %v3742_v18, %v34_v19  ;;  %v4852_v18 = vpop.permute.xlu1 %3049 }
 0x363   :  { %v4751_v26 = vadd.f32 %v3735_v40, %v30_v5  ;;  %v1865_v36 = vpop.f32.mrf.mxu1 }
 0x364   :  { %v4753_v57 = vadd.f32 %v1865_v36, %v33_v58  ;;  %v1774_v3 = vpop.f32.mrf.mxu0  ;;  %v2445_v44 = vsel %vm65_vm0, %v4755_v41, -inf }
 0x365   :  { %v2439_v59 = vsel %vm65_vm0, %v4751_v26, -inf  ;;  %v4767_v21 = vadd.f32 %v1774_v3, %v29_v22 }
 0x366   :  { %2440 = vmax.xlane.f32.xlu0 %v2439_v59  ;;  %v2442_v23 = vsel %vm65_vm0, %v4753_v57, -inf }
 0x367   :  { %2443 = vmax.xlane.f32.xlu1 %v2442_v23  ;;  %v2436_v14 = vsel %vm65_vm0, %v4767_v21, -inf }
 0x369   :  { %v3756_v8 = vpop.f32.mrf.mxu1 }
 0x36a   :  { %2446 = vmax.xlane.f32.xlu0 %v2445_v44  ;;  %v3749_v48 = vpop.f32.mrf.mxu0  ;;  %v4779_v11 = vadd.f32 %v3756_v8, %v42_v63 }
 0x36b   :  { %v4777_v9 = vadd.f32 %v3749_v48, %v38_v20  ;;  %v2047_v37 = vpop.f32.mrf.mxu1 }
 0x36c   :  { %v1956_v12 = vpop.f32.mrf.mxu0  ;;  %v4790_v25 = vadd.f32 %v2047_v37, %v41_v16  ;;  %v2457_v45 = vsel %vm65_vm0, %v4779_v11, -inf }
 0x36d   :  { %v4781_v13 = vadd.f32 %v1956_v12, %v37_v10  ;;  %v2451_v15 = vsel %vm65_vm0, %v4777_v9, -inf }
 0x36e   :  { %2437 = vmax.xlane.f32.xlu0 %v2436_v14  ;;  %2452 = vmax.xlane.f32.xlu1 %v2451_v15  ;;  %v2454_v2 = vsel %vm65_vm0, %v4790_v25, -inf }
 0x36f   :  { %v2448_v32 = vsel %vm65_vm0, %v4781_v13, -inf }
 0x371   :  { %v3770_v30 = vpop.f32.mrf.mxu1 }
 0x372   :  { %2449 = vmax.xlane.f32.xlu1 %v2448_v32  ;;  %v3763_v17 = vpop.f32.mrf.mxu0  ;;  %2458 = vmax.xlane.f32.xlu0 %v2457_v45  ;;  %v4798_v34 = vadd.f32 %v3770_v30, %v34_v19 }
 0x373   :  { %v4796_v31 = vadd.f32 %v3763_v17, %v30_v5  ;;  %v2229_v4 = vpop.f32.mrf.mxu1  ;;  %v4850_v5 = vpop.permute.xlu0 %2962 }
 0x374   :  { %v2138_v0 = vpop.f32.mrf.mxu0  ;;  %v2469_v6 = vsel %vm65_vm0, %v4798_v34, -inf  ;;  %v4808_v7 = vadd.f32 %v2229_v4, %v33_v58 }
 0x375   :  { %v4800_v61 = vadd.f32 %v2138_v0, %v29_v22  ;;  %v2463_v1 = vsel %vm65_vm0, %v4796_v31, -inf }
 0x376   :  { %2464 = vmax.xlane.f32.xlu1 %v2463_v1  ;;  %2455 = vmax.xlane.f32.xlu0 %v2454_v2  ;;  %v2466_v24 = vsel %vm65_vm0, %v4808_v7, -inf }
 0x377   :  { %v2460_v35 = vsel %vm65_vm0, %v4800_v61, -inf }
 0x379   :  { %v3784_v38 = vpop.f32.mrf.mxu1 }
 0x37a   :  { %2461 = vmax.xlane.f32.xlu1 %v2460_v35  ;;  %v3777_v39 = vpop.f32.mrf.mxu0  ;;  %2470 = vmax.xlane.f32.xlu0 %v2469_v6  ;;  %v4814_v47 = vadd.f32 %v3784_v38, %v42_v63 }
 0x37b   :  { %v4812_v43 = vadd.f32 %v3777_v39, %v38_v20  ;;  %v2411_v62 = vpop.f32.mrf.mxu1 }
 0x37c   :  { %v2320_v55 = vpop.f32.mrf.mxu0  ;;  %v2481_v51 = vsel %vm65_vm0, %v4814_v47, -inf  ;;  %v4826_v53 = vadd.f32 %v2411_v62, %v41_v16 }
 0x37d   :  { %v2475_v33 = vsel %vm65_vm0, %v4812_v43, -inf  ;;  %v4818_v49 = vadd.f32 %v2320_v55, %v37_v10 }
 0x37e   :  { %2476 = vmax.xlane.f32.xlu1 %v2475_v33  ;;  %2467 = vmax.xlane.f32.xlu0 %v2466_v24  ;;  %v2478_v60 = vsel %vm65_vm0, %v4826_v53, -inf }
 0x37f   :  { %v2472_v56 = vsel %vm65_vm0, %v4818_v49, -inf }
 0x382   :  { %2473 = vmax.xlane.f32.xlu1 %v2472_v56  ;;  %2482 = vmax.xlane.f32.xlu0 %v2481_v51 }
 0x386   :  { %2479 = vmax.xlane.f32.xlu0 %v2478_v60 }
 0x393   :  { %3047 = vrot.lane.b32.xlu1 %v3975_v54, %s3985_s5 }
 0x397   :  { %3223 = vrot.lane.b32.xlu1 %v3976_v50, %s3985_s5 }
 0x39c   :  { %2960 = vrot.lane.b32.xlu0 %v3977_v28, %s3985_s5 }
 0x3a0   :  { %3136 = vrot.lane.b32.xlu0 %v3978_v29, %s3985_s5 }
 0x3ef   :  { %v2441_v58 = vpop.xlane.xlu0 %2440 }
 0x3f0   :  { %v2485_v40 = vsub.f32 %v4751_v26, %v2441_v58  ;;  %v2444_v19 = vpop.xlane.xlu1 %2443 }
 0x3f1   :  { %v2486_v36 = vsub.f32 %v4753_v57, %v2444_v19 }
 0x3f2   :  { %v2502_v59 = vmul.f32 1.442695, %v2485_v40 }
 0x3f3   :  { %v2447_v22 = vpop.xlane.xlu0 %2446  ;;  %v2504_v23 = vmul.f32 1.442695, %v2486_v36 }
 0x3f4   :  { %3911 = vpow2.f32 %v2502_v59  ;;  %v2487_v3 = vsub.f32 %v4755_v41, %v2447_v22 }
 0x3f6   :  { %v2506_v20 = vmul.f32 1.442695, %v2487_v3 }
 0x3f7   :  { %v2438_v44 = vpop.xlane.xlu0 %2437  ;;  %v2453_v48 = vpop.xlane.xlu1 %2452 }
 0x3f8   :  { %3913 = vpow2.f32 %v2506_v20  ;;  %v2484_v63 = vsub.f32 %v4767_v21, %v2438_v44  ;;  %v2489_v8 = vsub.f32 %v4777_v9, %v2453_v48 }
 0x3f9   :  { %3915 = vpow2.f32 %v2504_v23 }
 0x3fa   :  { %v2500_v10 = vmul.f32 1.442695, %v2484_v63  ;;  %v2510_v26 = vmul.f32 1.442695, %v2489_v8 }
 0x3fb   :  { %v2459_v12 = vpop.xlane.xlu0 %2458  ;;  %v2450_v14 = vpop.xlane.xlu1 %2449 }
 0x3fc   :  { %3917 = vpow2.f32 %v2500_v10  ;;  %v2491_v57 = vsub.f32 %v4779_v11, %v2459_v12  ;;  %v2488_v15 = vsub.f32 %v4781_v13, %v2450_v14 }
 0x3fd   :  { %3919 = vpow2.f32 %v2510_v26 }
 0x3fe   :  { %v2514_v41 = vmul.f32 1.442695, %v2491_v57  ;;  %v2508_v16 = vmul.f32 1.442695, %v2488_v15 }
 0x3ff   :  { %v2456_v37 = vpop.xlane.xlu0 %2455  ;;  %v2465_v32 = vpop.xlane.xlu1 %2464 }
 0x400   :  { %3921 = vpow2.f32 %v2514_v41  ;;  %v2490_v21 = vsub.f32 %v4790_v25, %v2456_v37  ;;  %v2493_v9 = vsub.f32 %v4796_v31, %v2465_v32  ;;  %v3979_v32 = vld [vmem:[%s5080_s0 + $0x70] sm:$0xff] }
 0x401   :  { %v4863_v45 = vpop.eup %3911  ;;  %3923 = vpow2.f32 %v2508_v16 }
 0x402   :  { %v2512_v17 = vmul.f32 1.442695, %v2490_v21  ;;  %v2518_v30 = vmul.f32 1.442695, %v2493_v9  ;;  %v2535_v11 = vsel %vm65_vm0, %v4863_v45, 0.0  ;;  %v3980_v21 = vld [vmem:[%s5080_s0 + $0x60] sm:$0xff] }
 0x403   :  { %2536 = vadd.xlane.f32.xlu1 %v2535_v11  ;;  %v2471_v13 = vpop.xlane.xlu0 %2470  ;;  %v2462_v0 = vpop.xlane.xlu1 %2461  ;;  %s3986_s0 = smov 16  }
 0x404   :  { %3925 = vpow2.f32 %v2512_v17  ;;  %v2495_v1 = vsub.f32 %v4798_v34, %v2471_v13  ;;  %v2492_v2 = vsub.f32 %v4800_v61, %v2462_v0 }
 0x405   :  { %v4869_v4 = vpop.eup %3913  ;;  %3927 = vpow2.f32 %v2518_v30 }
 0x406   :  { %v4871_v25 = vpop.eup %3915  ;;  %v2522_v31 = vmul.f32 1.442695, %v2495_v1  ;;  %v2516_v6 = vmul.f32 1.442695, %v2492_v2  ;;  %v2541_v35 = vsel %vm65_vm0, %v4869_v4, 0.0 }
 0x407   :  { %v2468_v38 = vpop.xlane.xlu0 %2467  ;;  %2542 = vadd.xlane.f32.xlu0 %v2541_v35  ;;  %v2477_v39 = vpop.xlane.xlu1 %2476  ;;  %v2538_v61 = vsel %vm65_vm0, %v4871_v25, 0.0 }
 0x408   :  { %3929 = vpow2.f32 %v2522_v31  ;;  %v2494_v55 = vsub.f32 %v4808_v7, %v2468_v38  ;;  %v2497_v34 = vsub.f32 %v4812_v43, %v2477_v39 }
 0x409   :  { %v4877_v62 = vpop.eup %3917  ;;  %3931 = vpow2.f32 %v2516_v6 }
 0x40a   :  { %v4881_v33 = vpop.eup %3919  ;;  %v2520_v24 = vmul.f32 1.442695, %v2494_v55  ;;  %v2526_v56 = vmul.f32 1.442695, %v2497_v34  ;;  %v2532_v51 = vsel %vm65_vm0, %v4877_v62, 0.0 }
 0x40b   :  { %2533 = vadd.xlane.f32.xlu1 %v2532_v51  ;;  %v2483_v60 = vpop.xlane.xlu0 %2482  ;;  %2539 = vadd.xlane.f32.xlu0 %v2538_v61  ;;  %v2474_v54 = vpop.xlane.xlu1 %2473  ;;  %v2547_v28 = vsel %vm65_vm0, %v4881_v33, 0.0 }
 0x40c   :  { %3933 = vpow2.f32 %v2520_v24  ;;  %v2499_v7 = vsub.f32 %v4814_v47, %v2483_v60  ;;  %v2496_v43 = vsub.f32 %v4818_v49, %v2474_v54 }
 0x40d   :  { %v4887_v50 = vpop.eup %3921  ;;  %3935 = vpow2.f32 %v2526_v56 }
 0x40e   :  { %v2530_v29 = vmul.f32 1.442695, %v2499_v7  ;;  %v2524_v58 = vmul.f32 1.442695, %v2496_v43  ;;  %v2553_v40 = vsel %vm65_vm0, %v4887_v50, 0.0  ;;  %v4893_v19 = vpop.eup %3923 }
 0x40f   :  { %v2480_v36 = vpop.xlane.xlu0 %2479  ;;  %2554 = vadd.xlane.f32.xlu0 %v2553_v40  ;;  %2548 = vadd.xlane.f32.xlu1 %v2547_v28  ;;  %v2544_v3 = vsel %vm65_vm0, %v4893_v19, 0.0  ;;  %v4942_v9 = vpop.permute.xlu1 %3047 }
 0x410   :  { %3937 = vpow2.f32 %v2530_v29  ;;  %v2498_v47 = vsub.f32 %v4826_v53, %v2480_v36 }
 0x411   :  { %v4896_v49 = vpop.eup %3925  ;;  %3939 = vpow2.f32 %v2524_v58 }
 0x412   :  { %v2528_v59 = vmul.f32 1.442695, %v2498_v47  ;;  %v2550_v22 = vsel %vm65_vm0, %v4896_v49, 0.0  ;;  %v4902_v23 = vpop.eup %3927 }
 0x413   :  { %2551 = vadd.xlane.f32.xlu0 %v2550_v22  ;;  %2545 = vadd.xlane.f32.xlu1 %v2544_v3  ;;  %v2559_v44 = vsel %vm65_vm0, %v4902_v23, 0.0  ;;  %v4944_v17 = vpop.permute.xlu0 %2960  ;;  %v4946_v30 = vpop.permute.xlu1 %3223 }
 0x414   :  { %3941 = vpow2.f32 %v2528_v59 }
 0x415   :  { %v4904_v20 = vpop.eup %3929 }
 0x416   :  { %v2565_v53 = vsel %vm65_vm0, %v4904_v20, 0.0  ;;  %v4910_v48 = vpop.eup %3931 }
 0x417   :  { %2566 = vadd.xlane.f32.xlu0 %v2565_v53  ;;  %2560 = vadd.xlane.f32.xlu1 %v2559_v44  ;;  %v2556_v10 = vsel %vm65_vm0, %v4910_v48, 0.0  ;;  %v4948_v11 = vpop.permute.xlu0 %3136 }
 0x419   :  { %v4912_v63 = vpop.eup %3933 }
 0x41a   :  { %v2562_v8 = vsel %vm65_vm0, %v4912_v63, 0.0  ;;  %v4918_v26 = vpop.eup %3935 }
 0x41b   :  { %2563 = vadd.xlane.f32.xlu0 %v2562_v8  ;;  %2557 = vadd.xlane.f32.xlu1 %v2556_v10  ;;  %v2571_v57 = vsel %vm65_vm0, %v4918_v26, 0.0 }
 0x41d   :  { %v4920_v12 = vpop.eup %3937 }
 0x41e   :  { %v2577_v14 = vsel %vm65_vm0, %v4920_v12, 0.0  ;;  %v4926_v15 = vpop.eup %3939 }
 0x41f   :  { %2578 = vadd.xlane.f32.xlu0 %v2577_v14  ;;  %2572 = vadd.xlane.f32.xlu1 %v2571_v57  ;;  %v2568_v37 = vsel %vm65_vm0, %v4926_v15, 0.0 }
 0x421   :  { %v4928_v41 = vpop.eup %3941 }
 0x422   :  { %v2574_v16 = vsel %vm65_vm0, %v4928_v41, 0.0 }
 0x423   :  { %2575 = vadd.xlane.f32.xlu0 %v2574_v16  ;;  %2569 = vadd.xlane.f32.xlu1 %v2568_v37 }
 0x434   :  { %3221 = vrot.lane.b32.xlu1 %v3979_v32, %s3985_s5 }
 0x439   :  { %3134 = vrot.lane.b32.xlu0 %v3980_v21, %s3985_s5 }
 0x48c   :  { %v2537_v13 = vpop.xlane.xlu1 %2536 }
 0x48d   :  { %3943 = vrcp.f32 %v2537_v13 }
 0x490   :  { %v2543_v0 = vpop.xlane.xlu0 %2542 }
 0x491   :  { %3945 = vrcp.f32 %v2543_v0 }
 0x494   :  { %v2540_v1 = vpop.xlane.xlu0 %2539  ;;  %v2534_v2 = vpop.xlane.xlu1 %2533 }
 0x495   :  { %3947 = vrcp.f32 %v2540_v1 }
 0x496   :  { %3949 = vrcp.f32 %v2534_v2 }
 0x498   :  { %v2555_v31 = vpop.xlane.xlu0 %2554  ;;  %v2549_v6 = vpop.xlane.xlu1 %2548 }
 0x499   :  { %3951 = vrcp.f32 %v2555_v31 }
 0x49a   :  { %3953 = vrcp.f32 %v2549_v6  ;;  %v3944_v39 = vpop.eup %3943 }
 0x49b   :  { %v2597_v28 = vmul.f32 %v3944_v39, %v4863_v45 }
 0x49c   :  { %v2552_v35 = vpop.xlane.xlu0 %2551  ;;  %v2546_v38 = vpop.xlane.xlu1 %2545 }
 0x49d   :  { %3955 = vrcp.f32 %v2552_v35 }
 0x49e   :  { %3957 = vrcp.f32 %v2546_v38  ;;  %v3946_v61 = vpop.eup %3945 }
 0x49f   :  { %v2599_v43 = vmul.f32 %v3946_v61, %v4869_v4 }
 0x4a0   :  { %v2567_v55 = vpop.xlane.xlu0 %2566  ;;  %v2561_v34 = vpop.xlane.xlu1 %2560 }
 0x4a1   :  { %3959 = vrcp.f32 %v2567_v55 }
 0x4a2   :  { %v3948_v24 = vpop.eup %3947  ;;  %3961 = vrcp.f32 %v2561_v34 }
 0x4a3   :  { %v3950_v56 = vpop.eup %3949  ;;  %v2598_v51 = vmul.f32 %v3948_v24, %v4871_v25 }
 0x4a4   :  { %v2564_v60 = vpop.xlane.xlu0 %2563  ;;  %v2558_v54 = vpop.xlane.xlu1 %2557  ;;  %v2596_v7 = vmul.f32 %v3950_v56, %v4877_v62 }
 0x4a5   :  { %3963 = vrcp.f32 %v2564_v60  ;;  %3796 = vmatprep.mubr.msk.f32.mxu1 %vm65_vm0, %v2598_v51 }
 0x4a6   :  { %3965 = vrcp.f32 %v2558_v54  ;;  %3789 = vmatprep.mubr.msk.f32.mxu0 %vm65_vm0, %v2596_v7  ;;  %3797 = vmatmul.mubr.msk.f32.vlgmr.msra.gmra.mxu1 %vm65_vm0, %v2599_v43  ;;  %v3952_v25 = vpop.eup %3951 }
 0x4a7   :  { %3790 = vmatmul.mubr.msk.f32.vlgmr.msra.gmra.mxu0 %vm65_vm0, %v2597_v28  ;;  %3807 = vmatpush3.msra.mxu1 %v4675_v46  ;;  %v3954_v29 = vpop.eup %3953  ;;  %v2603_v47 = vmul.f32 %v3952_v25, %v4887_v50 }
 0x4a8   :  { %3800 = vmatpush3.msra.mxu0 %v4672_v42  ;;  %3808 = vmatprep.subr.mxu1 %v4848_v52  ;;  %v2579_v4 = vpop.xlane.xlu0 %2578  ;;  %v2573_v62 = vpop.xlane.xlu1 %2572 }
 0x4a9   :  { %3801 = vmatprep.subr.mxu0 %v4846_v27  ;;  %3809 = vmatpush3.msra.mxu1 %v4848_v52  ;;  %3967 = vrcp.f32 %v2579_v4 }
 0x4aa   :  { %v3956_v45 = vpop.eup %3955  ;;  %3802 = vmatpush3.msra.mxu0 %v4846_v27  ;;  %3820 = vmatprep.subr.mxu1 %v4852_v18  ;;  %3969 = vrcp.f32 %v2573_v62  ;;  %v2601_v27 = vmul.f32 %v3954_v29, %v4881_v33 }
 0x4ab   :  { %v3958_v58 = vpop.eup %3957  ;;  %3813 = vmatprep.subr.mxu0 %v4850_v5  ;;  %v2602_v42 = vmul.f32 %v3956_v45, %v4896_v49 }
 0x4ac   :  { %v2576_v46 = vpop.xlane.xlu0 %2575  ;;  %v2570_v40 = vpop.xlane.xlu1 %2569  ;;  %v2600_v36 = vmul.f32 %v3958_v58, %v4893_v19 }
 0x4ad   :  { %3971 = vrcp.f32 %v2576_v46  ;;  %3810 = vmatprep.mubr.msk.f32.mxu1 %vm65_vm0, %v2602_v42 }
 0x4ae   :  { %3973 = vrcp.f32 %v2570_v40  ;;  %3803 = vmatprep.mubr.msk.f32.mxu0 %vm65_vm0, %v2600_v36  ;;  %3811 = vmatmul.mubr.msk.f32.vlgmr.msra.gmra.mxu1 %vm65_vm0, %v2603_v47  ;;  %v3960_v52 = vpop.eup %3959 }
 0x4af   :  { %3804 = vmatmul.mubr.msk.f32.vlgmr.msra.gmra.mxu0 %vm65_vm0, %v2601_v27  ;;  %3821 = vmatpush3.msra.mxu1 %v4852_v18  ;;  %v3962_v50 = vpop.eup %3961 }
 0x4b0   :  { %3814 = vmatpush3.msra.mxu0 %v4850_v5  ;;  %3822 = vmatprep.subr.mxu1 %v4942_v9  ;;  %v2607_v5 = vmul.f32 %v3960_v52, %v4904_v20  ;;  %v2605_v59 = vmul.f32 %v3962_v50, %v4902_v23  ;;  %v3222_v22 = vpop.permute.xlu1 %3221  ;;  %v3135_v3 = vpop.permute.xlu0 %3134 }
 0x4b1   :  { %3815 = vmatprep.subr.mxu0 %v4944_v17  ;;  %3823 = vmatpush3.msra.mxu1 %v4942_v9 }
 0x4b2   :  { %v3964_v33 = vpop.eup %3963  ;;  %3816 = vmatpush3.msra.mxu0 %v4944_v17  ;;  %3834 = vmatprep.subr.mxu1 %v4946_v30 }
 0x4b3   :  { %v3966_v19 = vpop.eup %3965  ;;  %3827 = vmatprep.subr.mxu0 %v4948_v11  ;;  %v2606_v18 = vmul.f32 %v3964_v33, %v4912_v63 }
 0x4b4   :  { %v2604_v49 = vmul.f32 %v3966_v19, %v4910_v48 }
 0x4b5   :  { %3824 = vmatprep.mubr.msk.f32.mxu1 %vm65_vm0, %v2606_v18 }
 0x4b6   :  { %3817 = vmatprep.mubr.msk.f32.mxu0 %vm65_vm0, %v2604_v49  ;;  %3825 = vmatmul.mubr.msk.f32.vlgmr.msra.gmra.mxu1 %vm65_vm0, %v2607_v5  ;;  %v3968_v53 = vpop.eup %3967 }
 0x4b7   :  { %3818 = vmatmul.mubr.msk.f32.vlgmr.msra.gmra.mxu0 %vm65_vm0, %v2605_v59  ;;  %3835 = vmatpush3.msra.mxu1 %v4946_v30  ;;  %v3970_v44 = vpop.eup %3969  ;;  %v2611_v8 = vmul.f32 %v3968_v53, %v4920_v12 }
 0x4b8   :  { %3828 = vmatpush3.msra.mxu0 %v4948_v11  ;;  %3836 = vmatprep.subr.mxu1 %v3222_v22  ;;  %v2609_v10 = vmul.f32 %v3970_v44, %v4918_v26 }
 0x4b9   :  { %3829 = vmatprep.subr.mxu0 %v3135_v3  ;;  %3837 = vmatpush3.msra.mxu1 %v3222_v22 }
 0x4ba   :  { %v3972_v20 = vpop.eup %3971  ;;  %3830 = vmatpush3.msra.mxu0 %v3135_v3 }
 0x4bb   :  { %v3974_v23 = vpop.eup %3973  ;;  %v2610_v48 = vmul.f32 %v3972_v20, %v4928_v41 }
 0x4bc   :  { %v2608_v63 = vmul.f32 %v3974_v23, %v4926_v15 }
 0x4bd   :  { %3838 = vmatprep.mubr.msk.f32.mxu1 %vm65_vm0, %v2610_v48 }
 0x4be   :  { %3831 = vmatprep.mubr.msk.f32.mxu0 %vm65_vm0, %v2608_v63  ;;  %3839 = vmatmul.mubr.msk.f32.vlgmr.msra.gmra.mxu1 %vm65_vm0, %v2611_v8 }
 0x4bf   :  { %3832 = vmatmul.mubr.msk.f32.vlgmr.msra.gmra.mxu0 %vm65_vm0, %v2609_v10 }
 0x566   :  { %v3798_v57 = vpop.f32.mrf.mxu1 }
 0x567   :  { %v3791_v14 = vpop.f32.mrf.mxu0 }
 0x568   :  { %3326 = vrot.lane.b32.xlu1 %v3791_v14, %s3986_s0  ;;  %v2777_v12 = vpop.f32.mrf.mxu1 }
 0x569   :  { %v2690_v41 = vpop.f32.mrf.mxu0 }
 0x56a   :  { %3324 = vrot.lane.b32.xlu0 %v2690_v41, %s3986_s0 }
 0x56c   :  { %3330 = vrot.lane.b32.xlu1 %v3798_v57, %s3986_s0 }
 0x56e   :  { %3328 = vrot.lane.b32.xlu0 %v2777_v12, %s3986_s0  ;;  %v3812_v15 = vpop.f32.mrf.mxu1 }
 0x56f   :  { %v3805_v26 = vpop.f32.mrf.mxu0 }
 0x570   :  { %3334 = vrot.lane.b32.xlu1 %v3805_v26, %s3986_s0  ;;  %v2951_v37 = vpop.f32.mrf.mxu1 }
 0x571   :  { %v2864_v16 = vpop.f32.mrf.mxu0 }
 0x572   :  { %3332 = vrot.lane.b32.xlu0 %v2864_v16, %s3986_s0 }
 0x574   :  { %3338 = vrot.lane.b32.xlu1 %v3812_v15, %s3986_s0 }
 0x576   :  { %3336 = vrot.lane.b32.xlu0 %v2951_v37, %s3986_s0  ;;  %v3826_v21 = vpop.f32.mrf.mxu1 }
 0x577   :  { %v3819_v32 = vpop.f32.mrf.mxu0 }
 0x578   :  { %3342 = vrot.lane.b32.xlu1 %v3819_v32, %s3986_s0  ;;  %v3125_v17 = vpop.f32.mrf.mxu1 }
 0x579   :  { %v3038_v9 = vpop.f32.mrf.mxu0 }
 0x57a   :  { %3340 = vrot.lane.b32.xlu0 %v3038_v9, %s3986_s0 }
 0x57c   :  { %3346 = vrot.lane.b32.xlu1 %v3826_v21, %s3986_s0 }
 0x57e   :  { %3344 = vrot.lane.b32.xlu0 %v3125_v17, %s3986_s0  ;;  %v3840_v11 = vpop.f32.mrf.mxu1 }
 0x57f   :  { %v3833_v30 = vpop.f32.mrf.mxu0 }
 0x580   :  { %3350 = vrot.lane.b32.xlu1 %v3833_v30, %s3986_s0  ;;  %v3299_v0 = vpop.f32.mrf.mxu1 }
 0x581   :  { %v3212_v13 = vpop.f32.mrf.mxu0 }
 0x582   :  { %3348 = vrot.lane.b32.xlu0 %v3212_v13, %s3986_s0 }
 0x584   :  { %3354 = vrot.lane.b32.xlu1 %v3840_v11, %s3986_s0 }
 0x586   :  { %3352 = vrot.lane.b32.xlu0 %v3299_v0, %s3986_s0 }
 0x5da   :  { %v3327_v1 = vpop.permute.xlu1 %3326 }
 0x5db   :  { %3374 = vst.msk [vmem:[%s5082_s2 + $0x8] sm:$0xff] %vm3372_vm1, %v3327_v1 }
 0x5dc   :  { %v3325_v2 = vpop.permute.xlu0 %3324 }
 0x5dd   :  { %3373 = vst.msk [vmem:[%s5082_s2] sm:$0xff] %vm3372_vm1, %v3325_v2 }
 0x5de   :  { %v3331_v31 = vpop.permute.xlu1 %3330 }
 0x5df   :  { %3376 = vst.msk [vmem:[%s5082_s2 + $0x18] sm:$0xff] %vm3372_vm1, %v3331_v31 }
 0x5e0   :  { %v3329_v6 = vpop.permute.xlu0 %3328 }
 0x5e1   :  { %3375 = vst.msk [vmem:[%s5082_s2 + $0x10] sm:$0xff] %vm3372_vm1, %v3329_v6 }
 0x5e2   :  { %v3335_v35 = vpop.permute.xlu1 %3334 }
 0x5e3   :  { %3378 = vst.msk [vmem:[%s5082_s2 + $0x28] sm:$0xff] %vm3372_vm1, %v3335_v35 }
 0x5e4   :  { %v3333_v38 = vpop.permute.xlu0 %3332 }
 0x5e5   :  { %3377 = vst.msk [vmem:[%s5082_s2 + $0x20] sm:$0xff] %vm3372_vm1, %v3333_v38 }
 0x5e6   :  { %v3339_v39 = vpop.permute.xlu1 %3338 }
 0x5e7   :  { %3380 = vst.msk [vmem:[%s5082_s2 + $0x38] sm:$0xff] %vm3372_vm1, %v3339_v39 }
 0x5e8   :  { %v3337_v55 = vpop.permute.xlu0 %3336 }
 0x5e9   :  { %3379 = vst.msk [vmem:[%s5082_s2 + $0x30] sm:$0xff] %vm3372_vm1, %v3337_v55 }
 0x5ea   :  { %v3343_v34 = vpop.permute.xlu1 %3342 }
 0x5eb   :  { %3382 = vst.msk [vmem:[%s5082_s2 + $0x48] sm:$0xff] %vm3372_vm1, %v3343_v34 }
 0x5ec   :  { %v3341_v61 = vpop.permute.xlu0 %3340 }
 0x5ed   :  { %3381 = vst.msk [vmem:[%s5082_s2 + $0x40] sm:$0xff] %vm3372_vm1, %v3341_v61 }
 0x5ee   :  { %v3347_v24 = vpop.permute.xlu1 %3346 }
 0x5ef   :  { %3384 = vst.msk [vmem:[%s5082_s2 + $0x58] sm:$0xff] %vm3372_vm1, %v3347_v24 }
 0x5f0   :  { %v3345_v56 = vpop.permute.xlu0 %3344 }
 0x5f1   :  { %3383 = vst.msk [vmem:[%s5082_s2 + $0x50] sm:$0xff] %vm3372_vm1, %v3345_v56 }
 0x5f2   :  { %v3351_v51 = vpop.permute.xlu1 %3350 }
 0x5f3   :  { %3386 = vst.msk [vmem:[%s5082_s2 + $0x68] sm:$0xff] %vm3372_vm1, %v3351_v51 }
 0x5f4   :  { %v3349_v60 = vpop.permute.xlu0 %3348 }
 0x5f5   :  { %3385 = vst.msk [vmem:[%s5082_s2 + $0x60] sm:$0xff] %vm3372_vm1, %v3349_v60 }
 0x5f6   :  { %v3355_v54 = vpop.permute.xlu1 %3354 }
 0x5f7   :  { %3388 = vst.msk [vmem:[%s5082_s2 + $0x78] sm:$0xff] %vm3372_vm1, %v3355_v54 }
 0x5f8   :  { %v3353_v7 = vpop.permute.xlu0 %3352 }
 0x5f9   :  { %3387 = vst.msk [vmem:[%s5082_s2 + $0x70] sm:$0xff] %vm3372_vm1, %v3353_v7 }

// kernel: encoder_rgbt_swin.59
= control target key start
LH: loop header
LB: loop body
LE: loop exit
PB: predicated region body
PF: predicated region fallthrough
CT: control target
= control target key end

     0   :  { %vm21_vm0 = vcmask 523264   ;;  %s206_s0 = inlined_call_operand.vmem [shape: f32[32,64], index: 0, kind: input, shape index: {}]   ;;  %s207_s1 = inlined_call_operand.vmem [shape: f32[1,64], index: 1, kind: input, shape index: {}]   ;;  %s208_s2 = inlined_call_operand.vmem [shape: f32[1,64], index: 2, kind: input, shape index: {}]   ;;  %s209_s3 = inlined_call_operand.hbm [shape: f32[32,64], index: 3, kind: output, shape index: {}]  }
   0x1   :  { %v15_v0 = vld [vmem:[%s206_s0] sm:$0xff]  ;;  %v17_v1 = vld [vmem:[%s206_s0 + $0x10] sm:$0xff]  ;;  %v16_v2 = vld [vmem:[%s206_s0 + $0x8] sm:$0xff] }
   0x2   :  { %v22_v3 = vsel %vm21_vm0, %v15_v0, 0.0  ;;  %v28_v4 = vsel %vm21_vm0, %v17_v1, 0.0  ;;  %v18_v5 = vld [vmem:[%s206_s0 + $0x18] sm:$0xff] }
   0x3   :  { %8 = vsyncpa [#allocation3], 0  ;;  %23 = vadd.xlane.f32.xlu0 %v22_v3  ;;  %29 = vadd.xlane.f32.xlu1 %v28_v4  ;;  %v25_v6 = vsel %vm21_vm0, %v16_v2, 0.0  ;;  %v31_v7 = vsel %vm21_vm0, %v18_v5, 0.0  ;;  %v115_v41 = vld [vmem:[%s207_s1] ss:$0 sm:$0xff] }
   0x4   :  { %v116_v43 = vld [vmem:[%s208_s2] ss:$0 sm:$0xff]  ;;  %s150_s1 = smov [#allocation2]  }
   0x5   :  { %s104_s23 = sshll.u32 %s150_s1, 4  ;;  %s105_s23 = int_to_ptr.vmem [resolvable:$true] %s104_s23 }
   0x6   :  { %s128_s2 = scalar_lea.vmem %s105_s23, 512  ;;  %p133_p1 = scmp.lt.s32.totalorder %s105_s23, %s105_s23 }
   0x7   :  { %26 = vadd.xlane.f32.xlu0 %v25_v6  ;;  %32 = vadd.xlane.f32.xlu1 %v31_v7  ;;  %p129_p0 = scmp.ne.s32.totalorder %s105_s23, %s128_s2  ;;  %p134_p2 = scmp.lt.s32.totalorder %s128_s2, %s128_s2 }
   0x9   :  { %p135_p3 = por %p134_p2, %p133_p1 }
   0xb   :  { %p136_p4 = pnand %p135_p3, %p129_p0 }
  0x8c   :  { %v24_v8 = vpop.xlane.xlu0 %23  ;;  %v30_v9 = vpop.xlane.xlu1 %29 }
  0x8d   :  { %v35_v10 = vmul.f32 0.015625, %v24_v8  ;;  %v37_v11 = vmul.f32 0.015625, %v30_v9 }
  0x8f   :  { %v39_v12 = vsub.f32 %v15_v0, %v35_v10  ;;  %v41_v13 = vsub.f32 %v17_v1, %v37_v11 }
  0x90   :  { %v27_v14 = vpop.xlane.xlu0 %26  ;;  %v33_v15 = vpop.xlane.xlu1 %32 }
  0x91   :  { %v36_v16 = vmul.f32 0.015625, %v27_v14  ;;  %v38_v17 = vmul.f32 0.015625, %v33_v15  ;;  %v43_v18 = vmul.f32 %v39_v12, %v39_v12  ;;  %v45_v19 = vmul.f32 %v41_v13, %v41_v13 }
  0x93   :  { %v40_v20 = vsub.f32 %v16_v2, %v36_v16  ;;  %v42_v21 = vsub.f32 %v18_v5, %v38_v17  ;;  %v47_v22 = vsel %vm21_vm0, %v43_v18, 0.0  ;;  %v53_v23 = vsel %vm21_vm0, %v45_v19, 0.0 }
  0x94   :  { %48 = vadd.xlane.f32.xlu0 %v47_v22 }
  0x95   :  { %v44_v24 = vmul.f32 %v40_v20, %v40_v20  ;;  %v46_v25 = vmul.f32 %v42_v21, %v42_v21 }
  0x97   :  { %v50_v26 = vsel %vm21_vm0, %v44_v24, 0.0  ;;  %v56_v27 = vsel %vm21_vm0, %v46_v25, 0.0 }
  0x98   :  { %54 = vadd.xlane.f32.xlu0 %v53_v23  ;;  %51 = vadd.xlane.f32.xlu1 %v50_v26 }
  0x9c   :  { %57 = vadd.xlane.f32.xlu1 %v56_v27 }
 0x11d   :  { %v49_v28 = vpop.xlane.xlu0 %48 }
 0x11e   :  { %v59_v29 = vmul.f32 0.015625, %v49_v28 }
 0x120   :  { %v63_v30 = vadd.f32 1e-05, %v59_v29 }
 0x121   :  { %v52_v31 = vpop.xlane.xlu1 %51  ;;  %v55_v32 = vpop.xlane.xlu0 %54 }
 0x122   :  { %120 = vrsqrt.f32 %v63_v30  ;;  %v60_v33 = vmul.f32 0.015625, %v52_v31  ;;  %v61_v34 = vmul.f32 0.015625, %v55_v32 }
 0x124   :  { %v64_v35 = vadd.f32 1e-05, %v60_v33  ;;  %v65_v36 = vadd.f32 1e-05, %v61_v34 }
 0x125   :  { %v58_v37 = vpop.xlane.xlu1 %57 }
 0x126   :  { %122 = vrsqrt.f32 %v64_v35  ;;  %v62_v38 = vmul.f32 0.015625, %v58_v37 }
 0x127   :  { %124 = vrsqrt.f32 %v65_v36 }
 0x128   :  { %v66_v39 = vadd.f32 1e-05, %v62_v38 }
 0x12a   :  { %126 = vrsqrt.f32 %v66_v39 }
 0x12f   :  { %v121_v40 = vpop.eup %120 }
 0x130   :  { %v71_v42 = vmul.f32 %v121_v40, %v39_v12 }
 0x132   :  { %v81_v44 = vmul.f32 %v115_v41, %v71_v42 }
 0x133   :  { %v123_v45 = vpop.eup %122 }
 0x134   :  { %v125_v46 = vpop.eup %124  ;;  %v72_v47 = vmul.f32 %v123_v45, %v40_v20  ;;  %v91_v48 = vadd.f32 %v116_v43, %v81_v44 }
 0x135   :  { %v73_v49 = vmul.f32 %v125_v46, %v41_v13 }
 0x136   :  { %v82_v50 = vmul.f32 %v115_v41, %v72_v47  ;;  %95 = vst.msk [vmem:[#allocation2] sm:$0xff] %vm21_vm0, %v91_v48 }
 0x137   :  { %v127_v51 = vpop.eup %126  ;;  %v83_v52 = vmul.f32 %v115_v41, %v73_v49 }
 0x138   :  { %v74_v53 = vmul.f32 %v127_v51, %v42_v21  ;;  %v92_v54 = vadd.f32 %v116_v43, %v82_v50 }
 0x139   :  { %v93_v55 = vadd.f32 %v116_v43, %v83_v52 }
 0x13a   :  { %v84_v56 = vmul.f32 %v115_v41, %v74_v53  ;;  %96 = vst.msk [vmem:[#allocation2 + $0x8] sm:$0xff] %vm21_vm0, %v92_v54 }
 0x13b   :  { %97 = vst.msk [vmem:[#allocation2 + $0x10] sm:$0xff] %vm21_vm0, %v93_v55 }
 0x13c   :  { %v94_v57 = vadd.f32 %v116_v43, %v84_v56 }
 0x13e   :  { %98 = vst.msk [vmem:[#allocation2 + $0x18] sm:$0xff] %vm21_vm0, %v94_v57 }
 0x13f   :  { %139 = shalt.err (!%p136_p4)
}
 0x140   :  { %s151_s24 = smov 128   ;;  %s152_s25 = smov 8  }
 0x141   :  { %110 = dma.vmem_to_hbm [thread:$0]  %s105_s23, 512, %s209_s3, [#allocation3], %s151_s24, %s151_s24, %s152_s25  }
 0x142   :  { %148 = dma.done.wait [#allocation3], 512  }
 0x143   :  { %149 = vsyncadd [#allocation3], 4294966784 }
 0x144   :  { %114 = vsyncpa [#allocation3], 1 }

// kernel: encoder_rgbt_swin.53
= control target key start
LH: loop header
LB: loop body
LE: loop exit
PB: predicated region body
PF: predicated region fallthrough
CT: control target
= control target key end

     0   :  { %vm33_vm0 = vcmask 523264   ;;  %s273_s1 = inlined_call_operand.vmem [shape: f32[64,64], index: 1, kind: input, shape index: {}]   ;;  %s274_s0 = inlined_call_operand.vmem [shape: f32[32,64], index: 0, kind: input, shape index: {}]   ;;  %s275_s2 = inlined_call_operand.vmem [shape: f32[1,64], index: 2, kind: input, shape index: {}]   ;;  %s276_s3 = inlined_call_operand.vmem [shape: f32[32,64], index: 3, kind: output, shape index: {}]  }
   0x1   :  { %v25_v0 = vld [vmem:[%s273_s1 + $0x38] sm:$0xff]  ;;  %v24_v1 = vld [vmem:[%s273_s1 + $0x30] sm:$0xff]  ;;  %v23_v2 = vld [vmem:[%s273_s1 + $0x28] sm:$0xff] }
   0x2   :  { %156 = vmatprep.subr.mxu0 %v25_v0  ;;  %178 = vmatprep.subr.mxu1 %v25_v0  ;;  %v22_v3 = vld [vmem:[%s273_s1 + $0x20] sm:$0xff]  ;;  %v21_v4 = vld [vmem:[%s273_s1 + $0x18] sm:$0xff]  ;;  %v20_v5 = vld [vmem:[%s273_s1 + $0x10] sm:$0xff] }
   0x3   :  { %157 = vmatpush3.msra.mxu0 %v25_v0  ;;  %186 = vmatpush3.msra.mxu1 %v25_v0  ;;  %v19_v6 = vld [vmem:[%s273_s1 + $0x8] sm:$0xff]  ;;  %v18_v7 = vld [vmem:[%s273_s1] sm:$0xff]  ;;  %v16_v9 = vld [vmem:[%s274_s0 + $0x10] sm:$0xff] }
   0x4   :  { %158 = vmatprep.subr.mxu0 %v24_v1  ;;  %179 = vmatprep.subr.mxu1 %v24_v1  ;;  %v14_v8 = vld [vmem:[%s274_s0] sm:$0xff]  ;;  %v15_v10 = vld [vmem:[%s274_s0 + $0x8] sm:$0xff]  ;;  %v17_v11 = vld [vmem:[%s274_s0 + $0x18] sm:$0xff] }
   0x5   :  { %159 = vmatpush3.msra.mxu0 %v24_v1  ;;  %187 = vmatpush3.msra.mxu1 %v24_v1  ;;  %v139_v12 = vld [vmem:[%s275_s2] ss:$0 sm:$0xff] }
   0x6   :  { %160 = vmatprep.subr.mxu0 %v23_v2  ;;  %180 = vmatprep.subr.mxu1 %v23_v2 }
   0x7   :  { %161 = vmatpush3.msra.mxu0 %v23_v2  ;;  %188 = vmatpush3.msra.mxu1 %v23_v2 }
   0x8   :  { %162 = vmatprep.subr.mxu0 %v22_v3  ;;  %181 = vmatprep.subr.mxu1 %v22_v3 }
   0x9   :  { %163 = vmatpush3.msra.mxu0 %v22_v3  ;;  %189 = vmatpush3.msra.mxu1 %v22_v3 }
   0xa   :  { %164 = vmatprep.subr.mxu0 %v21_v4  ;;  %182 = vmatprep.subr.mxu1 %v21_v4 }
   0xb   :  { %165 = vmatpush3.msra.mxu0 %v21_v4  ;;  %190 = vmatpush3.msra.mxu1 %v21_v4 }
   0xc   :  { %166 = vmatprep.subr.mxu0 %v20_v5  ;;  %183 = vmatprep.subr.mxu1 %v20_v5 }
   0xd   :  { %167 = vmatpush3.msra.mxu0 %v20_v5  ;;  %191 = vmatpush3.msra.mxu1 %v20_v5 }
   0xe   :  { %168 = vmatprep.subr.mxu0 %v19_v6  ;;  %184 = vmatprep.subr.mxu1 %v19_v6 }
   0xf   :  { %169 = vmatpush3.msra.mxu0 %v19_v6  ;;  %192 = vmatpush3.msra.mxu1 %v19_v6 }
  0x10   :  { %170 = vmatprep.subr.mxu0 %v18_v7  ;;  %185 = vmatprep.subr.mxu1 %v18_v7 }
  0x11   :  { %171 = vmatpush3.msra.mxu0 %v18_v7  ;;  %193 = vmatpush3.msra.mxu1 %v18_v7 }
  0x12   :  { %172 = vmatprep.mubr.msk.f32.mxu0 %vm33_vm0, %v14_v8  ;;  %175 = vmatprep.mubr.msk.f32.mxu1 %vm33_vm0, %v16_v9 }
  0x13   :  { %173 = vmatmul.mubr.msk.f32.vlgmr.msra.gmra.mxu0 %vm33_vm0, %v15_v10  ;;  %176 = vmatmul.mubr.msk.f32.vlgmr.msra.gmra.mxu1 %vm33_vm0, %v17_v11 }
  0xd3   :  { %v174_v13 = vpop.f32.mrf.mxu0  ;;  %v177_v14 = vpop.f32.mrf.mxu1 }
  0xd4   :  { %v118_v15 = vadd.f32 %v174_v13, %v139_v12  ;;  %v128_v16 = vadd.f32 %v177_v14, %v139_v12 }
  0xd5   :  { %v112_v17 = vpop.f32.mrf.mxu0  ;;  %v122_v18 = vpop.f32.mrf.mxu1 }
  0xd6   :  { %132 = vst.msk [vmem:[%s276_s3 + $0x8] sm:$0xff] %vm33_vm0, %v118_v15  ;;  %134 = vst.msk [vmem:[%s276_s3 + $0x18] sm:$0xff] %vm33_vm0, %v128_v16  ;;  %v113_v19 = vadd.f32 %v139_v12, %v112_v17  ;;  %v123_v20 = vadd.f32 %v139_v12, %v122_v18 }
  0xd8   :  { %131 = vst.msk [vmem:[%s276_s3] sm:$0xff] %vm33_vm0, %v113_v19  ;;  %133 = vst.msk [vmem:[%s276_s3 + $0x10] sm:$0xff] %vm33_vm0, %v123_v20 }

// kernel: encoder_rgbt_swin.52
= control target key start
LH: loop header
LB: loop body
LE: loop exit
PB: predicated region body
PF: predicated region fallthrough
CT: control target
= control target key end

     0   :  { %s2006_s13 = smov 64   ;;  %vm37_vm0 = vcmask 130048   ;;  %s2007_s22 = smov 48   ;;  %vm852_vm1 = vcmask 261248   ;;  %vm1277_vm2 = vcmask 392448   ;;  %vm1702_vm3 = vcmask 523648   ;;  %s2368_s0 = inlined_call_operand.vmem [shape: f32[2,16,192], index: 0, kind: input, shape index: {}]   ;;  %s2369_s1 = inlined_call_operand.vmem [shape: f32[1,4,16,16], index: 1, kind: input, shape index: {}]   ;;  %s2370_s2 = inlined_call_operand.vmem [shape: f32[2,16,64], index: 2, kind: output, shape index: {}]  }
   0x1   :  { %v2031_v0 = vld [vmem:[%s2368_s0 + $0x10] sm:$0xff]  ;;  %v2036_v1 = vld [vmem:[%s2368_s0] sm:$0xff]  ;;  %v20_v14 = vld [vmem:[%s2369_s1 + $0x8] sm:$0xff]  ;;  %s2008_s3 = smov 112   ;;  %s2009_s15 = smov 32  }
   0x2   :  { %35 = vrot.lane.b32.xlu0 %v2031_v0, %s2006_s13  ;;  %33 = vrot.lane.b32.xlu1 %v2036_v1, %s2006_s13  ;;  %v2043_v2 = vld [vmem:[%s2368_s0 + $0x20] sm:$0xff]  ;;  %v2046_v3 = vmul.f32 0.25, %v2036_v1  ;;  %v2051_v4 = vld [vmem:[%s2368_s0 + $0x30] sm:$0xff]  ;;  %v2067_v10 = vmul.f32 0.25, %v2031_v0  ;;  %s2010_s16 = smov 96   ;;  %s2011_s21 = smov 16  }
   0x3   :  { %v2054_v5 = vmul.f32 0.25, %v2043_v2  ;;  %v2075_v11 = vmul.f32 0.25, %v2051_v4  ;;  %v19_v13 = vld [vmem:[%s2369_s1] sm:$0xff]  ;;  %v2095_v26 = vld [vmem:[%s2368_s0 + $0x18] sm:$0xff]  ;;  %v2100_v27 = vld [vmem:[%s2368_s0 + $0x8] sm:$0xff]  ;;  %s2012_s23 = smov 80  }
   0x4   :  { %1827 = vmatprep.mubr.msk.f32.mxu0 %vm37_vm0, %v2046_v3  ;;  %v2114_v49 = vld [vmem:[%s2368_s0 + $0x38] sm:$0xff]  ;;  %v2119_v50 = vld [vmem:[%s2368_s0 + $0x28] sm:$0xff] }
   0x5   :  { %1834 = vmatprep.mubr.msk.f32.mxu1 %vm37_vm0, %v2054_v5 }
   0x6   :  { %127 = vrot.lane.b32.xlu0 %v2051_v4, %s2006_s13  ;;  %125 = vrot.lane.b32.xlu1 %v2043_v2, %s2006_s13 }
  0x74   :  { %v36_v6 = vpop.permute.xlu0 %35  ;;  %v34_v7 = vpop.permute.xlu1 %33 }
  0x75   :  { %1823 = vmatprep.subr.msk.mxu0 %vm37_vm0, %v36_v6 }
  0x76   :  { %1824 = vmatpush3.xpose.msk.msra.mxu0 %vm37_vm0, %v36_v6 }
  0x77   :  { %1825 = vmatprep.subr.msk.mxu0 %vm37_vm0, %v34_v7 }
  0x78   :  { %v128_v8 = vpop.permute.xlu0 %127  ;;  %v126_v9 = vpop.permute.xlu1 %125 }
  0x79   :  { %1830 = vmatprep.subr.msk.mxu1 %vm37_vm0, %v128_v8 }
  0x7a   :  { %1826 = vmatpush3.xpose.msk.msra.mxu0 %vm37_vm0, %v34_v7  ;;  %1831 = vmatpush3.xpose.msk.msra.mxu1 %vm37_vm0, %v128_v8 }
  0x7b   :  { %1832 = vmatprep.subr.msk.mxu1 %vm37_vm0, %v126_v9  ;;  %1837 = vmatprep.subr.mxu0 %v2095_v26 }
  0x7d   :  { %1828 = vmatmul.mubr.msk.f32.vlgmr.msra.gmra.mxu0 %vm37_vm0, %v2067_v10 }
  0x7e   :  { %1833 = vmatpush3.xpose.msk.msra.mxu1 %vm37_vm0, %v126_v9  ;;  %1838 = vmatpush3.msra.mxu0 %v2095_v26 }
  0x7f   :  { %1839 = vmatprep.subr.mxu0 %v2100_v27  ;;  %1844 = vmatprep.subr.mxu1 %v2114_v49 }
  0x80   :  { %1840 = vmatpush3.msra.mxu0 %v2100_v27 }
  0x81   :  { %1835 = vmatmul.mubr.msk.f32.vlgmr.msra.gmra.mxu1 %vm37_vm0, %v2075_v11 }
  0x82   :  { %1845 = vmatpush3.msra.mxu1 %v2114_v49 }
  0x83   :  { %1846 = vmatprep.subr.mxu1 %v2119_v50 }
  0x84   :  { %1847 = vmatpush3.msra.mxu1 %v2119_v50 }
 0x13d   :  { %v1829_v12 = vpop.f32.mrf.mxu0 }
 0x13e   :  { %v215_v18 = vadd.f32 %v1829_v12, %v20_v14 }
 0x13f   :  { %v114_v15 = vpop.f32.mrf.mxu0 }
 0x140   :  { %v214_v16 = vadd.f32 %v114_v15, %v19_v13  ;;  %v221_v24 = vsel %vm37_vm0, %v215_v18, -inf }
 0x141   :  { %v1836_v17 = vpop.f32.mrf.mxu1 }
 0x142   :  { %v218_v19 = vsel %vm37_vm0, %v214_v16, -inf  ;;  %v217_v21 = vadd.f32 %v1836_v17, %v20_v14 }
 0x143   :  { %v205_v20 = vpop.f32.mrf.mxu1  ;;  %219 = vmax.xlane.f32.xlu0 %v218_v19  ;;  %v21_v19 = vld [vmem:[%s2369_s1 + $0x10] sm:$0xff] }
 0x144   :  { %v216_v22 = vadd.f32 %v205_v20, %v19_v13  ;;  %v227_v25 = vsel %vm37_vm0, %v217_v21, -inf  ;;  %v22_v20 = vld [vmem:[%s2369_s1 + $0x18] sm:$0xff] }
 0x146   :  { %v224_v23 = vsel %vm37_vm0, %v216_v22, -inf }
 0x147   :  { %225 = vmax.xlane.f32.xlu1 %v224_v23  ;;  %222 = vmax.xlane.f32.xlu0 %v221_v24 }
 0x14b   :  { %228 = vmax.xlane.f32.xlu0 %v227_v25 }
 0x158   :  { %434 = vrot.lane.b32.xlu1 %v2031_v0, %s2007_s22 }
 0x1cc   :  { %v220_v28 = vpop.xlane.xlu0 %219 }
 0x1cd   :  { %v230_v29 = vsub.f32 %v214_v16, %v220_v28 }
 0x1cf   :  { %v234_v35 = vmul.f32 1.442695, %v230_v29 }
 0x1d0   :  { %v226_v30 = vpop.xlane.xlu1 %225  ;;  %v223_v31 = vpop.xlane.xlu0 %222 }
 0x1d1   :  { %v231_v32 = vsub.f32 %v215_v18, %v223_v31  ;;  %v232_v33 = vsub.f32 %v216_v22, %v226_v30 }
 0x1d3   :  { %v236_v34 = vmul.f32 1.442695, %v231_v32  ;;  %v238_v39 = vmul.f32 1.442695, %v232_v33 }
 0x1d4   :  { %v229_v36 = vpop.xlane.xlu0 %228  ;;  %v435_v37 = vpop.permute.xlu1 %434 }
 0x1d5   :  { %v233_v38 = vsub.f32 %v217_v21, %v229_v36  ;;  %1851 = vmatprep.subr.msk.mxu0 %vm37_vm0, %v435_v37  ;;  %1942 = vpow2.f32 %v236_v34 }
 0x1d6   :  { %1944 = vpow2.f32 %v234_v35 }
 0x1d7   :  { %v240_v40 = vmul.f32 1.442695, %v233_v38 }
 0x1d9   :  { %1946 = vpow2.f32 %v240_v40 }
 0x1da   :  { %1948 = vpow2.f32 %v238_v39 }
 0x1e2   :  { %v1943_v41 = vpop.eup %1942 }
 0x1e3   :  { %v245_v42 = vsel %vm37_vm0, %v1943_v41, 0.0  ;;  %v1945_v43 = vpop.eup %1944 }
 0x1e4   :  { %246 = vadd.xlane.f32.xlu1 %v245_v42  ;;  %v242_v47 = vsel %vm37_vm0, %v1945_v43, 0.0 }
 0x1e6   :  { %v1947_v44 = vpop.eup %1946 }
 0x1e7   :  { %v251_v45 = vsel %vm37_vm0, %v1947_v44, 0.0  ;;  %v1949_v46 = vpop.eup %1948 }
 0x1e8   :  { %252 = vadd.xlane.f32.xlu0 %v251_v45  ;;  %243 = vadd.xlane.f32.xlu1 %v242_v47  ;;  %v248_v48 = vsel %vm37_vm0, %v1949_v46, 0.0 }
 0x1ec   :  { %249 = vadd.xlane.f32.xlu0 %v248_v48 }
 0x1f9   :  { %432 = vrot.lane.b32.xlu1 %v2036_v1, %s2007_s22 }
 0x1fd   :  { %523 = vrot.lane.b32.xlu1 %v2043_v2, %s2007_s22 }
 0x201   :  { %519 = vrot.lane.b32.xlu1 %v2054_v5, %s2008_s3 }
 0x202   :  { %525 = vrot.lane.b32.xlu0 %v2051_v4, %s2007_s22 }
 0x205   :  { %521 = vrot.lane.b32.xlu1 %v2075_v11, %s2008_s3 }
 0x206   :  { %428 = vrot.lane.b32.xlu0 %v2046_v3, %s2008_s3 }
 0x20a   :  { %430 = vrot.lane.b32.xlu0 %v2067_v10, %s2008_s3 }
 0x26d   :  { %v247_v51 = vpop.xlane.xlu1 %246 }
 0x26e   :  { %1950 = vrcp.f32 %v247_v51 }
 0x271   :  { %v253_v52 = vpop.xlane.xlu0 %252  ;;  %v244_v53 = vpop.xlane.xlu1 %243 }
 0x272   :  { %1952 = vrcp.f32 %v244_v53 }
 0x273   :  { %1954 = vrcp.f32 %v253_v52 }
 0x275   :  { %v250_v54 = vpop.xlane.xlu0 %249  ;;  %v433_v56 = vpop.permute.xlu1 %432 }
 0x276   :  { %1956 = vrcp.f32 %v250_v54 }
 0x279   :  { %v526_v55 = vpop.permute.xlu0 %525  ;;  %v524_v59 = vpop.permute.xlu1 %523 }
 0x27a   :  { %1858 = vmatprep.subr.msk.mxu1 %vm37_vm0, %v526_v55 }
 0x27b   :  { %v1951_v57 = vpop.eup %1950 }
 0x27c   :  { %v259_v62 = vmul.f32 %v1951_v57, %v1943_v41 }
 0x27d   :  { %v429_v63 = vpop.permute.xlu0 %428  ;;  %v520_v9 = vpop.permute.xlu1 %519 }
 0x27f   :  { %v1953_v58 = vpop.eup %1952 }
 0x280   :  { %v258_v60 = vmul.f32 %v1953_v58, %v1945_v43  ;;  %v1955_v61 = vpop.eup %1954 }
 0x281   :  { %v261_v8 = vmul.f32 %v1955_v61, %v1947_v44  ;;  %v431_v12 = vpop.permute.xlu0 %430  ;;  %v522_v13 = vpop.permute.xlu1 %521 }
 0x282   :  { %1841 = vmatprep.mubr.msk.f32.mxu0 %vm37_vm0, %v258_v60 }
 0x283   :  { %v1957_v6 = vpop.eup %1956  ;;  %1842 = vmatmul.mubr.msk.f32.vlgmr.msra.gmra.mxu0 %vm37_vm0, %v259_v62 }
 0x284   :  { %v260_v7 = vmul.f32 %v1957_v6, %v1949_v46  ;;  %1852 = vmatpush3.xpose.msk.msra.mxu0 %vm37_vm0, %v435_v37  ;;  %1855 = vmatprep.mubr.msk.f32.mxu0 %vm37_vm0, %v429_v63 }
 0x285   :  { %1853 = vmatprep.subr.msk.mxu0 %vm37_vm0, %v433_v56 }
 0x286   :  { %1848 = vmatprep.mubr.msk.f32.mxu1 %vm37_vm0, %v260_v7 }
 0x287   :  { %1849 = vmatmul.mubr.msk.f32.vlgmr.msra.gmra.mxu1 %vm37_vm0, %v261_v8 }
 0x288   :  { %1859 = vmatpush3.xpose.msk.msra.mxu1 %vm37_vm0, %v526_v55  ;;  %1862 = vmatprep.mubr.msk.f32.mxu1 %vm37_vm0, %v520_v9 }
 0x289   :  { %1854 = vmatpush3.xpose.msk.msra.mxu0 %vm37_vm0, %v433_v56  ;;  %1860 = vmatprep.subr.msk.mxu1 %vm37_vm0, %v524_v59 }
 0x28c   :  { %1856 = vmatmul.mubr.msk.f32.vlgmr.msra.gmra.mxu0 %vm37_vm0, %v431_v12  ;;  %1861 = vmatpush3.xpose.msk.msra.mxu1 %vm37_vm0, %v524_v59 }
 0x28f   :  { %1863 = vmatmul.mubr.msk.f32.vlgmr.msra.gmra.mxu1 %vm37_vm0, %v522_v13 }
 0x343   :  { %v1843_v14 = vpop.f32.mrf.mxu0 }
 0x344   :  { %425 = vst.msk [vmem:[%s2370_s2 + $0x8] sm:$0xff] %vm37_vm0, %v1843_v14 }
 0x345   :  { %v334_v15 = vpop.f32.mrf.mxu0 }
 0x346   :  { %424 = vst.msk [vmem:[%s2370_s2] sm:$0xff] %vm37_vm0, %v334_v15 }
 0x347   :  { %v1850_v16 = vpop.f32.mrf.mxu1 }
 0x348   :  { %427 = vst.msk [vmem:[%s2370_s2 + $0x18] sm:$0xff] %vm37_vm0, %v1850_v16 }
 0x349   :  { %v415_v17 = vpop.f32.mrf.mxu1 }
 0x34a   :  { %426 = vst.msk [vmem:[%s2370_s2 + $0x10] sm:$0xff] %vm37_vm0, %v415_v17 }
 0x34c   :  { %v1857_v18 = vpop.f32.mrf.mxu0 }
 0x34d   :  { %v611_v24 = vadd.f32 %v1857_v18, %v22_v20 }
 0x34e   :  { %v510_v21 = vpop.f32.mrf.mxu0 }
 0x34f   :  { %v610_v22 = vadd.f32 %v510_v21, %v21_v19  ;;  %v1864_v23 = vpop.f32.mrf.mxu1  ;;  %v617_v32 = vsel %vm37_vm0, %v611_v24, -inf }
 0x350   :  { %v613_v30 = vadd.f32 %v1864_v23, %v22_v20 }
 0x351   :  { %v601_v25 = vpop.f32.mrf.mxu1  ;;  %v614_v28 = vsel %vm37_vm0, %v610_v22, -inf }
 0x352   :  { %v612_v29 = vadd.f32 %v601_v25, %v21_v19  ;;  %615 = vmax.xlane.f32.xlu0 %v614_v28  ;;  %v623_v33 = vsel %vm37_vm0, %v613_v30, -inf }
 0x354   :  { %v620_v31 = vsel %vm37_vm0, %v612_v29, -inf }
 0x355   :  { %621 = vmax.xlane.f32.xlu1 %v620_v31 }
 0x356   :  { %618 = vmax.xlane.f32.xlu0 %v617_v32  ;;  %v24_v32 = vld [vmem:[%s2369_s1 + $0x28] sm:$0xff] }
 0x35a   :  { %624 = vmax.xlane.f32.xlu0 %v623_v33 }
 0x366   :  { %662 = vrot.lane.b32.xlu1 %v2095_v26, %s2008_s3 }
 0x36a   :  { %660 = vrot.lane.b32.xlu1 %v2100_v27, %s2008_s3 }
 0x36e   :  { %749 = vrot.lane.b32.xlu1 %v2119_v50, %s2008_s3 }
 0x370   :  { %751 = vrot.lane.b32.xlu0 %v2114_v49, %s2008_s3 }
 0x372   :  { %954 = vrot.lane.b32.xlu1 %v2051_v4, %s2009_s15 }
 0x374   :  { %863 = vrot.lane.b32.xlu0 %v2031_v0, %s2009_s15 }
 0x3db   :  { %v616_v34 = vpop.xlane.xlu0 %615 }
 0x3dc   :  { %v626_v35 = vsub.f32 %v610_v22, %v616_v34 }
 0x3de   :  { %v622_v36 = vpop.xlane.xlu1 %621  ;;  %v630_v39 = vmul.f32 1.442695, %v626_v35 }
 0x3df   :  { %v619_v37 = vpop.xlane.xlu0 %618  ;;  %v628_v40 = vsub.f32 %v612_v29, %v622_v36 }
 0x3e0   :  { %v627_v38 = vsub.f32 %v611_v24, %v619_v37 }
 0x3e1   :  { %v634_v45 = vmul.f32 1.442695, %v628_v40 }
 0x3e2   :  { %v632_v41 = vmul.f32 1.442695, %v627_v38  ;;  %v663_v42 = vpop.permute.xlu1 %662 }
 0x3e3   :  { %v625_v43 = vpop.xlane.xlu0 %624  ;;  %1865 = vmatprep.subr.mxu0 %v663_v42 }
 0x3e4   :  { %1958 = vpow2.f32 %v632_v41  ;;  %v629_v44 = vsub.f32 %v613_v30, %v625_v43  ;;  %1866 = vmatpush3.msra.mxu0 %v663_v42  ;;  %v23_v30 = vld [vmem:[%s2369_s1 + $0x20] sm:$0xff] }
 0x3e5   :  { %1960 = vpow2.f32 %v630_v39 }
 0x3e6   :  { %v636_v46 = vmul.f32 1.442695, %v629_v44  ;;  %v661_v47 = vpop.permute.xlu1 %660 }
 0x3e7   :  { %1867 = vmatprep.subr.mxu0 %v661_v47  ;;  %v752_v48 = vpop.permute.xlu0 %751 }
 0x3e8   :  { %1962 = vpow2.f32 %v636_v46  ;;  %1868 = vmatpush3.msra.mxu0 %v661_v47  ;;  %1872 = vmatprep.subr.mxu1 %v752_v48 }
 0x3e9   :  { %1873 = vmatpush3.msra.mxu1 %v752_v48  ;;  %1964 = vpow2.f32 %v634_v45 }
 0x3ea   :  { %v750_v51 = vpop.permute.xlu1 %749 }
 0x3eb   :  { %1874 = vmatprep.subr.mxu1 %v750_v51  ;;  %v864_v52 = vpop.permute.xlu0 %863 }
 0x3ec   :  { %1875 = vmatpush3.msra.mxu1 %v750_v51  ;;  %1879 = vmatprep.subr.msk.mxu0 %vm37_vm0, %v864_v52 }
 0x3ee   :  { %v955_v53 = vpop.permute.xlu1 %954 }
 0x3ef   :  { %1886 = vmatprep.subr.msk.mxu1 %vm37_vm0, %v955_v53 }
 0x3f1   :  { %v1959_v54 = vpop.eup %1958 }
 0x3f2   :  { %v641_v55 = vsel %vm37_vm0, %v1959_v54, 0.0  ;;  %v1961_v56 = vpop.eup %1960 }
 0x3f3   :  { %642 = vadd.xlane.f32.xlu1 %v641_v55  ;;  %v638_v58 = vsel %vm37_vm0, %v1961_v56, 0.0 }
 0x3f5   :  { %v1963_v57 = vpop.eup %1962 }
 0x3f6   :  { %v647_v59 = vsel %vm37_vm0, %v1963_v57, 0.0  ;;  %v1965_v60 = vpop.eup %1964 }
 0x3f7   :  { %639 = vadd.xlane.f32.xlu1 %v638_v58  ;;  %648 = vadd.xlane.f32.xlu0 %v647_v59  ;;  %v644_v61 = vsel %vm37_vm0, %v1965_v60, 0.0 }
 0x3fb   :  { %645 = vadd.xlane.f32.xlu0 %v644_v61 }
 0x408   :  { %952 = vrot.lane.b32.xlu1 %v2043_v2, %s2009_s15 }
 0x40c   :  { %948 = vrot.lane.b32.xlu1 %v2054_v5, %s2010_s16 }
 0x410   :  { %950 = vrot.lane.b32.xlu1 %v2075_v11, %s2010_s16 }
 0x411   :  { %861 = vrot.lane.b32.xlu0 %v2036_v1, %s2009_s15 }
 0x415   :  { %857 = vrot.lane.b32.xlu0 %v2046_v3, %s2010_s16 }
 0x419   :  { %859 = vrot.lane.b32.xlu0 %v2067_v10, %s2010_s16 }
 0x47c   :  { %v643_v62 = vpop.xlane.xlu1 %642 }
 0x47d   :  { %1966 = vrcp.f32 %v643_v62 }
 0x480   :  { %v640_v63 = vpop.xlane.xlu1 %639  ;;  %v649_v6 = vpop.xlane.xlu0 %648 }
 0x481   :  { %1968 = vrcp.f32 %v640_v63 }
 0x482   :  { %1970 = vrcp.f32 %v649_v6 }
 0x484   :  { %v646_v7 = vpop.xlane.xlu0 %645  ;;  %v953_v14 = vpop.permute.xlu1 %952 }
 0x485   :  { %1972 = vrcp.f32 %v646_v7 }
 0x488   :  { %v862_v8 = vpop.permute.xlu0 %861  ;;  %v949_v21 = vpop.permute.xlu1 %948 }
 0x48a   :  { %v1967_v9 = vpop.eup %1966 }
 0x48b   :  { %v655_v15 = vmul.f32 %v1967_v9, %v1959_v54 }
 0x48c   :  { %v858_v16 = vpop.permute.xlu0 %857  ;;  %v951_v23 = vpop.permute.xlu1 %950 }
 0x48e   :  { %v1969_v12 = vpop.eup %1968 }
 0x48f   :  { %v654_v13 = vmul.f32 %v1969_v12, %v1961_v56  ;;  %v1971_v17 = vpop.eup %1970 }
 0x490   :  { %v657_v20 = vmul.f32 %v1971_v17, %v1963_v57  ;;  %v860_v22 = vpop.permute.xlu0 %859 }
 0x491   :  { %1869 = vmatprep.mubr.msk.f32.mxu0 %vm37_vm0, %v654_v13 }
 0x492   :  { %v1973_v18 = vpop.eup %1972  ;;  %1870 = vmatmul.mubr.msk.f32.vlgmr.msra.gmra.mxu0 %vm37_vm0, %v655_v15 }
 0x493   :  { %1880 = vmatpush3.xpose.msk.msra.mxu0 %vm37_vm0, %v864_v52  ;;  %v656_v19 = vmul.f32 %v1973_v18, %v1965_v60  ;;  %1883 = vmatprep.mubr.msk.f32.mxu0 %vm37_vm0, %v858_v16 }
 0x494   :  { %1881 = vmatprep.subr.msk.mxu0 %vm37_vm0, %v862_v8 }
 0x495   :  { %1876 = vmatprep.mubr.msk.f32.mxu1 %vm37_vm0, %v656_v19 }
 0x496   :  { %1877 = vmatmul.mubr.msk.f32.vlgmr.msra.gmra.mxu1 %vm37_vm0, %v657_v20 }
 0x497   :  { %1882 = vmatpush3.xpose.msk.msra.mxu0 %vm37_vm0, %v862_v8  ;;  %1887 = vmatpush3.xpose.msk.msra.mxu1 %vm37_vm0, %v955_v53 }
 0x498   :  { %1888 = vmatprep.subr.msk.mxu1 %vm37_vm0, %v953_v14  ;;  %1890 = vmatprep.mubr.msk.f32.mxu1 %vm37_vm0, %v949_v21 }
 0x49a   :  { %1884 = vmatmul.mubr.msk.f32.vlgmr.msra.gmra.mxu0 %vm37_vm0, %v860_v22 }
 0x49b   :  { %1889 = vmatpush3.xpose.msk.msra.mxu1 %vm37_vm0, %v953_v14 }
 0x49e   :  { %1891 = vmatmul.mubr.msk.f32.vlgmr.msra.gmra.mxu1 %vm37_vm0, %v951_v23 }
 0x552   :  { %v2224_v24 = vpop.f32.mrf.mxu0 }
 0x554   :  { %v2226_v25 = vpop.f32.mrf.mxu0 }
 0x556   :  { %v2228_v28 = vpop.f32.mrf.mxu1 }
 0x558   :  { %v2233_v31 = vpop.f32.mrf.mxu1 }
 0x55a   :  { %v1885_v29 = vpop.f32.mrf.mxu0 }
 0x55b   :  { %v1040_v36 = vadd.f32 %v1885_v29, %v24_v32 }
 0x55c   :  { %v939_v33 = vpop.f32.mrf.mxu0 }
 0x55d   :  { %v1039_v34 = vadd.f32 %v939_v33, %v23_v30  ;;  %v1046_v42 = vsel %vm37_vm0, %v1040_v36, -inf }
 0x55e   :  { %v1892_v35 = vpop.f32.mrf.mxu1 }
 0x55f   :  { %v1043_v37 = vsel %vm37_vm0, %v1039_v34, -inf  ;;  %v1042_v39 = vadd.f32 %v1892_v35, %v24_v32 }
 0x560   :  { %v1030_v38 = vpop.f32.mrf.mxu1  ;;  %1044 = vmax.xlane.f32.xlu0 %v1043_v37 }
 0x561   :  { %v1041_v40 = vadd.f32 %v1030_v38, %v23_v30  ;;  %v1052_v43 = vsel %vm37_vm0, %v1042_v39, -inf  ;;  %v26_v38 = vld [vmem:[%s2369_s1 + $0x38] sm:$0xff] }
 0x563   :  { %v1049_v41 = vsel %vm37_vm0, %v1041_v40, -inf }
 0x564   :  { %1050 = vmax.xlane.f32.xlu1 %v1049_v41  ;;  %1047 = vmax.xlane.f32.xlu0 %v1046_v42 }
 0x568   :  { %1053 = vmax.xlane.f32.xlu0 %v1052_v43 }
 0x575   :  { %1089 = vrot.lane.b32.xlu1 %v2095_v26, %s2010_s16 }
 0x579   :  { %1087 = vrot.lane.b32.xlu1 %v2100_v27, %s2010_s16 }
 0x57d   :  { %1174 = vrot.lane.b32.xlu1 %v2119_v50, %s2010_s16 }
 0x57e   :  { %1176 = vrot.lane.b32.xlu0 %v2114_v49, %s2010_s16 }
 0x581   :  { %1379 = vrot.lane.b32.xlu1 %v2051_v4, %s2011_s21 }
 0x582   :  { %1288 = vrot.lane.b32.xlu0 %v2031_v0, %s2011_s21 }
 0x5e9   :  { %v1045_v44 = vpop.xlane.xlu0 %1044 }
 0x5ea   :  { %v1055_v45 = vsub.f32 %v1039_v34, %v1045_v44 }
 0x5ec   :  { %v1059_v53 = vmul.f32 1.442695, %v1055_v45 }
 0x5ed   :  { %v1051_v46 = vpop.xlane.xlu1 %1050  ;;  %v1048_v47 = vpop.xlane.xlu0 %1047 }
 0x5ee   :  { %v1056_v48 = vsub.f32 %v1040_v36, %v1048_v47  ;;  %v1057_v51 = vsub.f32 %v1041_v40, %v1051_v46  ;;  %v25_v36 = vld [vmem:[%s2369_s1 + $0x30] sm:$0xff] }
 0x5f0   :  { %v1061_v52 = vmul.f32 1.442695, %v1056_v48  ;;  %v1063_v57 = vmul.f32 1.442695, %v1057_v51 }
 0x5f1   :  { %v1054_v54 = vpop.xlane.xlu0 %1053  ;;  %v1090_v55 = vpop.permute.xlu1 %1089 }
 0x5f2   :  { %v1058_v56 = vsub.f32 %v1042_v39, %v1054_v54  ;;  %1893 = vmatprep.subr.mxu0 %v1090_v55  ;;  %1974 = vpow2.f32 %v1061_v52 }
 0x5f3   :  { %1894 = vmatpush3.msra.mxu0 %v1090_v55  ;;  %1976 = vpow2.f32 %v1059_v53 }
 0x5f4   :  { %v1065_v58 = vmul.f32 1.442695, %v1058_v56 }
 0x5f5   :  { %v1088_v4 = vpop.permute.xlu1 %1087  ;;  %v1177_v59 = vpop.permute.xlu0 %1176 }
 0x5f6   :  { %1978 = vpow2.f32 %v1065_v58  ;;  %1895 = vmatprep.subr.mxu0 %v1088_v4  ;;  %1900 = vmatprep.subr.mxu1 %v1177_v59 }
 0x5f7   :  { %1896 = vmatpush3.msra.mxu0 %v1088_v4  ;;  %1901 = vmatpush3.msra.mxu1 %v1177_v59  ;;  %1980 = vpow2.f32 %v1063_v57 }
 0x5f9   :  { %v1175_v0 = vpop.permute.xlu1 %1174  ;;  %v1289_v60 = vpop.permute.xlu0 %1288 }
 0x5fa   :  { %1902 = vmatprep.subr.mxu1 %v1175_v0  ;;  %1907 = vmatprep.subr.msk.mxu0 %vm37_vm0, %v1289_v60 }
 0x5fb   :  { %1903 = vmatpush3.msra.mxu1 %v1175_v0 }
 0x5fd   :  { %v1380_v61 = vpop.permute.xlu1 %1379 }
 0x5fe   :  { %1914 = vmatprep.subr.msk.mxu1 %vm37_vm0, %v1380_v61 }
 0x5ff   :  { %v1975_v62 = vpop.eup %1974 }
 0x600   :  { %v1070_v63 = vsel %vm37_vm0, %v1975_v62, 0.0  ;;  %v1977_v6 = vpop.eup %1976 }
 0x601   :  { %1071 = vadd.xlane.f32.xlu1 %v1070_v63  ;;  %v1067_v12 = vsel %vm37_vm0, %v1977_v6, 0.0 }
 0x603   :  { %v1979_v7 = vpop.eup %1978 }
 0x604   :  { %v1076_v8 = vsel %vm37_vm0, %v1979_v7, 0.0  ;;  %v1981_v9 = vpop.eup %1980 }
 0x605   :  { %1077 = vadd.xlane.f32.xlu0 %v1076_v8  ;;  %1068 = vadd.xlane.f32.xlu1 %v1067_v12  ;;  %v1073_v13 = vsel %vm37_vm0, %v1981_v9, 0.0 }
 0x609   :  { %1074 = vadd.xlane.f32.xlu0 %v1073_v13 }
 0x616   :  { %1377 = vrot.lane.b32.xlu1 %v2043_v2, %s2011_s21 }
 0x61a   :  { %1373 = vrot.lane.b32.xlu1 %v2054_v5, %s2012_s23 }
 0x61e   :  { %1375 = vrot.lane.b32.xlu1 %v2075_v11, %s2012_s23 }
 0x61f   :  { %1286 = vrot.lane.b32.xlu0 %v2036_v1, %s2011_s21 }
 0x623   :  { %1282 = vrot.lane.b32.xlu0 %v2046_v3, %s2012_s23 }
 0x627   :  { %1284 = vrot.lane.b32.xlu0 %v2067_v10, %s2012_s23 }
 0x68a   :  { %v1072_v14 = vpop.xlane.xlu1 %1071 }
 0x68b   :  { %1982 = vrcp.f32 %v1072_v14 }
 0x68e   :  { %v1078_v15 = vpop.xlane.xlu0 %1077  ;;  %v1069_v2 = vpop.xlane.xlu1 %1068 }
 0x68f   :  { %1984 = vrcp.f32 %v1069_v2 }
 0x690   :  { %1986 = vrcp.f32 %v1078_v15 }
 0x692   :  { %v1075_v16 = vpop.xlane.xlu0 %1074  ;;  %v1378_v18 = vpop.permute.xlu1 %1377 }
 0x693   :  { %1988 = vrcp.f32 %v1075_v16 }
 0x696   :  { %v1287_v5 = vpop.permute.xlu0 %1286  ;;  %v1374_v23 = vpop.permute.xlu1 %1373 }
 0x698   :  { %v1983_v17 = vpop.eup %1982 }
 0x699   :  { %v1084_v20 = vmul.f32 %v1983_v17, %v1975_v62 }
 0x69a   :  { %v1283_v21 = vpop.permute.xlu0 %1282  ;;  %v1376_v30 = vpop.permute.xlu1 %1375 }
 0x69c   :  { %v1985_v1 = vpop.eup %1984 }
 0x69d   :  { %v1083_v19 = vmul.f32 %v1985_v1, %v1977_v6  ;;  %v1987_v11 = vpop.eup %1986 }
 0x69e   :  { %v1086_v22 = vmul.f32 %v1987_v11, %v1979_v7  ;;  %v1285_v29 = vpop.permute.xlu0 %1284 }
 0x69f   :  { %1897 = vmatprep.mubr.msk.f32.mxu0 %vm37_vm0, %v1083_v19 }
 0x6a0   :  { %v1989_v3 = vpop.eup %1988  ;;  %1898 = vmatmul.mubr.msk.f32.vlgmr.msra.gmra.mxu0 %vm37_vm0, %v1084_v20 }
 0x6a1   :  { %v1085_v10 = vmul.f32 %v1989_v3, %v1981_v9  ;;  %1908 = vmatpush3.xpose.msk.msra.mxu0 %vm37_vm0, %v1289_v60  ;;  %1911 = vmatprep.mubr.msk.f32.mxu0 %vm37_vm0, %v1283_v21 }
 0x6a2   :  { %1909 = vmatprep.subr.msk.mxu0 %vm37_vm0, %v1287_v5 }
 0x6a3   :  { %1904 = vmatprep.mubr.msk.f32.mxu1 %vm37_vm0, %v1085_v10 }
 0x6a4   :  { %1905 = vmatmul.mubr.msk.f32.vlgmr.msra.gmra.mxu1 %vm37_vm0, %v1086_v22 }
 0x6a5   :  { %1915 = vmatpush3.xpose.msk.msra.mxu1 %vm37_vm0, %v1380_v61  ;;  %1918 = vmatprep.mubr.msk.f32.mxu1 %vm37_vm0, %v1374_v23 }
 0x6a6   :  { %1910 = vmatpush3.xpose.msk.msra.mxu0 %vm37_vm0, %v1287_v5  ;;  %1916 = vmatprep.subr.msk.mxu1 %vm37_vm0, %v1378_v18 }
 0x6a9   :  { %1912 = vmatmul.mubr.msk.f32.vlgmr.msra.gmra.mxu0 %vm37_vm0, %v1285_v29  ;;  %1917 = vmatpush3.xpose.msk.msra.mxu1 %vm37_vm0, %v1378_v18 }
 0x6ac   :  { %1919 = vmatmul.mubr.msk.f32.vlgmr.msra.gmra.mxu1 %vm37_vm0, %v1376_v30 }
 0x760   :  { %v1899_v32 = vpop.f32.mrf.mxu0 }
 0x762   :  { %v1165_v34 = vpop.f32.mrf.mxu0 }
 0x764   :  { %v1906_v33 = vpop.f32.mrf.mxu1 }
 0x766   :  { %v1252_v37 = vpop.f32.mrf.mxu1 }
 0x769   :  { %v1913_v35 = vpop.f32.mrf.mxu0 }
 0x76a   :  { %v1465_v42 = vadd.f32 %v1913_v35, %v26_v38 }
 0x76b   :  { %v1364_v39 = vpop.f32.mrf.mxu0 }
 0x76c   :  { %v1464_v40 = vadd.f32 %v1364_v39, %v25_v36  ;;  %v1920_v41 = vpop.f32.mrf.mxu1  ;;  %v1471_v48 = vsel %vm37_vm0, %v1465_v42, -inf }
 0x76d   :  { %v1467_v46 = vadd.f32 %v1920_v41, %v26_v38 }
 0x76e   :  { %v1455_v43 = vpop.f32.mrf.mxu1  ;;  %v1468_v44 = vsel %vm37_vm0, %v1464_v40, -inf }
 0x76f   :  { %v1466_v45 = vadd.f32 %v1455_v43, %v25_v36  ;;  %1469 = vmax.xlane.f32.xlu0 %v1468_v44  ;;  %v1477_v51 = vsel %vm37_vm0, %v1467_v46, -inf }
 0x771   :  { %v1474_v47 = vsel %vm37_vm0, %v1466_v45, -inf }
 0x772   :  { %1475 = vmax.xlane.f32.xlu1 %v1474_v47 }
 0x773   :  { %1472 = vmax.xlane.f32.xlu0 %v1471_v48 }
 0x777   :  { %1478 = vmax.xlane.f32.xlu0 %v1477_v51 }
 0x783   :  { %1514 = vrot.lane.b32.xlu1 %v2095_v26, %s2012_s23 }
 0x7f8   :  { %v1470_v52 = vpop.xlane.xlu0 %1469 }
 0x7f9   :  { %v1480_v53 = vsub.f32 %v1464_v40, %v1470_v52 }
 0x7fb   :  { %v1476_v54 = vpop.xlane.xlu1 %1475  ;;  %v1484_v57 = vmul.f32 1.442695, %v1480_v53 }
 0x7fc   :  { %v1473_v55 = vpop.xlane.xlu0 %1472  ;;  %v1482_v58 = vsub.f32 %v1466_v45, %v1476_v54 }
 0x7fd   :  { %v1481_v56 = vsub.f32 %v1465_v42, %v1473_v55 }
 0x7fe   :  { %v1488_v61 = vmul.f32 1.442695, %v1482_v58 }
 0x7ff   :  { %v1486_v4 = vmul.f32 1.442695, %v1481_v56  ;;  %v1515_v59 = vpop.permute.xlu1 %1514 }
 0x800   :  { %v1479_v0 = vpop.xlane.xlu0 %1478  ;;  %1921 = vmatprep.subr.mxu0 %v1515_v59 }
 0x801   :  { %1990 = vpow2.f32 %v1486_v4  ;;  %v1483_v60 = vsub.f32 %v1467_v46, %v1479_v0  ;;  %1922 = vmatpush3.msra.mxu0 %v1515_v59 }
 0x802   :  { %1992 = vpow2.f32 %v1484_v57 }
 0x803   :  { %v1490_v62 = vmul.f32 1.442695, %v1483_v60 }
 0x805   :  { %1994 = vpow2.f32 %v1490_v62 }
 0x806   :  { %1996 = vpow2.f32 %v1488_v61 }
 0x80e   :  { %v1991_v26 = vpop.eup %1990 }
 0x80f   :  { %v1495_v63 = vsel %vm37_vm0, %v1991_v26, 0.0  ;;  %v1993_v6 = vpop.eup %1992 }
 0x810   :  { %1496 = vadd.xlane.f32.xlu1 %v1495_v63  ;;  %v1492_v8 = vsel %vm37_vm0, %v1993_v6, 0.0 }
 0x812   :  { %v1995_v7 = vpop.eup %1994 }
 0x813   :  { %v1501_v9 = vsel %vm37_vm0, %v1995_v7, 0.0  ;;  %v1997_v12 = vpop.eup %1996 }
 0x814   :  { %1493 = vadd.xlane.f32.xlu1 %v1492_v8  ;;  %1502 = vadd.xlane.f32.xlu0 %v1501_v9  ;;  %v1498_v13 = vsel %vm37_vm0, %v1997_v12, 0.0 }
 0x818   :  { %1499 = vadd.xlane.f32.xlu0 %v1498_v13 }
 0x825   :  { %1512 = vrot.lane.b32.xlu1 %v2100_v27, %s2012_s23 }
 0x829   :  { %1599 = vrot.lane.b32.xlu1 %v2119_v50, %s2012_s23 }
 0x82d   :  { %842 = vrot.lane.b32.xlu1 %v2224_v24, %s2011_s21 }
 0x82e   :  { %1601 = vrot.lane.b32.xlu0 %v2114_v49, %s2012_s23 }
 0x831   :  { %846 = vrot.lane.b32.xlu1 %v2228_v28, %s2011_s21 }
 0x832   :  { %840 = vrot.lane.b32.xlu0 %v2226_v25, %s2011_s21 }
 0x835   :  { %1267 = vrot.lane.b32.xlu1 %v1899_v32, %s2009_s15 }
 0x836   :  { %844 = vrot.lane.b32.xlu0 %v2233_v31, %s2011_s21 }
 0x839   :  { %1271 = vrot.lane.b32.xlu1 %v1906_v33, %s2009_s15 }
 0x83a   :  { %1265 = vrot.lane.b32.xlu0 %v1165_v34, %s2009_s15 }
 0x83e   :  { %1269 = vrot.lane.b32.xlu0 %v1252_v37, %s2009_s15 }
 0x899   :  { %v1497_v27 = vpop.xlane.xlu1 %1496 }
 0x89a   :  { %1998 = vrcp.f32 %v1497_v27 }
 0x89d   :  { %v1494_v49 = vpop.xlane.xlu1 %1493  ;;  %v1503_v50 = vpop.xlane.xlu0 %1502 }
 0x89e   :  { %2000 = vrcp.f32 %v1494_v49 }
 0x89f   :  { %2002 = vrcp.f32 %v1503_v50 }
 0x8a1   :  { %v1513_v24 = vpop.permute.xlu1 %1512  ;;  %v1500_v28 = vpop.xlane.xlu0 %1499 }
 0x8a2   :  { %2004 = vrcp.f32 %v1500_v28  ;;  %1923 = vmatprep.subr.mxu0 %v1513_v24 }
 0x8a3   :  { %1924 = vmatpush3.msra.mxu0 %v1513_v24 }
 0x8a5   :  { %v1600_v25 = vpop.permute.xlu1 %1599  ;;  %v1602_v14 = vpop.permute.xlu0 %1601 }
 0x8a6   :  { %1928 = vmatprep.subr.mxu1 %v1602_v14 }
 0x8a7   :  { %1929 = vmatpush3.msra.mxu1 %v1602_v14  ;;  %v1999_v2 = vpop.eup %1998 }
 0x8a8   :  { %1930 = vmatprep.subr.mxu1 %v1600_v25  ;;  %v1509_v18 = vmul.f32 %v1999_v2, %v1991_v26 }
 0x8a9   :  { %v843_v31 = vpop.permute.xlu1 %842  ;;  %v841_v15 = vpop.permute.xlu0 %840  ;;  %1931 = vmatpush3.msra.mxu1 %v1600_v25 }
 0x8aa   :  { %854 = vst.msk [vmem:[%s2370_s2 + $0x8] sm:$0xff] %vm852_vm1, %v843_v31  ;;  %853 = vst.msk [vmem:[%s2370_s2] sm:$0xff] %vm852_vm1, %v841_v15 }
 0x8ab   :  { %v2001_v16 = vpop.eup %2000 }
 0x8ac   :  { %v1508_v5 = vmul.f32 %v2001_v16, %v1993_v6  ;;  %v2003_v19 = vpop.eup %2002 }
 0x8ad   :  { %v847_v17 = vpop.permute.xlu1 %846  ;;  %v845_v1 = vpop.permute.xlu0 %844  ;;  %v1511_v10 = vmul.f32 %v2003_v19, %v1995_v7 }
 0x8ae   :  { %856 = vst.msk [vmem:[%s2370_s2 + $0x18] sm:$0xff] %vm852_vm1, %v847_v17  ;;  %855 = vst.msk [vmem:[%s2370_s2 + $0x10] sm:$0xff] %vm852_vm1, %v845_v1  ;;  %1925 = vmatprep.mubr.msk.f32.mxu0 %vm37_vm0, %v1508_v5 }
 0x8af   :  { %v2005_v11 = vpop.eup %2004  ;;  %1926 = vmatmul.mubr.msk.f32.vlgmr.msra.gmra.mxu0 %vm37_vm0, %v1509_v18 }
 0x8b0   :  { %v1510_v20 = vmul.f32 %v2005_v11, %v1997_v12 }
 0x8b1   :  { %v1268_v21 = vpop.permute.xlu1 %1267  ;;  %v1266_v3 = vpop.permute.xlu0 %1265 }
 0x8b2   :  { %1279 = vst.msk [vmem:[%s2370_s2 + $0x8] sm:$0xff] %vm1277_vm2, %v1268_v21  ;;  %1278 = vst.msk [vmem:[%s2370_s2] sm:$0xff] %vm1277_vm2, %v1266_v3  ;;  %1932 = vmatprep.mubr.msk.f32.mxu1 %vm37_vm0, %v1510_v20 }
 0x8b3   :  { %1933 = vmatmul.mubr.msk.f32.vlgmr.msra.gmra.mxu1 %vm37_vm0, %v1511_v10 }
 0x8b5   :  { %v1272_v22 = vpop.permute.xlu1 %1271  ;;  %v1270_v23 = vpop.permute.xlu0 %1269 }
 0x8b6   :  { %1281 = vst.msk [vmem:[%s2370_s2 + $0x18] sm:$0xff] %vm1277_vm2, %v1272_v22  ;;  %1280 = vst.msk [vmem:[%s2370_s2 + $0x10] sm:$0xff] %vm1277_vm2, %v1270_v23 }
 0x96f   :  { %v1927_v29 = vpop.f32.mrf.mxu0 }
 0x970   :  { %1692 = vrot.lane.b32.xlu1 %v1927_v29, %s2007_s22 }
 0x971   :  { %v1590_v30 = vpop.f32.mrf.mxu0 }
 0x972   :  { %1690 = vrot.lane.b32.xlu0 %v1590_v30, %s2007_s22 }
 0x973   :  { %v1934_v32 = vpop.f32.mrf.mxu1 }
 0x974   :  { %1696 = vrot.lane.b32.xlu1 %v1934_v32, %s2007_s22 }
 0x975   :  { %v1677_v33 = vpop.f32.mrf.mxu1 }
 0x976   :  { %1694 = vrot.lane.b32.xlu0 %v1677_v33, %s2007_s22 }
 0x9e2   :  { %v1693_v34 = vpop.permute.xlu1 %1692 }
 0x9e3   :  { %1704 = vst.msk [vmem:[%s2370_s2 + $0x8] sm:$0xff] %vm1702_vm3, %v1693_v34 }
 0x9e4   :  { %v1691_v35 = vpop.permute.xlu0 %1690 }
 0x9e5   :  { %1703 = vst.msk [vmem:[%s2370_s2] sm:$0xff] %vm1702_vm3, %v1691_v35 }
 0x9e6   :  { %v1697_v36 = vpop.permute.xlu1 %1696 }
 0x9e7   :  { %1706 = vst.msk [vmem:[%s2370_s2 + $0x18] sm:$0xff] %vm1702_vm3, %v1697_v36 }
 0x9e8   :  { %v1695_v37 = vpop.permute.xlu0 %1694 }
 0x9e9   :  { %1705 = vst.msk [vmem:[%s2370_s2 + $0x10] sm:$0xff] %vm1702_vm3, %v1695_v37 }

// kernel: encoder_rgbt_swin.54
= control target key start
LH: loop header
LB: loop body
LE: loop exit
PB: predicated region body
PF: predicated region fallthrough
CT: control target
= control target key end

     0   :  { %vm32_vm0 = vcmask 523264   ;;  %v515_v36 = vmov 0.0   ;;  %s821_s0 = inlined_call_operand.vmem [shape: f32[32,64], index: 0, kind: input, shape index: {}]   ;;  %s822_s3 = inlined_call_operand.vmem [shape: f32[64,256], index: 3, kind: input, shape index: {}]   ;;  %s823_s1 = inlined_call_operand.vmem [shape: f32[1,64], index: 1, kind: input, shape index: {}]   ;;  %s824_s2 = inlined_call_operand.vmem [shape: f32[1,64], index: 2, kind: input, shape index: {}, may-alias: {2,6}]   ;;  %s825_s5 = inlined_call_operand.vmem [shape: f32[256,64], index: 5, kind: input, shape index: {}]   ;;  %s826_s4 = inlined_call_operand.vmem [shape: f32[1,256], index: 4, kind: input, shape index: {}]   ;;  %s827_s6 = inlined_call_operand.vmem [shape: f32[1,64], index: 6, kind: input, shape index: {}, may-alias: {2,6}]   ;;  %s828_s7 = inlined_call_operand.vmem [shape: f32[32,64], index: 7, kind: output, shape index: {}]  }
   0x1   :  { %v26_v0 = vld [vmem:[%s821_s0] sm:$0xff]  ;;  %v28_v1 = vld [vmem:[%s821_s0 + $0x10] sm:$0xff]  ;;  %v27_v2 = vld [vmem:[%s821_s0 + $0x8] sm:$0xff]  ;;  %210 = vmatprep.mubr.f32.mxu0 %v515_v36 }
   0x2   :  { %v33_v3 = vsel %vm32_vm0, %v26_v0, 0.0  ;;  %v39_v4 = vsel %vm32_vm0, %v28_v1, 0.0  ;;  %v29_v5 = vld [vmem:[%s821_s0 + $0x18] sm:$0xff]  ;;  %v36_v6 = vsel %vm32_vm0, %v27_v2, 0.0  ;;  %v120_v29 = vld [vmem:[%s822_s3 + $0x70] sm:$0xff]  ;;  %v119_v30 = vld [vmem:[%s822_s3 + $0x68] sm:$0xff] }
   0x3   :  { %34 = vadd.xlane.f32.xlu0 %v33_v3  ;;  %40 = vadd.xlane.f32.xlu1 %v39_v4  ;;  %v42_v7 = vsel %vm32_vm0, %v29_v5, 0.0  ;;  %v121_v28 = vld [vmem:[%s822_s3 + $0x78] sm:$0xff]  ;;  %v118_v31 = vld [vmem:[%s822_s3 + $0x60] sm:$0xff]  ;;  %v116_v33 = vld [vmem:[%s822_s3 + $0x50] sm:$0xff] }
   0x4   :  { %162 = vmatprep.subr.mxu0 %v121_v28  ;;  %v117_v32 = vld [vmem:[%s822_s3 + $0x58] sm:$0xff]  ;;  %v115_v34 = vld [vmem:[%s822_s3 + $0x48] sm:$0xff]  ;;  %v114_v35 = vld [vmem:[%s822_s3 + $0x40] sm:$0xff] }
   0x5   :  { %163 = vmatpush1.msra.mxu0 %v120_v29  ;;  %v113_v37 = vld [vmem:[%s822_s3 + $0x38] sm:$0xff]  ;;  %v112_v38 = vld [vmem:[%s822_s3 + $0x30] sm:$0xff]  ;;  %v111_v39 = vld [vmem:[%s822_s3 + $0x28] sm:$0xff] }
   0x6   :  { %164 = vmatprep.subr.mxu0 %v119_v30  ;;  %v110_v40 = vld [vmem:[%s822_s3 + $0x20] sm:$0xff]  ;;  %v109_v41 = vld [vmem:[%s822_s3 + $0x18] sm:$0xff]  ;;  %v108_v42 = vld [vmem:[%s822_s3 + $0x10] sm:$0xff] }
   0x7   :  { %37 = vadd.xlane.f32.xlu0 %v36_v6  ;;  %43 = vadd.xlane.f32.xlu1 %v42_v7  ;;  %v107_v43 = vld [vmem:[%s822_s3 + $0x8] sm:$0xff]  ;;  %v106_v44 = vld [vmem:[%s822_s3] sm:$0xff]  ;;  %v314_v28 = vld [vmem:[%s825_s5 + $0x38] sm:$0xff] }
   0x8   :  { %165 = vmatpush1.msra.mxu0 %v118_v31  ;;  %v439_v58 = vld [vmem:[%s823_s1] ss:$0 sm:$0xff]  ;;  %v329_v29 = vld [vmem:[%s825_s5 + $0xb0] sm:$0xff]  ;;  %v328_v31 = vld [vmem:[%s825_s5 + $0xa8] sm:$0xff] }
   0x9   :  { %166 = vmatprep.subr.mxu0 %v117_v32  ;;  %v440_v60 = vld [vmem:[%s824_s2] ss:$0 sm:$0xff]  ;;  %v313_v30 = vld [vmem:[%s825_s5 + $0x30] sm:$0xff]  ;;  %v312_v32 = vld [vmem:[%s825_s5 + $0x28] sm:$0xff] }
   0xa   :  { %167 = vmatpush1.msra.mxu0 %v116_v33  ;;  %v327_v33 = vld [vmem:[%s825_s5 + $0xa0] sm:$0xff] }
   0xb   :  { %168 = vmatprep.subr.mxu0 %v115_v34  ;;  %v311_v34 = vld [vmem:[%s825_s5 + $0x20] sm:$0xff] }
   0xc   :  { %169 = vmatpush1.msra.mxu0 %v114_v35  ;;  %v326_v35 = vld [vmem:[%s825_s5 + $0x98] sm:$0xff] }
   0xd   :  { %170 = vmatprep.subr.mxu0 %v113_v37  ;;  %v325_v37 = vld [vmem:[%s825_s5 + $0x90] sm:$0xff] }
   0xe   :  { %171 = vmatpush1.msra.mxu0 %v112_v38  ;;  %v309_v38 = vld [vmem:[%s825_s5 + $0x10] sm:$0xff] }
   0xf   :  { %172 = vmatprep.subr.mxu0 %v111_v39  ;;  %v324_v39 = vld [vmem:[%s825_s5 + $0x88] sm:$0xff] }
  0x10   :  { %173 = vmatpush1.msra.mxu0 %v110_v40  ;;  %v308_v40 = vld [vmem:[%s825_s5 + $0x8] sm:$0xff] }
  0x11   :  { %174 = vmatprep.subr.mxu0 %v109_v41  ;;  %v323_v41 = vld [vmem:[%s825_s5 + $0x80] sm:$0xff] }
  0x12   :  { %175 = vmatpush1.msra.mxu0 %v108_v42  ;;  %v307_v42 = vld [vmem:[%s825_s5] sm:$0xff] }
  0x13   :  { %176 = vmatprep.subr.mxu0 %v107_v43  ;;  %v124_v43 = vlaneseq }
  0x14   :  { %177 = vmatpush1.msra.mxu0 %v106_v44 }
  0x15   :  { %v125_v44 = vshrl.u32 %v124_v43, 7 }
  0x8c   :  { %v35_v8 = vpop.xlane.xlu0 %34  ;;  %v41_v9 = vpop.xlane.xlu1 %40 }
  0x8d   :  { %v46_v10 = vmul.f32 0.015625, %v35_v8  ;;  %v48_v11 = vmul.f32 0.015625, %v41_v9 }
  0x8f   :  { %v572_v12 = vsub.f32 %v26_v0, %v46_v10  ;;  %v574_v13 = vsub.f32 %v28_v1, %v48_v11  ;;  %v338_v11 = vld [vmem:[%s825_s5 + $0xf8] sm:$0xff] }
  0x90   :  { %v38_v14 = vpop.xlane.xlu0 %37  ;;  %v44_v15 = vpop.xlane.xlu1 %43  ;;  %446 = vmatprep.subr.mxu1 %v338_v11 }
  0x91   :  { %v47_v16 = vmul.f32 0.015625, %v38_v14  ;;  %v49_v17 = vmul.f32 0.015625, %v44_v15  ;;  %v54_v18 = vmul.f32 %v572_v12, %v572_v12  ;;  %v56_v19 = vmul.f32 %v574_v13, %v574_v13  ;;  %v321_v14 = vld [vmem:[%s825_s5 + $0x70] sm:$0xff]  ;;  %v336_v15 = vld [vmem:[%s825_s5 + $0xe8] sm:$0xff] }
  0x93   :  { %v580_v20 = vsub.f32 %v27_v2, %v47_v16  ;;  %v582_v21 = vsub.f32 %v29_v5, %v49_v17  ;;  %v58_v22 = vsel %vm32_vm0, %v54_v18, 0.0  ;;  %v64_v23 = vsel %vm32_vm0, %v56_v19, 0.0  ;;  %v320_v16 = vld [vmem:[%s825_s5 + $0x68] sm:$0xff]  ;;  %v335_v17 = vld [vmem:[%s825_s5 + $0xe0] sm:$0xff]  ;;  %v334_v19 = vld [vmem:[%s825_s5 + $0xd8] sm:$0xff] }
  0x94   :  { %59 = vadd.xlane.f32.xlu0 %v58_v22  ;;  %v319_v18 = vld [vmem:[%s825_s5 + $0x60] sm:$0xff]  ;;  %v317_v22 = vld [vmem:[%s825_s5 + $0x50] sm:$0xff] }
  0x95   :  { %v55_v24 = vmul.f32 %v580_v20, %v580_v20  ;;  %v57_v25 = vmul.f32 %v582_v21, %v582_v21 }
  0x97   :  { %v61_v26 = vsel %vm32_vm0, %v55_v24, 0.0  ;;  %v67_v27 = vsel %vm32_vm0, %v57_v25, 0.0  ;;  %v316_v24 = vld [vmem:[%s825_s5 + $0x48] sm:$0xff]  ;;  %v331_v25 = vld [vmem:[%s825_s5 + $0xc0] sm:$0xff] }
  0x98   :  { %65 = vadd.xlane.f32.xlu0 %v64_v23  ;;  %62 = vadd.xlane.f32.xlu1 %v61_v26  ;;  %v332_v23 = vld [vmem:[%s825_s5 + $0xc8] sm:$0xff]  ;;  %v315_v26 = vld [vmem:[%s825_s5 + $0x40] sm:$0xff] }
  0x9c   :  { %68 = vadd.xlane.f32.xlu1 %v67_v27  ;;  %v330_v27 = vld [vmem:[%s825_s5 + $0xb8] sm:$0xff] }
 0x11d   :  { %v60_v45 = vpop.xlane.xlu0 %59 }
 0x11e   :  { %v70_v46 = vmul.f32 0.015625, %v60_v45  ;;  %v126_v45 = vsub.s32 0, %v125_v44 }
 0x120   :  { %v74_v47 = vadd.f32 1e-05, %v70_v46  ;;  %v122_v46 = vld [vmem:[%s826_s4] sm:$0x3] }
 0x121   :  { %v63_v48 = vpop.xlane.xlu1 %62  ;;  %v66_v49 = vpop.xlane.xlu0 %65 }
 0x122   :  { %491 = vrsqrt.f32 %v74_v47  ;;  %v71_v50 = vmul.f32 0.015625, %v63_v48  ;;  %v72_v51 = vmul.f32 0.015625, %v66_v49  ;;  %v130_v47 = vsub.s32 1, %v125_v44 }
 0x123   :  { %v127_v48 = vrot.slane %v122_v46, %v126_v45 }
 0x124   :  { %v75_v52 = vadd.f32 1e-05, %v71_v50  ;;  %v76_v53 = vadd.f32 1e-05, %v72_v51  ;;  %v131_v49 = vrot.slane %v122_v46, %v130_v47 }
 0x125   :  { %v69_v54 = vpop.xlane.xlu1 %68 }
 0x126   :  { %493 = vrsqrt.f32 %v75_v52  ;;  %v73_v55 = vmul.f32 0.015625, %v69_v54 }
 0x127   :  { %495 = vrsqrt.f32 %v76_v53 }
 0x128   :  { %v77_v56 = vadd.f32 1e-05, %v73_v55 }
 0x12a   :  { %497 = vrsqrt.f32 %v77_v56 }
 0x12f   :  { %v492_v57 = vpop.eup %491 }
 0x130   :  { %v82_v59 = vmul.f32 %v492_v57, %v572_v12  ;;  %v322_v12 = vld [vmem:[%s825_s5 + $0x78] sm:$0xff] }
 0x131   :  { %447 = vmatpush3.msra.mxu1 %v322_v12 }
 0x132   :  { %v92_v61 = vmul.f32 %v439_v58, %v82_v59 }
 0x133   :  { %v494_v62 = vpop.eup %493 }
 0x134   :  { %v496_v63 = vpop.eup %495  ;;  %v102_v0 = vadd.f32 %v440_v60, %v92_v61  ;;  %v83_v1 = vmul.f32 %v494_v62, %v580_v20  ;;  %v318_v20 = vld [vmem:[%s825_s5 + $0x58] sm:$0xff] }
 0x135   :  { %v84_v2 = vmul.f32 %v496_v63, %v574_v13  ;;  %v337_v13 = vld [vmem:[%s825_s5 + $0xf0] sm:$0xff] }
 0x136   :  { %441 = vmatmul.mubr.msk.f32.vlgmr.msra.gmra.mxu0 %vm32_vm0, %v102_v0  ;;  %v93_v3 = vmul.f32 %v439_v58, %v83_v1  ;;  %448 = vmatprep.subr.mxu1 %v337_v13 }
 0x137   :  { %v498_v4 = vpop.eup %497  ;;  %216 = vmatprep.mubr.f32.mxu0 %v515_v36  ;;  %v94_v6 = vmul.f32 %v439_v58, %v84_v2  ;;  %449 = vmatpush3.msra.mxu1 %v321_v14 }
 0x138   :  { %v103_v5 = vadd.f32 %v440_v60, %v93_v3  ;;  %v85_v7 = vmul.f32 %v498_v4, %v582_v21  ;;  %450 = vmatprep.subr.mxu1 %v336_v15  ;;  %v333_v21 = vld [vmem:[%s825_s5 + $0xd0] sm:$0xff] }
 0x139   :  { %v104_v8 = vadd.f32 %v440_v60, %v94_v6  ;;  %451 = vmatpush3.msra.mxu1 %v320_v16 }
 0x13a   :  { %442 = vmatmul.mubr.msk.f32.gmra.mxu0 %vm32_vm0, %v103_v5  ;;  %v95_v9 = vmul.f32 %v439_v58, %v85_v7  ;;  %452 = vmatprep.subr.mxu1 %v335_v17 }
 0x13b   :  { %222 = vmatprep.mubr.f32.mxu0 %v515_v36  ;;  %453 = vmatpush3.msra.mxu1 %v319_v18 }
 0x13c   :  { %v105_v10 = vadd.f32 %v440_v60, %v95_v9  ;;  %454 = vmatprep.subr.mxu1 %v334_v19 }
 0x13d   :  { %455 = vmatpush3.msra.mxu1 %v318_v20 }
 0x13e   :  { %443 = vmatmul.mubr.msk.f32.gmra.mxu0 %vm32_vm0, %v104_v8  ;;  %456 = vmatprep.subr.mxu1 %v333_v21 }
 0x13f   :  { %228 = vmatprep.mubr.f32.mxu0 %v515_v36  ;;  %457 = vmatpush3.msra.mxu1 %v317_v22  ;;  %v310_v36 = vld [vmem:[%s825_s5 + $0x18] sm:$0xff] }
 0x140   :  { %458 = vmatprep.subr.mxu1 %v332_v23 }
 0x141   :  { %459 = vmatpush3.msra.mxu1 %v316_v24 }
 0x142   :  { %444 = vmatmul.mubr.msk.f32.gmra.mxu0 %vm32_vm0, %v105_v10  ;;  %460 = vmatprep.subr.mxu1 %v331_v25 }
 0x143   :  { %461 = vmatpush3.msra.mxu1 %v315_v26 }
 0x144   :  { %462 = vmatprep.subr.mxu1 %v330_v27 }
 0x145   :  { %463 = vmatpush3.msra.mxu1 %v314_v28 }
 0x146   :  { %464 = vmatprep.subr.mxu1 %v329_v29 }
 0x147   :  { %465 = vmatpush3.msra.mxu1 %v313_v30 }
 0x148   :  { %466 = vmatprep.subr.mxu1 %v328_v31 }
 0x149   :  { %467 = vmatpush3.msra.mxu1 %v312_v32 }
 0x14a   :  { %468 = vmatprep.subr.mxu1 %v327_v33 }
 0x14b   :  { %469 = vmatpush3.msra.mxu1 %v311_v34 }
 0x14c   :  { %470 = vmatprep.subr.mxu1 %v326_v35 }
 0x14d   :  { %471 = vmatpush3.msra.mxu1 %v310_v36 }
 0x14e   :  { %472 = vmatprep.subr.mxu1 %v325_v37 }
 0x14f   :  { %473 = vmatpush3.msra.mxu1 %v309_v38 }
 0x150   :  { %474 = vmatprep.subr.mxu1 %v324_v39 }
 0x151   :  { %475 = vmatpush3.msra.mxu1 %v308_v40 }
 0x152   :  { %476 = vmatprep.subr.mxu1 %v323_v41 }
 0x153   :  { %477 = vmatpush3.msra.mxu1 %v307_v42 }
 0x1f6   :  { %v212_v50 = vpop.f32.mrf.mxu0 }
 0x1f7   :  { %v753_v51 = vadd.f32 %v212_v50, %v127_v48 }
 0x1f8   :  { %v214_v52 = vpop.f32.mrf.mxu0 }
 0x1f9   :  { %v235_v53 = vmul.f32 %v753_v51, %v753_v51  ;;  %v757_v54 = vadd.f32 %v214_v52, %v131_v49 }
 0x1fa   :  { %v218_v55 = vpop.f32.mrf.mxu0 }
 0x1fb   :  { %v243_v56 = vmul.f32 %v235_v53, %v753_v51  ;;  %v236_v57 = vmul.f32 %v757_v54, %v757_v54  ;;  %v762_v58 = vadd.f32 %v218_v55, %v127_v48 }
 0x1fc   :  { %v220_v59 = vpop.f32.mrf.mxu0 }
 0x1fd   :  { %v251_v60 = vmul.f32 0.044715, %v243_v56  ;;  %v244_v61 = vmul.f32 %v236_v57, %v757_v54  ;;  %v237_v62 = vmul.f32 %v762_v58, %v762_v58  ;;  %v767_v63 = vadd.f32 %v220_v59, %v131_v49 }
 0x1fe   :  { %v224_v0 = vpop.f32.mrf.mxu0 }
 0x1ff   :  { %v259_v1 = vadd.f32 %v251_v60, %v753_v51  ;;  %v245_v2 = vmul.f32 %v237_v62, %v762_v58  ;;  %v238_v3 = vmul.f32 %v767_v63, %v767_v63  ;;  %v773_v4 = vadd.f32 %v224_v0, %v127_v48 }
 0x200   :  { %v226_v5 = vpop.f32.mrf.mxu0  ;;  %v252_v6 = vmul.f32 0.044715, %v244_v61 }
 0x201   :  { %v267_v7 = vmul.f32 0.7978846, %v259_v1  ;;  %v253_v8 = vmul.f32 0.044715, %v245_v2  ;;  %v246_v9 = vmul.f32 %v238_v3, %v767_v63  ;;  %v239_v10 = vmul.f32 %v773_v4, %v773_v4 }
 0x202   :  { %v778_v11 = vadd.f32 %v226_v5, %v131_v49  ;;  %v230_v12 = vpop.f32.mrf.mxu0  ;;  %v260_v13 = vadd.f32 %v252_v6, %v757_v54 }
 0x203   :  { %499 = vtanh.f32 %v267_v7  ;;  %v261_v14 = vadd.f32 %v253_v8, %v762_v58  ;;  %v254_v15 = vmul.f32 0.044715, %v246_v9  ;;  %v247_v16 = vmul.f32 %v239_v10, %v773_v4 }
 0x204   :  { %v240_v17 = vmul.f32 %v778_v11, %v778_v11  ;;  %v785_v18 = vadd.f32 %v230_v12, %v127_v48  ;;  %v232_v19 = vpop.f32.mrf.mxu0  ;;  %v268_v20 = vmul.f32 0.7978846, %v260_v13  ;;  %v445_v13 = vld [vmem:[%s827_s6] ss:$0 sm:$0xff] }
 0x205   :  { %v269_v21 = vmul.f32 0.7978846, %v261_v14  ;;  %v262_v22 = vadd.f32 %v254_v15, %v767_v63  ;;  %v255_v23 = vmul.f32 0.044715, %v247_v16  ;;  %v233_v24 = vadd.f32 %v232_v19, %v131_v49 }
 0x206   :  { %v248_v25 = vmul.f32 %v240_v17, %v778_v11  ;;  %v241_v26 = vmul.f32 %v785_v18, %v785_v18  ;;  %501 = vtanh.f32 %v268_v20 }
 0x207   :  { %503 = vtanh.f32 %v269_v21  ;;  %v270_v27 = vmul.f32 0.7978846, %v262_v22  ;;  %v263_v28 = vadd.f32 %v255_v23, %v773_v4  ;;  %v242_v29 = vmul.f32 %v233_v24, %v233_v24 }
 0x208   :  { %v256_v30 = vmul.f32 0.044715, %v248_v25  ;;  %v249_v31 = vmul.f32 %v241_v26, %v785_v18 }
 0x209   :  { %505 = vtanh.f32 %v270_v27  ;;  %v271_v32 = vmul.f32 0.7978846, %v263_v28  ;;  %v250_v33 = vmul.f32 %v242_v29, %v233_v24 }
 0x20a   :  { %v264_v34 = vadd.f32 %v256_v30, %v778_v11  ;;  %v257_v35 = vmul.f32 0.044715, %v249_v31 }
 0x20b   :  { %507 = vtanh.f32 %v271_v32  ;;  %v258_v36 = vmul.f32 0.044715, %v250_v33 }
 0x20c   :  { %v272_v37 = vmul.f32 0.7978846, %v264_v34  ;;  %v265_v38 = vadd.f32 %v257_v35, %v785_v18 }
 0x20d   :  { %v266_v39 = vadd.f32 %v258_v36, %v233_v24 }
 0x20e   :  { %509 = vtanh.f32 %v272_v37  ;;  %v273_v40 = vmul.f32 0.7978846, %v265_v38 }
 0x20f   :  { %v274_v41 = vmul.f32 0.7978846, %v266_v39 }
 0x210   :  { %v500_v42 = vpop.eup %499  ;;  %511 = vtanh.f32 %v273_v40 }
 0x211   :  { %513 = vtanh.f32 %v274_v41  ;;  %v283_v43 = vadd.f32 1.0, %v500_v42 }
 0x213   :  { %v502_v44 = vpop.eup %501  ;;  %v291_v47 = vmul.f32 0.5, %v283_v43 }
 0x214   :  { %v504_v45 = vpop.eup %503  ;;  %v284_v46 = vadd.f32 1.0, %v502_v44 }
 0x215   :  { %v285_v48 = vadd.f32 1.0, %v504_v45  ;;  %v299_v56 = vmul.f32 %v291_v47, %v753_v51 }
 0x216   :  { %v506_v49 = vpop.eup %505  ;;  %v292_v50 = vmul.f32 0.5, %v284_v46 }
 0x217   :  { %v286_v52 = vadd.f32 1.0, %v506_v49  ;;  %v293_v59 = vmul.f32 0.5, %v285_v48 }
 0x218   :  { %v508_v53 = vpop.eup %507  ;;  %v300_v55 = vmul.f32 %v292_v50, %v757_v54 }
 0x219   :  { %v294_v57 = vmul.f32 0.5, %v286_v52  ;;  %v287_v60 = vadd.f32 1.0, %v508_v53  ;;  %v301_v2 = vmul.f32 %v293_v59, %v762_v58 }
 0x21a   :  { %410 = vmatprep.mubr.f32.mxu1 %v300_v55 }
 0x21b   :  { %v510_v61 = vpop.eup %509  ;;  %411 = vmatmul.mubr.f32.vlgmr.msra.gmra.mxu1 %v299_v56  ;;  %v302_v62 = vmul.f32 %v294_v57, %v767_v63  ;;  %v295_v3 = vmul.f32 0.5, %v287_v60 }
 0x21c   :  { %v288_v0 = vadd.f32 1.0, %v510_v61 }
 0x21d   :  { %v512_v1 = vpop.eup %511  ;;  %415 = vmatprep.mubr.f32.mxu1 %v302_v62  ;;  %v303_v8 = vmul.f32 %v295_v3, %v773_v4 }
 0x21e   :  { %v514_v5 = vpop.eup %513  ;;  %v296_v6 = vmul.f32 0.5, %v288_v0  ;;  %v289_v7 = vadd.f32 1.0, %v512_v1 }
 0x21f   :  { %416 = vmatmul.mubr.f32.gmra.mxu1 %v301_v2  ;;  %v290_v54 = vadd.f32 1.0, %v514_v5 }
 0x220   :  { %v304_v51 = vmul.f32 %v296_v6, %v778_v11  ;;  %v297_v10 = vmul.f32 0.5, %v289_v7 }
 0x221   :  { %v298_v9 = vmul.f32 0.5, %v290_v54 }
 0x222   :  { %420 = vmatprep.mubr.f32.mxu1 %v304_v51  ;;  %v305_v12 = vmul.f32 %v297_v10, %v785_v18 }
 0x223   :  { %421 = vmatmul.mubr.f32.gmra.mxu1 %v303_v8  ;;  %v306_v63 = vmul.f32 %v298_v9, %v233_v24 }
 0x225   :  { %425 = vmatprep.mubr.f32.mxu1 %v306_v63 }
 0x227   :  { %426 = vmatmul.mubr.f32.gmra.mxu1 %v305_v12 }
 0x2db   :  { %v478_v58 = vpop.f32.mrf.mxu1 }
 0x2dd   :  { %v479_v14 = vpop.f32.mrf.mxu1 }
 0x2de   :  { %v480_v15 = vadd.f32 %v479_v14, %v478_v58 }
 0x2df   :  { %v481_v16 = vpop.f32.mrf.mxu1 }
 0x2e0   :  { %v413_v11 = vadd.f32 %v480_v15, %v445_v13 }
 0x2e1   :  { %v482_v17 = vpop.f32.mrf.mxu1 }
 0x2e2   :  { %431 = vst.msk [vmem:[%s828_s7] sm:$0xff] %vm32_vm0, %v413_v11  ;;  %v483_v4 = vadd.f32 %v482_v17, %v481_v16 }
 0x2e3   :  { %v484_v19 = vpop.f32.mrf.mxu1 }
 0x2e4   :  { %v418_v20 = vadd.f32 %v483_v4, %v445_v13 }
 0x2e5   :  { %v485_v18 = vpop.f32.mrf.mxu1 }
 0x2e6   :  { %432 = vst.msk [vmem:[%s828_s7 + $0x8] sm:$0xff] %vm32_vm0, %v418_v20  ;;  %v486_v21 = vadd.f32 %v485_v18, %v484_v19 }
 0x2e7   :  { %v487_v22 = vpop.f32.mrf.mxu1 }
 0x2e8   :  { %v423_v23 = vadd.f32 %v486_v21, %v445_v13 }
 0x2e9   :  { %v488_v24 = vpop.f32.mrf.mxu1 }
 0x2ea   :  { %433 = vst.msk [vmem:[%s828_s7 + $0x10] sm:$0xff] %vm32_vm0, %v423_v23  ;;  %v489_v25 = vadd.f32 %v488_v24, %v487_v22 }
 0x2ec   :  { %v428_v26 = vadd.f32 %v489_v25, %v445_v13 }
 0x2ee   :  { %434 = vst.msk [vmem:[%s828_s7 + $0x18] sm:$0xff] %vm32_vm0, %v428_v26 }

</bundles_post_ra>
